<compile_context>
chip_gen: v5e
topology: v5e:2x2
jax: 0.10.0
libtpu: 0.0.40
codegen_flags: <defaults>
</compile_context>

<pallas_src>
import jax
import jax.numpy as jnp
from jax import lax
from jax.experimental import pallas as pl
from jax.experimental.pallas import tpu as pltpu


# ----------------------------------------------------------------------------
# Fused conv/pool pipeline: one grid step per image, everything in VMEM.
# ----------------------------------------------------------------------------
def _encoder_features_kernel(xp_ref, w1_ref, b1_ref, w2_ref, b2_ref,
                             w3_ref, b3_ref, o_ref,
                             p1_ref, p2_ref, imc2_ref, imc3_ref,
                             h2_ref, h3_ref):
    # xp_ref : (1, 3, 242, 81)  phase-split input, xp[p, h, w'] = x[h, 3*w' + p]
    # w1_ref : (32, 9)    conv1 weight  [c_out, 3*ky + kx]
    # b1_ref : (32, 1)
    # w2_ref : (288, 64)  conv2 weight  [(3*ky+kx)*32 + c_in, c_out]
    # b2_ref : (1, 64)
    # w3_ref : (576, 128) conv3 weight  [(3*ky+kx)*64 + c_in, c_out]
    # b3_ref : (1, 128)
    # o_ref  : (1, 64, 128) flattened pool3 output, row = 8*h + w, lane = c
    # scratch: p1 (80,80,32) pool1 HWC | p2 (26,26,64) pool2 HWC
    #          imc2 (78,288) / imc3 (24,576) im2col row buffers
    #          h2 (78,64) / h3 (24,128) vertically-pooled conv-row bounce bufs

    # ----------------- stage 1: conv1 + maxpool1 (VPU taps) -----------------
    w1c = [w1_ref[:, pl.ds(k, 1)] for k in range(9)]          # nine (32, 1)
    b1v = b1_ref[...]                                         # (32, 1)

    def s1_body(hp, carry):
        best = None
        for py in range(3):                                   # pool row phase
            for px in range(3):                               # pool col phase
                acc = None
                for dy in range(3):                           # conv taps
                    for dx in range(3):
                        q = px + dx                           # 0..4
                        row = 3 * hp + py + dy
                        xrow = xp_ref[0, q % 3, pl.ds(row, 1),
                                      pl.ds(q // 3, 80)]      # (1, 80)
                        term = xrow * w1c[3 * dy + dx]        # -> (32, 80)
                        acc = term if acc is None else acc + term
                best = acc if best is None else jnp.maximum(best, acc)
        # (32, 80) [c, w] -> (80, 32) [w, c]; bias commutes with max
        p1_ref[hp] = jnp.transpose(best + b1v, (1, 0))
        return carry

    lax.fori_loop(0, 80, s1_body, 0)

    # ------------ stage 2: conv2 + maxpool2 (MXU, K = 288 im2col) ------------
    b2v = b2_ref[...]                                         # (1, 64)

    def conv2_row(r):
        for dy in range(3):
            for dx in range(3):
                imc2_ref[:, pl.ds(32 * (3 * dy + dx), 32)] = (
                    p1_ref[r + dy, pl.ds(dx, 78), :])
        return jnp.dot(imc2_ref[...], w2_ref[...],
                       preferred_element_type=jnp.float32)    # (78, 64)

    def s2_body(hp, carry):
        r0 = 3 * hp
        v = jnp.maximum(jnp.maximum(conv2_row(r0), conv2_row(r0 + 1)),
                        conv2_row(r0 + 2))
        h2_ref[...] = v
        m = jnp.maximum(jnp.maximum(h2_ref[pl.ds(0, 26, 3), :],
                                    h2_ref[pl.ds(1, 26, 3), :]),
                        h2_ref[pl.ds(2, 26, 3), :])
        p2_ref[hp] = m + b2v
        return carry

    lax.fori_loop(0, 26, s2_body, 0)

    # ------- stage 3: conv3 + maxpool3 (K = 576 im2col) + flatten store -------
    b3v = b3_ref[...]                                         # (1, 128)

    def conv3_row(r):
        for dy in range(3):
            for dx in range(3):
                imc3_ref[:, pl.ds(64 * (3 * dy + dx), 64)] = (
                    p2_ref[r + dy, pl.ds(dx, 24), :])
        return jnp.dot(imc3_ref[...], w3_ref[...],
                       preferred_element_type=jnp.float32)    # (24, 128)

    def s3_body(hp, carry):
        r0 = 3 * hp
        v = jnp.maximum(jnp.maximum(conv3_row(r0), conv3_row(r0 + 1)),
                        conv3_row(r0 + 2))
        h3_ref[...] = v
        m = jnp.maximum(jnp.maximum(h3_ref[pl.ds(0, 8, 3), :],
                                    h3_ref[pl.ds(1, 8, 3), :]),
                        h3_ref[pl.ds(2, 8, 3), :])
        o_ref[0, pl.ds(pl.multiple_of(8 * hp, 8), 8), :] = m + b3v
        return carry

    lax.fori_loop(0, 8, s3_body, 0)


def _encoder_features(x_p, w1, b1, w2, b2, w3, b3):
    n = x_p.shape[0]
    return pl.pallas_call(
        _encoder_features_kernel,
        out_shape=jax.ShapeDtypeStruct((n, 64, 128), jnp.float32),
        grid=(n,),
        in_specs=[
            pl.BlockSpec((1, 3, 242, 81), lambda i: (i, 0, 0, 0)),
            pl.BlockSpec((32, 9), lambda i: (0, 0)),
            pl.BlockSpec((32, 1), lambda i: (0, 0)),
            pl.BlockSpec((288, 64), lambda i: (0, 0)),
            pl.BlockSpec((1, 64), lambda i: (0, 0)),
            pl.BlockSpec((576, 128), lambda i: (0, 0)),
            pl.BlockSpec((1, 128), lambda i: (0, 0)),
        ],
        out_specs=pl.BlockSpec((1, 64, 128), lambda i: (i, 0, 0)),
        scratch_shapes=[
            pltpu.VMEM((80, 80, 32), jnp.float32),   # pool1 activations (HWC)
            pltpu.VMEM((26, 26, 64), jnp.float32),   # pool2 activations (HWC)
            pltpu.VMEM((78, 288), jnp.float32),      # conv2 im2col row buffer
            pltpu.VMEM((24, 576), jnp.float32),      # conv3 im2col row buffer
            pltpu.VMEM((78, 64), jnp.float32),       # conv2 pooled-row bounce
            pltpu.VMEM((24, 128), jnp.float32),      # conv3 pooled-row bounce
        ],
        compiler_params=pltpu.CompilerParams(
            dimension_semantics=("parallel",),        # batch across cores (v7x)
            vmem_limit_bytes=32 * 1024 * 1024),       # ~5 MB used; safe everywhere
    )(x_p, w1, b1, w2, b2, w3, b3)


# ----------------------------------------------------------------------------
# Dense layer: one matmul over the whole batch, bf16 weight / f32 accumulation.
# ----------------------------------------------------------------------------
def _linear_kernel(x_ref, w_ref, b_ref, o_ref):
    xb = x_ref[...].astype(w_ref.dtype)
    o_ref[...] = jnp.dot(xb, w_ref[...],
                         preferred_element_type=jnp.float32) + b_ref[...]


def _linear(x, w, b):
    n, k = x.shape
    m = w.shape[1]
    return pl.pallas_call(
        _linear_kernel,
        out_shape=jax.ShapeDtypeStruct((n, m), jnp.float32),
        grid=(1,),
        in_specs=[pl.BlockSpec((n, k), lambda i: (0, 0)),
                  pl.BlockSpec((k, m), lambda i: (0, 0)),
                  pl.BlockSpec((1, m), lambda i: (0, 0))],
        out_specs=pl.BlockSpec((n, m), lambda i: (0, 0)),
    )(x, w, b)


# ----------------------------------------------------------------------------
# Parameter prep (one-time, outside jit): PyTorch layouts -> kernel layouts.
# ----------------------------------------------------------------------------
def prepare_params(params):
    w1 = params["conv1_w"].astype(jnp.float32).reshape(32, 9)            # [c, 3ky+kx]
    b1 = params["conv1_b"].astype(jnp.float32).reshape(32, 1)
    w2 = jnp.transpose(params["conv2_w"].astype(jnp.float32),
                       (2, 3, 1, 0)).reshape(288, 64)                    # [(3ky+kx)*32+ci, co]
    b2 = params["conv2_b"].astype(jnp.float32).reshape(1, 64)
    w3 = jnp.transpose(params["conv3_w"].astype(jnp.float32),
                       (2, 3, 1, 0)).reshape(576, 128)
    b3 = params["conv3_b"].astype(jnp.float32).reshape(1, 128)
    # torch.nn.Flatten is (c, h, w) order; the fused kernel emits (h*8+w, c).
    # Fold that permutation into the fc weight once, and keep it in bf16.
    wf = params["fc_w"].astype(jnp.float32).reshape(128, 128, 8, 8)      # [out, c, h, w]
    wf = jnp.transpose(wf, (2, 3, 1, 0)).reshape(8192, 128)              # row = h*1024+w*128+c
    wf = wf.astype(jnp.bfloat16)
    bf = params["fc_b"].astype(jnp.float32).reshape(1, 128)
    return {"w1": w1, "b1": b1, "w2": w2, "b2": b2, "w3": w3, "b3": b3,
            "wf": wf, "bf": bf}


# ----------------------------------------------------------------------------
# Encoder forward (Pallas path): exactly two pallas_call launches.
# ----------------------------------------------------------------------------
@jax.jit
def encoder_forward(kparams, x_nchw):
    n, c, h, w = x_nchw.shape
    assert (c, h, w) == (1, 242, 242), "fc_layer_1(8192) implies a 1x242x242 input"
    x = x_nchw[:, 0, :, :].astype(jnp.float32)                           # (N, 242, 242)
    # Phase-split the W axis (w = 3*w' + p) so conv1 taps and the fused pooling
    # only ever need contiguous lane reads inside the kernel.
    xpad = jnp.pad(x, ((0, 0), (0, 0), (0, 1)))                          # (N, 242, 243)
    x_p = jnp.transpose(xpad.reshape(n, 242, 81, 3), (0, 3, 1, 2))       # (N, 3, 242, 81)
    feats = _encoder_features(x_p, kparams["w1"], kparams["b1"],
                              kparams["w2"], kparams["b2"],
                              kparams["w3"], kparams["b3"])              # (N, 64, 128)
    return _linear(feats.reshape(n, 8192), kparams["wf"], kparams["bf"])


# ----------------------------------------------------------------------------
# Pure-JAX reference (mimics the PyTorch module exactly, NCHW, f32 throughout).
# ----------------------------------------------------------------------------
def encoder_reference(params, x_nchw):
    def conv(x, w, b):
        y = lax.conv_general_dilated(x, w, (1, 1), "VALID",
                                     dimension_numbers=("NCHW", "OIHW", "NCHW"),
                                     precision=lax.Precision.HIGHEST)
        return y + b[None, :, None, None]

    def pool(x):
        return lax.reduce_window(x, -jnp.inf, lax.max,
                                 (1, 1, 3, 3), (1, 1, 3, 3), "VALID")

    x = pool(conv(x_nchw, params["conv1_w"], params["conv1_b"]))
    x = pool(conv(x, params["conv2_w"], params["conv2_b"]))
    x = pool(conv(x, params["conv3_w"], params["conv3_b"]))
    x = x.reshape(x.shape[0], -1)
    return jnp.dot(x, params["fc_w"].T,
                   precision=lax.Precision.HIGHEST) + params["fc_b"]


def init_params(key):
    def u(k, shape, fan_in):
        bound = 1.0 / (fan_in ** 0.5)
        return jax.random.uniform(k, shape, jnp.float32, -bound, bound)

    ks = jax.random.split(key, 8)
    return {
        "conv1_w": u(ks[0], (32, 1, 3, 3), 1 * 9),
        "conv1_b": u(ks[1], (32,), 1 * 9),
        "conv2_w": u(ks[2], (64, 32, 3, 3), 32 * 9),
        "conv2_b": u(ks[3], (64,), 32 * 9),
        "conv3_w": u(ks[4], (128, 64, 3, 3), 64 * 9),
        "conv3_b": u(ks[5], (128,), 64 * 9),
        "fc_w":    u(ks[6], (128, 8192), 8192),
        "fc_b":    u(ks[7], (128,), 8192),
    }


if __name__ == "__main__":
    key = jax.random.PRNGKey(0)
    pkey, xkey = jax.random.split(key)
    params = init_params(pkey)
    kparams = prepare_params(params)   # one-time layout conversion, outside jit

    # Smallest input consistent with fc_layer_1 (8192 = 128*8*8): 1x242x242.
    x = jax.random.normal(xkey, (2, 1, 242, 242), jnp.float32)

    out = jax.block_until_ready(encoder_forward(kparams, x))
    ref = jax.block_until_ready(encoder_reference(params, x))

    assert out.shape == (2, 128), out.shape
    assert bool(jnp.all(jnp.isfinite(out)))
    err = float(jnp.max(jnp.abs(out - ref)))
    assert bool(jnp.allclose(out, ref, atol=2e-2, rtol=2e-2)), f"max abs err {err}"
    print("KERNEL_OK")
</pallas_src>

<mosaic_0001>
module attributes {stable_mosaic.version = 11 : i64} {
  func.func @_linear_kernel(%arg0: i32, %arg1: memref<2x8192xf32, #tpu.memory_space<vmem>>, %arg2: memref<8192x128xbf16, #tpu.memory_space<vmem>>, %arg3: memref<1x128xf32, #tpu.memory_space<vmem>>, %arg4: memref<2x128xf32, #tpu.memory_space<vmem>>) attributes {dimension_semantics = [#tpu.dimension_semantics<arbitrary>], iteration_bounds = array<i64: 1>, scalar_prefetch = 0 : i64, scratch_operands = 0 : i64, tpu.core_type = #tpu.core_type<tc>, window_params = [{pipeline_mode = #tpu.pipeline_mode<synchronous>, transform_indices = @transform_0, window_bounds = array<i64: 2, 8192>}, {pipeline_mode = #tpu.pipeline_mode<synchronous>, transform_indices = @transform_1, window_bounds = array<i64: 8192, 128>}, {pipeline_mode = #tpu.pipeline_mode<synchronous>, transform_indices = @transform_2, window_bounds = array<i64: 1, 128>}, {pipeline_mode = #tpu.pipeline_mode<synchronous>, transform_indices = @transform_3, window_bounds = array<i64: 2, 128>}]} {
    %c0 = arith.constant 0 : index
    %c0_0 = arith.constant 0 : index
    %0 = vector.load %arg1[%c0, %c0_0] : memref<2x8192xf32, #tpu.memory_space<vmem>>, vector<2x8192xf32>
    %1 = arith.truncf %0 : vector<2x8192xf32> to vector<2x8192xbf16>
    %c0_1 = arith.constant 0 : index
    %c0_2 = arith.constant 0 : index
    %2 = vector.load %arg2[%c0_1, %c0_2] : memref<8192x128xbf16, #tpu.memory_space<vmem>>, vector<8192x128xbf16>
    %cst = arith.constant dense<0.000000e+00> : vector<2x128xf32>
    %3 = tpu.matmul %1, %2, %cst {dimension_numbers = #tpu.dot_dimension_numbers<[1], [0], [0], [1], [0, 0, 1, 1], [], []>} : vector<2x8192xbf16>, vector<8192x128xbf16>, vector<2x128xf32> -> vector<2x128xf32>
    %c0_3 = arith.constant 0 : index
    %c0_4 = arith.constant 0 : index
    %4 = vector.load %arg3[%c0_3, %c0_4] : memref<1x128xf32, #tpu.memory_space<vmem>>, vector<1x128xf32>
    %5 = vector.broadcast %4 : vector<1x128xf32> to vector<2x128xf32>
    %6 = arith.addf %3, %5 : vector<2x128xf32>
    %c0_5 = arith.constant 0 : index
    %c0_6 = arith.constant 0 : index
    %7 = vector.load %arg4[%c0_5, %c0_6] : memref<2x128xf32, #tpu.memory_space<vmem>>, vector<2x128xf32>
    tpu.vector_store %arg4[%c0_5, %c0_6], %6 {strides = array<i32>} : memref<2x128xf32, #tpu.memory_space<vmem>>, vector<2x128xf32>,
    return
  }
  func.func @transform_0(%arg0: i32) -> (i32, i32) {
    %c0_i32 = arith.constant 0 : i32
    %c0_i32_0 = arith.constant 0 : i32
    %c0_i32_1 = arith.constant 0 : i32
    return %c0_i32, %c0_i32_0 : i32, i32
  }
  func.func @transform_1(%arg0: i32) -> (i32, i32) {
    %c0_i32 = arith.constant 0 : i32
    %c0_i32_0 = arith.constant 0 : i32
    %c0_i32_1 = arith.constant 0 : i32
    return %c0_i32, %c0_i32_0 : i32, i32
  }
  func.func @transform_2(%arg0: i32) -> (i32, i32) {
    %c0_i32 = arith.constant 0 : i32
    %c0_i32_0 = arith.constant 0 : i32
    %c0_i32_1 = arith.constant 0 : i32
    return %c0_i32, %c0_i32_0 : i32, i32
  }
  func.func @transform_3(%arg0: i32) -> (i32, i32) {
    %c0_i32 = arith.constant 0 : i32
    %c0_i32_0 = arith.constant 0 : i32
    %c0_i32_1 = arith.constant 0 : i32
    return %c0_i32, %c0_i32_0 : i32, i32
  }
}

module attributes {stable_mosaic.version = 11 : i64} {
  func.func @_encoder_features_kernel(%arg0: i32, %arg1: memref<1x3x242x81xf32, #tpu.memory_space<vmem>>, %arg2: memref<32x9xf32, #tpu.memory_space<vmem>>, %arg3: memref<32x1xf32, #tpu.memory_space<vmem>>, %arg4: memref<288x64xf32, #tpu.memory_space<vmem>>, %arg5: memref<1x64xf32, #tpu.memory_space<vmem>>, %arg6: memref<576x128xf32, #tpu.memory_space<vmem>>, %arg7: memref<1x128xf32, #tpu.memory_space<vmem>>, %arg8: memref<1x64x128xf32, #tpu.memory_space<vmem>>, %arg9: memref<80x80x32xf32, #tpu.memory_space<vmem>>, %arg10: memref<26x26x64xf32, #tpu.memory_space<vmem>>, %arg11: memref<78x288xf32, #tpu.memory_space<vmem>>, %arg12: memref<24x576xf32, #tpu.memory_space<vmem>>, %arg13: memref<78x64xf32, #tpu.memory_space<vmem>>, %arg14: memref<24x128xf32, #tpu.memory_space<vmem>>) attributes {dimension_semantics = [#tpu.dimension_semantics<parallel>], iteration_bounds = array<i64: 2>, scalar_prefetch = 0 : i64, scratch_operands = 6 : i64, tpu.core_type = #tpu.core_type<tc>, window_params = [{transform_indices = @transform_0, window_bounds = array<i64: 1, 3, 242, 81>}, {pipeline_mode = #tpu.pipeline_mode<synchronous>, transform_indices = @transform_1, window_bounds = array<i64: 32, 9>}, {pipeline_mode = #tpu.pipeline_mode<synchronous>, transform_indices = @transform_2, window_bounds = array<i64: 32, 1>}, {pipeline_mode = #tpu.pipeline_mode<synchronous>, transform_indices = @transform_3, window_bounds = array<i64: 288, 64>}, {pipeline_mode = #tpu.pipeline_mode<synchronous>, transform_indices = @transform_4, window_bounds = array<i64: 1, 64>}, {pipeline_mode = #tpu.pipeline_mode<synchronous>, transform_indices = @transform_5, window_bounds = array<i64: 576, 128>}, {pipeline_mode = #tpu.pipeline_mode<synchronous>, transform_indices = @transform_6, window_bounds = array<i64: 1, 128>}, {transform_indices = @transform_7, window_bounds = array<i64: 1, 64, 128>}]} {
    %c0 = arith.constant 0 : index
    %c0_0 = arith.constant 0 : index
    %0 = vector.load %arg2[%c0, %c0_0] : memref<32x9xf32, #tpu.memory_space<vmem>>, vector<32x1xf32>
    %c0_1 = arith.constant 0 : index
    %c1 = arith.constant 1 : index
    %1 = vector.load %arg2[%c0_1, %c1] : memref<32x9xf32, #tpu.memory_space<vmem>>, vector<32x1xf32>
    %c0_2 = arith.constant 0 : index
    %c2 = arith.constant 2 : index
    %2 = vector.load %arg2[%c0_2, %c2] : memref<32x9xf32, #tpu.memory_space<vmem>>, vector<32x1xf32>
    %c0_3 = arith.constant 0 : index
    %c3 = arith.constant 3 : index
    %3 = vector.load %arg2[%c0_3, %c3] : memref<32x9xf32, #tpu.memory_space<vmem>>, vector<32x1xf32>
    %c0_4 = arith.constant 0 : index
    %c4 = arith.constant 4 : index
    %4 = vector.load %arg2[%c0_4, %c4] : memref<32x9xf32, #tpu.memory_space<vmem>>, vector<32x1xf32>
    %c0_5 = arith.constant 0 : index
    %c5 = arith.constant 5 : index
    %5 = vector.load %arg2[%c0_5, %c5] : memref<32x9xf32, #tpu.memory_space<vmem>>, vector<32x1xf32>
    %c0_6 = arith.constant 0 : index
    %c6 = arith.constant 6 : index
    %6 = vector.load %arg2[%c0_6, %c6] : memref<32x9xf32, #tpu.memory_space<vmem>>, vector<32x1xf32>
    %c0_7 = arith.constant 0 : index
    %c7 = arith.constant 7 : index
    %7 = vector.load %arg2[%c0_7, %c7] : memref<32x9xf32, #tpu.memory_space<vmem>>, vector<32x1xf32>
    %c0_8 = arith.constant 0 : index
    %c8 = arith.constant 8 : index
    %8 = vector.load %arg2[%c0_8, %c8] : memref<32x9xf32, #tpu.memory_space<vmem>>, vector<32x1xf32>
    %c0_9 = arith.constant 0 : index
    %c0_10 = arith.constant 0 : index
    %9 = vector.load %arg3[%c0_9, %c0_10] : memref<32x1xf32, #tpu.memory_space<vmem>>, vector<32x1xf32>
    %c0_i32 = arith.constant 0 : i32
    %c80_i32 = arith.constant 80 : i32
    %10 = arith.addi %c0_i32, %c80_i32 : i32
    %c1_i32 = arith.constant 1 : i32
    scf.for %arg15 = %c0_i32 to %10 step %c1_i32  : i32 {
      %c3_i32 = arith.constant 3 : i32
      %15 = arith.muli %c3_i32, %arg15 : i32
      %c0_i32_22 = arith.constant 0 : i32
      %16 = arith.addi %15, %c0_i32_22 : i32
      %c0_i32_23 = arith.constant 0 : i32
      %17 = arith.addi %16, %c0_i32_23 : i32
      %c0_24 = arith.constant 0 : index
      %c0_25 = arith.constant 0 : index
      %18 = arith.index_cast %17 : i32 to index
      %c0_26 = arith.constant 0 : index
      %19 = vector.load %arg1[%c0_24, %c0_25, %18, %c0_26] : memref<1x3x242x81xf32, #tpu.memory_space<vmem>>, vector<1x1x1x80xf32>
      %20 = vector.shape_cast %19 : vector<1x1x1x80xf32> to vector<1x80xf32>
      %21 = vector.broadcast %20 : vector<1x80xf32> to vector<32x80xf32>
      %22 = vector.broadcast %0 : vector<32x1xf32> to vector<32x80xf32>
      %23 = arith.mulf %21, %22 : vector<32x80xf32>
      %c3_i32_27 = arith.constant 3 : i32
      %24 = arith.muli %c3_i32_27, %arg15 : i32
      %c0_i32_28 = arith.constant 0 : i32
      %25 = arith.addi %24, %c0_i32_28 : i32
      %c0_i32_29 = arith.constant 0 : i32
      %26 = arith.addi %25, %c0_i32_29 : i32
      %c0_30 = arith.constant 0 : index
      %c1_31 = arith.constant 1 : index
      %27 = arith.index_cast %26 : i32 to index
      %c0_32 = arith.constant 0 : index
      %28 = vector.load %arg1[%c0_30, %c1_31, %27, %c0_32] : memref<1x3x242x81xf32, #tpu.memory_space<vmem>>, vector<1x1x1x80xf32>
      %29 = vector.shape_cast %28 : vector<1x1x1x80xf32> to vector<1x80xf32>
      %30 = vector.broadcast %29 : vector<1x80xf32> to vector<32x80xf32>
      %31 = vector.broadcast %1 : vector<32x1xf32> to vector<32x80xf32>
      %32 = arith.mulf %30, %31 : vector<32x80xf32>
      %33 = arith.addf %23, %32 : vector<32x80xf32>
      %c3_i32_33 = arith.constant 3 : i32
      %34 = arith.muli %c3_i32_33, %arg15 : i32
      %c0_i32_34 = arith.constant 0 : i32
      %35 = arith.addi %34, %c0_i32_34 : i32
      %c0_i32_35 = arith.constant 0 : i32
      %36 = arith.addi %35, %c0_i32_35 : i32
      %c0_36 = arith.constant 0 : index
      %c2_37 = arith.constant 2 : index
      %37 = arith.index_cast %36 : i32 to index
      %c0_38 = arith.constant 0 : index
      %38 = vector.load %arg1[%c0_36, %c2_37, %37, %c0_38] : memref<1x3x242x81xf32, #tpu.memory_space<vmem>>, vector<1x1x1x80xf32>
      %39 = vector.shape_cast %38 : vector<1x1x1x80xf32> to vector<1x80xf32>
      %40 = vector.broadcast %39 : vector<1x80xf32> to vector<32x80xf32>
      %41 = vector.broadcast %2 : vector<32x1xf32> to vector<32x80xf32>
      %42 = arith.mulf %40, %41 : vector<32x80xf32>
      %43 = arith.addf %33, %42 : vector<32x80xf32>
      %c3_i32_39 = arith.constant 3 : i32
      %44 = arith.muli %c3_i32_39, %arg15 : i32
      %c0_i32_40 = arith.constant 0 : i32
      %45 = arith.addi %44, %c0_i32_40 : i32
      %c1_i32_41 = arith.constant 1 : i32
      %46 = arith.addi %45, %c1_i32_41 : i32
      %c0_42 = arith.constant 0 : index
      %c0_43 = arith.constant 0 : index
      %47 = arith.index_cast %46 : i32 to index
      %c0_44 = arith.constant 0 : index
      %48 = vector.load %arg1[%c0_42, %c0_43, %47, %c0_44] : memref<1x3x242x81xf32, #tpu.memory_space<vmem>>, vector<1x1x1x80xf32>
      %49 = vector.shape_cast %48 : vector<1x1x1x80xf32> to vector<1x80xf32>
      %50 = vector.broadcast %49 : vector<1x80xf32> to vector<32x80xf32>
      %51 = vector.broadcast %3 : vector<32x1xf32> to vector<32x80xf32>
      %52 = arith.mulf %50, %51 : vector<32x80xf32>
      %53 = arith.addf %43, %52 : vector<32x80xf32>
      %c3_i32_45 = arith.constant 3 : i32
      %54 = arith.muli %c3_i32_45, %arg15 : i32
      %c0_i32_46 = arith.constant 0 : i32
      %55 = arith.addi %54, %c0_i32_46 : i32
      %c1_i32_47 = arith.constant 1 : i32
      %56 = arith.addi %55, %c1_i32_47 : i32
      %c0_48 = arith.constant 0 : index
      %c1_49 = arith.constant 1 : index
      %57 = arith.index_cast %56 : i32 to index
      %c0_50 = arith.constant 0 : index
      %58 = vector.load %arg1[%c0_48, %c1_49, %57, %c0_50] : memref<1x3x242x81xf32, #tpu.memory_space<vmem>>, vector<1x1x1x80xf32>
      %59 = vector.shape_cast %58 : vector<1x1x1x80xf32> to vector<1x80xf32>
      %60 = vector.broadcast %59 : vector<1x80xf32> to vector<32x80xf32>
      %61 = vector.broadcast %4 : vector<32x1xf32> to vector<32x80xf32>
      %62 = arith.mulf %60, %61 : vector<32x80xf32>
      %63 = arith.addf %53, %62 : vector<32x80xf32>
      %c3_i32_51 = arith.constant 3 : i32
      %64 = arith.muli %c3_i32_51, %arg15 : i32
      %c0_i32_52 = arith.constant 0 : i32
      %65 = arith.addi %64, %c0_i32_52 : i32
      %c1_i32_53 = arith.constant 1 : i32
      %66 = arith.addi %65, %c1_i32_53 : i32
      %c0_54 = arith.constant 0 : index
      %c2_55 = arith.constant 2 : index
      %67 = arith.index_cast %66 : i32 to index
      %c0_56 = arith.constant 0 : index
      %68 = vector.load %arg1[%c0_54, %c2_55, %67, %c0_56] : memref<1x3x242x81xf32, #tpu.memory_space<vmem>>, vector<1x1x1x80xf32>
      %69 = vector.shape_cast %68 : vector<1x1x1x80xf32> to vector<1x80xf32>
      %70 = vector.broadcast %69 : vector<1x80xf32> to vector<32x80xf32>
      %71 = vector.broadcast %5 : vector<32x1xf32> to vector<32x80xf32>
      %72 = arith.mulf %70, %71 : vector<32x80xf32>
      %73 = arith.addf %63, %72 : vector<32x80xf32>
      %c3_i32_57 = arith.constant 3 : i32
      %74 = arith.muli %c3_i32_57, %arg15 : i32
      %c0_i32_58 = arith.constant 0 : i32
      %75 = arith.addi %74, %c0_i32_58 : i32
      %c2_i32 = arith.constant 2 : i32
      %76 = arith.addi %75, %c2_i32 : i32
      %c0_59 = arith.constant 0 : index
      %c0_60 = arith.constant 0 : index
      %77 = arith.index_cast %76 : i32 to index
      %c0_61 = arith.constant 0 : index
      %78 = vector.load %arg1[%c0_59, %c0_60, %77, %c0_61] : memref<1x3x242x81xf32, #tpu.memory_space<vmem>>, vector<1x1x1x80xf32>
      %79 = vector.shape_cast %78 : vector<1x1x1x80xf32> to vector<1x80xf32>
      %80 = vector.broadcast %79 : vector<1x80xf32> to vector<32x80xf32>
      %81 = vector.broadcast %6 : vector<32x1xf32> to vector<32x80xf32>
      %82 = arith.mulf %80, %81 : vector<32x80xf32>
      %83 = arith.addf %73, %82 : vector<32x80xf32>
      %c3_i32_62 = arith.constant 3 : i32
      %84 = arith.muli %c3_i32_62, %arg15 : i32
      %c0_i32_63 = arith.constant 0 : i32
      %85 = arith.addi %84, %c0_i32_63 : i32
      %c2_i32_64 = arith.constant 2 : i32
      %86 = arith.addi %85, %c2_i32_64 : i32
      %c0_65 = arith.constant 0 : index
      %c1_66 = arith.constant 1 : index
      %87 = arith.index_cast %86 : i32 to index
      %c0_67 = arith.constant 0 : index
      %88 = vector.load %arg1[%c0_65, %c1_66, %87, %c0_67] : memref<1x3x242x81xf32, #tpu.memory_space<vmem>>, vector<1x1x1x80xf32>
      %89 = vector.shape_cast %88 : vector<1x1x1x80xf32> to vector<1x80xf32>
      %90 = vector.broadcast %89 : vector<1x80xf32> to vector<32x80xf32>
      %91 = vector.broadcast %7 : vector<32x1xf32> to vector<32x80xf32>
      %92 = arith.mulf %90, %91 : vector<32x80xf32>
      %93 = arith.addf %83, %92 : vector<32x80xf32>
      %c3_i32_68 = arith.constant 3 : i32
      %94 = arith.muli %c3_i32_68, %arg15 : i32
      %c0_i32_69 = arith.constant 0 : i32
      %95 = arith.addi %94, %c0_i32_69 : i32
      %c2_i32_70 = arith.constant 2 : i32
      %96 = arith.addi %95, %c2_i32_70 : i32
      %c0_71 = arith.constant 0 : index
      %c2_72 = arith.constant 2 : index
      %97 = arith.index_cast %96 : i32 to index
      %c0_73 = arith.constant 0 : index
      %98 = vector.load %arg1[%c0_71, %c2_72, %97, %c0_73] : memref<1x3x242x81xf32, #tpu.memory_space<vmem>>, vector<1x1x1x80xf32>
      %99 = vector.shape_cast %98 : vector<1x1x1x80xf32> to vector<1x80xf32>
      %100 = vector.broadcast %99 : vector<1x80xf32> to vector<32x80xf32>
      %101 = vector.broadcast %8 : vector<32x1xf32> to vector<32x80xf32>
      %102 = arith.mulf %100, %101 : vector<32x80xf32>
      %103 = arith.addf %93, %102 : vector<32x80xf32>
      %c3_i32_74 = arith.constant 3 : i32
      %104 = arith.muli %c3_i32_74, %arg15 : i32
      %c0_i32_75 = arith.constant 0 : i32
      %105 = arith.addi %104, %c0_i32_75 : i32
      %c0_i32_76 = arith.constant 0 : i32
      %106 = arith.addi %105, %c0_i32_76 : i32
      %c0_77 = arith.constant 0 : index
      %c1_78 = arith.constant 1 : index
      %107 = arith.index_cast %106 : i32 to index
      %c0_79 = arith.constant 0 : index
      %108 = vector.load %arg1[%c0_77, %c1_78, %107, %c0_79] : memref<1x3x242x81xf32, #tpu.memory_space<vmem>>, vector<1x1x1x80xf32>
      %109 = vector.shape_cast %108 : vector<1x1x1x80xf32> to vector<1x80xf32>
      %110 = vector.broadcast %109 : vector<1x80xf32> to vector<32x80xf32>
      %111 = vector.broadcast %0 : vector<32x1xf32> to vector<32x80xf32>
      %112 = arith.mulf %110, %111 : vector<32x80xf32>
      %c3_i32_80 = arith.constant 3 : i32
      %113 = arith.muli %c3_i32_80, %arg15 : i32
      %c0_i32_81 = arith.constant 0 : i32
      %114 = arith.addi %113, %c0_i32_81 : i32
      %c0_i32_82 = arith.constant 0 : i32
      %115 = arith.addi %114, %c0_i32_82 : i32
      %c0_83 = arith.constant 0 : index
      %c2_84 = arith.constant 2 : index
      %116 = arith.index_cast %115 : i32 to index
      %c0_85 = arith.constant 0 : index
      %117 = vector.load %arg1[%c0_83, %c2_84, %116, %c0_85] : memref<1x3x242x81xf32, #tpu.memory_space<vmem>>, vector<1x1x1x80xf32>
      %118 = vector.shape_cast %117 : vector<1x1x1x80xf32> to vector<1x80xf32>
      %119 = vector.broadcast %118 : vector<1x80xf32> to vector<32x80xf32>
      %120 = vector.broadcast %1 : vector<32x1xf32> to vector<32x80xf32>
      %121 = arith.mulf %119, %120 : vector<32x80xf32>
      %122 = arith.addf %112, %121 : vector<32x80xf32>
      %c3_i32_86 = arith.constant 3 : i32
      %123 = arith.muli %c3_i32_86, %arg15 : i32
      %c0_i32_87 = arith.constant 0 : i32
      %124 = arith.addi %123, %c0_i32_87 : i32
      %c0_i32_88 = arith.constant 0 : i32
      %125 = arith.addi %124, %c0_i32_88 : i32
      %c0_89 = arith.constant 0 : index
      %c0_90 = arith.constant 0 : index
      %126 = arith.index_cast %125 : i32 to index
      %c1_91 = arith.constant 1 : index
      %127 = vector.load %arg1[%c0_89, %c0_90, %126, %c1_91] : memref<1x3x242x81xf32, #tpu.memory_space<vmem>>, vector<1x1x1x80xf32>
      %128 = vector.shape_cast %127 : vector<1x1x1x80xf32> to vector<1x80xf32>
      %129 = vector.broadcast %128 : vector<1x80xf32> to vector<32x80xf32>
      %130 = vector.broadcast %2 : vector<32x1xf32> to vector<32x80xf32>
      %131 = arith.mulf %129, %130 : vector<32x80xf32>
      %132 = arith.addf %122, %131 : vector<32x80xf32>
      %c3_i32_92 = arith.constant 3 : i32
      %133 = arith.muli %c3_i32_92, %arg15 : i32
      %c0_i32_93 = arith.constant 0 : i32
      %134 = arith.addi %133, %c0_i32_93 : i32
      %c1_i32_94 = arith.constant 1 : i32
      %135 = arith.addi %134, %c1_i32_94 : i32
      %c0_95 = arith.constant 0 : index
      %c1_96 = arith.constant 1 : index
      %136 = arith.index_cast %135 : i32 to index
      %c0_97 = arith.constant 0 : index
      %137 = vector.load %arg1[%c0_95, %c1_96, %136, %c0_97] : memref<1x3x242x81xf32, #tpu.memory_space<vmem>>, vector<1x1x1x80xf32>
      %138 = vector.shape_cast %137 : vector<1x1x1x80xf32> to vector<1x80xf32>
      %139 = vector.broadcast %138 : vector<1x80xf32> to vector<32x80xf32>
      %140 = vector.broadcast %3 : vector<32x1xf32> to vector<32x80xf32>
      %141 = arith.mulf %139, %140 : vector<32x80xf32>
      %142 = arith.addf %132, %141 : vector<32x80xf32>
      %c3_i32_98 = arith.constant 3 : i32
      %143 = arith.muli %c3_i32_98, %arg15 : i32
      %c0_i32_99 = arith.constant 0 : i32
      %144 = arith.addi %143, %c0_i32_99 : i32
      %c1_i32_100 = arith.constant 1 : i32
      %145 = arith.addi %144, %c1_i32_100 : i32
      %c0_101 = arith.constant 0 : index
      %c2_102 = arith.constant 2 : index
      %146 = arith.index_cast %145 : i32 to index
      %c0_103 = arith.constant 0 : index
      %147 = vector.load %arg1[%c0_101, %c2_102, %146, %c0_103] : memref<1x3x242x81xf32, #tpu.memory_space<vmem>>, vector<1x1x1x80xf32>
      %148 = vector.shape_cast %147 : vector<1x1x1x80xf32> to vector<1x80xf32>
      %149 = vector.broadcast %148 : vector<1x80xf32> to vector<32x80xf32>
      %150 = vector.broadcast %4 : vector<32x1xf32> to vector<32x80xf32>
      %151 = arith.mulf %149, %150 : vector<32x80xf32>
      %152 = arith.addf %142, %151 : vector<32x80xf32>
      %c3_i32_104 = arith.constant 3 : i32
      %153 = arith.muli %c3_i32_104, %arg15 : i32
      %c0_i32_105 = arith.constant 0 : i32
      %154 = arith.addi %153, %c0_i32_105 : i32
      %c1_i32_106 = arith.constant 1 : i32
      %155 = arith.addi %154, %c1_i32_106 : i32
      %c0_107 = arith.constant 0 : index
      %c0_108 = arith.constant 0 : index
      %156 = arith.index_cast %155 : i32 to index
      %c1_109 = arith.constant 1 : index
      %157 = vector.load %arg1[%c0_107, %c0_108, %156, %c1_109] : memref<1x3x242x81xf32, #tpu.memory_space<vmem>>, vector<1x1x1x80xf32>
      %158 = vector.shape_cast %157 : vector<1x1x1x80xf32> to vector<1x80xf32>
      %159 = vector.broadcast %158 : vector<1x80xf32> to vector<32x80xf32>
      %160 = vector.broadcast %5 : vector<32x1xf32> to vector<32x80xf32>
      %161 = arith.mulf %159, %160 : vector<32x80xf32>
      %162 = arith.addf %152, %161 : vector<32x80xf32>
      %c3_i32_110 = arith.constant 3 : i32
      %163 = arith.muli %c3_i32_110, %arg15 : i32
      %c0_i32_111 = arith.constant 0 : i32
      %164 = arith.addi %163, %c0_i32_111 : i32
      %c2_i32_112 = arith.constant 2 : i32
      %165 = arith.addi %164, %c2_i32_112 : i32
      %c0_113 = arith.constant 0 : index
      %c1_114 = arith.constant 1 : index
      %166 = arith.index_cast %165 : i32 to index
      %c0_115 = arith.constant 0 : index
      %167 = vector.load %arg1[%c0_113, %c1_114, %166, %c0_115] : memref<1x3x242x81xf32, #tpu.memory_space<vmem>>, vector<1x1x1x80xf32>
      %168 = vector.shape_cast %167 : vector<1x1x1x80xf32> to vector<1x80xf32>
      %169 = vector.broadcast %168 : vector<1x80xf32> to vector<32x80xf32>
      %170 = vector.broadcast %6 : vector<32x1xf32> to vector<32x80xf32>
      %171 = arith.mulf %169, %170 : vector<32x80xf32>
      %172 = arith.addf %162, %171 : vector<32x80xf32>
      %c3_i32_116 = arith.constant 3 : i32
      %173 = arith.muli %c3_i32_116, %arg15 : i32
      %c0_i32_117 = arith.constant 0 : i32
      %174 = arith.addi %173, %c0_i32_117 : i32
      %c2_i32_118 = arith.constant 2 : i32
      %175 = arith.addi %174, %c2_i32_118 : i32
      %c0_119 = arith.constant 0 : index
      %c2_120 = arith.constant 2 : index
      %176 = arith.index_cast %175 : i32 to index
      %c0_121 = arith.constant 0 : index
      %177 = vector.load %arg1[%c0_119, %c2_120, %176, %c0_121] : memref<1x3x242x81xf32, #tpu.memory_space<vmem>>, vector<1x1x1x80xf32>
      %178 = vector.shape_cast %177 : vector<1x1x1x80xf32> to vector<1x80xf32>
      %179 = vector.broadcast %178 : vector<1x80xf32> to vector<32x80xf32>
      %180 = vector.broadcast %7 : vector<32x1xf32> to vector<32x80xf32>
      %181 = arith.mulf %179, %180 : vector<32x80xf32>
      %182 = arith.addf %172, %181 : vector<32x80xf32>
      %c3_i32_122 = arith.constant 3 : i32
      %183 = arith.muli %c3_i32_122, %arg15 : i32
      %c0_i32_123 = arith.constant 0 : i32
      %184 = arith.addi %183, %c0_i32_123 : i32
      %c2_i32_124 = arith.constant 2 : i32
      %185 = arith.addi %184, %c2_i32_124 : i32
      %c0_125 = arith.constant 0 : index
      %c0_126 = arith.constant 0 : index
      %186 = arith.index_cast %185 : i32 to index
      %c1_127 = arith.constant 1 : index
      %187 = vector.load %arg1[%c0_125, %c0_126, %186, %c1_127] : memref<1x3x242x81xf32, #tpu.memory_space<vmem>>, vector<1x1x1x80xf32>
      %188 = vector.shape_cast %187 : vector<1x1x1x80xf32> to vector<1x80xf32>
      %189 = vector.broadcast %188 : vector<1x80xf32> to vector<32x80xf32>
      %190 = vector.broadcast %8 : vector<32x1xf32> to vector<32x80xf32>
      %191 = arith.mulf %189, %190 : vector<32x80xf32>
      %192 = arith.addf %182, %191 : vector<32x80xf32>
      %193 = arith.maximumf %103, %192 : vector<32x80xf32>
      %c3_i32_128 = arith.constant 3 : i32
      %194 = arith.muli %c3_i32_128, %arg15 : i32
      %c0_i32_129 = arith.constant 0 : i32
      %195 = arith.addi %194, %c0_i32_129 : i32
      %c0_i32_130 = arith.constant 0 : i32
      %196 = arith.addi %195, %c0_i32_130 : i32
      %c0_131 = arith.constant 0 : index
      %c2_132 = arith.constant 2 : index
      %197 = arith.index_cast %196 : i32 to index
      %c0_133 = arith.constant 0 : index
      %198 = vector.load %arg1[%c0_131, %c2_132, %197, %c0_133] : memref<1x3x242x81xf32, #tpu.memory_space<vmem>>, vector<1x1x1x80xf32>
      %199 = vector.shape_cast %198 : vector<1x1x1x80xf32> to vector<1x80xf32>
      %200 = vector.broadcast %199 : vector<1x80xf32> to vector<32x80xf32>
      %201 = vector.broadcast %0 : vector<32x1xf32> to vector<32x80xf32>
      %202 = arith.mulf %200, %201 : vector<32x80xf32>
      %c3_i32_134 = arith.constant 3 : i32
      %203 = arith.muli %c3_i32_134, %arg15 : i32
      %c0_i32_135 = arith.constant 0 : i32
      %204 = arith.addi %203, %c0_i32_135 : i32
      %c0_i32_136 = arith.constant 0 : i32
      %205 = arith.addi %204, %c0_i32_136 : i32
      %c0_137 = arith.constant 0 : index
      %c0_138 = arith.constant 0 : index
      %206 = arith.index_cast %205 : i32 to index
      %c1_139 = arith.constant 1 : index
      %207 = vector.load %arg1[%c0_137, %c0_138, %206, %c1_139] : memref<1x3x242x81xf32, #tpu.memory_space<vmem>>, vector<1x1x1x80xf32>
      %208 = vector.shape_cast %207 : vector<1x1x1x80xf32> to vector<1x80xf32>
      %209 = vector.broadcast %208 : vector<1x80xf32> to vector<32x80xf32>
      %210 = vector.broadcast %1 : vector<32x1xf32> to vector<32x80xf32>
      %211 = arith.mulf %209, %210 : vector<32x80xf32>
      %212 = arith.addf %202, %211 : vector<32x80xf32>
      %c3_i32_140 = arith.constant 3 : i32
      %213 = arith.muli %c3_i32_140, %arg15 : i32
      %c0_i32_141 = arith.constant 0 : i32
      %214 = arith.addi %213, %c0_i32_141 : i32
      %c0_i32_142 = arith.constant 0 : i32
      %215 = arith.addi %214, %c0_i32_142 : i32
      %c0_143 = arith.constant 0 : index
      %c1_144 = arith.constant 1 : index
      %216 = arith.index_cast %215 : i32 to index
      %c1_145 = arith.constant 1 : index
      %217 = vector.load %arg1[%c0_143, %c1_144, %216, %c1_145] : memref<1x3x242x81xf32, #tpu.memory_space<vmem>>, vector<1x1x1x80xf32>
      %218 = vector.shape_cast %217 : vector<1x1x1x80xf32> to vector<1x80xf32>
      %219 = vector.broadcast %218 : vector<1x80xf32> to vector<32x80xf32>
      %220 = vector.broadcast %2 : vector<32x1xf32> to vector<32x80xf32>
      %221 = arith.mulf %219, %220 : vector<32x80xf32>
      %222 = arith.addf %212, %221 : vector<32x80xf32>
      %c3_i32_146 = arith.constant 3 : i32
      %223 = arith.muli %c3_i32_146, %arg15 : i32
      %c0_i32_147 = arith.constant 0 : i32
      %224 = arith.addi %223, %c0_i32_147 : i32
      %c1_i32_148 = arith.constant 1 : i32
      %225 = arith.addi %224, %c1_i32_148 : i32
      %c0_149 = arith.constant 0 : index
      %c2_150 = arith.constant 2 : index
      %226 = arith.index_cast %225 : i32 to index
      %c0_151 = arith.constant 0 : index
      %227 = vector.load %arg1[%c0_149, %c2_150, %226, %c0_151] : memref<1x3x242x81xf32, #tpu.memory_space<vmem>>, vector<1x1x1x80xf32>
      %228 = vector.shape_cast %227 : vector<1x1x1x80xf32> to vector<1x80xf32>
      %229 = vector.broadcast %228 : vector<1x80xf32> to vector<32x80xf32>
      %230 = vector.broadcast %3 : vector<32x1xf32> to vector<32x80xf32>
      %231 = arith.mulf %229, %230 : vector<32x80xf32>
      %232 = arith.addf %222, %231 : vector<32x80xf32>
      %c3_i32_152 = arith.constant 3 : i32
      %233 = arith.muli %c3_i32_152, %arg15 : i32
      %c0_i32_153 = arith.constant 0 : i32
      %234 = arith.addi %233, %c0_i32_153 : i32
      %c1_i32_154 = arith.constant 1 : i32
      %235 = arith.addi %234, %c1_i32_154 : i32
      %c0_155 = arith.constant 0 : index
      %c0_156 = arith.constant 0 : index
      %236 = arith.index_cast %235 : i32 to index
      %c1_157 = arith.constant 1 : index
      %237 = vector.load %arg1[%c0_155, %c0_156, %236, %c1_157] : memref<1x3x242x81xf32, #tpu.memory_space<vmem>>, vector<1x1x1x80xf32>
      %238 = vector.shape_cast %237 : vector<1x1x1x80xf32> to vector<1x80xf32>
      %239 = vector.broadcast %238 : vector<1x80xf32> to vector<32x80xf32>
      %240 = vector.broadcast %4 : vector<32x1xf32> to vector<32x80xf32>
      %241 = arith.mulf %239, %240 : vector<32x80xf32>
      %242 = arith.addf %232, %241 : vector<32x80xf32>
      %c3_i32_158 = arith.constant 3 : i32
      %243 = arith.muli %c3_i32_158, %arg15 : i32
      %c0_i32_159 = arith.constant 0 : i32
      %244 = arith.addi %243, %c0_i32_159 : i32
      %c1_i32_160 = arith.constant 1 : i32
      %245 = arith.addi %244, %c1_i32_160 : i32
      %c0_161 = arith.constant 0 : index
      %c1_162 = arith.constant 1 : index
      %246 = arith.index_cast %245 : i32 to index
      %c1_163 = arith.constant 1 : index
      %247 = vector.load %arg1[%c0_161, %c1_162, %246, %c1_163] : memref<1x3x242x81xf32, #tpu.memory_space<vmem>>, vector<1x1x1x80xf32>
      %248 = vector.shape_cast %247 : vector<1x1x1x80xf32> to vector<1x80xf32>
      %249 = vector.broadcast %248 : vector<1x80xf32> to vector<32x80xf32>
      %250 = vector.broadcast %5 : vector<32x1xf32> to vector<32x80xf32>
      %251 = arith.mulf %249, %250 : vector<32x80xf32>
      %252 = arith.addf %242, %251 : vector<32x80xf32>
      %c3_i32_164 = arith.constant 3 : i32
      %253 = arith.muli %c3_i32_164, %arg15 : i32
      %c0_i32_165 = arith.constant 0 : i32
      %254 = arith.addi %253, %c0_i32_165 : i32
      %c2_i32_166 = arith.constant 2 : i32
      %255 = arith.addi %254, %c2_i32_166 : i32
      %c0_167 = arith.constant 0 : index
      %c2_168 = arith.constant 2 : index
      %256 = arith.index_cast %255 : i32 to index
      %c0_169 = arith.constant 0 : index
      %257 = vector.load %arg1[%c0_167, %c2_168, %256, %c0_169] : memref<1x3x242x81xf32, #tpu.memory_space<vmem>>, vector<1x1x1x80xf32>
      %258 = vector.shape_cast %257 : vector<1x1x1x80xf32> to vector<1x80xf32>
      %259 = vector.broadcast %258 : vector<1x80xf32> to vector<32x80xf32>
      %260 = vector.broadcast %6 : vector<32x1xf32> to vector<32x80xf32>
      %261 = arith.mulf %259, %260 : vector<32x80xf32>
      %262 = arith.addf %252, %261 : vector<32x80xf32>
      %c3_i32_170 = arith.constant 3 : i32
      %263 = arith.muli %c3_i32_170, %arg15 : i32
      %c0_i32_171 = arith.constant 0 : i32
      %264 = arith.addi %263, %c0_i32_171 : i32
      %c2_i32_172 = arith.constant 2 : i32
      %265 = arith.addi %264, %c2_i32_172 : i32
      %c0_173 = arith.constant 0 : index
      %c0_174 = arith.constant 0 : index
      %266 = arith.index_cast %265 : i32 to index
      %c1_175 = arith.constant 1 : index
      %267 = vector.load %arg1[%c0_173, %c0_174, %266, %c1_175] : memref<1x3x242x81xf32, #tpu.memory_space<vmem>>, vector<1x1x1x80xf32>
      %268 = vector.shape_cast %267 : vector<1x1x1x80xf32> to vector<1x80xf32>
      %269 = vector.broadcast %268 : vector<1x80xf32> to vector<32x80xf32>
      %270 = vector.broadcast %7 : vector<32x1xf32> to vector<32x80xf32>
      %271 = arith.mulf %269, %270 : vector<32x80xf32>
      %272 = arith.addf %262, %271 : vector<32x80xf32>
      %c3_i32_176 = arith.constant 3 : i32
      %273 = arith.muli %c3_i32_176, %arg15 : i32
      %c0_i32_177 = arith.constant 0 : i32
      %274 = arith.addi %273, %c0_i32_177 : i32
      %c2_i32_178 = arith.constant 2 : i32
      %275 = arith.addi %274, %c2_i32_178 : i32
      %c0_179 = arith.constant 0 : index
      %c1_180 = arith.constant 1 : index
      %276 = arith.index_cast %275 : i32 to index
      %c1_181 = arith.constant 1 : index
      %277 = vector.load %arg1[%c0_179, %c1_180, %276, %c1_181] : memref<1x3x242x81xf32, #tpu.memory_space<vmem>>, vector<1x1x1x80xf32>
      %278 = vector.shape_cast %277 : vector<1x1x1x80xf32> to vector<1x80xf32>
      %279 = vector.broadcast %278 : vector<1x80xf32> to vector<32x80xf32>
      %280 = vector.broadcast %8 : vector<32x1xf32> to vector<32x80xf32>
      %281 = arith.mulf %279, %280 : vector<32x80xf32>
      %282 = arith.addf %272, %281 : vector<32x80xf32>
      %283 = arith.maximumf %193, %282 : vector<32x80xf32>
      %c3_i32_182 = arith.constant 3 : i32
      %284 = arith.muli %c3_i32_182, %arg15 : i32
      %c1_i32_183 = arith.constant 1 : i32
      %285 = arith.addi %284, %c1_i32_183 : i32
      %c0_i32_184 = arith.constant 0 : i32
      %286 = arith.addi %285, %c0_i32_184 : i32
      %c0_185 = arith.constant 0 : index
      %c0_186 = arith.constant 0 : index
      %287 = arith.index_cast %286 : i32 to index
      %c0_187 = arith.constant 0 : index
      %288 = vector.load %arg1[%c0_185, %c0_186, %287, %c0_187] : memref<1x3x242x81xf32, #tpu.memory_space<vmem>>, vector<1x1x1x80xf32>
      %289 = vector.shape_cast %288 : vector<1x1x1x80xf32> to vector<1x80xf32>
      %290 = vector.broadcast %289 : vector<1x80xf32> to vector<32x80xf32>
      %291 = vector.broadcast %0 : vector<32x1xf32> to vector<32x80xf32>
      %292 = arith.mulf %290, %291 : vector<32x80xf32>
      %c3_i32_188 = arith.constant 3 : i32
      %293 = arith.muli %c3_i32_188, %arg15 : i32
      %c1_i32_189 = arith.constant 1 : i32
      %294 = arith.addi %293, %c1_i32_189 : i32
      %c0_i32_190 = arith.constant 0 : i32
      %295 = arith.addi %294, %c0_i32_190 : i32
      %c0_191 = arith.constant 0 : index
      %c1_192 = arith.constant 1 : index
      %296 = arith.index_cast %295 : i32 to index
      %c0_193 = arith.constant 0 : index
      %297 = vector.load %arg1[%c0_191, %c1_192, %296, %c0_193] : memref<1x3x242x81xf32, #tpu.memory_space<vmem>>, vector<1x1x1x80xf32>
      %298 = vector.shape_cast %297 : vector<1x1x1x80xf32> to vector<1x80xf32>
      %299 = vector.broadcast %298 : vector<1x80xf32> to vector<32x80xf32>
      %300 = vector.broadcast %1 : vector<32x1xf32> to vector<32x80xf32>
      %301 = arith.mulf %299, %300 : vector<32x80xf32>
      %302 = arith.addf %292, %301 : vector<32x80xf32>
      %c3_i32_194 = arith.constant 3 : i32
      %303 = arith.muli %c3_i32_194, %arg15 : i32
      %c1_i32_195 = arith.constant 1 : i32
      %304 = arith.addi %303, %c1_i32_195 : i32
      %c0_i32_196 = arith.constant 0 : i32
      %305 = arith.addi %304, %c0_i32_196 : i32
      %c0_197 = arith.constant 0 : index
      %c2_198 = arith.constant 2 : index
      %306 = arith.index_cast %305 : i32 to index
      %c0_199 = arith.constant 0 : index
      %307 = vector.load %arg1[%c0_197, %c2_198, %306, %c0_199] : memref<1x3x242x81xf32, #tpu.memory_space<vmem>>, vector<1x1x1x80xf32>
      %308 = vector.shape_cast %307 : vector<1x1x1x80xf32> to vector<1x80xf32>
      %309 = vector.broadcast %308 : vector<1x80xf32> to vector<32x80xf32>
      %310 = vector.broadcast %2 : vector<32x1xf32> to vector<32x80xf32>
      %311 = arith.mulf %309, %310 : vector<32x80xf32>
      %312 = arith.addf %302, %311 : vector<32x80xf32>
      %c3_i32_200 = arith.constant 3 : i32
      %313 = arith.muli %c3_i32_200, %arg15 : i32
      %c1_i32_201 = arith.constant 1 : i32
      %314 = arith.addi %313, %c1_i32_201 : i32
      %c1_i32_202 = arith.constant 1 : i32
      %315 = arith.addi %314, %c1_i32_202 : i32
      %c0_203 = arith.constant 0 : index
      %c0_204 = arith.constant 0 : index
      %316 = arith.index_cast %315 : i32 to index
      %c0_205 = arith.constant 0 : index
      %317 = vector.load %arg1[%c0_203, %c0_204, %316, %c0_205] : memref<1x3x242x81xf32, #tpu.memory_space<vmem>>, vector<1x1x1x80xf32>
      %318 = vector.shape_cast %317 : vector<1x1x1x80xf32> to vector<1x80xf32>
      %319 = vector.broadcast %318 : vector<1x80xf32> to vector<32x80xf32>
      %320 = vector.broadcast %3 : vector<32x1xf32> to vector<32x80xf32>
      %321 = arith.mulf %319, %320 : vector<32x80xf32>
      %322 = arith.addf %312, %321 : vector<32x80xf32>
      %c3_i32_206 = arith.constant 3 : i32
      %323 = arith.muli %c3_i32_206, %arg15 : i32
      %c1_i32_207 = arith.constant 1 : i32
      %324 = arith.addi %323, %c1_i32_207 : i32
      %c1_i32_208 = arith.constant 1 : i32
      %325 = arith.addi %324, %c1_i32_208 : i32
      %c0_209 = arith.constant 0 : index
      %c1_210 = arith.constant 1 : index
      %326 = arith.index_cast %325 : i32 to index
      %c0_211 = arith.constant 0 : index
      %327 = vector.load %arg1[%c0_209, %c1_210, %326, %c0_211] : memref<1x3x242x81xf32, #tpu.memory_space<vmem>>, vector<1x1x1x80xf32>
      %328 = vector.shape_cast %327 : vector<1x1x1x80xf32> to vector<1x80xf32>
      %329 = vector.broadcast %328 : vector<1x80xf32> to vector<32x80xf32>
      %330 = vector.broadcast %4 : vector<32x1xf32> to vector<32x80xf32>
      %331 = arith.mulf %329, %330 : vector<32x80xf32>
      %332 = arith.addf %322, %331 : vector<32x80xf32>
      %c3_i32_212 = arith.constant 3 : i32
      %333 = arith.muli %c3_i32_212, %arg15 : i32
      %c1_i32_213 = arith.constant 1 : i32
      %334 = arith.addi %333, %c1_i32_213 : i32
      %c1_i32_214 = arith.constant 1 : i32
      %335 = arith.addi %334, %c1_i32_214 : i32
      %c0_215 = arith.constant 0 : index
      %c2_216 = arith.constant 2 : index
      %336 = arith.index_cast %335 : i32 to index
      %c0_217 = arith.constant 0 : index
      %337 = vector.load %arg1[%c0_215, %c2_216, %336, %c0_217] : memref<1x3x242x81xf32, #tpu.memory_space<vmem>>, vector<1x1x1x80xf32>
      %338 = vector.shape_cast %337 : vector<1x1x1x80xf32> to vector<1x80xf32>
      %339 = vector.broadcast %338 : vector<1x80xf32> to vector<32x80xf32>
      %340 = vector.broadcast %5 : vector<32x1xf32> to vector<32x80xf32>
      %341 = arith.mulf %339, %340 : vector<32x80xf32>
      %342 = arith.addf %332, %341 : vector<32x80xf32>
      %c3_i32_218 = arith.constant 3 : i32
      %343 = arith.muli %c3_i32_218, %arg15 : i32
      %c1_i32_219 = arith.constant 1 : i32
      %344 = arith.addi %343, %c1_i32_219 : i32
      %c2_i32_220 = arith.constant 2 : i32
      %345 = arith.addi %344, %c2_i32_220 : i32
      %c0_221 = arith.constant 0 : index
      %c0_222 = arith.constant 0 : index
      %346 = arith.index_cast %345 : i32 to index
      %c0_223 = arith.constant 0 : index
      %347 = vector.load %arg1[%c0_221, %c0_222, %346, %c0_223] : memref<1x3x242x81xf32, #tpu.memory_space<vmem>>, vector<1x1x1x80xf32>
      %348 = vector.shape_cast %347 : vector<1x1x1x80xf32> to vector<1x80xf32>
      %349 = vector.broadcast %348 : vector<1x80xf32> to vector<32x80xf32>
      %350 = vector.broadcast %6 : vector<32x1xf32> to vector<32x80xf32>
      %351 = arith.mulf %349, %350 : vector<32x80xf32>
      %352 = arith.addf %342, %351 : vector<32x80xf32>
      %c3_i32_224 = arith.constant 3 : i32
      %353 = arith.muli %c3_i32_224, %arg15 : i32
      %c1_i32_225 = arith.constant 1 : i32
      %354 = arith.addi %353, %c1_i32_225 : i32
      %c2_i32_226 = arith.constant 2 : i32
      %355 = arith.addi %354, %c2_i32_226 : i32
      %c0_227 = arith.constant 0 : index
      %c1_228 = arith.constant 1 : index
      %356 = arith.index_cast %355 : i32 to index
      %c0_229 = arith.constant 0 : index
      %357 = vector.load %arg1[%c0_227, %c1_228, %356, %c0_229] : memref<1x3x242x81xf32, #tpu.memory_space<vmem>>, vector<1x1x1x80xf32>
      %358 = vector.shape_cast %357 : vector<1x1x1x80xf32> to vector<1x80xf32>
      %359 = vector.broadcast %358 : vector<1x80xf32> to vector<32x80xf32>
      %360 = vector.broadcast %7 : vector<32x1xf32> to vector<32x80xf32>
      %361 = arith.mulf %359, %360 : vector<32x80xf32>
      %362 = arith.addf %352, %361 : vector<32x80xf32>
      %c3_i32_230 = arith.constant 3 : i32
      %363 = arith.muli %c3_i32_230, %arg15 : i32
      %c1_i32_231 = arith.constant 1 : i32
      %364 = arith.addi %363, %c1_i32_231 : i32
      %c2_i32_232 = arith.constant 2 : i32
      %365 = arith.addi %364, %c2_i32_232 : i32
      %c0_233 = arith.constant 0 : index
      %c2_234 = arith.constant 2 : index
      %366 = arith.index_cast %365 : i32 to index
      %c0_235 = arith.constant 0 : index
      %367 = vector.load %arg1[%c0_233, %c2_234, %366, %c0_235] : memref<1x3x242x81xf32, #tpu.memory_space<vmem>>, vector<1x1x1x80xf32>
      %368 = vector.shape_cast %367 : vector<1x1x1x80xf32> to vector<1x80xf32>
      %369 = vector.broadcast %368 : vector<1x80xf32> to vector<32x80xf32>
      %370 = vector.broadcast %8 : vector<32x1xf32> to vector<32x80xf32>
      %371 = arith.mulf %369, %370 : vector<32x80xf32>
      %372 = arith.addf %362, %371 : vector<32x80xf32>
      %373 = arith.maximumf %283, %372 : vector<32x80xf32>
      %c3_i32_236 = arith.constant 3 : i32
      %374 = arith.muli %c3_i32_236, %arg15 : i32
      %c1_i32_237 = arith.constant 1 : i32
      %375 = arith.addi %374, %c1_i32_237 : i32
      %c0_i32_238 = arith.constant 0 : i32
      %376 = arith.addi %375, %c0_i32_238 : i32
      %c0_239 = arith.constant 0 : index
      %c1_240 = arith.constant 1 : index
      %377 = arith.index_cast %376 : i32 to index
      %c0_241 = arith.constant 0 : index
      %378 = vector.load %arg1[%c0_239, %c1_240, %377, %c0_241] : memref<1x3x242x81xf32, #tpu.memory_space<vmem>>, vector<1x1x1x80xf32>
      %379 = vector.shape_cast %378 : vector<1x1x1x80xf32> to vector<1x80xf32>
      %380 = vector.broadcast %379 : vector<1x80xf32> to vector<32x80xf32>
      %381 = vector.broadcast %0 : vector<32x1xf32> to vector<32x80xf32>
      %382 = arith.mulf %380, %381 : vector<32x80xf32>
      %c3_i32_242 = arith.constant 3 : i32
      %383 = arith.muli %c3_i32_242, %arg15 : i32
      %c1_i32_243 = arith.constant 1 : i32
      %384 = arith.addi %383, %c1_i32_243 : i32
      %c0_i32_244 = arith.constant 0 : i32
      %385 = arith.addi %384, %c0_i32_244 : i32
      %c0_245 = arith.constant 0 : index
      %c2_246 = arith.constant 2 : index
      %386 = arith.index_cast %385 : i32 to index
      %c0_247 = arith.constant 0 : index
      %387 = vector.load %arg1[%c0_245, %c2_246, %386, %c0_247] : memref<1x3x242x81xf32, #tpu.memory_space<vmem>>, vector<1x1x1x80xf32>
      %388 = vector.shape_cast %387 : vector<1x1x1x80xf32> to vector<1x80xf32>
      %389 = vector.broadcast %388 : vector<1x80xf32> to vector<32x80xf32>
      %390 = vector.broadcast %1 : vector<32x1xf32> to vector<32x80xf32>
      %391 = arith.mulf %389, %390 : vector<32x80xf32>
      %392 = arith.addf %382, %391 : vector<32x80xf32>
      %c3_i32_248 = arith.constant 3 : i32
      %393 = arith.muli %c3_i32_248, %arg15 : i32
      %c1_i32_249 = arith.constant 1 : i32
      %394 = arith.addi %393, %c1_i32_249 : i32
      %c0_i32_250 = arith.constant 0 : i32
      %395 = arith.addi %394, %c0_i32_250 : i32
      %c0_251 = arith.constant 0 : index
      %c0_252 = arith.constant 0 : index
      %396 = arith.index_cast %395 : i32 to index
      %c1_253 = arith.constant 1 : index
      %397 = vector.load %arg1[%c0_251, %c0_252, %396, %c1_253] : memref<1x3x242x81xf32, #tpu.memory_space<vmem>>, vector<1x1x1x80xf32>
      %398 = vector.shape_cast %397 : vector<1x1x1x80xf32> to vector<1x80xf32>
      %399 = vector.broadcast %398 : vector<1x80xf32> to vector<32x80xf32>
      %400 = vector.broadcast %2 : vector<32x1xf32> to vector<32x80xf32>
      %401 = arith.mulf %399, %400 : vector<32x80xf32>
      %402 = arith.addf %392, %401 : vector<32x80xf32>
      %c3_i32_254 = arith.constant 3 : i32
      %403 = arith.muli %c3_i32_254, %arg15 : i32
      %c1_i32_255 = arith.constant 1 : i32
      %404 = arith.addi %403, %c1_i32_255 : i32
      %c1_i32_256 = arith.constant 1 : i32
      %405 = arith.addi %404, %c1_i32_256 : i32
      %c0_257 = arith.constant 0 : index
      %c1_258 = arith.constant 1 : index
      %406 = arith.index_cast %405 : i32 to index
      %c0_259 = arith.constant 0 : index
      %407 = vector.load %arg1[%c0_257, %c1_258, %406, %c0_259] : memref<1x3x242x81xf32, #tpu.memory_space<vmem>>, vector<1x1x1x80xf32>
      %408 = vector.shape_cast %407 : vector<1x1x1x80xf32> to vector<1x80xf32>
      %409 = vector.broadcast %408 : vector<1x80xf32> to vector<32x80xf32>
      %410 = vector.broadcast %3 : vector<32x1xf32> to vector<32x80xf32>
      %411 = arith.mulf %409, %410 : vector<32x80xf32>
      %412 = arith.addf %402, %411 : vector<32x80xf32>
      %c3_i32_260 = arith.constant 3 : i32
      %413 = arith.muli %c3_i32_260, %arg15 : i32
      %c1_i32_261 = arith.constant 1 : i32
      %414 = arith.addi %413, %c1_i32_261 : i32
      %c1_i32_262 = arith.constant 1 : i32
      %415 = arith.addi %414, %c1_i32_262 : i32
      %c0_263 = arith.constant 0 : index
      %c2_264 = arith.constant 2 : index
      %416 = arith.index_cast %415 : i32 to index
      %c0_265 = arith.constant 0 : index
      %417 = vector.load %arg1[%c0_263, %c2_264, %416, %c0_265] : memref<1x3x242x81xf32, #tpu.memory_space<vmem>>, vector<1x1x1x80xf32>
      %418 = vector.shape_cast %417 : vector<1x1x1x80xf32> to vector<1x80xf32>
      %419 = vector.broadcast %418 : vector<1x80xf32> to vector<32x80xf32>
      %420 = vector.broadcast %4 : vector<32x1xf32> to vector<32x80xf32>
      %421 = arith.mulf %419, %420 : vector<32x80xf32>
      %422 = arith.addf %412, %421 : vector<32x80xf32>
      %c3_i32_266 = arith.constant 3 : i32
      %423 = arith.muli %c3_i32_266, %arg15 : i32
      %c1_i32_267 = arith.constant 1 : i32
      %424 = arith.addi %423, %c1_i32_267 : i32
      %c1_i32_268 = arith.constant 1 : i32
      %425 = arith.addi %424, %c1_i32_268 : i32
      %c0_269 = arith.constant 0 : index
      %c0_270 = arith.constant 0 : index
      %426 = arith.index_cast %425 : i32 to index
      %c1_271 = arith.constant 1 : index
      %427 = vector.load %arg1[%c0_269, %c0_270, %426, %c1_271] : memref<1x3x242x81xf32, #tpu.memory_space<vmem>>, vector<1x1x1x80xf32>
      %428 = vector.shape_cast %427 : vector<1x1x1x80xf32> to vector<1x80xf32>
      %429 = vector.broadcast %428 : vector<1x80xf32> to vector<32x80xf32>
      %430 = vector.broadcast %5 : vector<32x1xf32> to vector<32x80xf32>
      %431 = arith.mulf %429, %430 : vector<32x80xf32>
      %432 = arith.addf %422, %431 : vector<32x80xf32>
      %c3_i32_272 = arith.constant 3 : i32
      %433 = arith.muli %c3_i32_272, %arg15 : i32
      %c1_i32_273 = arith.constant 1 : i32
      %434 = arith.addi %433, %c1_i32_273 : i32
      %c2_i32_274 = arith.constant 2 : i32
      %435 = arith.addi %434, %c2_i32_274 : i32
      %c0_275 = arith.constant 0 : index
      %c1_276 = arith.constant 1 : index
      %436 = arith.index_cast %435 : i32 to index
      %c0_277 = arith.constant 0 : index
      %437 = vector.load %arg1[%c0_275, %c1_276, %436, %c0_277] : memref<1x3x242x81xf32, #tpu.memory_space<vmem>>, vector<1x1x1x80xf32>
      %438 = vector.shape_cast %437 : vector<1x1x1x80xf32> to vector<1x80xf32>
      %439 = vector.broadcast %438 : vector<1x80xf32> to vector<32x80xf32>
      %440 = vector.broadcast %6 : vector<32x1xf32> to vector<32x80xf32>
      %441 = arith.mulf %439, %440 : vector<32x80xf32>
      %442 = arith.addf %432, %441 : vector<32x80xf32>
      %c3_i32_278 = arith.constant 3 : i32
      %443 = arith.muli %c3_i32_278, %arg15 : i32
      %c1_i32_279 = arith.constant 1 : i32
      %444 = arith.addi %443, %c1_i32_279 : i32
      %c2_i32_280 = arith.constant 2 : i32
      %445 = arith.addi %444, %c2_i32_280 : i32
      %c0_281 = arith.constant 0 : index
      %c2_282 = arith.constant 2 : index
      %446 = arith.index_cast %445 : i32 to index
      %c0_283 = arith.constant 0 : index
      %447 = vector.load %arg1[%c0_281, %c2_282, %446, %c0_283] : memref<1x3x242x81xf32, #tpu.memory_space<vmem>>, vector<1x1x1x80xf32>
      %448 = vector.shape_cast %447 : vector<1x1x1x80xf32> to vector<1x80xf32>
      %449 = vector.broadcast %448 : vector<1x80xf32> to vector<32x80xf32>
      %450 = vector.broadcast %7 : vector<32x1xf32> to vector<32x80xf32>
      %451 = arith.mulf %449, %450 : vector<32x80xf32>
      %452 = arith.addf %442, %451 : vector<32x80xf32>
      %c3_i32_284 = arith.constant 3 : i32
      %453 = arith.muli %c3_i32_284, %arg15 : i32
      %c1_i32_285 = arith.constant 1 : i32
      %454 = arith.addi %453, %c1_i32_285 : i32
      %c2_i32_286 = arith.constant 2 : i32
      %455 = arith.addi %454, %c2_i32_286 : i32
      %c0_287 = arith.constant 0 : index
      %c0_288 = arith.constant 0 : index
      %456 = arith.index_cast %455 : i32 to index
      %c1_289 = arith.constant 1 : index
      %457 = vector.load %arg1[%c0_287, %c0_288, %456, %c1_289] : memref<1x3x242x81xf32, #tpu.memory_space<vmem>>, vector<1x1x1x80xf32>
      %458 = vector.shape_cast %457 : vector<1x1x1x80xf32> to vector<1x80xf32>
      %459 = vector.broadcast %458 : vector<1x80xf32> to vector<32x80xf32>
      %460 = vector.broadcast %8 : vector<32x1xf32> to vector<32x80xf32>
      %461 = arith.mulf %459, %460 : vector<32x80xf32>
      %462 = arith.addf %452, %461 : vector<32x80xf32>
      %463 = arith.maximumf %373, %462 : vector<32x80xf32>
      %c3_i32_290 = arith.constant 3 : i32
      %464 = arith.muli %c3_i32_290, %arg15 : i32
      %c1_i32_291 = arith.constant 1 : i32
      %465 = arith.addi %464, %c1_i32_291 : i32
      %c0_i32_292 = arith.constant 0 : i32
      %466 = arith.addi %465, %c0_i32_292 : i32
      %c0_293 = arith.constant 0 : index
      %c2_294 = arith.constant 2 : index
      %467 = arith.index_cast %466 : i32 to index
      %c0_295 = arith.constant 0 : index
      %468 = vector.load %arg1[%c0_293, %c2_294, %467, %c0_295] : memref<1x3x242x81xf32, #tpu.memory_space<vmem>>, vector<1x1x1x80xf32>
      %469 = vector.shape_cast %468 : vector<1x1x1x80xf32> to vector<1x80xf32>
      %470 = vector.broadcast %469 : vector<1x80xf32> to vector<32x80xf32>
      %471 = vector.broadcast %0 : vector<32x1xf32> to vector<32x80xf32>
      %472 = arith.mulf %470, %471 : vector<32x80xf32>
      %c3_i32_296 = arith.constant 3 : i32
      %473 = arith.muli %c3_i32_296, %arg15 : i32
      %c1_i32_297 = arith.constant 1 : i32
      %474 = arith.addi %473, %c1_i32_297 : i32
      %c0_i32_298 = arith.constant 0 : i32
      %475 = arith.addi %474, %c0_i32_298 : i32
      %c0_299 = arith.constant 0 : index
      %c0_300 = arith.constant 0 : index
      %476 = arith.index_cast %475 : i32 to index
      %c1_301 = arith.constant 1 : index
      %477 = vector.load %arg1[%c0_299, %c0_300, %476, %c1_301] : memref<1x3x242x81xf32, #tpu.memory_space<vmem>>, vector<1x1x1x80xf32>
      %478 = vector.shape_cast %477 : vector<1x1x1x80xf32> to vector<1x80xf32>
      %479 = vector.broadcast %478 : vector<1x80xf32> to vector<32x80xf32>
      %480 = vector.broadcast %1 : vector<32x1xf32> to vector<32x80xf32>
      %481 = arith.mulf %479, %480 : vector<32x80xf32>
      %482 = arith.addf %472, %481 : vector<32x80xf32>
      %c3_i32_302 = arith.constant 3 : i32
      %483 = arith.muli %c3_i32_302, %arg15 : i32
      %c1_i32_303 = arith.constant 1 : i32
      %484 = arith.addi %483, %c1_i32_303 : i32
      %c0_i32_304 = arith.constant 0 : i32
      %485 = arith.addi %484, %c0_i32_304 : i32
      %c0_305 = arith.constant 0 : index
      %c1_306 = arith.constant 1 : index
      %486 = arith.index_cast %485 : i32 to index
      %c1_307 = arith.constant 1 : index
      %487 = vector.load %arg1[%c0_305, %c1_306, %486, %c1_307] : memref<1x3x242x81xf32, #tpu.memory_space<vmem>>, vector<1x1x1x80xf32>
      %488 = vector.shape_cast %487 : vector<1x1x1x80xf32> to vector<1x80xf32>
      %489 = vector.broadcast %488 : vector<1x80xf32> to vector<32x80xf32>
      %490 = vector.broadcast %2 : vector<32x1xf32> to vector<32x80xf32>
      %491 = arith.mulf %489, %490 : vector<32x80xf32>
      %492 = arith.addf %482, %491 : vector<32x80xf32>
      %c3_i32_308 = arith.constant 3 : i32
      %493 = arith.muli %c3_i32_308, %arg15 : i32
      %c1_i32_309 = arith.constant 1 : i32
      %494 = arith.addi %493, %c1_i32_309 : i32
      %c1_i32_310 = arith.constant 1 : i32
      %495 = arith.addi %494, %c1_i32_310 : i32
      %c0_311 = arith.constant 0 : index
      %c2_312 = arith.constant 2 : index
      %496 = arith.index_cast %495 : i32 to index
      %c0_313 = arith.constant 0 : index
      %497 = vector.load %arg1[%c0_311, %c2_312, %496, %c0_313] : memref<1x3x242x81xf32, #tpu.memory_space<vmem>>, vector<1x1x1x80xf32>
      %498 = vector.shape_cast %497 : vector<1x1x1x80xf32> to vector<1x80xf32>
      %499 = vector.broadcast %498 : vector<1x80xf32> to vector<32x80xf32>
      %500 = vector.broadcast %3 : vector<32x1xf32> to vector<32x80xf32>
      %501 = arith.mulf %499, %500 : vector<32x80xf32>
      %502 = arith.addf %492, %501 : vector<32x80xf32>
      %c3_i32_314 = arith.constant 3 : i32
      %503 = arith.muli %c3_i32_314, %arg15 : i32
      %c1_i32_315 = arith.constant 1 : i32
      %504 = arith.addi %503, %c1_i32_315 : i32
      %c1_i32_316 = arith.constant 1 : i32
      %505 = arith.addi %504, %c1_i32_316 : i32
      %c0_317 = arith.constant 0 : index
      %c0_318 = arith.constant 0 : index
      %506 = arith.index_cast %505 : i32 to index
      %c1_319 = arith.constant 1 : index
      %507 = vector.load %arg1[%c0_317, %c0_318, %506, %c1_319] : memref<1x3x242x81xf32, #tpu.memory_space<vmem>>, vector<1x1x1x80xf32>
      %508 = vector.shape_cast %507 : vector<1x1x1x80xf32> to vector<1x80xf32>
      %509 = vector.broadcast %508 : vector<1x80xf32> to vector<32x80xf32>
      %510 = vector.broadcast %4 : vector<32x1xf32> to vector<32x80xf32>
      %511 = arith.mulf %509, %510 : vector<32x80xf32>
      %512 = arith.addf %502, %511 : vector<32x80xf32>
      %c3_i32_320 = arith.constant 3 : i32
      %513 = arith.muli %c3_i32_320, %arg15 : i32
      %c1_i32_321 = arith.constant 1 : i32
      %514 = arith.addi %513, %c1_i32_321 : i32
      %c1_i32_322 = arith.constant 1 : i32
      %515 = arith.addi %514, %c1_i32_322 : i32
      %c0_323 = arith.constant 0 : index
      %c1_324 = arith.constant 1 : index
      %516 = arith.index_cast %515 : i32 to index
      %c1_325 = arith.constant 1 : index
      %517 = vector.load %arg1[%c0_323, %c1_324, %516, %c1_325] : memref<1x3x242x81xf32, #tpu.memory_space<vmem>>, vector<1x1x1x80xf32>
      %518 = vector.shape_cast %517 : vector<1x1x1x80xf32> to vector<1x80xf32>
      %519 = vector.broadcast %518 : vector<1x80xf32> to vector<32x80xf32>
      %520 = vector.broadcast %5 : vector<32x1xf32> to vector<32x80xf32>
      %521 = arith.mulf %519, %520 : vector<32x80xf32>
      %522 = arith.addf %512, %521 : vector<32x80xf32>
      %c3_i32_326 = arith.constant 3 : i32
      %523 = arith.muli %c3_i32_326, %arg15 : i32
      %c1_i32_327 = arith.constant 1 : i32
      %524 = arith.addi %523, %c1_i32_327 : i32
      %c2_i32_328 = arith.constant 2 : i32
      %525 = arith.addi %524, %c2_i32_328 : i32
      %c0_329 = arith.constant 0 : index
      %c2_330 = arith.constant 2 : index
      %526 = arith.index_cast %525 : i32 to index
      %c0_331 = arith.constant 0 : index
      %527 = vector.load %arg1[%c0_329, %c2_330, %526, %c0_331] : memref<1x3x242x81xf32, #tpu.memory_space<vmem>>, vector<1x1x1x80xf32>
      %528 = vector.shape_cast %527 : vector<1x1x1x80xf32> to vector<1x80xf32>
      %529 = vector.broadcast %528 : vector<1x80xf32> to vector<32x80xf32>
      %530 = vector.broadcast %6 : vector<32x1xf32> to vector<32x80xf32>
      %531 = arith.mulf %529, %530 : vector<32x80xf32>
      %532 = arith.addf %522, %531 : vector<32x80xf32>
      %c3_i32_332 = arith.constant 3 : i32
      %533 = arith.muli %c3_i32_332, %arg15 : i32
      %c1_i32_333 = arith.constant 1 : i32
      %534 = arith.addi %533, %c1_i32_333 : i32
      %c2_i32_334 = arith.constant 2 : i32
      %535 = arith.addi %534, %c2_i32_334 : i32
      %c0_335 = arith.constant 0 : index
      %c0_336 = arith.constant 0 : index
      %536 = arith.index_cast %535 : i32 to index
      %c1_337 = arith.constant 1 : index
      %537 = vector.load %arg1[%c0_335, %c0_336, %536, %c1_337] : memref<1x3x242x81xf32, #tpu.memory_space<vmem>>, vector<1x1x1x80xf32>
      %538 = vector.shape_cast %537 : vector<1x1x1x80xf32> to vector<1x80xf32>
      %539 = vector.broadcast %538 : vector<1x80xf32> to vector<32x80xf32>
      %540 = vector.broadcast %7 : vector<32x1xf32> to vector<32x80xf32>
      %541 = arith.mulf %539, %540 : vector<32x80xf32>
      %542 = arith.addf %532, %541 : vector<32x80xf32>
      %c3_i32_338 = arith.constant 3 : i32
      %543 = arith.muli %c3_i32_338, %arg15 : i32
      %c1_i32_339 = arith.constant 1 : i32
      %544 = arith.addi %543, %c1_i32_339 : i32
      %c2_i32_340 = arith.constant 2 : i32
      %545 = arith.addi %544, %c2_i32_340 : i32
      %c0_341 = arith.constant 0 : index
      %c1_342 = arith.constant 1 : index
      %546 = arith.index_cast %545 : i32 to index
      %c1_343 = arith.constant 1 : index
      %547 = vector.load %arg1[%c0_341, %c1_342, %546, %c1_343] : memref<1x3x242x81xf32, #tpu.memory_space<vmem>>, vector<1x1x1x80xf32>
      %548 = vector.shape_cast %547 : vector<1x1x1x80xf32> to vector<1x80xf32>
      %549 = vector.broadcast %548 : vector<1x80xf32> to vector<32x80xf32>
      %550 = vector.broadcast %8 : vector<32x1xf32> to vector<32x80xf32>
      %551 = arith.mulf %549, %550 : vector<32x80xf32>
      %552 = arith.addf %542, %551 : vector<32x80xf32>
      %553 = arith.maximumf %463, %552 : vector<32x80xf32>
      %c3_i32_344 = arith.constant 3 : i32
      %554 = arith.muli %c3_i32_344, %arg15 : i32
      %c2_i32_345 = arith.constant 2 : i32
      %555 = arith.addi %554, %c2_i32_345 : i32
      %c0_i32_346 = arith.constant 0 : i32
      %556 = arith.addi %555, %c0_i32_346 : i32
      %c0_347 = arith.constant 0 : index
      %c0_348 = arith.constant 0 : index
      %557 = arith.index_cast %556 : i32 to index
      %c0_349 = arith.constant 0 : index
      %558 = vector.load %arg1[%c0_347, %c0_348, %557, %c0_349] : memref<1x3x242x81xf32, #tpu.memory_space<vmem>>, vector<1x1x1x80xf32>
      %559 = vector.shape_cast %558 : vector<1x1x1x80xf32> to vector<1x80xf32>
      %560 = vector.broadcast %559 : vector<1x80xf32> to vector<32x80xf32>
      %561 = vector.broadcast %0 : vector<32x1xf32> to vector<32x80xf32>
      %562 = arith.mulf %560, %561 : vector<32x80xf32>
      %c3_i32_350 = arith.constant 3 : i32
      %563 = arith.muli %c3_i32_350, %arg15 : i32
      %c2_i32_351 = arith.constant 2 : i32
      %564 = arith.addi %563, %c2_i32_351 : i32
      %c0_i32_352 = arith.constant 0 : i32
      %565 = arith.addi %564, %c0_i32_352 : i32
      %c0_353 = arith.constant 0 : index
      %c1_354 = arith.constant 1 : index
      %566 = arith.index_cast %565 : i32 to index
      %c0_355 = arith.constant 0 : index
      %567 = vector.load %arg1[%c0_353, %c1_354, %566, %c0_355] : memref<1x3x242x81xf32, #tpu.memory_space<vmem>>, vector<1x1x1x80xf32>
      %568 = vector.shape_cast %567 : vector<1x1x1x80xf32> to vector<1x80xf32>
      %569 = vector.broadcast %568 : vector<1x80xf32> to vector<32x80xf32>
      %570 = vector.broadcast %1 : vector<32x1xf32> to vector<32x80xf32>
      %571 = arith.mulf %569, %570 : vector<32x80xf32>
      %572 = arith.addf %562, %571 : vector<32x80xf32>
      %c3_i32_356 = arith.constant 3 : i32
      %573 = arith.muli %c3_i32_356, %arg15 : i32
      %c2_i32_357 = arith.constant 2 : i32
      %574 = arith.addi %573, %c2_i32_357 : i32
      %c0_i32_358 = arith.constant 0 : i32
      %575 = arith.addi %574, %c0_i32_358 : i32
      %c0_359 = arith.constant 0 : index
      %c2_360 = arith.constant 2 : index
      %576 = arith.index_cast %575 : i32 to index
      %c0_361 = arith.constant 0 : index
      %577 = vector.load %arg1[%c0_359, %c2_360, %576, %c0_361] : memref<1x3x242x81xf32, #tpu.memory_space<vmem>>, vector<1x1x1x80xf32>
      %578 = vector.shape_cast %577 : vector<1x1x1x80xf32> to vector<1x80xf32>
      %579 = vector.broadcast %578 : vector<1x80xf32> to vector<32x80xf32>
      %580 = vector.broadcast %2 : vector<32x1xf32> to vector<32x80xf32>
      %581 = arith.mulf %579, %580 : vector<32x80xf32>
      %582 = arith.addf %572, %581 : vector<32x80xf32>
      %c3_i32_362 = arith.constant 3 : i32
      %583 = arith.muli %c3_i32_362, %arg15 : i32
      %c2_i32_363 = arith.constant 2 : i32
      %584 = arith.addi %583, %c2_i32_363 : i32
      %c1_i32_364 = arith.constant 1 : i32
      %585 = arith.addi %584, %c1_i32_364 : i32
      %c0_365 = arith.constant 0 : index
      %c0_366 = arith.constant 0 : index
      %586 = arith.index_cast %585 : i32 to index
      %c0_367 = arith.constant 0 : index
      %587 = vector.load %arg1[%c0_365, %c0_366, %586, %c0_367] : memref<1x3x242x81xf32, #tpu.memory_space<vmem>>, vector<1x1x1x80xf32>
      %588 = vector.shape_cast %587 : vector<1x1x1x80xf32> to vector<1x80xf32>
      %589 = vector.broadcast %588 : vector<1x80xf32> to vector<32x80xf32>
      %590 = vector.broadcast %3 : vector<32x1xf32> to vector<32x80xf32>
      %591 = arith.mulf %589, %590 : vector<32x80xf32>
      %592 = arith.addf %582, %591 : vector<32x80xf32>
      %c3_i32_368 = arith.constant 3 : i32
      %593 = arith.muli %c3_i32_368, %arg15 : i32
      %c2_i32_369 = arith.constant 2 : i32
      %594 = arith.addi %593, %c2_i32_369 : i32
      %c1_i32_370 = arith.constant 1 : i32
      %595 = arith.addi %594, %c1_i32_370 : i32
      %c0_371 = arith.constant 0 : index
      %c1_372 = arith.constant 1 : index
      %596 = arith.index_cast %595 : i32 to index
      %c0_373 = arith.constant 0 : index
      %597 = vector.load %arg1[%c0_371, %c1_372, %596, %c0_373] : memref<1x3x242x81xf32, #tpu.memory_space<vmem>>, vector<1x1x1x80xf32>
      %598 = vector.shape_cast %597 : vector<1x1x1x80xf32> to vector<1x80xf32>
      %599 = vector.broadcast %598 : vector<1x80xf32> to vector<32x80xf32>
      %600 = vector.broadcast %4 : vector<32x1xf32> to vector<32x80xf32>
      %601 = arith.mulf %599, %600 : vector<32x80xf32>
      %602 = arith.addf %592, %601 : vector<32x80xf32>
      %c3_i32_374 = arith.constant 3 : i32
      %603 = arith.muli %c3_i32_374, %arg15 : i32
      %c2_i32_375 = arith.constant 2 : i32
      %604 = arith.addi %603, %c2_i32_375 : i32
      %c1_i32_376 = arith.constant 1 : i32
      %605 = arith.addi %604, %c1_i32_376 : i32
      %c0_377 = arith.constant 0 : index
      %c2_378 = arith.constant 2 : index
      %606 = arith.index_cast %605 : i32 to index
      %c0_379 = arith.constant 0 : index
      %607 = vector.load %arg1[%c0_377, %c2_378, %606, %c0_379] : memref<1x3x242x81xf32, #tpu.memory_space<vmem>>, vector<1x1x1x80xf32>
      %608 = vector.shape_cast %607 : vector<1x1x1x80xf32> to vector<1x80xf32>
      %609 = vector.broadcast %608 : vector<1x80xf32> to vector<32x80xf32>
      %610 = vector.broadcast %5 : vector<32x1xf32> to vector<32x80xf32>
      %611 = arith.mulf %609, %610 : vector<32x80xf32>
      %612 = arith.addf %602, %611 : vector<32x80xf32>
      %c3_i32_380 = arith.constant 3 : i32
      %613 = arith.muli %c3_i32_380, %arg15 : i32
      %c2_i32_381 = arith.constant 2 : i32
      %614 = arith.addi %613, %c2_i32_381 : i32
      %c2_i32_382 = arith.constant 2 : i32
      %615 = arith.addi %614, %c2_i32_382 : i32
      %c0_383 = arith.constant 0 : index
      %c0_384 = arith.constant 0 : index
      %616 = arith.index_cast %615 : i32 to index
      %c0_385 = arith.constant 0 : index
      %617 = vector.load %arg1[%c0_383, %c0_384, %616, %c0_385] : memref<1x3x242x81xf32, #tpu.memory_space<vmem>>, vector<1x1x1x80xf32>
      %618 = vector.shape_cast %617 : vector<1x1x1x80xf32> to vector<1x80xf32>
      %619 = vector.broadcast %618 : vector<1x80xf32> to vector<32x80xf32>
      %620 = vector.broadcast %6 : vector<32x1xf32> to vector<32x80xf32>
      %621 = arith.mulf %619, %620 : vector<32x80xf32>
      %622 = arith.addf %612, %621 : vector<32x80xf32>
      %c3_i32_386 = arith.constant 3 : i32
      %623 = arith.muli %c3_i32_386, %arg15 : i32
      %c2_i32_387 = arith.constant 2 : i32
      %624 = arith.addi %623, %c2_i32_387 : i32
      %c2_i32_388 = arith.constant 2 : i32
      %625 = arith.addi %624, %c2_i32_388 : i32
      %c0_389 = arith.constant 0 : index
      %c1_390 = arith.constant 1 : index
      %626 = arith.index_cast %625 : i32 to index
      %c0_391 = arith.constant 0 : index
      %627 = vector.load %arg1[%c0_389, %c1_390, %626, %c0_391] : memref<1x3x242x81xf32, #tpu.memory_space<vmem>>, vector<1x1x1x80xf32>
      %628 = vector.shape_cast %627 : vector<1x1x1x80xf32> to vector<1x80xf32>
      %629 = vector.broadcast %628 : vector<1x80xf32> to vector<32x80xf32>
      %630 = vector.broadcast %7 : vector<32x1xf32> to vector<32x80xf32>
      %631 = arith.mulf %629, %630 : vector<32x80xf32>
      %632 = arith.addf %622, %631 : vector<32x80xf32>
      %c3_i32_392 = arith.constant 3 : i32
      %633 = arith.muli %c3_i32_392, %arg15 : i32
      %c2_i32_393 = arith.constant 2 : i32
      %634 = arith.addi %633, %c2_i32_393 : i32
      %c2_i32_394 = arith.constant 2 : i32
      %635 = arith.addi %634, %c2_i32_394 : i32
      %c0_395 = arith.constant 0 : index
      %c2_396 = arith.constant 2 : index
      %636 = arith.index_cast %635 : i32 to index
      %c0_397 = arith.constant 0 : index
      %637 = vector.load %arg1[%c0_395, %c2_396, %636, %c0_397] : memref<1x3x242x81xf32, #tpu.memory_space<vmem>>, vector<1x1x1x80xf32>
      %638 = vector.shape_cast %637 : vector<1x1x1x80xf32> to vector<1x80xf32>
      %639 = vector.broadcast %638 : vector<1x80xf32> to vector<32x80xf32>
      %640 = vector.broadcast %8 : vector<32x1xf32> to vector<32x80xf32>
      %641 = arith.mulf %639, %640 : vector<32x80xf32>
      %642 = arith.addf %632, %641 : vector<32x80xf32>
      %643 = arith.maximumf %553, %642 : vector<32x80xf32>
      %c3_i32_398 = arith.constant 3 : i32
      %644 = arith.muli %c3_i32_398, %arg15 : i32
      %c2_i32_399 = arith.constant 2 : i32
      %645 = arith.addi %644, %c2_i32_399 : i32
      %c0_i32_400 = arith.constant 0 : i32
      %646 = arith.addi %645, %c0_i32_400 : i32
      %c0_401 = arith.constant 0 : index
      %c1_402 = arith.constant 1 : index
      %647 = arith.index_cast %646 : i32 to index
      %c0_403 = arith.constant 0 : index
      %648 = vector.load %arg1[%c0_401, %c1_402, %647, %c0_403] : memref<1x3x242x81xf32, #tpu.memory_space<vmem>>, vector<1x1x1x80xf32>
      %649 = vector.shape_cast %648 : vector<1x1x1x80xf32> to vector<1x80xf32>
      %650 = vector.broadcast %649 : vector<1x80xf32> to vector<32x80xf32>
      %651 = vector.broadcast %0 : vector<32x1xf32> to vector<32x80xf32>
      %652 = arith.mulf %650, %651 : vector<32x80xf32>
      %c3_i32_404 = arith.constant 3 : i32
      %653 = arith.muli %c3_i32_404, %arg15 : i32
      %c2_i32_405 = arith.constant 2 : i32
      %654 = arith.addi %653, %c2_i32_405 : i32
      %c0_i32_406 = arith.constant 0 : i32
      %655 = arith.addi %654, %c0_i32_406 : i32
      %c0_407 = arith.constant 0 : index
      %c2_408 = arith.constant 2 : index
      %656 = arith.index_cast %655 : i32 to index
      %c0_409 = arith.constant 0 : index
      %657 = vector.load %arg1[%c0_407, %c2_408, %656, %c0_409] : memref<1x3x242x81xf32, #tpu.memory_space<vmem>>, vector<1x1x1x80xf32>
      %658 = vector.shape_cast %657 : vector<1x1x1x80xf32> to vector<1x80xf32>
      %659 = vector.broadcast %658 : vector<1x80xf32> to vector<32x80xf32>
      %660 = vector.broadcast %1 : vector<32x1xf32> to vector<32x80xf32>
      %661 = arith.mulf %659, %660 : vector<32x80xf32>
      %662 = arith.addf %652, %661 : vector<32x80xf32>
      %c3_i32_410 = arith.constant 3 : i32
      %663 = arith.muli %c3_i32_410, %arg15 : i32
      %c2_i32_411 = arith.constant 2 : i32
      %664 = arith.addi %663, %c2_i32_411 : i32
      %c0_i32_412 = arith.constant 0 : i32
      %665 = arith.addi %664, %c0_i32_412 : i32
      %c0_413 = arith.constant 0 : index
      %c0_414 = arith.constant 0 : index
      %666 = arith.index_cast %665 : i32 to index
      %c1_415 = arith.constant 1 : index
      %667 = vector.load %arg1[%c0_413, %c0_414, %666, %c1_415] : memref<1x3x242x81xf32, #tpu.memory_space<vmem>>, vector<1x1x1x80xf32>
      %668 = vector.shape_cast %667 : vector<1x1x1x80xf32> to vector<1x80xf32>
      %669 = vector.broadcast %668 : vector<1x80xf32> to vector<32x80xf32>
      %670 = vector.broadcast %2 : vector<32x1xf32> to vector<32x80xf32>
      %671 = arith.mulf %669, %670 : vector<32x80xf32>
      %672 = arith.addf %662, %671 : vector<32x80xf32>
      %c3_i32_416 = arith.constant 3 : i32
      %673 = arith.muli %c3_i32_416, %arg15 : i32
      %c2_i32_417 = arith.constant 2 : i32
      %674 = arith.addi %673, %c2_i32_417 : i32
      %c1_i32_418 = arith.constant 1 : i32
      %675 = arith.addi %674, %c1_i32_418 : i32
      %c0_419 = arith.constant 0 : index
      %c1_420 = arith.constant 1 : index
      %676 = arith.index_cast %675 : i32 to index
      %c0_421 = arith.constant 0 : index
      %677 = vector.load %arg1[%c0_419, %c1_420, %676, %c0_421] : memref<1x3x242x81xf32, #tpu.memory_space<vmem>>, vector<1x1x1x80xf32>
      %678 = vector.shape_cast %677 : vector<1x1x1x80xf32> to vector<1x80xf32>
      %679 = vector.broadcast %678 : vector<1x80xf32> to vector<32x80xf32>
      %680 = vector.broadcast %3 : vector<32x1xf32> to vector<32x80xf32>
      %681 = arith.mulf %679, %680 : vector<32x80xf32>
      %682 = arith.addf %672, %681 : vector<32x80xf32>
      %c3_i32_422 = arith.constant 3 : i32
      %683 = arith.muli %c3_i32_422, %arg15 : i32
      %c2_i32_423 = arith.constant 2 : i32
      %684 = arith.addi %683, %c2_i32_423 : i32
      %c1_i32_424 = arith.constant 1 : i32
      %685 = arith.addi %684, %c1_i32_424 : i32
      %c0_425 = arith.constant 0 : index
      %c2_426 = arith.constant 2 : index
      %686 = arith.index_cast %685 : i32 to index
      %c0_427 = arith.constant 0 : index
      %687 = vector.load %arg1[%c0_425, %c2_426, %686, %c0_427] : memref<1x3x242x81xf32, #tpu.memory_space<vmem>>, vector<1x1x1x80xf32>
      %688 = vector.shape_cast %687 : vector<1x1x1x80xf32> to vector<1x80xf32>
      %689 = vector.broadcast %688 : vector<1x80xf32> to vector<32x80xf32>
      %690 = vector.broadcast %4 : vector<32x1xf32> to vector<32x80xf32>
      %691 = arith.mulf %689, %690 : vector<32x80xf32>
      %692 = arith.addf %682, %691 : vector<32x80xf32>
      %c3_i32_428 = arith.constant 3 : i32
      %693 = arith.muli %c3_i32_428, %arg15 : i32
      %c2_i32_429 = arith.constant 2 : i32
      %694 = arith.addi %693, %c2_i32_429 : i32
      %c1_i32_430 = arith.constant 1 : i32
      %695 = arith.addi %694, %c1_i32_430 : i32
      %c0_431 = arith.constant 0 : index
      %c0_432 = arith.constant 0 : index
      %696 = arith.index_cast %695 : i32 to index
      %c1_433 = arith.constant 1 : index
      %697 = vector.load %arg1[%c0_431, %c0_432, %696, %c1_433] : memref<1x3x242x81xf32, #tpu.memory_space<vmem>>, vector<1x1x1x80xf32>
      %698 = vector.shape_cast %697 : vector<1x1x1x80xf32> to vector<1x80xf32>
      %699 = vector.broadcast %698 : vector<1x80xf32> to vector<32x80xf32>
      %700 = vector.broadcast %5 : vector<32x1xf32> to vector<32x80xf32>
      %701 = arith.mulf %699, %700 : vector<32x80xf32>
      %702 = arith.addf %692, %701 : vector<32x80xf32>
      %c3_i32_434 = arith.constant 3 : i32
      %703 = arith.muli %c3_i32_434, %arg15 : i32
      %c2_i32_435 = arith.constant 2 : i32
      %704 = arith.addi %703, %c2_i32_435 : i32
      %c2_i32_436 = arith.constant 2 : i32
      %705 = arith.addi %704, %c2_i32_436 : i32
      %c0_437 = arith.constant 0 : index
      %c1_438 = arith.constant 1 : index
      %706 = arith.index_cast %705 : i32 to index
      %c0_439 = arith.constant 0 : index
      %707 = vector.load %arg1[%c0_437, %c1_438, %706, %c0_439] : memref<1x3x242x81xf32, #tpu.memory_space<vmem>>, vector<1x1x1x80xf32>
      %708 = vector.shape_cast %707 : vector<1x1x1x80xf32> to vector<1x80xf32>
      %709 = vector.broadcast %708 : vector<1x80xf32> to vector<32x80xf32>
      %710 = vector.broadcast %6 : vector<32x1xf32> to vector<32x80xf32>
      %711 = arith.mulf %709, %710 : vector<32x80xf32>
      %712 = arith.addf %702, %711 : vector<32x80xf32>
      %c3_i32_440 = arith.constant 3 : i32
      %713 = arith.muli %c3_i32_440, %arg15 : i32
      %c2_i32_441 = arith.constant 2 : i32
      %714 = arith.addi %713, %c2_i32_441 : i32
      %c2_i32_442 = arith.constant 2 : i32
      %715 = arith.addi %714, %c2_i32_442 : i32
      %c0_443 = arith.constant 0 : index
      %c2_444 = arith.constant 2 : index
      %716 = arith.index_cast %715 : i32 to index
      %c0_445 = arith.constant 0 : index
      %717 = vector.load %arg1[%c0_443, %c2_444, %716, %c0_445] : memref<1x3x242x81xf32, #tpu.memory_space<vmem>>, vector<1x1x1x80xf32>
      %718 = vector.shape_cast %717 : vector<1x1x1x80xf32> to vector<1x80xf32>
      %719 = vector.broadcast %718 : vector<1x80xf32> to vector<32x80xf32>
      %720 = vector.broadcast %7 : vector<32x1xf32> to vector<32x80xf32>
      %721 = arith.mulf %719, %720 : vector<32x80xf32>
      %722 = arith.addf %712, %721 : vector<32x80xf32>
      %c3_i32_446 = arith.constant 3 : i32
      %723 = arith.muli %c3_i32_446, %arg15 : i32
      %c2_i32_447 = arith.constant 2 : i32
      %724 = arith.addi %723, %c2_i32_447 : i32
      %c2_i32_448 = arith.constant 2 : i32
      %725 = arith.addi %724, %c2_i32_448 : i32
      %c0_449 = arith.constant 0 : index
      %c0_450 = arith.constant 0 : index
      %726 = arith.index_cast %725 : i32 to index
      %c1_451 = arith.constant 1 : index
      %727 = vector.load %arg1[%c0_449, %c0_450, %726, %c1_451] : memref<1x3x242x81xf32, #tpu.memory_space<vmem>>, vector<1x1x1x80xf32>
      %728 = vector.shape_cast %727 : vector<1x1x1x80xf32> to vector<1x80xf32>
      %729 = vector.broadcast %728 : vector<1x80xf32> to vector<32x80xf32>
      %730 = vector.broadcast %8 : vector<32x1xf32> to vector<32x80xf32>
      %731 = arith.mulf %729, %730 : vector<32x80xf32>
      %732 = arith.addf %722, %731 : vector<32x80xf32>
      %733 = arith.maximumf %643, %732 : vector<32x80xf32>
      %c3_i32_452 = arith.constant 3 : i32
      %734 = arith.muli %c3_i32_452, %arg15 : i32
      %c2_i32_453 = arith.constant 2 : i32
      %735 = arith.addi %734, %c2_i32_453 : i32
      %c0_i32_454 = arith.constant 0 : i32
      %736 = arith.addi %735, %c0_i32_454 : i32
      %c0_455 = arith.constant 0 : index
      %c2_456 = arith.constant 2 : index
      %737 = arith.index_cast %736 : i32 to index
      %c0_457 = arith.constant 0 : index
      %738 = vector.load %arg1[%c0_455, %c2_456, %737, %c0_457] : memref<1x3x242x81xf32, #tpu.memory_space<vmem>>, vector<1x1x1x80xf32>
      %739 = vector.shape_cast %738 : vector<1x1x1x80xf32> to vector<1x80xf32>
      %740 = vector.broadcast %739 : vector<1x80xf32> to vector<32x80xf32>
      %741 = vector.broadcast %0 : vector<32x1xf32> to vector<32x80xf32>
      %742 = arith.mulf %740, %741 : vector<32x80xf32>
      %c3_i32_458 = arith.constant 3 : i32
      %743 = arith.muli %c3_i32_458, %arg15 : i32
      %c2_i32_459 = arith.constant 2 : i32
      %744 = arith.addi %743, %c2_i32_459 : i32
      %c0_i32_460 = arith.constant 0 : i32
      %745 = arith.addi %744, %c0_i32_460 : i32
      %c0_461 = arith.constant 0 : index
      %c0_462 = arith.constant 0 : index
      %746 = arith.index_cast %745 : i32 to index
      %c1_463 = arith.constant 1 : index
      %747 = vector.load %arg1[%c0_461, %c0_462, %746, %c1_463] : memref<1x3x242x81xf32, #tpu.memory_space<vmem>>, vector<1x1x1x80xf32>
      %748 = vector.shape_cast %747 : vector<1x1x1x80xf32> to vector<1x80xf32>
      %749 = vector.broadcast %748 : vector<1x80xf32> to vector<32x80xf32>
      %750 = vector.broadcast %1 : vector<32x1xf32> to vector<32x80xf32>
      %751 = arith.mulf %749, %750 : vector<32x80xf32>
      %752 = arith.addf %742, %751 : vector<32x80xf32>
      %c3_i32_464 = arith.constant 3 : i32
      %753 = arith.muli %c3_i32_464, %arg15 : i32
      %c2_i32_465 = arith.constant 2 : i32
      %754 = arith.addi %753, %c2_i32_465 : i32
      %c0_i32_466 = arith.constant 0 : i32
      %755 = arith.addi %754, %c0_i32_466 : i32
      %c0_467 = arith.constant 0 : index
      %c1_468 = arith.constant 1 : index
      %756 = arith.index_cast %755 : i32 to index
      %c1_469 = arith.constant 1 : index
      %757 = vector.load %arg1[%c0_467, %c1_468, %756, %c1_469] : memref<1x3x242x81xf32, #tpu.memory_space<vmem>>, vector<1x1x1x80xf32>
      %758 = vector.shape_cast %757 : vector<1x1x1x80xf32> to vector<1x80xf32>
      %759 = vector.broadcast %758 : vector<1x80xf32> to vector<32x80xf32>
      %760 = vector.broadcast %2 : vector<32x1xf32> to vector<32x80xf32>
      %761 = arith.mulf %759, %760 : vector<32x80xf32>
      %762 = arith.addf %752, %761 : vector<32x80xf32>
      %c3_i32_470 = arith.constant 3 : i32
      %763 = arith.muli %c3_i32_470, %arg15 : i32
      %c2_i32_471 = arith.constant 2 : i32
      %764 = arith.addi %763, %c2_i32_471 : i32
      %c1_i32_472 = arith.constant 1 : i32
      %765 = arith.addi %764, %c1_i32_472 : i32
      %c0_473 = arith.constant 0 : index
      %c2_474 = arith.constant 2 : index
      %766 = arith.index_cast %765 : i32 to index
      %c0_475 = arith.constant 0 : index
      %767 = vector.load %arg1[%c0_473, %c2_474, %766, %c0_475] : memref<1x3x242x81xf32, #tpu.memory_space<vmem>>, vector<1x1x1x80xf32>
      %768 = vector.shape_cast %767 : vector<1x1x1x80xf32> to vector<1x80xf32>
      %769 = vector.broadcast %768 : vector<1x80xf32> to vector<32x80xf32>
      %770 = vector.broadcast %3 : vector<32x1xf32> to vector<32x80xf32>
      %771 = arith.mulf %769, %770 : vector<32x80xf32>
      %772 = arith.addf %762, %771 : vector<32x80xf32>
      %c3_i32_476 = arith.constant 3 : i32
      %773 = arith.muli %c3_i32_476, %arg15 : i32
      %c2_i32_477 = arith.constant 2 : i32
      %774 = arith.addi %773, %c2_i32_477 : i32
      %c1_i32_478 = arith.constant 1 : i32
      %775 = arith.addi %774, %c1_i32_478 : i32
      %c0_479 = arith.constant 0 : index
      %c0_480 = arith.constant 0 : index
      %776 = arith.index_cast %775 : i32 to index
      %c1_481 = arith.constant 1 : index
      %777 = vector.load %arg1[%c0_479, %c0_480, %776, %c1_481] : memref<1x3x242x81xf32, #tpu.memory_space<vmem>>, vector<1x1x1x80xf32>
      %778 = vector.shape_cast %777 : vector<1x1x1x80xf32> to vector<1x80xf32>
      %779 = vector.broadcast %778 : vector<1x80xf32> to vector<32x80xf32>
      %780 = vector.broadcast %4 : vector<32x1xf32> to vector<32x80xf32>
      %781 = arith.mulf %779, %780 : vector<32x80xf32>
      %782 = arith.addf %772, %781 : vector<32x80xf32>
      %c3_i32_482 = arith.constant 3 : i32
      %783 = arith.muli %c3_i32_482, %arg15 : i32
      %c2_i32_483 = arith.constant 2 : i32
      %784 = arith.addi %783, %c2_i32_483 : i32
      %c1_i32_484 = arith.constant 1 : i32
      %785 = arith.addi %784, %c1_i32_484 : i32
      %c0_485 = arith.constant 0 : index
      %c1_486 = arith.constant 1 : index
      %786 = arith.index_cast %785 : i32 to index
      %c1_487 = arith.constant 1 : index
      %787 = vector.load %arg1[%c0_485, %c1_486, %786, %c1_487] : memref<1x3x242x81xf32, #tpu.memory_space<vmem>>, vector<1x1x1x80xf32>
      %788 = vector.shape_cast %787 : vector<1x1x1x80xf32> to vector<1x80xf32>
      %789 = vector.broadcast %788 : vector<1x80xf32> to vector<32x80xf32>
      %790 = vector.broadcast %5 : vector<32x1xf32> to vector<32x80xf32>
      %791 = arith.mulf %789, %790 : vector<32x80xf32>
      %792 = arith.addf %782, %791 : vector<32x80xf32>
      %c3_i32_488 = arith.constant 3 : i32
      %793 = arith.muli %c3_i32_488, %arg15 : i32
      %c2_i32_489 = arith.constant 2 : i32
      %794 = arith.addi %793, %c2_i32_489 : i32
      %c2_i32_490 = arith.constant 2 : i32
      %795 = arith.addi %794, %c2_i32_490 : i32
      %c0_491 = arith.constant 0 : index
      %c2_492 = arith.constant 2 : index
      %796 = arith.index_cast %795 : i32 to index
      %c0_493 = arith.constant 0 : index
      %797 = vector.load %arg1[%c0_491, %c2_492, %796, %c0_493] : memref<1x3x242x81xf32, #tpu.memory_space<vmem>>, vector<1x1x1x80xf32>
      %798 = vector.shape_cast %797 : vector<1x1x1x80xf32> to vector<1x80xf32>
      %799 = vector.broadcast %798 : vector<1x80xf32> to vector<32x80xf32>
      %800 = vector.broadcast %6 : vector<32x1xf32> to vector<32x80xf32>
      %801 = arith.mulf %799, %800 : vector<32x80xf32>
      %802 = arith.addf %792, %801 : vector<32x80xf32>
      %c3_i32_494 = arith.constant 3 : i32
      %803 = arith.muli %c3_i32_494, %arg15 : i32
      %c2_i32_495 = arith.constant 2 : i32
      %804 = arith.addi %803, %c2_i32_495 : i32
      %c2_i32_496 = arith.constant 2 : i32
      %805 = arith.addi %804, %c2_i32_496 : i32
      %c0_497 = arith.constant 0 : index
      %c0_498 = arith.constant 0 : index
      %806 = arith.index_cast %805 : i32 to index
      %c1_499 = arith.constant 1 : index
      %807 = vector.load %arg1[%c0_497, %c0_498, %806, %c1_499] : memref<1x3x242x81xf32, #tpu.memory_space<vmem>>, vector<1x1x1x80xf32>
      %808 = vector.shape_cast %807 : vector<1x1x1x80xf32> to vector<1x80xf32>
      %809 = vector.broadcast %808 : vector<1x80xf32> to vector<32x80xf32>
      %810 = vector.broadcast %7 : vector<32x1xf32> to vector<32x80xf32>
      %811 = arith.mulf %809, %810 : vector<32x80xf32>
      %812 = arith.addf %802, %811 : vector<32x80xf32>
      %c3_i32_500 = arith.constant 3 : i32
      %813 = arith.muli %c3_i32_500, %arg15 : i32
      %c2_i32_501 = arith.constant 2 : i32
      %814 = arith.addi %813, %c2_i32_501 : i32
      %c2_i32_502 = arith.constant 2 : i32
      %815 = arith.addi %814, %c2_i32_502 : i32
      %c0_503 = arith.constant 0 : index
      %c1_504 = arith.constant 1 : index
      %816 = arith.index_cast %815 : i32 to index
      %c1_505 = arith.constant 1 : index
      %817 = vector.load %arg1[%c0_503, %c1_504, %816, %c1_505] : memref<1x3x242x81xf32, #tpu.memory_space<vmem>>, vector<1x1x1x80xf32>
      %818 = vector.shape_cast %817 : vector<1x1x1x80xf32> to vector<1x80xf32>
      %819 = vector.broadcast %818 : vector<1x80xf32> to vector<32x80xf32>
      %820 = vector.broadcast %8 : vector<32x1xf32> to vector<32x80xf32>
      %821 = arith.mulf %819, %820 : vector<32x80xf32>
      %822 = arith.addf %812, %821 : vector<32x80xf32>
      %823 = arith.maximumf %733, %822 : vector<32x80xf32>
      %824 = vector.broadcast %9 : vector<32x1xf32> to vector<32x80xf32>
      %825 = arith.addf %823, %824 : vector<32x80xf32>
      %826 = tpu.transpose %825, [1, 0] : vector<32x80xf32> -> vector<80x32xf32>
      %827 = arith.index_cast %arg15 : i32 to index
      %c0_506 = arith.constant 0 : index
      %c0_507 = arith.constant 0 : index
      %828 = vector.load %arg9[%827, %c0_506, %c0_507] : memref<80x80x32xf32, #tpu.memory_space<vmem>>, vector<1x80x32xf32>
      %829 = vector.shape_cast %828 : vector<1x80x32xf32> to vector<80x32xf32>
      %830 = vector.shape_cast %826 : vector<80x32xf32> to vector<1x80x32xf32>
      tpu.vector_store %arg9[%827, %c0_506, %c0_507], %830 {strides = array<i32>} : memref<80x80x32xf32, #tpu.memory_space<vmem>>, vector<1x80x32xf32>,
    }
    %c80_i32_11 = arith.constant 80 : i32
    %c0_12 = arith.constant 0 : index
    %c0_13 = arith.constant 0 : index
    %11 = vector.load %arg5[%c0_12, %c0_13] : memref<1x64xf32, #tpu.memory_space<vmem>>, vector<1x64xf32>
    %c0_i32_14 = arith.constant 0 : i32
    %c26_i32 = arith.constant 26 : i32
    %12 = arith.addi %c0_i32_14, %c26_i32 : i32
    %c1_i32_15 = arith.constant 1 : i32
    scf.for %arg15 = %c0_i32_14 to %12 step %c1_i32_15  : i32 {
      %c3_i32 = arith.constant 3 : i32
      %15 = arith.muli %c3_i32, %arg15 : i32
      %c0_i32_22 = arith.constant 0 : i32
      %16 = arith.addi %15, %c0_i32_22 : i32
      %17 = arith.index_cast %16 : i32 to index
      %c0_23 = arith.constant 0 : index
      %c0_24 = arith.constant 0 : index
      %18 = vector.load %arg9[%17, %c0_23, %c0_24] : memref<80x80x32xf32, #tpu.memory_space<vmem>>, vector<1x78x32xf32>
      %19 = vector.shape_cast %18 : vector<1x78x32xf32> to vector<78x32xf32>
      %c0_25 = arith.constant 0 : index
      %c0_26 = arith.constant 0 : index
      %20 = vector.load %arg11[%c0_25, %c0_26] : memref<78x288xf32, #tpu.memory_space<vmem>>, vector<78x32xf32>
      tpu.vector_store %arg11[%c0_25, %c0_26], %19 {strides = array<i32>} : memref<78x288xf32, #tpu.memory_space<vmem>>, vector<78x32xf32>,
      %c0_i32_27 = arith.constant 0 : i32
      %21 = arith.addi %15, %c0_i32_27 : i32
      %22 = arith.index_cast %21 : i32 to index
      %c1_28 = arith.constant 1 : index
      %c0_29 = arith.constant 0 : index
      %23 = vector.load %arg9[%22, %c1_28, %c0_29] : memref<80x80x32xf32, #tpu.memory_space<vmem>>, vector<1x78x32xf32>
      %24 = vector.shape_cast %23 : vector<1x78x32xf32> to vector<78x32xf32>
      %c0_30 = arith.constant 0 : index
      %c32 = arith.constant 32 : index
      %25 = vector.load %arg11[%c0_30, %c32] : memref<78x288xf32, #tpu.memory_space<vmem>>, vector<78x32xf32>
      tpu.vector_store %arg11[%c0_30, %c32], %24 {strides = array<i32>} : memref<78x288xf32, #tpu.memory_space<vmem>>, vector<78x32xf32>,
      %c0_i32_31 = arith.constant 0 : i32
      %26 = arith.addi %15, %c0_i32_31 : i32
      %27 = arith.index_cast %26 : i32 to index
      %c2_32 = arith.constant 2 : index
      %c0_33 = arith.constant 0 : index
      %28 = vector.load %arg9[%27, %c2_32, %c0_33] : memref<80x80x32xf32, #tpu.memory_space<vmem>>, vector<1x78x32xf32>
      %29 = vector.shape_cast %28 : vector<1x78x32xf32> to vector<78x32xf32>
      %c0_34 = arith.constant 0 : index
      %c64 = arith.constant 64 : index
      %30 = vector.load %arg11[%c0_34, %c64] : memref<78x288xf32, #tpu.memory_space<vmem>>, vector<78x32xf32>
      tpu.vector_store %arg11[%c0_34, %c64], %29 {strides = array<i32>} : memref<78x288xf32, #tpu.memory_space<vmem>>, vector<78x32xf32>,
      %c1_i32_35 = arith.constant 1 : i32
      %31 = arith.addi %15, %c1_i32_35 : i32
      %32 = arith.index_cast %31 : i32 to index
      %c0_36 = arith.constant 0 : index
      %c0_37 = arith.constant 0 : index
      %33 = vector.load %arg9[%32, %c0_36, %c0_37] : memref<80x80x32xf32, #tpu.memory_space<vmem>>, vector<1x78x32xf32>
      %34 = vector.shape_cast %33 : vector<1x78x32xf32> to vector<78x32xf32>
      %c0_38 = arith.constant 0 : index
      %c96 = arith.constant 96 : index
      %35 = vector.load %arg11[%c0_38, %c96] : memref<78x288xf32, #tpu.memory_space<vmem>>, vector<78x32xf32>
      tpu.vector_store %arg11[%c0_38, %c96], %34 {strides = array<i32>} : memref<78x288xf32, #tpu.memory_space<vmem>>, vector<78x32xf32>,
      %c1_i32_39 = arith.constant 1 : i32
      %36 = arith.addi %15, %c1_i32_39 : i32
      %37 = arith.index_cast %36 : i32 to index
      %c1_40 = arith.constant 1 : index
      %c0_41 = arith.constant 0 : index
      %38 = vector.load %arg9[%37, %c1_40, %c0_41] : memref<80x80x32xf32, #tpu.memory_space<vmem>>, vector<1x78x32xf32>
      %39 = vector.shape_cast %38 : vector<1x78x32xf32> to vector<78x32xf32>
      %c0_42 = arith.constant 0 : index
      %c128 = arith.constant 128 : index
      %40 = vector.load %arg11[%c0_42, %c128] : memref<78x288xf32, #tpu.memory_space<vmem>>, vector<78x32xf32>
      tpu.vector_store %arg11[%c0_42, %c128], %39 {strides = array<i32>} : memref<78x288xf32, #tpu.memory_space<vmem>>, vector<78x32xf32>,
      %c1_i32_43 = arith.constant 1 : i32
      %41 = arith.addi %15, %c1_i32_43 : i32
      %42 = arith.index_cast %41 : i32 to index
      %c2_44 = arith.constant 2 : index
      %c0_45 = arith.constant 0 : index
      %43 = vector.load %arg9[%42, %c2_44, %c0_45] : memref<80x80x32xf32, #tpu.memory_space<vmem>>, vector<1x78x32xf32>
      %44 = vector.shape_cast %43 : vector<1x78x32xf32> to vector<78x32xf32>
      %c0_46 = arith.constant 0 : index
      %c160 = arith.constant 160 : index
      %45 = vector.load %arg11[%c0_46, %c160] : memref<78x288xf32, #tpu.memory_space<vmem>>, vector<78x32xf32>
      tpu.vector_store %arg11[%c0_46, %c160], %44 {strides = array<i32>} : memref<78x288xf32, #tpu.memory_space<vmem>>, vector<78x32xf32>,
      %c2_i32 = arith.constant 2 : i32
      %46 = arith.addi %15, %c2_i32 : i32
      %47 = arith.index_cast %46 : i32 to index
      %c0_47 = arith.constant 0 : index
      %c0_48 = arith.constant 0 : index
      %48 = vector.load %arg9[%47, %c0_47, %c0_48] : memref<80x80x32xf32, #tpu.memory_space<vmem>>, vector<1x78x32xf32>
      %49 = vector.shape_cast %48 : vector<1x78x32xf32> to vector<78x32xf32>
      %c0_49 = arith.constant 0 : index
      %c192 = arith.constant 192 : index
      %50 = vector.load %arg11[%c0_49, %c192] : memref<78x288xf32, #tpu.memory_space<vmem>>, vector<78x32xf32>
      tpu.vector_store %arg11[%c0_49, %c192], %49 {strides = array<i32>} : memref<78x288xf32, #tpu.memory_space<vmem>>, vector<78x32xf32>,
      %c2_i32_50 = arith.constant 2 : i32
      %51 = arith.addi %15, %c2_i32_50 : i32
      %52 = arith.index_cast %51 : i32 to index
      %c1_51 = arith.constant 1 : index
      %c0_52 = arith.constant 0 : index
      %53 = vector.load %arg9[%52, %c1_51, %c0_52] : memref<80x80x32xf32, #tpu.memory_space<vmem>>, vector<1x78x32xf32>
      %54 = vector.shape_cast %53 : vector<1x78x32xf32> to vector<78x32xf32>
      %c0_53 = arith.constant 0 : index
      %c224 = arith.constant 224 : index
      %55 = vector.load %arg11[%c0_53, %c224] : memref<78x288xf32, #tpu.memory_space<vmem>>, vector<78x32xf32>
      tpu.vector_store %arg11[%c0_53, %c224], %54 {strides = array<i32>} : memref<78x288xf32, #tpu.memory_space<vmem>>, vector<78x32xf32>,
      %c2_i32_54 = arith.constant 2 : i32
      %56 = arith.addi %15, %c2_i32_54 : i32
      %57 = arith.index_cast %56 : i32 to index
      %c2_55 = arith.constant 2 : index
      %c0_56 = arith.constant 0 : index
      %58 = vector.load %arg9[%57, %c2_55, %c0_56] : memref<80x80x32xf32, #tpu.memory_space<vmem>>, vector<1x78x32xf32>
      %59 = vector.shape_cast %58 : vector<1x78x32xf32> to vector<78x32xf32>
      %c0_57 = arith.constant 0 : index
      %c256 = arith.constant 256 : index
      %60 = vector.load %arg11[%c0_57, %c256] : memref<78x288xf32, #tpu.memory_space<vmem>>, vector<78x32xf32>
      tpu.vector_store %arg11[%c0_57, %c256], %59 {strides = array<i32>} : memref<78x288xf32, #tpu.memory_space<vmem>>, vector<78x32xf32>,
      %c0_58 = arith.constant 0 : index
      %c0_59 = arith.constant 0 : index
      %61 = vector.load %arg11[%c0_58, %c0_59] : memref<78x288xf32, #tpu.memory_space<vmem>>, vector<78x288xf32>
      %c0_60 = arith.constant 0 : index
      %c0_61 = arith.constant 0 : index
      %62 = vector.load %arg4[%c0_60, %c0_61] : memref<288x64xf32, #tpu.memory_space<vmem>>, vector<288x64xf32>
      %cst = arith.constant dense<0.000000e+00> : vector<78x64xf32>
      %63 = tpu.matmul %61, %62, %cst {dimension_numbers = #tpu.dot_dimension_numbers<[1], [0], [0], [1], [0, 0, 1, 1], [], []>} : vector<78x288xf32>, vector<288x64xf32>, vector<78x64xf32> -> vector<78x64xf32>
      %c1_i32_62 = arith.constant 1 : i32
      %64 = arith.addi %15, %c1_i32_62 : i32
      %c0_i32_63 = arith.constant 0 : i32
      %65 = arith.addi %64, %c0_i32_63 : i32
      %66 = arith.index_cast %65 : i32 to index
      %c0_64 = arith.constant 0 : index
      %c0_65 = arith.constant 0 : index
      %67 = vector.load %arg9[%66, %c0_64, %c0_65] : memref<80x80x32xf32, #tpu.memory_space<vmem>>, vector<1x78x32xf32>
      %68 = vector.shape_cast %67 : vector<1x78x32xf32> to vector<78x32xf32>
      %c0_66 = arith.constant 0 : index
      %c0_67 = arith.constant 0 : index
      %69 = vector.load %arg11[%c0_66, %c0_67] : memref<78x288xf32, #tpu.memory_space<vmem>>, vector<78x32xf32>
      tpu.vector_store %arg11[%c0_66, %c0_67], %68 {strides = array<i32>} : memref<78x288xf32, #tpu.memory_space<vmem>>, vector<78x32xf32>,
      %c0_i32_68 = arith.constant 0 : i32
      %70 = arith.addi %64, %c0_i32_68 : i32
      %71 = arith.index_cast %70 : i32 to index
      %c1_69 = arith.constant 1 : index
      %c0_70 = arith.constant 0 : index
      %72 = vector.load %arg9[%71, %c1_69, %c0_70] : memref<80x80x32xf32, #tpu.memory_space<vmem>>, vector<1x78x32xf32>
      %73 = vector.shape_cast %72 : vector<1x78x32xf32> to vector<78x32xf32>
      %c0_71 = arith.constant 0 : index
      %c32_72 = arith.constant 32 : index
      %74 = vector.load %arg11[%c0_71, %c32_72] : memref<78x288xf32, #tpu.memory_space<vmem>>, vector<78x32xf32>
      tpu.vector_store %arg11[%c0_71, %c32_72], %73 {strides = array<i32>} : memref<78x288xf32, #tpu.memory_space<vmem>>, vector<78x32xf32>,
      %c0_i32_73 = arith.constant 0 : i32
      %75 = arith.addi %64, %c0_i32_73 : i32
      %76 = arith.index_cast %75 : i32 to index
      %c2_74 = arith.constant 2 : index
      %c0_75 = arith.constant 0 : index
      %77 = vector.load %arg9[%76, %c2_74, %c0_75] : memref<80x80x32xf32, #tpu.memory_space<vmem>>, vector<1x78x32xf32>
      %78 = vector.shape_cast %77 : vector<1x78x32xf32> to vector<78x32xf32>
      %c0_76 = arith.constant 0 : index
      %c64_77 = arith.constant 64 : index
      %79 = vector.load %arg11[%c0_76, %c64_77] : memref<78x288xf32, #tpu.memory_space<vmem>>, vector<78x32xf32>
      tpu.vector_store %arg11[%c0_76, %c64_77], %78 {strides = array<i32>} : memref<78x288xf32, #tpu.memory_space<vmem>>, vector<78x32xf32>,
      %c1_i32_78 = arith.constant 1 : i32
      %80 = arith.addi %64, %c1_i32_78 : i32
      %81 = arith.index_cast %80 : i32 to index
      %c0_79 = arith.constant 0 : index
      %c0_80 = arith.constant 0 : index
      %82 = vector.load %arg9[%81, %c0_79, %c0_80] : memref<80x80x32xf32, #tpu.memory_space<vmem>>, vector<1x78x32xf32>
      %83 = vector.shape_cast %82 : vector<1x78x32xf32> to vector<78x32xf32>
      %c0_81 = arith.constant 0 : index
      %c96_82 = arith.constant 96 : index
      %84 = vector.load %arg11[%c0_81, %c96_82] : memref<78x288xf32, #tpu.memory_space<vmem>>, vector<78x32xf32>
      tpu.vector_store %arg11[%c0_81, %c96_82], %83 {strides = array<i32>} : memref<78x288xf32, #tpu.memory_space<vmem>>, vector<78x32xf32>,
      %c1_i32_83 = arith.constant 1 : i32
      %85 = arith.addi %64, %c1_i32_83 : i32
      %86 = arith.index_cast %85 : i32 to index
      %c1_84 = arith.constant 1 : index
      %c0_85 = arith.constant 0 : index
      %87 = vector.load %arg9[%86, %c1_84, %c0_85] : memref<80x80x32xf32, #tpu.memory_space<vmem>>, vector<1x78x32xf32>
      %88 = vector.shape_cast %87 : vector<1x78x32xf32> to vector<78x32xf32>
      %c0_86 = arith.constant 0 : index
      %c128_87 = arith.constant 128 : index
      %89 = vector.load %arg11[%c0_86, %c128_87] : memref<78x288xf32, #tpu.memory_space<vmem>>, vector<78x32xf32>
      tpu.vector_store %arg11[%c0_86, %c128_87], %88 {strides = array<i32>} : memref<78x288xf32, #tpu.memory_space<vmem>>, vector<78x32xf32>,
      %c1_i32_88 = arith.constant 1 : i32
      %90 = arith.addi %64, %c1_i32_88 : i32
      %91 = arith.index_cast %90 : i32 to index
      %c2_89 = arith.constant 2 : index
      %c0_90 = arith.constant 0 : index
      %92 = vector.load %arg9[%91, %c2_89, %c0_90] : memref<80x80x32xf32, #tpu.memory_space<vmem>>, vector<1x78x32xf32>
      %93 = vector.shape_cast %92 : vector<1x78x32xf32> to vector<78x32xf32>
      %c0_91 = arith.constant 0 : index
      %c160_92 = arith.constant 160 : index
      %94 = vector.load %arg11[%c0_91, %c160_92] : memref<78x288xf32, #tpu.memory_space<vmem>>, vector<78x32xf32>
      tpu.vector_store %arg11[%c0_91, %c160_92], %93 {strides = array<i32>} : memref<78x288xf32, #tpu.memory_space<vmem>>, vector<78x32xf32>,
      %c2_i32_93 = arith.constant 2 : i32
      %95 = arith.addi %64, %c2_i32_93 : i32
      %96 = arith.index_cast %95 : i32 to index
      %c0_94 = arith.constant 0 : index
      %c0_95 = arith.constant 0 : index
      %97 = vector.load %arg9[%96, %c0_94, %c0_95] : memref<80x80x32xf32, #tpu.memory_space<vmem>>, vector<1x78x32xf32>
      %98 = vector.shape_cast %97 : vector<1x78x32xf32> to vector<78x32xf32>
      %c0_96 = arith.constant 0 : index
      %c192_97 = arith.constant 192 : index
      %99 = vector.load %arg11[%c0_96, %c192_97] : memref<78x288xf32, #tpu.memory_space<vmem>>, vector<78x32xf32>
      tpu.vector_store %arg11[%c0_96, %c192_97], %98 {strides = array<i32>} : memref<78x288xf32, #tpu.memory_space<vmem>>, vector<78x32xf32>,
      %c2_i32_98 = arith.constant 2 : i32
      %100 = arith.addi %64, %c2_i32_98 : i32
      %101 = arith.index_cast %100 : i32 to index
      %c1_99 = arith.constant 1 : index
      %c0_100 = arith.constant 0 : index
      %102 = vector.load %arg9[%101, %c1_99, %c0_100] : memref<80x80x32xf32, #tpu.memory_space<vmem>>, vector<1x78x32xf32>
      %103 = vector.shape_cast %102 : vector<1x78x32xf32> to vector<78x32xf32>
      %c0_101 = arith.constant 0 : index
      %c224_102 = arith.constant 224 : index
      %104 = vector.load %arg11[%c0_101, %c224_102] : memref<78x288xf32, #tpu.memory_space<vmem>>, vector<78x32xf32>
      tpu.vector_store %arg11[%c0_101, %c224_102], %103 {strides = array<i32>} : memref<78x288xf32, #tpu.memory_space<vmem>>, vector<78x32xf32>,
      %c2_i32_103 = arith.constant 2 : i32
      %105 = arith.addi %64, %c2_i32_103 : i32
      %106 = arith.index_cast %105 : i32 to index
      %c2_104 = arith.constant 2 : index
      %c0_105 = arith.constant 0 : index
      %107 = vector.load %arg9[%106, %c2_104, %c0_105] : memref<80x80x32xf32, #tpu.memory_space<vmem>>, vector<1x78x32xf32>
      %108 = vector.shape_cast %107 : vector<1x78x32xf32> to vector<78x32xf32>
      %c0_106 = arith.constant 0 : index
      %c256_107 = arith.constant 256 : index
      %109 = vector.load %arg11[%c0_106, %c256_107] : memref<78x288xf32, #tpu.memory_space<vmem>>, vector<78x32xf32>
      tpu.vector_store %arg11[%c0_106, %c256_107], %108 {strides = array<i32>} : memref<78x288xf32, #tpu.memory_space<vmem>>, vector<78x32xf32>,
      %c0_108 = arith.constant 0 : index
      %c0_109 = arith.constant 0 : index
      %110 = vector.load %arg11[%c0_108, %c0_109] : memref<78x288xf32, #tpu.memory_space<vmem>>, vector<78x288xf32>
      %c0_110 = arith.constant 0 : index
      %c0_111 = arith.constant 0 : index
      %111 = vector.load %arg4[%c0_110, %c0_111] : memref<288x64xf32, #tpu.memory_space<vmem>>, vector<288x64xf32>
      %cst_112 = arith.constant dense<0.000000e+00> : vector<78x64xf32>
      %112 = tpu.matmul %110, %111, %cst_112 {dimension_numbers = #tpu.dot_dimension_numbers<[1], [0], [0], [1], [0, 0, 1, 1], [], []>} : vector<78x288xf32>, vector<288x64xf32>, vector<78x64xf32> -> vector<78x64xf32>
      %113 = arith.maximumf %63, %112 : vector<78x64xf32>
      %c2_i32_113 = arith.constant 2 : i32
      %114 = arith.addi %15, %c2_i32_113 : i32
      %c0_i32_114 = arith.constant 0 : i32
      %115 = arith.addi %114, %c0_i32_114 : i32
      %116 = arith.index_cast %115 : i32 to index
      %c0_115 = arith.constant 0 : index
      %c0_116 = arith.constant 0 : index
      %117 = vector.load %arg9[%116, %c0_115, %c0_116] : memref<80x80x32xf32, #tpu.memory_space<vmem>>, vector<1x78x32xf32>
      %118 = vector.shape_cast %117 : vector<1x78x32xf32> to vector<78x32xf32>
      %c0_117 = arith.constant 0 : index
      %c0_118 = arith.constant 0 : index
      %119 = vector.load %arg11[%c0_117, %c0_118] : memref<78x288xf32, #tpu.memory_space<vmem>>, vector<78x32xf32>
      tpu.vector_store %arg11[%c0_117, %c0_118], %118 {strides = array<i32>} : memref<78x288xf32, #tpu.memory_space<vmem>>, vector<78x32xf32>,
      %c0_i32_119 = arith.constant 0 : i32
      %120 = arith.addi %114, %c0_i32_119 : i32
      %121 = arith.index_cast %120 : i32 to index
      %c1_120 = arith.constant 1 : index
      %c0_121 = arith.constant 0 : index
      %122 = vector.load %arg9[%121, %c1_120, %c0_121] : memref<80x80x32xf32, #tpu.memory_space<vmem>>, vector<1x78x32xf32>
      %123 = vector.shape_cast %122 : vector<1x78x32xf32> to vector<78x32xf32>
      %c0_122 = arith.constant 0 : index
      %c32_123 = arith.constant 32 : index
      %124 = vector.load %arg11[%c0_122, %c32_123] : memref<78x288xf32, #tpu.memory_space<vmem>>, vector<78x32xf32>
      tpu.vector_store %arg11[%c0_122, %c32_123], %123 {strides = array<i32>} : memref<78x288xf32, #tpu.memory_space<vmem>>, vector<78x32xf32>,
      %c0_i32_124 = arith.constant 0 : i32
      %125 = arith.addi %114, %c0_i32_124 : i32
      %126 = arith.index_cast %125 : i32 to index
      %c2_125 = arith.constant 2 : index
      %c0_126 = arith.constant 0 : index
      %127 = vector.load %arg9[%126, %c2_125, %c0_126] : memref<80x80x32xf32, #tpu.memory_space<vmem>>, vector<1x78x32xf32>
      %128 = vector.shape_cast %127 : vector<1x78x32xf32> to vector<78x32xf32>
      %c0_127 = arith.constant 0 : index
      %c64_128 = arith.constant 64 : index
      %129 = vector.load %arg11[%c0_127, %c64_128] : memref<78x288xf32, #tpu.memory_space<vmem>>, vector<78x32xf32>
      tpu.vector_store %arg11[%c0_127, %c64_128], %128 {strides = array<i32>} : memref<78x288xf32, #tpu.memory_space<vmem>>, vector<78x32xf32>,
      %c1_i32_129 = arith.constant 1 : i32
      %130 = arith.addi %114, %c1_i32_129 : i32
      %131 = arith.index_cast %130 : i32 to index
      %c0_130 = arith.constant 0 : index
      %c0_131 = arith.constant 0 : index
      %132 = vector.load %arg9[%131, %c0_130, %c0_131] : memref<80x80x32xf32, #tpu.memory_space<vmem>>, vector<1x78x32xf32>
      %133 = vector.shape_cast %132 : vector<1x78x32xf32> to vector<78x32xf32>
      %c0_132 = arith.constant 0 : index
      %c96_133 = arith.constant 96 : index
      %134 = vector.load %arg11[%c0_132, %c96_133] : memref<78x288xf32, #tpu.memory_space<vmem>>, vector<78x32xf32>
      tpu.vector_store %arg11[%c0_132, %c96_133], %133 {strides = array<i32>} : memref<78x288xf32, #tpu.memory_space<vmem>>, vector<78x32xf32>,
      %c1_i32_134 = arith.constant 1 : i32
      %135 = arith.addi %114, %c1_i32_134 : i32
      %136 = arith.index_cast %135 : i32 to index
      %c1_135 = arith.constant 1 : index
      %c0_136 = arith.constant 0 : index
      %137 = vector.load %arg9[%136, %c1_135, %c0_136] : memref<80x80x32xf32, #tpu.memory_space<vmem>>, vector<1x78x32xf32>
      %138 = vector.shape_cast %137 : vector<1x78x32xf32> to vector<78x32xf32>
      %c0_137 = arith.constant 0 : index
      %c128_138 = arith.constant 128 : index
      %139 = vector.load %arg11[%c0_137, %c128_138] : memref<78x288xf32, #tpu.memory_space<vmem>>, vector<78x32xf32>
      tpu.vector_store %arg11[%c0_137, %c128_138], %138 {strides = array<i32>} : memref<78x288xf32, #tpu.memory_space<vmem>>, vector<78x32xf32>,
      %c1_i32_139 = arith.constant 1 : i32
      %140 = arith.addi %114, %c1_i32_139 : i32
      %141 = arith.index_cast %140 : i32 to index
      %c2_140 = arith.constant 2 : index
      %c0_141 = arith.constant 0 : index
      %142 = vector.load %arg9[%141, %c2_140, %c0_141] : memref<80x80x32xf32, #tpu.memory_space<vmem>>, vector<1x78x32xf32>
      %143 = vector.shape_cast %142 : vector<1x78x32xf32> to vector<78x32xf32>
      %c0_142 = arith.constant 0 : index
      %c160_143 = arith.constant 160 : index
      %144 = vector.load %arg11[%c0_142, %c160_143] : memref<78x288xf32, #tpu.memory_space<vmem>>, vector<78x32xf32>
      tpu.vector_store %arg11[%c0_142, %c160_143], %143 {strides = array<i32>} : memref<78x288xf32, #tpu.memory_space<vmem>>, vector<78x32xf32>,
      %c2_i32_144 = arith.constant 2 : i32
      %145 = arith.addi %114, %c2_i32_144 : i32
      %146 = arith.index_cast %145 : i32 to index
      %c0_145 = arith.constant 0 : index
      %c0_146 = arith.constant 0 : index
      %147 = vector.load %arg9[%146, %c0_145, %c0_146] : memref<80x80x32xf32, #tpu.memory_space<vmem>>, vector<1x78x32xf32>
      %148 = vector.shape_cast %147 : vector<1x78x32xf32> to vector<78x32xf32>
      %c0_147 = arith.constant 0 : index
      %c192_148 = arith.constant 192 : index
      %149 = vector.load %arg11[%c0_147, %c192_148] : memref<78x288xf32, #tpu.memory_space<vmem>>, vector<78x32xf32>
      tpu.vector_store %arg11[%c0_147, %c192_148], %148 {strides = array<i32>} : memref<78x288xf32, #tpu.memory_space<vmem>>, vector<78x32xf32>,
      %c2_i32_149 = arith.constant 2 : i32
      %150 = arith.addi %114, %c2_i32_149 : i32
      %151 = arith.index_cast %150 : i32 to index
      %c1_150 = arith.constant 1 : index
      %c0_151 = arith.constant 0 : index
      %152 = vector.load %arg9[%151, %c1_150, %c0_151] : memref<80x80x32xf32, #tpu.memory_space<vmem>>, vector<1x78x32xf32>
      %153 = vector.shape_cast %152 : vector<1x78x32xf32> to vector<78x32xf32>
      %c0_152 = arith.constant 0 : index
      %c224_153 = arith.constant 224 : index
      %154 = vector.load %arg11[%c0_152, %c224_153] : memref<78x288xf32, #tpu.memory_space<vmem>>, vector<78x32xf32>
      tpu.vector_store %arg11[%c0_152, %c224_153], %153 {strides = array<i32>} : memref<78x288xf32, #tpu.memory_space<vmem>>, vector<78x32xf32>,
      %c2_i32_154 = arith.constant 2 : i32
      %155 = arith.addi %114, %c2_i32_154 : i32
      %156 = arith.index_cast %155 : i32 to index
      %c2_155 = arith.constant 2 : index
      %c0_156 = arith.constant 0 : index
      %157 = vector.load %arg9[%156, %c2_155, %c0_156] : memref<80x80x32xf32, #tpu.memory_space<vmem>>, vector<1x78x32xf32>
      %158 = vector.shape_cast %157 : vector<1x78x32xf32> to vector<78x32xf32>
      %c0_157 = arith.constant 0 : index
      %c256_158 = arith.constant 256 : index
      %159 = vector.load %arg11[%c0_157, %c256_158] : memref<78x288xf32, #tpu.memory_space<vmem>>, vector<78x32xf32>
      tpu.vector_store %arg11[%c0_157, %c256_158], %158 {strides = array<i32>} : memref<78x288xf32, #tpu.memory_space<vmem>>, vector<78x32xf32>,
      %c0_159 = arith.constant 0 : index
      %c0_160 = arith.constant 0 : index
      %160 = vector.load %arg11[%c0_159, %c0_160] : memref<78x288xf32, #tpu.memory_space<vmem>>, vector<78x288xf32>
      %c0_161 = arith.constant 0 : index
      %c0_162 = arith.constant 0 : index
      %161 = vector.load %arg4[%c0_161, %c0_162] : memref<288x64xf32, #tpu.memory_space<vmem>>, vector<288x64xf32>
      %cst_163 = arith.constant dense<0.000000e+00> : vector<78x64xf32>
      %162 = tpu.matmul %160, %161, %cst_163 {dimension_numbers = #tpu.dot_dimension_numbers<[1], [0], [0], [1], [0, 0, 1, 1], [], []>} : vector<78x288xf32>, vector<288x64xf32>, vector<78x64xf32> -> vector<78x64xf32>
      %163 = arith.maximumf %113, %162 : vector<78x64xf32>
      %c0_164 = arith.constant 0 : index
      %c0_165 = arith.constant 0 : index
      %164 = vector.load %arg13[%c0_164, %c0_165] : memref<78x64xf32, #tpu.memory_space<vmem>>, vector<78x64xf32>
      tpu.vector_store %arg13[%c0_164, %c0_165], %163 {strides = array<i32>} : memref<78x64xf32, #tpu.memory_space<vmem>>, vector<78x64xf32>,
      %c0_166 = arith.constant 0 : index
      %c0_167 = arith.constant 0 : index
      %165 = tpu.strided_load %arg13[%c0_166, %c0_167] {strides = array<i32: 3, 1>} : memref<78x64xf32, #tpu.memory_space<vmem>>, vector<26x64xf32>
      %c1_168 = arith.constant 1 : index
      %c0_169 = arith.constant 0 : index
      %166 = tpu.strided_load %arg13[%c1_168, %c0_169] {strides = array<i32: 3, 1>} : memref<78x64xf32, #tpu.memory_space<vmem>>, vector<26x64xf32>
      %167 = arith.maximumf %165, %166 : vector<26x64xf32>
      %c2_170 = arith.constant 2 : index
      %c0_171 = arith.constant 0 : index
      %168 = tpu.strided_load %arg13[%c2_170, %c0_171] {strides = array<i32: 3, 1>} : memref<78x64xf32, #tpu.memory_space<vmem>>, vector<26x64xf32>
      %169 = arith.maximumf %167, %168 : vector<26x64xf32>
      %170 = vector.broadcast %11 : vector<1x64xf32> to vector<26x64xf32>
      %171 = arith.addf %169, %170 : vector<26x64xf32>
      %172 = arith.index_cast %arg15 : i32 to index
      %c0_172 = arith.constant 0 : index
      %c0_173 = arith.constant 0 : index
      %173 = vector.load %arg10[%172, %c0_172, %c0_173] : memref<26x26x64xf32, #tpu.memory_space<vmem>>, vector<1x26x64xf32>
      %174 = vector.shape_cast %173 : vector<1x26x64xf32> to vector<26x64xf32>
      %175 = vector.shape_cast %171 : vector<26x64xf32> to vector<1x26x64xf32>
      tpu.vector_store %arg10[%172, %c0_172, %c0_173], %175 {strides = array<i32>} : memref<26x26x64xf32, #tpu.memory_space<vmem>>, vector<1x26x64xf32>,
    }
    %c26_i32_16 = arith.constant 26 : i32
    %c0_17 = arith.constant 0 : index
    %c0_18 = arith.constant 0 : index
    %13 = vector.load %arg7[%c0_17, %c0_18] : memref<1x128xf32, #tpu.memory_space<vmem>>, vector<1x128xf32>
    %c0_i32_19 = arith.constant 0 : i32
    %c8_i32 = arith.constant 8 : i32
    %14 = arith.addi %c0_i32_19, %c8_i32 : i32
    %c1_i32_20 = arith.constant 1 : i32
    scf.for %arg15 = %c0_i32_19 to %14 step %c1_i32_20  : i32 {
      %c3_i32 = arith.constant 3 : i32
      %15 = arith.muli %c3_i32, %arg15 : i32
      %c0_i32_22 = arith.constant 0 : i32
      %16 = arith.addi %15, %c0_i32_22 : i32
      %17 = arith.index_cast %16 : i32 to index
      %c0_23 = arith.constant 0 : index
      %c0_24 = arith.constant 0 : index
      %18 = vector.load %arg10[%17, %c0_23, %c0_24] : memref<26x26x64xf32, #tpu.memory_space<vmem>>, vector<1x24x64xf32>
      %19 = vector.shape_cast %18 : vector<1x24x64xf32> to vector<24x64xf32>
      %c0_25 = arith.constant 0 : index
      %c0_26 = arith.constant 0 : index
      %20 = vector.load %arg12[%c0_25, %c0_26] : memref<24x576xf32, #tpu.memory_space<vmem>>, vector<24x64xf32>
      tpu.vector_store %arg12[%c0_25, %c0_26], %19 {strides = array<i32>} : memref<24x576xf32, #tpu.memory_space<vmem>>, vector<24x64xf32>,
      %c0_i32_27 = arith.constant 0 : i32
      %21 = arith.addi %15, %c0_i32_27 : i32
      %22 = arith.index_cast %21 : i32 to index
      %c1_28 = arith.constant 1 : index
      %c0_29 = arith.constant 0 : index
      %23 = vector.load %arg10[%22, %c1_28, %c0_29] : memref<26x26x64xf32, #tpu.memory_space<vmem>>, vector<1x24x64xf32>
      %24 = vector.shape_cast %23 : vector<1x24x64xf32> to vector<24x64xf32>
      %c0_30 = arith.constant 0 : index
      %c64 = arith.constant 64 : index
      %25 = vector.load %arg12[%c0_30, %c64] : memref<24x576xf32, #tpu.memory_space<vmem>>, vector<24x64xf32>
      tpu.vector_store %arg12[%c0_30, %c64], %24 {strides = array<i32>} : memref<24x576xf32, #tpu.memory_space<vmem>>, vector<24x64xf32>,
      %c0_i32_31 = arith.constant 0 : i32
      %26 = arith.addi %15, %c0_i32_31 : i32
      %27 = arith.index_cast %26 : i32 to index
      %c2_32 = arith.constant 2 : index
      %c0_33 = arith.constant 0 : index
      %28 = vector.load %arg10[%27, %c2_32, %c0_33] : memref<26x26x64xf32, #tpu.memory_space<vmem>>, vector<1x24x64xf32>
      %29 = vector.shape_cast %28 : vector<1x24x64xf32> to vector<24x64xf32>
      %c0_34 = arith.constant 0 : index
      %c128 = arith.constant 128 : index
      %30 = vector.load %arg12[%c0_34, %c128] : memref<24x576xf32, #tpu.memory_space<vmem>>, vector<24x64xf32>
      tpu.vector_store %arg12[%c0_34, %c128], %29 {strides = array<i32>} : memref<24x576xf32, #tpu.memory_space<vmem>>, vector<24x64xf32>,
      %c1_i32_35 = arith.constant 1 : i32
      %31 = arith.addi %15, %c1_i32_35 : i32
      %32 = arith.index_cast %31 : i32 to index
      %c0_36 = arith.constant 0 : index
      %c0_37 = arith.constant 0 : index
      %33 = vector.load %arg10[%32, %c0_36, %c0_37] : memref<26x26x64xf32, #tpu.memory_space<vmem>>, vector<1x24x64xf32>
      %34 = vector.shape_cast %33 : vector<1x24x64xf32> to vector<24x64xf32>
      %c0_38 = arith.constant 0 : index
      %c192 = arith.constant 192 : index
      %35 = vector.load %arg12[%c0_38, %c192] : memref<24x576xf32, #tpu.memory_space<vmem>>, vector<24x64xf32>
      tpu.vector_store %arg12[%c0_38, %c192], %34 {strides = array<i32>} : memref<24x576xf32, #tpu.memory_space<vmem>>, vector<24x64xf32>,
      %c1_i32_39 = arith.constant 1 : i32
      %36 = arith.addi %15, %c1_i32_39 : i32
      %37 = arith.index_cast %36 : i32 to index
      %c1_40 = arith.constant 1 : index
      %c0_41 = arith.constant 0 : index
      %38 = vector.load %arg10[%37, %c1_40, %c0_41] : memref<26x26x64xf32, #tpu.memory_space<vmem>>, vector<1x24x64xf32>
      %39 = vector.shape_cast %38 : vector<1x24x64xf32> to vector<24x64xf32>
      %c0_42 = arith.constant 0 : index
      %c256 = arith.constant 256 : index
      %40 = vector.load %arg12[%c0_42, %c256] : memref<24x576xf32, #tpu.memory_space<vmem>>, vector<24x64xf32>
      tpu.vector_store %arg12[%c0_42, %c256], %39 {strides = array<i32>} : memref<24x576xf32, #tpu.memory_space<vmem>>, vector<24x64xf32>,
      %c1_i32_43 = arith.constant 1 : i32
      %41 = arith.addi %15, %c1_i32_43 : i32
      %42 = arith.index_cast %41 : i32 to index
      %c2_44 = arith.constant 2 : index
      %c0_45 = arith.constant 0 : index
      %43 = vector.load %arg10[%42, %c2_44, %c0_45] : memref<26x26x64xf32, #tpu.memory_space<vmem>>, vector<1x24x64xf32>
      %44 = vector.shape_cast %43 : vector<1x24x64xf32> to vector<24x64xf32>
      %c0_46 = arith.constant 0 : index
      %c320 = arith.constant 320 : index
      %45 = vector.load %arg12[%c0_46, %c320] : memref<24x576xf32, #tpu.memory_space<vmem>>, vector<24x64xf32>
      tpu.vector_store %arg12[%c0_46, %c320], %44 {strides = array<i32>} : memref<24x576xf32, #tpu.memory_space<vmem>>, vector<24x64xf32>,
      %c2_i32 = arith.constant 2 : i32
      %46 = arith.addi %15, %c2_i32 : i32
      %47 = arith.index_cast %46 : i32 to index
      %c0_47 = arith.constant 0 : index
      %c0_48 = arith.constant 0 : index
      %48 = vector.load %arg10[%47, %c0_47, %c0_48] : memref<26x26x64xf32, #tpu.memory_space<vmem>>, vector<1x24x64xf32>
      %49 = vector.shape_cast %48 : vector<1x24x64xf32> to vector<24x64xf32>
      %c0_49 = arith.constant 0 : index
      %c384 = arith.constant 384 : index
      %50 = vector.load %arg12[%c0_49, %c384] : memref<24x576xf32, #tpu.memory_space<vmem>>, vector<24x64xf32>
      tpu.vector_store %arg12[%c0_49, %c384], %49 {strides = array<i32>} : memref<24x576xf32, #tpu.memory_space<vmem>>, vector<24x64xf32>,
      %c2_i32_50 = arith.constant 2 : i32
      %51 = arith.addi %15, %c2_i32_50 : i32
      %52 = arith.index_cast %51 : i32 to index
      %c1_51 = arith.constant 1 : index
      %c0_52 = arith.constant 0 : index
      %53 = vector.load %arg10[%52, %c1_51, %c0_52] : memref<26x26x64xf32, #tpu.memory_space<vmem>>, vector<1x24x64xf32>
      %54 = vector.shape_cast %53 : vector<1x24x64xf32> to vector<24x64xf32>
      %c0_53 = arith.constant 0 : index
      %c448 = arith.constant 448 : index
      %55 = vector.load %arg12[%c0_53, %c448] : memref<24x576xf32, #tpu.memory_space<vmem>>, vector<24x64xf32>
      tpu.vector_store %arg12[%c0_53, %c448], %54 {strides = array<i32>} : memref<24x576xf32, #tpu.memory_space<vmem>>, vector<24x64xf32>,
      %c2_i32_54 = arith.constant 2 : i32
      %56 = arith.addi %15, %c2_i32_54 : i32
      %57 = arith.index_cast %56 : i32 to index
      %c2_55 = arith.constant 2 : index
      %c0_56 = arith.constant 0 : index
      %58 = vector.load %arg10[%57, %c2_55, %c0_56] : memref<26x26x64xf32, #tpu.memory_space<vmem>>, vector<1x24x64xf32>
      %59 = vector.shape_cast %58 : vector<1x24x64xf32> to vector<24x64xf32>
      %c0_57 = arith.constant 0 : index
      %c512 = arith.constant 512 : index
      %60 = vector.load %arg12[%c0_57, %c512] : memref<24x576xf32, #tpu.memory_space<vmem>>, vector<24x64xf32>
      tpu.vector_store %arg12[%c0_57, %c512], %59 {strides = array<i32>} : memref<24x576xf32, #tpu.memory_space<vmem>>, vector<24x64xf32>,
      %c0_58 = arith.constant 0 : index
      %c0_59 = arith.constant 0 : index
      %61 = vector.load %arg12[%c0_58, %c0_59] : memref<24x576xf32, #tpu.memory_space<vmem>>, vector<24x576xf32>
      %c0_60 = arith.constant 0 : index
      %c0_61 = arith.constant 0 : index
      %62 = vector.load %arg6[%c0_60, %c0_61] : memref<576x128xf32, #tpu.memory_space<vmem>>, vector<576x128xf32>
      %cst = arith.constant dense<0.000000e+00> : vector<24x128xf32>
      %63 = tpu.matmul %61, %62, %cst {dimension_numbers = #tpu.dot_dimension_numbers<[1], [0], [0], [1], [0, 0, 1, 1], [], []>} : vector<24x576xf32>, vector<576x128xf32>, vector<24x128xf32> -> vector<24x128xf32>
      %c1_i32_62 = arith.constant 1 : i32
      %64 = arith.addi %15, %c1_i32_62 : i32
      %c0_i32_63 = arith.constant 0 : i32
      %65 = arith.addi %64, %c0_i32_63 : i32
      %66 = arith.index_cast %65 : i32 to index
      %c0_64 = arith.constant 0 : index
      %c0_65 = arith.constant 0 : index
      %67 = vector.load %arg10[%66, %c0_64, %c0_65] : memref<26x26x64xf32, #tpu.memory_space<vmem>>, vector<1x24x64xf32>
      %68 = vector.shape_cast %67 : vector<1x24x64xf32> to vector<24x64xf32>
      %c0_66 = arith.constant 0 : index
      %c0_67 = arith.constant 0 : index
      %69 = vector.load %arg12[%c0_66, %c0_67] : memref<24x576xf32, #tpu.memory_space<vmem>>, vector<24x64xf32>
      tpu.vector_store %arg12[%c0_66, %c0_67], %68 {strides = array<i32>} : memref<24x576xf32, #tpu.memory_space<vmem>>, vector<24x64xf32>,
      %c0_i32_68 = arith.constant 0 : i32
      %70 = arith.addi %64, %c0_i32_68 : i32
      %71 = arith.index_cast %70 : i32 to index
      %c1_69 = arith.constant 1 : index
      %c0_70 = arith.constant 0 : index
      %72 = vector.load %arg10[%71, %c1_69, %c0_70] : memref<26x26x64xf32, #tpu.memory_space<vmem>>, vector<1x24x64xf32>
      %73 = vector.shape_cast %72 : vector<1x24x64xf32> to vector<24x64xf32>
      %c0_71 = arith.constant 0 : index
      %c64_72 = arith.constant 64 : index
      %74 = vector.load %arg12[%c0_71, %c64_72] : memref<24x576xf32, #tpu.memory_space<vmem>>, vector<24x64xf32>
      tpu.vector_store %arg12[%c0_71, %c64_72], %73 {strides = array<i32>} : memref<24x576xf32, #tpu.memory_space<vmem>>, vector<24x64xf32>,
      %c0_i32_73 = arith.constant 0 : i32
      %75 = arith.addi %64, %c0_i32_73 : i32
      %76 = arith.index_cast %75 : i32 to index
      %c2_74 = arith.constant 2 : index
      %c0_75 = arith.constant 0 : index
      %77 = vector.load %arg10[%76, %c2_74, %c0_75] : memref<26x26x64xf32, #tpu.memory_space<vmem>>, vector<1x24x64xf32>
      %78 = vector.shape_cast %77 : vector<1x24x64xf32> to vector<24x64xf32>
      %c0_76 = arith.constant 0 : index
      %c128_77 = arith.constant 128 : index
      %79 = vector.load %arg12[%c0_76, %c128_77] : memref<24x576xf32, #tpu.memory_space<vmem>>, vector<24x64xf32>
      tpu.vector_store %arg12[%c0_76, %c128_77], %78 {strides = array<i32>} : memref<24x576xf32, #tpu.memory_space<vmem>>, vector<24x64xf32>,
      %c1_i32_78 = arith.constant 1 : i32
      %80 = arith.addi %64, %c1_i32_78 : i32
      %81 = arith.index_cast %80 : i32 to index
      %c0_79 = arith.constant 0 : index
      %c0_80 = arith.constant 0 : index
      %82 = vector.load %arg10[%81, %c0_79, %c0_80] : memref<26x26x64xf32, #tpu.memory_space<vmem>>, vector<1x24x64xf32>
      %83 = vector.shape_cast %82 : vector<1x24x64xf32> to vector<24x64xf32>
      %c0_81 = arith.constant 0 : index
      %c192_82 = arith.constant 192 : index
      %84 = vector.load %arg12[%c0_81, %c192_82] : memref<24x576xf32, #tpu.memory_space<vmem>>, vector<24x64xf32>
      tpu.vector_store %arg12[%c0_81, %c192_82], %83 {strides = array<i32>} : memref<24x576xf32, #tpu.memory_space<vmem>>, vector<24x64xf32>,
      %c1_i32_83 = arith.constant 1 : i32
      %85 = arith.addi %64, %c1_i32_83 : i32
      %86 = arith.index_cast %85 : i32 to index
      %c1_84 = arith.constant 1 : index
      %c0_85 = arith.constant 0 : index
      %87 = vector.load %arg10[%86, %c1_84, %c0_85] : memref<26x26x64xf32, #tpu.memory_space<vmem>>, vector<1x24x64xf32>
      %88 = vector.shape_cast %87 : vector<1x24x64xf32> to vector<24x64xf32>
      %c0_86 = arith.constant 0 : index
      %c256_87 = arith.constant 256 : index
      %89 = vector.load %arg12[%c0_86, %c256_87] : memref<24x576xf32, #tpu.memory_space<vmem>>, vector<24x64xf32>
      tpu.vector_store %arg12[%c0_86, %c256_87], %88 {strides = array<i32>} : memref<24x576xf32, #tpu.memory_space<vmem>>, vector<24x64xf32>,
      %c1_i32_88 = arith.constant 1 : i32
      %90 = arith.addi %64, %c1_i32_88 : i32
      %91 = arith.index_cast %90 : i32 to index
      %c2_89 = arith.constant 2 : index
      %c0_90 = arith.constant 0 : index
      %92 = vector.load %arg10[%91, %c2_89, %c0_90] : memref<26x26x64xf32, #tpu.memory_space<vmem>>, vector<1x24x64xf32>
      %93 = vector.shape_cast %92 : vector<1x24x64xf32> to vector<24x64xf32>
      %c0_91 = arith.constant 0 : index
      %c320_92 = arith.constant 320 : index
      %94 = vector.load %arg12[%c0_91, %c320_92] : memref<24x576xf32, #tpu.memory_space<vmem>>, vector<24x64xf32>
      tpu.vector_store %arg12[%c0_91, %c320_92], %93 {strides = array<i32>} : memref<24x576xf32, #tpu.memory_space<vmem>>, vector<24x64xf32>,
      %c2_i32_93 = arith.constant 2 : i32
      %95 = arith.addi %64, %c2_i32_93 : i32
      %96 = arith.index_cast %95 : i32 to index
      %c0_94 = arith.constant 0 : index
      %c0_95 = arith.constant 0 : index
      %97 = vector.load %arg10[%96, %c0_94, %c0_95] : memref<26x26x64xf32, #tpu.memory_space<vmem>>, vector<1x24x64xf32>
      %98 = vector.shape_cast %97 : vector<1x24x64xf32> to vector<24x64xf32>
      %c0_96 = arith.constant 0 : index
      %c384_97 = arith.constant 384 : index
      %99 = vector.load %arg12[%c0_96, %c384_97] : memref<24x576xf32, #tpu.memory_space<vmem>>, vector<24x64xf32>
      tpu.vector_store %arg12[%c0_96, %c384_97], %98 {strides = array<i32>} : memref<24x576xf32, #tpu.memory_space<vmem>>, vector<24x64xf32>,
      %c2_i32_98 = arith.constant 2 : i32
      %100 = arith.addi %64, %c2_i32_98 : i32
      %101 = arith.index_cast %100 : i32 to index
      %c1_99 = arith.constant 1 : index
      %c0_100 = arith.constant 0 : index
      %102 = vector.load %arg10[%101, %c1_99, %c0_100] : memref<26x26x64xf32, #tpu.memory_space<vmem>>, vector<1x24x64xf32>
      %103 = vector.shape_cast %102 : vector<1x24x64xf32> to vector<24x64xf32>
      %c0_101 = arith.constant 0 : index
      %c448_102 = arith.constant 448 : index
      %104 = vector.load %arg12[%c0_101, %c448_102] : memref<24x576xf32, #tpu.memory_space<vmem>>, vector<24x64xf32>
      tpu.vector_store %arg12[%c0_101, %c448_102], %103 {strides = array<i32>} : memref<24x576xf32, #tpu.memory_space<vmem>>, vector<24x64xf32>,
      %c2_i32_103 = arith.constant 2 : i32
      %105 = arith.addi %64, %c2_i32_103 : i32
      %106 = arith.index_cast %105 : i32 to index
      %c2_104 = arith.constant 2 : index
      %c0_105 = arith.constant 0 : index
      %107 = vector.load %arg10[%106, %c2_104, %c0_105] : memref<26x26x64xf32, #tpu.memory_space<vmem>>, vector<1x24x64xf32>
      %108 = vector.shape_cast %107 : vector<1x24x64xf32> to vector<24x64xf32>
      %c0_106 = arith.constant 0 : index
      %c512_107 = arith.constant 512 : index
      %109 = vector.load %arg12[%c0_106, %c512_107] : memref<24x576xf32, #tpu.memory_space<vmem>>, vector<24x64xf32>
      tpu.vector_store %arg12[%c0_106, %c512_107], %108 {strides = array<i32>} : memref<24x576xf32, #tpu.memory_space<vmem>>, vector<24x64xf32>,
      %c0_108 = arith.constant 0 : index
      %c0_109 = arith.constant 0 : index
      %110 = vector.load %arg12[%c0_108, %c0_109] : memref<24x576xf32, #tpu.memory_space<vmem>>, vector<24x576xf32>
      %c0_110 = arith.constant 0 : index
      %c0_111 = arith.constant 0 : index
      %111 = vector.load %arg6[%c0_110, %c0_111] : memref<576x128xf32, #tpu.memory_space<vmem>>, vector<576x128xf32>
      %cst_112 = arith.constant dense<0.000000e+00> : vector<24x128xf32>
      %112 = tpu.matmul %110, %111, %cst_112 {dimension_numbers = #tpu.dot_dimension_numbers<[1], [0], [0], [1], [0, 0, 1, 1], [], []>} : vector<24x576xf32>, vector<576x128xf32>, vector<24x128xf32> -> vector<24x128xf32>
      %113 = arith.maximumf %63, %112 : vector<24x128xf32>
      %c2_i32_113 = arith.constant 2 : i32
      %114 = arith.addi %15, %c2_i32_113 : i32
      %c0_i32_114 = arith.constant 0 : i32
      %115 = arith.addi %114, %c0_i32_114 : i32
      %116 = arith.index_cast %115 : i32 to index
      %c0_115 = arith.constant 0 : index
      %c0_116 = arith.constant 0 : index
      %117 = vector.load %arg10[%116, %c0_115, %c0_116] : memref<26x26x64xf32, #tpu.memory_space<vmem>>, vector<1x24x64xf32>
      %118 = vector.shape_cast %117 : vector<1x24x64xf32> to vector<24x64xf32>
      %c0_117 = arith.constant 0 : index
      %c0_118 = arith.constant 0 : index
      %119 = vector.load %arg12[%c0_117, %c0_118] : memref<24x576xf32, #tpu.memory_space<vmem>>, vector<24x64xf32>
      tpu.vector_store %arg12[%c0_117, %c0_118], %118 {strides = array<i32>} : memref<24x576xf32, #tpu.memory_space<vmem>>, vector<24x64xf32>,
      %c0_i32_119 = arith.constant 0 : i32
      %120 = arith.addi %114, %c0_i32_119 : i32
      %121 = arith.index_cast %120 : i32 to index
      %c1_120 = arith.constant 1 : index
      %c0_121 = arith.constant 0 : index
      %122 = vector.load %arg10[%121, %c1_120, %c0_121] : memref<26x26x64xf32, #tpu.memory_space<vmem>>, vector<1x24x64xf32>
      %123 = vector.shape_cast %122 : vector<1x24x64xf32> to vector<24x64xf32>
      %c0_122 = arith.constant 0 : index
      %c64_123 = arith.constant 64 : index
      %124 = vector.load %arg12[%c0_122, %c64_123] : memref<24x576xf32, #tpu.memory_space<vmem>>, vector<24x64xf32>
      tpu.vector_store %arg12[%c0_122, %c64_123], %123 {strides = array<i32>} : memref<24x576xf32, #tpu.memory_space<vmem>>, vector<24x64xf32>,
      %c0_i32_124 = arith.constant 0 : i32
      %125 = arith.addi %114, %c0_i32_124 : i32
      %126 = arith.index_cast %125 : i32 to index
      %c2_125 = arith.constant 2 : index
      %c0_126 = arith.constant 0 : index
      %127 = vector.load %arg10[%126, %c2_125, %c0_126] : memref<26x26x64xf32, #tpu.memory_space<vmem>>, vector<1x24x64xf32>
      %128 = vector.shape_cast %127 : vector<1x24x64xf32> to vector<24x64xf32>
      %c0_127 = arith.constant 0 : index
      %c128_128 = arith.constant 128 : index
      %129 = vector.load %arg12[%c0_127, %c128_128] : memref<24x576xf32, #tpu.memory_space<vmem>>, vector<24x64xf32>
      tpu.vector_store %arg12[%c0_127, %c128_128], %128 {strides = array<i32>} : memref<24x576xf32, #tpu.memory_space<vmem>>, vector<24x64xf32>,
      %c1_i32_129 = arith.constant 1 : i32
      %130 = arith.addi %114, %c1_i32_129 : i32
      %131 = arith.index_cast %130 : i32 to index
      %c0_130 = arith.constant 0 : index
      %c0_131 = arith.constant 0 : index
      %132 = vector.load %arg10[%131, %c0_130, %c0_131] : memref<26x26x64xf32, #tpu.memory_space<vmem>>, vector<1x24x64xf32>
      %133 = vector.shape_cast %132 : vector<1x24x64xf32> to vector<24x64xf32>
      %c0_132 = arith.constant 0 : index
      %c192_133 = arith.constant 192 : index
      %134 = vector.load %arg12[%c0_132, %c192_133] : memref<24x576xf32, #tpu.memory_space<vmem>>, vector<24x64xf32>
      tpu.vector_store %arg12[%c0_132, %c192_133], %133 {strides = array<i32>} : memref<24x576xf32, #tpu.memory_space<vmem>>, vector<24x64xf32>,
      %c1_i32_134 = arith.constant 1 : i32
      %135 = arith.addi %114, %c1_i32_134 : i32
      %136 = arith.index_cast %135 : i32 to index
      %c1_135 = arith.constant 1 : index
      %c0_136 = arith.constant 0 : index
      %137 = vector.load %arg10[%136, %c1_135, %c0_136] : memref<26x26x64xf32, #tpu.memory_space<vmem>>, vector<1x24x64xf32>
      %138 = vector.shape_cast %137 : vector<1x24x64xf32> to vector<24x64xf32>
      %c0_137 = arith.constant 0 : index
      %c256_138 = arith.constant 256 : index
      %139 = vector.load %arg12[%c0_137, %c256_138] : memref<24x576xf32, #tpu.memory_space<vmem>>, vector<24x64xf32>
      tpu.vector_store %arg12[%c0_137, %c256_138], %138 {strides = array<i32>} : memref<24x576xf32, #tpu.memory_space<vmem>>, vector<24x64xf32>,
      %c1_i32_139 = arith.constant 1 : i32
      %140 = arith.addi %114, %c1_i32_139 : i32
      %141 = arith.index_cast %140 : i32 to index
      %c2_140 = arith.constant 2 : index
      %c0_141 = arith.constant 0 : index
      %142 = vector.load %arg10[%141, %c2_140, %c0_141] : memref<26x26x64xf32, #tpu.memory_space<vmem>>, vector<1x24x64xf32>
      %143 = vector.shape_cast %142 : vector<1x24x64xf32> to vector<24x64xf32>
      %c0_142 = arith.constant 0 : index
      %c320_143 = arith.constant 320 : index
      %144 = vector.load %arg12[%c0_142, %c320_143] : memref<24x576xf32, #tpu.memory_space<vmem>>, vector<24x64xf32>
      tpu.vector_store %arg12[%c0_142, %c320_143], %143 {strides = array<i32>} : memref<24x576xf32, #tpu.memory_space<vmem>>, vector<24x64xf32>,
      %c2_i32_144 = arith.constant 2 : i32
      %145 = arith.addi %114, %c2_i32_144 : i32
      %146 = arith.index_cast %145 : i32 to index
      %c0_145 = arith.constant 0 : index
      %c0_146 = arith.constant 0 : index
      %147 = vector.load %arg10[%146, %c0_145, %c0_146] : memref<26x26x64xf32, #tpu.memory_space<vmem>>, vector<1x24x64xf32>
      %148 = vector.shape_cast %147 : vector<1x24x64xf32> to vector<24x64xf32>
      %c0_147 = arith.constant 0 : index
      %c384_148 = arith.constant 384 : index
      %149 = vector.load %arg12[%c0_147, %c384_148] : memref<24x576xf32, #tpu.memory_space<vmem>>, vector<24x64xf32>
      tpu.vector_store %arg12[%c0_147, %c384_148], %148 {strides = array<i32>} : memref<24x576xf32, #tpu.memory_space<vmem>>, vector<24x64xf32>,
      %c2_i32_149 = arith.constant 2 : i32
      %150 = arith.addi %114, %c2_i32_149 : i32
      %151 = arith.index_cast %150 : i32 to index
      %c1_150 = arith.constant 1 : index
      %c0_151 = arith.constant 0 : index
      %152 = vector.load %arg10[%151, %c1_150, %c0_151] : memref<26x26x64xf32, #tpu.memory_space<vmem>>, vector<1x24x64xf32>
      %153 = vector.shape_cast %152 : vector<1x24x64xf32> to vector<24x64xf32>
      %c0_152 = arith.constant 0 : index
      %c448_153 = arith.constant 448 : index
      %154 = vector.load %arg12[%c0_152, %c448_153] : memref<24x576xf32, #tpu.memory_space<vmem>>, vector<24x64xf32>
      tpu.vector_store %arg12[%c0_152, %c448_153], %153 {strides = array<i32>} : memref<24x576xf32, #tpu.memory_space<vmem>>, vector<24x64xf32>,
      %c2_i32_154 = arith.constant 2 : i32
      %155 = arith.addi %114, %c2_i32_154 : i32
      %156 = arith.index_cast %155 : i32 to index
      %c2_155 = arith.constant 2 : index
      %c0_156 = arith.constant 0 : index
      %157 = vector.load %arg10[%156, %c2_155, %c0_156] : memref<26x26x64xf32, #tpu.memory_space<vmem>>, vector<1x24x64xf32>
      %158 = vector.shape_cast %157 : vector<1x24x64xf32> to vector<24x64xf32>
      %c0_157 = arith.constant 0 : index
      %c512_158 = arith.constant 512 : index
      %159 = vector.load %arg12[%c0_157, %c512_158] : memref<24x576xf32, #tpu.memory_space<vmem>>, vector<24x64xf32>
      tpu.vector_store %arg12[%c0_157, %c512_158], %158 {strides = array<i32>} : memref<24x576xf32, #tpu.memory_space<vmem>>, vector<24x64xf32>,
      %c0_159 = arith.constant 0 : index
      %c0_160 = arith.constant 0 : index
      %160 = vector.load %arg12[%c0_159, %c0_160] : memref<24x576xf32, #tpu.memory_space<vmem>>, vector<24x576xf32>
      %c0_161 = arith.constant 0 : index
      %c0_162 = arith.constant 0 : index
      %161 = vector.load %arg6[%c0_161, %c0_162] : memref<576x128xf32, #tpu.memory_space<vmem>>, vector<576x128xf32>
      %cst_163 = arith.constant dense<0.000000e+00> : vector<24x128xf32>
      %162 = tpu.matmul %160, %161, %cst_163 {dimension_numbers = #tpu.dot_dimension_numbers<[1], [0], [0], [1], [0, 0, 1, 1], [], []>} : vector<24x576xf32>, vector<576x128xf32>, vector<24x128xf32> -> vector<24x128xf32>
      %163 = arith.maximumf %113, %162 : vector<24x128xf32>
      %c0_164 = arith.constant 0 : index
      %c0_165 = arith.constant 0 : index
      %164 = vector.load %arg14[%c0_164, %c0_165] : memref<24x128xf32, #tpu.memory_space<vmem>>, vector<24x128xf32>
      tpu.vector_store %arg14[%c0_164, %c0_165], %163 {strides = array<i32>} : memref<24x128xf32, #tpu.memory_space<vmem>>, vector<24x128xf32>,
      %c0_166 = arith.constant 0 : index
      %c0_167 = arith.constant 0 : index
      %165 = tpu.strided_load %arg14[%c0_166, %c0_167] {strides = array<i32: 3, 1>} : memref<24x128xf32, #tpu.memory_space<vmem>>, vector<8x128xf32>
      %c1_168 = arith.constant 1 : index
      %c0_169 = arith.constant 0 : index
      %166 = tpu.strided_load %arg14[%c1_168, %c0_169] {strides = array<i32: 3, 1>} : memref<24x128xf32, #tpu.memory_space<vmem>>, vector<8x128xf32>
      %167 = arith.maximumf %165, %166 : vector<8x128xf32>
      %c2_170 = arith.constant 2 : index
      %c0_171 = arith.constant 0 : index
      %168 = tpu.strided_load %arg14[%c2_170, %c0_171] {strides = array<i32: 3, 1>} : memref<24x128xf32, #tpu.memory_space<vmem>>, vector<8x128xf32>
      %169 = arith.maximumf %167, %168 : vector<8x128xf32>
      %170 = vector.broadcast %13 : vector<1x128xf32> to vector<8x128xf32>
      %171 = arith.addf %169, %170 : vector<8x128xf32>
      %c8_i32_172 = arith.constant 8 : i32
      %172 = arith.muli %c8_i32_172, %arg15 : i32
      %173 = tpu.assume_multiple %172, 8 : i32
      %c0_173 = arith.constant 0 : index
      %174 = arith.index_cast %173 : i32 to index
      %c0_174 = arith.constant 0 : index
      %175 = vector.load %arg8[%c0_173, %174, %c0_174] : memref<1x64x128xf32, #tpu.memory_space<vmem>>, vector<1x8x128xf32>
      %176 = vector.shape_cast %175 : vector<1x8x128xf32> to vector<8x128xf32>
      %177 = vector.shape_cast %171 : vector<8x128xf32> to vector<1x8x128xf32>
      tpu.vector_store %arg8[%c0_173, %174, %c0_174], %177 {strides = array<i32>} : memref<1x64x128xf32, #tpu.memory_space<vmem>>, vector<1x8x128xf32>,
    }
    %c8_i32_21 = arith.constant 8 : i32
    return
  }
  func.func @transform_0(%arg0: i32) -> (i32, i32, i32, i32) {
    %c0_i32 = arith.constant 0 : i32
    %c0_i32_0 = arith.constant 0 : i32
    %c0_i32_1 = arith.constant 0 : i32
    %c0_i32_2 = arith.constant 0 : i32
    return %arg0, %c0_i32, %c0_i32_0, %c0_i32_1 : i32, i32, i32, i32
  }
  func.func @transform_1(%arg0: i32) -> (i32, i32) {
    %c0_i32 = arith.constant 0 : i32
    %c0_i32_0 = arith.constant 0 : i32
    %c0_i32_1 = arith.constant 0 : i32
    return %c0_i32, %c0_i32_0 : i32, i32
  }
  func.func @transform_2(%arg0: i32) -> (i32, i32) {
    %c0_i32 = arith.constant 0 : i32
    %c0_i32_0 = arith.constant 0 : i32
    %c0_i32_1 = arith.constant 0 : i32
    return %c0_i32, %c0_i32_0 : i32, i32
  }
  func.func @transform_3(%arg0: i32) -> (i32, i32) {
    %c0_i32 = arith.constant 0 : i32
    %c0_i32_0 = arith.constant 0 : i32
    %c0_i32_1 = arith.constant 0 : i32
    return %c0_i32, %c0_i32_0 : i32, i32
  }
  func.func @transform_4(%arg0: i32) -> (i32, i32) {
    %c0_i32 = arith.constant 0 : i32
    %c0_i32_0 = arith.constant 0 : i32
    %c0_i32_1 = arith.constant 0 : i32
    return %c0_i32, %c0_i32_0 : i32, i32
  }
  func.func @transform_5(%arg0: i32) -> (i32, i32) {
    %c0_i32 = arith.constant 0 : i32
    %c0_i32_0 = arith.constant 0 : i32
    %c0_i32_1 = arith.constant 0 : i32
    return %c0_i32, %c0_i32_0 : i32, i32
  }
  func.func @transform_6(%arg0: i32) -> (i32, i32) {
    %c0_i32 = arith.constant 0 : i32
    %c0_i32_0 = arith.constant 0 : i32
    %c0_i32_1 = arith.constant 0 : i32
    return %c0_i32, %c0_i32_0 : i32, i32
  }
  func.func @transform_7(%arg0: i32) -> (i32, i32, i32) {
    %c0_i32 = arith.constant 0 : i32
    %c0_i32_0 = arith.constant 0 : i32
    %c0_i32_1 = arith.constant 0 : i32
    return %arg0, %c0_i32, %c0_i32_0 : i32, i32, i32
  }
}

</mosaic_0001>

<bundles_post_ra>
// kernel: encoder_forward.2
= control target key start
LH: loop header
LB: loop body
LE: loop exit
PB: predicated region body
PF: predicated region fallthrough
CT: control target
= control target key end

     0   :  { %s5496_s24 = smov 0   ;;  %s9227_s0 = inlined_call_operand.vmem [shape: f32[2,3,242,81], index: 0, kind: input, shape index: {}]   ;;  %s9228_s1 = inlined_call_operand.vmem [shape: f32[32,9], index: 1, kind: input, shape index: {}]   ;;  %s9229_s2 = inlined_call_operand.vmem [shape: f32[32,1], index: 2, kind: input, shape index: {}]   ;;  %s9230_s3 = inlined_call_operand.vmem [shape: f32[288,64], index: 3, kind: input, shape index: {}]   ;;  %s9231_s4 = inlined_call_operand.vmem [shape: f32[1,64], index: 4, kind: input, shape index: {}]   ;;  %s9232_s5 = inlined_call_operand.vmem [shape: f32[576,128], index: 5, kind: input, shape index: {}]   ;;  %s9233_s6 = inlined_call_operand.vmem [shape: f32[1,128], index: 6, kind: input, shape index: {}]   ;;  %s9234_s7 = inlined_call_operand.vmem [shape: f32[2,64,128], index: 7, kind: output, shape index: {}]  }
   0x1 LB: > { %s4911_s25 = sadd.s32 4294967295, %s5428_s24   ;;  %p4915_p0 = scmp.ge.s32.totalorder %s5428_s24, 1  ;;  %s5428_s24 = sphi %s5496_s24, %s17_s24  }
   0x2   : > { %p237_p1 = scmp.lt.s32.totalorder %s5428_s24, 3 }
   0x4   : > { %p238_p2 = pnand %p4915_p0, %p237_p1 }
   0x6   : > { %241 = sbr.rel (%p238_p2) target bundleno = 1987 (0x7c3), region = 48 }
   0xb   : > { %p269_p3 = scmp.lt.s32.totalorder %s4911_s25, 1  ;;  %v5507_v0 = vld [vmem:[%s9228_s1] sm:$0xff]  ;;  %v5512_v1 = vld [vmem:[%s9228_s1 + $0x8] sm:$0xff]  ;;  %v5517_v2 = vld [vmem:[%s9228_s1 + $0x10] sm:$0xff]  ;;  %s5554_s29 = smov 0  }
   0xc   : > { %9341 = vst [vmem:[#allocation8_spill] sm:$0xff] %v5507_v0  ;;  %v5522_v3 = vld [vmem:[%s9228_s1 + $0x18] sm:$0xff]  ;;  %v5527_v4 = vld [vmem:[%s9229_s2] sm:$0xff]  ;;  %v5532_v5 = vld [vmem:[%s9229_s2 + $0x8] sm:$0xff] }
   0xd   : > { %9342 = vst [vmem:[#allocation9_spill] sm:$0xff] %v5512_v1  ;;  %s9533_s25 = smov (!%p269_p3, %s4911_s25), 1  ;;  %v5537_v6 = vld [vmem:[%s9229_s2 + $0x10] sm:$0xff]  ;;  %v5542_v7 = vld [vmem:[%s9229_s2 + $0x18] sm:$0xff] }
   0xe   : > { %9343 = vst [vmem:[#allocation10_spill] sm:$0xff] %v5517_v2  ;;  %s5311_s19 = smul.u32 744, %s9533_s25  ;;  %s5298_s20 = sshll.u32 %s9533_s25, 6 }
   0xf   : > { %9344 = vst [vmem:[#allocation11_spill] sm:$0xff] %v5522_v3  ;;  %s5547_s23 = scalar_lea.vmem %s9234_s7, %s5298_s20 }
  0x10   : > { %9345 = vst [vmem:[#allocation12_spill] sm:$0xff] %v5527_v4  ;;  %s5552_s28 = scalar_lea.vmem %s9227_s0, %s5311_s19 }
  0x11   : > { %9346 = vst [vmem:[#allocation13_spill] sm:$0xff] %v5532_v5 }
  0x12   : > { %9347 = vst [vmem:[#allocation14_spill] sm:$0xff] %v5537_v6 }
  0x13   : > { %9348 = vst [vmem:[#allocation15_spill] sm:$0xff] %v5542_v7 }
  0x14 LB: >> { %v9351_v1 = vld [vmem:[#allocation9_spill] sm:$0xff]  ;;  %v9352_v0 = vld [vmem:[#allocation8_spill] sm:$0xff]  ;;  %v5442_v8 = vmov 1   ;;  %v5443_v9 = vmov 0   ;;  %s293_s25 = smul.u32 3, %s5432_s29  ;;  %v5444_v10 = vmov 2   ;;  %s5432_s29 = sphi %s5554_s29, %s292_s29  }
  0x15   : >> { %v9350_v2 = vld [vmem:[#allocation10_spill] sm:$0xff]  ;;  %5361 = vset.pattern.permute.xlu0 %v5442_v8  ;;  %5360 = vset.pattern.permute.xlu2 %v5442_v8  ;;  %v5445_v11 = vmov 4   ;;  %v5446_v12 = vmov 5   ;;  %v5447_v13 = vmov 3   ;;  %v5448_v14 = vmov 6   ;;  %s5451_s8 = smov 127  }
  0x16   : >> { %v9349_v3 = vld [vmem:[#allocation11_spill] sm:$0xff]  ;;  %5359 = vset.pattern.permute.xlu1 %v5443_v9  ;;  %334 = vperm.xlu0 %5361, %v9350_v2   ;;  %s5565_s30 = scalar_lea.vmem %s5552_s28, %s293_s25  ;;  %v5449_v15 = vmov 7   ;;  %v5450_v18 = vmov 8   ;;  %s1633_s9 = smul.u32 80, %s5432_s29  ;;  %vm1635_vm0 = vcmask 261120  }
  0x17   : >> { %326 = vperm.xlu2 %5360, %v9352_v0   ;;  %309 = vperm.xlu1 %5359, %v9350_v2   ;;  %v5603_v19 = vld [vmem:[%s5565_s30] ss:$0 sm:$0xff]  ;;  %v5643_v35 = vld [vmem:[%s5565_s30 + $0x1] ss:$0 sm:$0xff]  ;;  %v5654_v39 = vld [vmem:[%s5565_s30 + $0xf8] ss:$0 sm:$0xff] }
  0x18   : >> { %v5661_v42 = vld [vmem:[%s5565_s30 + $0xf9] ss:$0 sm:$0xff]  ;;  %v5668_v45 = vld [vmem:[%s5565_s30 + $0x2] ss:$0 sm:$0xff]  ;;  %v5671_v46 = vld [vmem:[%s5565_s30 + $0xfa] ss:$0 sm:$0xff] }
  0x19   : >> { %v5679_v49 = vld [vmem:[%s5565_s30 + $0x1f0] ss:$0 sm:$0xff]  ;;  %v5690_v54 = vld [vmem:[%s5565_s30 + $0x1f1] ss:$0 sm:$0xff]  ;;  %v5695_v57 = vld [vmem:[%s5565_s30 + $0x1f2] ss:$0 sm:$0xff] }
  0x1a   : >> { %s1634_s10 = scalar_lea.vmem [#allocation2], %s1633_s9  ;;  %s292_s29 = sadd.s32 1, %s5432_s29  }
  0x1b   : >> { %p289_p4 = scmp.ge.s32.totalorder %s292_s29, 80  }
  0x1c   : > { %s6723_s13 = smov (%p289_p4), 0  }
  0x1e   : >> { %5365 = vset.pattern.permute.xlu0 %v5444_v10 }
  0x1f   : >> { %330 = vperm.xlu2 %5360, %v9351_v1   ;;  %314 = vperm.xlu1 %5359, %v9349_v3  }
  0x20   : >> { %366 = vperm.xlu0 %5365, %v9349_v3  }
  0x27   : >> { %5363 = vset.pattern.permute.xlu2 %v5444_v10  ;;  %5362 = vset.pattern.permute.xlu1 %v5442_v8 }
  0x28   : >> { %5368 = vset.pattern.permute.xlu0 %v5445_v11  ;;  %354 = vperm.xlu2 %5363, %v9352_v0  }
  0x29   : >> { %338 = vperm.xlu1 %5362, %v9349_v3   ;;  %410 = vperm.xlu0 %5368, %v9352_v0  }
  0x30   : >> { %362 = vperm.xlu2 %5363, %v9350_v2  }
  0x31   : >> { %5364 = vset.pattern.permute.xlu1 %v5444_v10  ;;  %5372 = vset.pattern.permute.xlu0 %v5446_v12 }
  0x32   : >> { %358 = vperm.xlu1 %5364, %v9351_v1   ;;  %442 = vperm.xlu0 %5372, %v9351_v1  }
  0x38   : >> { %5367 = vset.pattern.permute.xlu2 %v5447_v13 }
  0x39   : >> { %386 = vperm.xlu2 %5367, %v9351_v1  }
  0x3a   : >> { %5366 = vset.pattern.permute.xlu1 %v5447_v13  ;;  %5376 = vset.pattern.permute.xlu0 %v5448_v14  ;;  %v5715_v13 = vld [vmem:[%s5565_s30 + $0x3] ss:$0 sm:$0xff] }
  0x3b   : >> { %382 = vperm.xlu1 %5366, %v9352_v0   ;;  %474 = vperm.xlu0 %5376, %v9350_v2   ;;  %9369 = vst [vmem:[#allocation32_spill] sm:$0xff] %v5715_v13 }
  0x41   : >> { %394 = vperm.xlu2 %5367, %v9349_v3  }
  0x43   : >> { %390 = vperm.xlu1 %5366, %v9350_v2   ;;  %5379 = vset.pattern.permute.xlu0 %v5449_v15 }
  0x44   : >> { %506 = vperm.xlu0 %5379, %v9349_v3  }
  0x49   : >> { %5370 = vset.pattern.permute.xlu2 %v5445_v11 }
  0x4a   : >> { %418 = vperm.xlu2 %5370, %v9350_v2  }
  0x4b   : >> { %5369 = vset.pattern.permute.xlu1 %v5445_v11 }
  0x4c   : >> { %414 = vperm.xlu1 %5369, %v9351_v1   ;;  %5380 = vset.pattern.permute.xlu0 %v5443_v9 }
  0x4d   : >> { %299 = vperm.xlu0 %5380, %v9352_v0  }
  0x52   : >> { %5371 = vset.pattern.permute.xlu2 %v5446_v12 }
  0x53   : >> { %438 = vperm.xlu2 %5371, %v9352_v0  }
  0x54   : >> { %422 = vperm.xlu1 %5369, %v9349_v3  }
  0x55   : >> { %304 = vperm.xlu0 %5380, %v9351_v1  }
  0x5b   : >> { %450 = vperm.xlu2 %5371, %v9349_v3  }
  0x5c   : >> { %5373 = vset.pattern.permute.xlu1 %v5446_v12 }
  0x5d   : >> { %446 = vperm.xlu1 %5373, %v9350_v2  }
  0x63   : >> { %5375 = vset.pattern.permute.xlu2 %v5448_v14 }
  0x64   : >> { %470 = vperm.xlu2 %5375, %v9351_v1  }
  0x65   : >> { %5374 = vset.pattern.permute.xlu1 %v5448_v14  ;;  %v5718_v14 = vld [vmem:[%s5565_s30 + $0xfb] ss:$0 sm:$0xff] }
  0x66   : >> { %466 = vperm.xlu1 %5374, %v9352_v0  }
  0x6c   : >> { %5377 = vset.pattern.permute.xlu2 %v5449_v15 }
  0x6d   : >> { %494 = vperm.xlu2 %5377, %v9352_v0  }
  0x6e   : >> { %478 = vperm.xlu1 %5374, %v9349_v3  }
  0x71   : >> { %v5595_v16 = vpop.permute.xlu2 %326 }
  0x72   : >> { %9353 = vst [vmem:[#allocation16_spill] sm:$0xff] %v5595_v16 }
  0x75   : >> { %502 = vperm.xlu2 %5377, %v9350_v2  }
  0x76   : >> { %5378 = vset.pattern.permute.xlu1 %v5449_v15 }
  0x77   : >> { %498 = vperm.xlu1 %5378, %v9351_v1  }
  0x79   : >> { %v5599_v17 = vpop.permute.xlu2 %330 }
  0x7a   : >> { %9354 = vst [vmem:[#allocation17_spill] sm:$0xff] %v5599_v17 }
  0x7d   : >> { %5382 = vset.pattern.permute.xlu2 %v5450_v18 }
  0x7e   : >> { %526 = vperm.xlu2 %5382, %v9351_v1  }
  0x7f   : >> { %5381 = vset.pattern.permute.xlu1 %v5450_v18 }
  0x80   : >> { %522 = vperm.xlu1 %5381, %v9352_v0  }
  0x82   : >> { %v5606_v20 = vpop.permute.xlu2 %354 }
  0x83   : >> { %9355 = vst [vmem:[#allocation18_spill] sm:$0xff] %v5606_v20  ;;  %v557_v21 = vmul.f32 %v5603_v19, %v5606_v20 }
  0x85   : >> { %565 = vrot.lane.b32.xlu0 %v557_v21, %s5451_s8 }
  0x86   : >> { %534 = vperm.xlu2 %5382, %v9349_v3  }
  0x88   : >> { %530 = vperm.xlu1 %5381, %v9350_v2   ;;  %v5613_v22 = vpop.permute.xlu0 %334 }
  0x89   : >> { %9356 = vst [vmem:[#allocation19_spill] sm:$0xff] %v5613_v22  ;;  %v5615_v23 = vpop.permute.xlu1 %309  ;;  %v343_v47 = vmul.f32 %v5654_v39, %v5613_v22  ;;  %v839_v51 = vmul.f32 %v5661_v42, %v5613_v22  ;;  %v1211_v53 = vmul.f32 %v5671_v46, %v5613_v22 }
  0x8a   : >> { %9357 = vst [vmem:[#allocation20_spill] sm:$0xff] %v5615_v23  ;;  %v5617_v24 = vpop.permute.xlu2 %362  ;;  %v319_v48 = vmul.f32 %v5603_v19, %v5615_v23  ;;  %v835_v50 = vmul.f32 %v5643_v35, %v5615_v23  ;;  %v1207_v52 = vmul.f32 %v5668_v45, %v5615_v23 }
  0x8b   : >> { %9358 = vst [vmem:[#allocation21_spill] sm:$0xff] %v5617_v24  ;;  %v559_v25 = vmul.f32 %v5603_v19, %v5617_v24  ;;  %v371_v55 = vmul.f32 %v5679_v49, %v5617_v24  ;;  %v847_v61 = vmul.f32 %v5690_v54, %v5617_v24 }
  0x8c   : >> { %v347_v56 = vadd.f32 %v343_v47, %v319_v48  ;;  %v843_v60 = vadd.f32 %v839_v51, %v835_v50  ;;  %v1215_v8 = vadd.f32 %v1211_v53, %v1207_v52 }
  0x8e   : >> { %569 = vrot.lane.b32.xlu2 %v559_v25, %s5451_s8  ;;  %v375_v12 = vadd.f32 %v371_v55, %v347_v56  ;;  %v851_v18 = vadd.f32 %v847_v61, %v843_v60 }
  0x90   : >> { %5383 = vset.pattern.permute.xlu1 %v5443_v9  ;;  %v1219_v9 = vmul.f32 %v5695_v57, %v5617_v24 }
  0x91   : >> { %v5623_v26 = vpop.permute.xlu1 %314 }
  0x92   : >> { %9359 = vst [vmem:[#allocation22_spill] sm:$0xff] %v5623_v26  ;;  %v5625_v27 = vpop.permute.xlu0 %366  ;;  %v320_v51 = vmul.f32 %v5603_v19, %v5623_v26 }
  0x93   : >> { %v5627_v28 = vpop.permute.xlu2 %386  ;;  %v560_v29 = vmul.f32 %v5603_v19, %v5625_v27  ;;  %v372_v61 = vmul.f32 %v5679_v49, %v5625_v27 }
  0x94   : >> { %9360 = vst [vmem:[#allocation23_spill] sm:$0xff] %v5627_v28 }
  0x95   : >> { %571 = vrot.lane.b32.xlu0 %v560_v29, %s5451_s8  ;;  %v1223_v29 = vadd.f32 %v1219_v9, %v1215_v8  ;;  %v341_v8 = vmul.f32 %v5654_v39, %v5595_v16 }
  0x9b   : >> { %v5632_v30 = vpop.permute.xlu1 %338  ;;  %v5634_v31 = vpop.permute.xlu2 %394 }
  0x9c   : >> { %v5636_v32 = vpop.permute.xlu0 %410 }
  0x9d   : >> { %9361 = vst [vmem:[#allocation24_spill] sm:$0xff] %v5636_v32  ;;  %v861_v6 = vmul.f32 %v5671_v46, %v5636_v32 }
  0xa4   : >> { %v5638_v33 = vpop.permute.xlu1 %358  ;;  %v5640_v34 = vpop.permute.xlu2 %418 }
  0xa5   : >> { %9362 = vst [vmem:[#allocation25_spill] sm:$0xff] %v5640_v34  ;;  %v558_v36 = vmul.f32 %v5603_v19, %v5638_v33  ;;  %v5647_v37 = vpop.permute.xlu0 %442  ;;  %v427_v11 = vmul.f32 %v5661_v42, %v5640_v34  ;;  %v863_v25 = vmul.f32 %v5671_v46, %v5640_v34 }
  0xa6   : >> { %v598_v38 = vmul.f32 %v5643_v35, %v5647_v37 }
  0xa7   : >> { %567 = vrot.lane.b32.xlu1 %v558_v36, %s5451_s8 }
  0xa8   : >> { %607 = vrot.lane.b32.xlu2 %v598_v38, %s5451_s8  ;;  %v1235_v38 = vmul.f32 %v5718_v14, %v5640_v34 }
  0xad   : >> { %v5656_v40 = vpop.permute.xlu1 %382  ;;  %v5658_v41 = vpop.permute.xlu2 %438 }
  0xae   : >> { %9363 = vst [vmem:[#allocation26_spill] sm:$0xff] %v5656_v40  ;;  %v5663_v43 = vpop.permute.xlu0 %474  ;;  %v597_v44 = vmul.f32 %v5643_v35, %v5658_v41  ;;  %v869_v34 = vmul.f32 %v5695_v57, %v5658_v41 }
  0xaf   : >> { %9364 = vst [vmem:[#allocation27_spill] sm:$0xff] %v5658_v41 }
  0xb0   : >> { %9365 = vst [vmem:[#allocation28_spill] sm:$0xff] %v5663_v43  ;;  %605 = vrot.lane.b32.xlu1 %v597_v44, %s5451_s8  ;;  %v344_v44 = vmul.f32 %v5654_v39, %v5632_v30  ;;  %v846_v43 = vmul.f32 %v5690_v54, %v5638_v33 }
  0xb5   : >> { %v5697_v58 = vpop.permute.xlu1 %390  ;;  %v5699_v59 = vpop.permute.xlu2 %450 }
  0xb6   : >> { %9366 = vst [vmem:[#allocation29_spill] sm:$0xff] %v5697_v58  ;;  %v5703_v62 = vpop.permute.xlu0 %506  ;;  %v600_v63 = vmul.f32 %v5643_v35, %v5699_v59  ;;  %v399_v10 = vmul.f32 %v5643_v35, %v5697_v58  ;;  %v855_v21 = vmul.f32 %v5668_v45, %v5697_v58  ;;  %v1227_v36 = vmul.f32 %v5715_v13, %v5697_v58 }
  0xb7   : >> { %9367 = vst [vmem:[#allocation30_spill] sm:$0xff] %v5699_v59  ;;  %v456_v1 = vmul.f32 %v5690_v54, %v5699_v59 }
  0xb8   : >> { %9368 = vst [vmem:[#allocation31_spill] sm:$0xff] %v5703_v62  ;;  %611 = vrot.lane.b32.xlu1 %v600_v63, %s5451_s8  ;;  %v403_v15 = vadd.f32 %v399_v10, %v375_v12  ;;  %v859_v48 = vadd.f32 %v855_v21, %v851_v18  ;;  %v1231_v50 = vadd.f32 %v1227_v36, %v1223_v29 }
  0xb9   : >> { %v348_v63 = vadd.f32 %v344_v44, %v320_v51  ;;  %v840_v10 = vmul.f32 %v5661_v42, %v5632_v30  ;;  %v837_v12 = vmul.f32 %v5661_v42, %v5595_v16  ;;  %v836_v21 = vmul.f32 %v5643_v35, %v5623_v26 }
  0xba   : >> { %v5730_v47 = vadd.f32 %v427_v11, %v403_v15  ;;  %v5734_v52 = vadd.f32 %v863_v25, %v859_v48  ;;  %v5740_v56 = vadd.f32 %v1235_v38, %v1231_v50  ;;  %v369_v15 = vmul.f32 %v5679_v49, %v5606_v20 }
  0xbb   : >> { %v400_v25 = vmul.f32 %v5643_v35, %v5634_v31  ;;  %v376_v29 = vadd.f32 %v372_v61, %v348_v63  ;;  %v845_v38 = vmul.f32 %v5690_v54, %v5606_v20  ;;  %v397_v44 = vmul.f32 %v5643_v35, %v5656_v40 }
  0xbc   : >> { %v844_v50 = vadd.f32 %v840_v10, %v836_v21  ;;  %v848_v51 = vmul.f32 %v5690_v54, %v5625_v27  ;;  %v342_v61 = vmul.f32 %v5654_v39, %v5599_v17 }
  0xbe   : >> { %v5736_v53 = vpop.permute.xlu1 %414  ;;  %v5738_v55 = vpop.permute.xlu2 %470  ;;  %v852_v2 = vadd.f32 %v848_v51, %v844_v50  ;;  %v398_v50 = vmul.f32 %v5643_v35, %v5627_v28 }
  0xbf   : >> { %9370 = vst [vmem:[#allocation33_spill] sm:$0xff] %v5736_v53  ;;  %v5742_v60 = vpop.permute.xlu0 %299 }
  0xc0   : >> { %9371 = vst [vmem:[#allocation34_spill] sm:$0xff] %v5738_v55  ;;  %v317_v9 = vmul.f32 %v5603_v19, %v5742_v60  ;;  %v833_v11 = vmul.f32 %v5643_v35, %v5742_v60 }
  0xc1   : >> { %9372 = vst [vmem:[#allocation35_spill] sm:$0xff] %v5742_v60 }
  0xc2   : >> { %v345_v18 = vadd.f32 %v341_v8, %v317_v9  ;;  %v841_v36 = vadd.f32 %v837_v12, %v833_v11  ;;  %v425_v8 = vmul.f32 %v5661_v42, %v5636_v32  ;;  %v838_v11 = vmul.f32 %v5661_v42, %v5599_v17 }
  0xc3   : >> { %v856_v12 = vmul.f32 %v5668_v45, %v5634_v31 }
  0xc4   : >> { %v373_v48 = vadd.f32 %v369_v15, %v345_v18  ;;  %v849_v9 = vadd.f32 %v845_v38, %v841_v36  ;;  %v453_v18 = vmul.f32 %v5690_v54, %v5658_v41  ;;  %v404_v36 = vadd.f32 %v400_v25, %v376_v29 }
  0xc5   : >> { %v853_v38 = vmul.f32 %v5668_v45, %v5656_v40  ;;  %v370_v25 = vmul.f32 %v5679_v49, %v5638_v33 }
  0xc6   : >> { %v5770_v0 = vpop.permute.xlu1 %422  ;;  %v401_v63 = vadd.f32 %v397_v44, %v373_v48 }
  0xc7   : >> { %9373 = vst [vmem:[#allocation36_spill] sm:$0xff] %v5770_v0  ;;  %v5778_v10 = vpop.permute.xlu0 %304  ;;  %v5780_v15 = vpop.permute.xlu2 %494  ;;  %v428_v21 = vmul.f32 %v5661_v42, %v5770_v0  ;;  %v857_v5 = vadd.f32 %v853_v38, %v849_v9  ;;  %v854_v9 = vmul.f32 %v5668_v45, %v5627_v28 }
  0xc8   : >> { %9374 = vst [vmem:[#allocation37_spill] sm:$0xff] %v5778_v10  ;;  %v834_v44 = vmul.f32 %v5643_v35, %v5778_v10  ;;  %v318_v48 = vmul.f32 %v5603_v19, %v5778_v10  ;;  %v429_v3 = vadd.f32 %v425_v8, %v401_v63 }
  0xc9   : >> { %v432_v7 = vadd.f32 %v428_v21, %v404_v36  ;;  %v865_v21 = vadd.f32 %v861_v6, %v857_v5  ;;  %v872_v36 = vmul.f32 %v5695_v57, %v5699_v59 }
  0xca   : >> { %v346_v29 = vadd.f32 %v342_v61, %v318_v48  ;;  %v842_v4 = vadd.f32 %v838_v11, %v834_v44  ;;  %v457_v24 = vadd.f32 %v453_v18, %v429_v3  ;;  %v860_v61 = vadd.f32 %v856_v12, %v852_v2 }
  0xcb   : >> { %v5804_v8 = vadd.f32 %v456_v1, %v432_v7  ;;  %v864_v11 = vmul.f32 %v5671_v46, %v5770_v0  ;;  %v454_v3 = vmul.f32 %v5690_v54, %v5647_v37  ;;  %v426_v7 = vmul.f32 %v5661_v42, %v5736_v53 }
  0xcc   : >> { %v374_v51 = vadd.f32 %v370_v25, %v346_v29  ;;  %v850_v63 = vadd.f32 %v846_v43, %v842_v4  ;;  %v873_v5 = vadd.f32 %v869_v34, %v865_v21  ;;  %v862_v43 = vmul.f32 %v5671_v46, %v5736_v53 }
  0xcd   : >> { %v868_v2 = vadd.f32 %v864_v11, %v860_v61  ;;  %v870_v12 = vmul.f32 %v5695_v57, %v5647_v37  ;;  %v482_v44 = vmul.f32 %v5668_v45, %v5738_v55  ;;  %v882_v29 = vmul.f32 %v5715_v13, %v5738_v55 }
  0xce   : >> { %v402_v18 = vadd.f32 %v398_v50, %v374_v51  ;;  %v858_v4 = vadd.f32 %v854_v9, %v850_v63  ;;  %v1205_v11 = vmul.f32 %v5668_v45, %v5742_v60 }
  0xcf   : >> { %v5814_v38 = vpop.permute.xlu1 %446  ;;  %v5816_v1 = vpop.permute.xlu2 %502  ;;  %v876_v9 = vadd.f32 %v872_v36, %v868_v2 }
  0xd0   : >> { %9375 = vst [vmem:[#allocation38_spill] sm:$0xff] %v5814_v38  ;;  %v599_v6 = vmul.f32 %v5643_v35, %v5814_v38  ;;  %v430_v48 = vadd.f32 %v426_v7, %v402_v18  ;;  %v455_v25 = vmul.f32 %v5690_v54, %v5814_v38  ;;  %v866_v34 = vadd.f32 %v862_v43, %v858_v4 }
  0xd1   : >> { %9376 = vst [vmem:[#allocation39_spill] sm:$0xff] %v5816_v1  ;;  %v871_v21 = vmul.f32 %v5695_v57, %v5814_v38 }
  0xd2   : >> { %609 = vrot.lane.b32.xlu0 %v599_v6, %s5451_s8  ;;  %v458_v50 = vadd.f32 %v454_v3, %v430_v48  ;;  %v5834_v51 = vadd.f32 %v455_v25, %v5730_v47  ;;  %v874_v63 = vadd.f32 %v870_v12, %v866_v34  ;;  %v1209_v3 = vmul.f32 %v5671_v46, %v5595_v16 }
  0xd3   : >> { %v5845_v7 = vadd.f32 %v871_v21, %v5734_v52  ;;  %v509_v6 = vmul.f32 %v5671_v46, %v5780_v15  ;;  %v893_v12 = vmul.f32 %v5718_v14, %v5780_v15  ;;  %v1217_v48 = vmul.f32 %v5695_v57, %v5606_v20  ;;  %v5873_v21 = vld [vmem:[%s5565_s30 + $0x1f3] ss:$0 sm:$0xff] }
  0xd4   : >> { %9377 = vst [vmem:[#allocation40_spill] sm:$0xff] %v5834_v51  ;;  %v5838_v61 = vadd.f32 %v482_v44, %v458_v50  ;;  %v5842_v18 = vadd.f32 %v882_v29, %v874_v63  ;;  %v1213_v43 = vadd.f32 %v1209_v3, %v1205_v11  ;;  %v1225_v50 = vmul.f32 %v5715_v13, %v5656_v40 }
  0xd5   : >> { %9378 = vst [vmem:[#allocation41_spill] sm:$0xff] %v5845_v7 }
  0xd6   : >> { %v1221_v29 = vadd.f32 %v1217_v48, %v1213_v43  ;;  %9381 = vst [vmem:[#allocation44_spill] sm:$0xff] %v5873_v21  ;;  %v512_v43 = vmul.f32 %v5671_v46, %v5703_v62  ;;  %v5896_v48 = vld [vmem:[%s5565_s30 + $0x4] ss:$0 sm:$0xff] }
  0xd7   : >> { %9383 = vst [vmem:[#allocation46_spill] sm:$0xff] %v5896_v48 }
  0xd8   : >> { %v5849_v47 = vpop.permute.xlu1 %466  ;;  %v5851_v36 = vpop.permute.xlu2 %526  ;;  %v1229_v11 = vadd.f32 %v1225_v50, %v1221_v29  ;;  %v1208_v29 = vmul.f32 %v5668_v45, %v5623_v26  ;;  %v1220_v26 = vmul.f32 %v5695_v57, %v5625_v27 }
  0xd9   : >> { %9379 = vst [vmem:[#allocation42_spill] sm:$0xff] %v5849_v47  ;;  %v638_v4 = vmul.f32 %v5668_v45, %v5851_v36  ;;  %v481_v2 = vmul.f32 %v5668_v45, %v5849_v47  ;;  %v881_v52 = vmul.f32 %v5715_v13, %v5849_v47 }
  0xda   : >> { %9380 = vst [vmem:[#allocation43_spill] sm:$0xff] %v5851_v36 }
  0xdb   : >> { %647 = vrot.lane.b32.xlu0 %v638_v4, %s5451_s8  ;;  %v485_v44 = vadd.f32 %v481_v2, %v457_v24  ;;  %v885_v25 = vadd.f32 %v881_v52, %v873_v5  ;;  %v1233_v24 = vmul.f32 %v5718_v14, %v5636_v32  ;;  %v1212_v5 = vmul.f32 %v5671_v46, %v5632_v30 }
  0xdc   : >> { %v669_v2 = vmul.f32 %v5603_v19, %v5595_v16  ;;  %v1243_v52 = vmul.f32 %v5873_v21, %v5814_v38  ;;  %v896_v32 = vmul.f32 %v5718_v14, %v5703_v62 }
  0xdd   : >> { %v5866_v34 = vadd.f32 %v509_v6, %v485_v44  ;;  %v5870_v63 = vadd.f32 %v893_v12, %v885_v25  ;;  %v547_v12 = vmul.f32 %v5654_v39, %v5615_v23  ;;  %v551_v44 = vmul.f32 %v5679_v49, %v5613_v22 }
  0xde   : >> { %v1241_v25 = vmul.f32 %v5873_v21, %v5658_v41  ;;  %v1237_v20 = vadd.f32 %v1233_v24, %v1229_v11  ;;  %v1253_v22 = vmul.f32 %v5896_v48, %v5849_v47  ;;  %v1216_v41 = vadd.f32 %v1212_v5, %v1208_v29 }
  0xdf   : >> { %v555_v62 = vadd.f32 %v551_v44, %v547_v12  ;;  %v672_v11 = vmul.f32 %v5603_v19, %v5632_v30  ;;  %v9387_v44 = vld [vmem:[#allocation25_spill] sm:$0xff] }
  0xe0   : >> { %v5875_v3 = vpop.permute.xlu1 %478  ;;  %v5877_v4 = vpop.permute.xlu2 %534  ;;  %v1245_v1 = vadd.f32 %v1241_v25, %v1237_v20  ;;  %v583_v20 = vmul.f32 %v5661_v42, %v5697_v58  ;;  %v591_v25 = vmul.f32 %v5690_v54, %v9387_v44  ;;  %v1226_v58 = vmul.f32 %v5715_v13, %v5627_v28 }
  0xe1   : >> { %9382 = vst [vmem:[#allocation45_spill] sm:$0xff] %v5877_v4  ;;  %v484_v6 = vmul.f32 %v5668_v45, %v5875_v3  ;;  %v540_v50 = vmul.f32 %v5695_v57, %v5877_v4  ;;  %v884_v23 = vmul.f32 %v5715_v13, %v5875_v3  ;;  %v908_v51 = vmul.f32 %v5873_v21, %v5877_v4 }
  0xe2   : >> { %v1257_v47 = vadd.f32 %v1253_v22, %v1245_v1  ;;  %v538_v1 = vmul.f32 %v5695_v57, %v5851_v36 }
  0xe3   : >> { %677 = vrot.lane.b32.xlu0 %v669_v2, %s5451_s8  ;;  %v488_v38 = vadd.f32 %v484_v6, %v5804_v8  ;;  %v888_v7 = vadd.f32 %v884_v23, %v876_v9  ;;  %v5917_v8 = vadd.f32 %v1243_v52, %v5740_v56  ;;  %v5920_v6 = vld [vmem:[%s5565_s30 + $0xfc] ss:$0 sm:$0xff]  ;;  %v1228_v56 = vmul.f32 %v5715_v13, %v5634_v31 }
  0xe4   : >> { %9384 = vst [vmem:[#allocation47_spill] sm:$0xff] %v5920_v6  ;;  %v1265_v23 = vmul.f32 %v5920_v6, %v5780_v15 }
  0xe5   : >> { %v516_v2 = vadd.f32 %v512_v43, %v488_v38  ;;  %v900_v5 = vadd.f32 %v896_v32, %v888_v7  ;;  %v1206_v38 = vmul.f32 %v5668_v45, %v5778_v10  ;;  %v1224_v32 = vadd.f32 %v1220_v26, %v1216_v41 }
  0xe6   : >> { %v1210_v7 = vmul.f32 %v5671_v46, %v5599_v17  ;;  %v906_v26 = vmul.f32 %v5873_v21, %v5851_v36 }
  0xe7   : >> { %v5924_v24 = vadd.f32 %v540_v50, %v516_v2  ;;  %v5936_v52 = vadd.f32 %v908_v51, %v900_v5  ;;  %v1269_v51 = vadd.f32 %v1265_v23, %v1257_v47  ;;  %v1218_v2 = vmul.f32 %v5695_v57, %v5638_v33 }
  0xe8   : >> { %v570_v29 = vpop.permute.xlu2 %569  ;;  %v1214_v50 = vadd.f32 %v1210_v7, %v1206_v38 }
  0xe9   : >> { %9385 = vst [vmem:[#allocation48_spill] sm:$0xff] %v5924_v24  ;;  %v5932_v9 = vpop.permute.xlu1 %498  ;;  %v579_v43 = vadd.f32 %v570_v29, %v555_v62  ;;  %v1232_v29 = vadd.f32 %v1228_v56, %v1224_v32  ;;  %v9391_v56 = vld [vmem:[#allocation21_spill] sm:$0xff] }
  0xea   : >> { %9386 = vst [vmem:[#allocation49_spill] sm:$0xff] %v5936_v52  ;;  %v510_v22 = vmul.f32 %v5671_v46, %v5932_v9  ;;  %v894_v62 = vmul.f32 %v5718_v14, %v5932_v9  ;;  %v1222_v52 = vadd.f32 %v1218_v2, %v1214_v50  ;;  %v695_v32 = vmul.f32 %v5654_v39, %v9391_v56  ;;  %v5398_v2 = vld [vmem:[%s5565_s30 + $0x1f4] ss:$0 sm:$0xff] }
  0xeb   : >> { %v587_v12 = vadd.f32 %v583_v20, %v579_v43  ;;  %683 = vrot.lane.b32.xlu0 %v672_v11, %s5451_s8  ;;  %v1236_v20 = vmul.f32 %v5718_v14, %v5770_v0  ;;  %v1266_v24 = vmul.f32 %v5920_v6, %v5932_v9  ;;  %v9396_v56 = vld [vmem:[#allocation39_spill] sm:$0xff] }
  0xec   : >> { %v514_v41 = vadd.f32 %v510_v22, %v5838_v61  ;;  %v898_v11 = vadd.f32 %v894_v62, %v5842_v18  ;;  %v1244_v61 = vmul.f32 %v5873_v21, %v5699_v59  ;;  %v1230_v38 = vadd.f32 %v1226_v58, %v1222_v52 }
  0xed   : >> { %v5954_v5 = vadd.f32 %v591_v25, %v587_v12  ;;  %v1240_v23 = vadd.f32 %v1236_v20, %v1232_v29  ;;  %v1234_v18 = vmul.f32 %v5718_v14, %v5736_v53  ;;  %v1242_v22 = vmul.f32 %v5873_v21, %v5647_v37 }
  0xee   : >> { %v5959_v43 = vadd.f32 %v538_v1, %v514_v41  ;;  %v5965_v47 = vadd.f32 %v906_v26, %v898_v11  ;;  %v545_v12 = vmul.f32 %v5654_v39, %v5742_v60  ;;  %v549_v25 = vmul.f32 %v5679_v49, %v5595_v16  ;;  %v9392_v41 = vld [vmem:[#allocation28_spill] sm:$0xff] }
  0xef   : >> { %9388 = vst [vmem:[#allocation25_spill] sm:$0xff] %v5954_v5  ;;  %v1248_v1 = vadd.f32 %v1244_v61, %v1240_v23  ;;  %v581_v58 = vmul.f32 %v5661_v42, %v5656_v40  ;;  %v1238_v52 = vadd.f32 %v1234_v18, %v1230_v38  ;;  %v483_v50 = vmul.f32 %v5668_v45, %v9392_v41 }
  0xf0   : >> { %9389 = vst [vmem:[#allocation50_spill] sm:$0xff] %v5959_v43  ;;  %v1254_v11 = vmul.f32 %v5896_v48, %v5738_v55  ;;  %v726_v29 = vmul.f32 %v5643_v35, %v5736_v53  ;;  %v883_v61 = vmul.f32 %v5715_v13, %v9392_v41  ;;  %v1256_v23 = vmul.f32 %v5896_v48, %v5875_v3  ;;  %v9395_v43 = vld [vmem:[#allocation31_spill] sm:$0xff] }
  0xf1   : >> { %9390 = vst [vmem:[#allocation51_spill] sm:$0xff] %v5965_v47  ;;  %v1246_v47 = vadd.f32 %v1242_v22, %v1238_v52  ;;  %v553_v40 = vadd.f32 %v549_v25, %v545_v12  ;;  %v1268_v5 = vmul.f32 %v5920_v6, %v9395_v43  ;;  %v9399_v12 = vld [vmem:[#allocation41_spill] sm:$0xff] }
  0xf2   : >> { %v5973_v7 = vpop.permute.xlu1 %522  ;;  %v887_v25 = vadd.f32 %v883_v61, %v9399_v12  ;;  %v1260_v52 = vadd.f32 %v1256_v23, %v1248_v1 }
  0xf3   : >> { %705 = vrot.lane.b32.xlu0 %v695_v32, %s5451_s8  ;;  %v637_v62 = vmul.f32 %v5668_v45, %v5973_v7  ;;  %v537_v26 = vmul.f32 %v5695_v57, %v5973_v7  ;;  %v905_v20 = vmul.f32 %v5873_v21, %v5973_v7  ;;  %v1277_v18 = vmul.f32 %v5398_v2, %v5973_v7 }
  0xf4   : >> { %v1255_v32 = vmul.f32 %v5896_v48, %v9392_v41  ;;  %v1258_v48 = vadd.f32 %v1254_v11, %v1246_v47  ;;  %v1267_v41 = vmul.f32 %v5920_v6, %v9396_v56  ;;  %v1272_v47 = vadd.f32 %v1268_v5, %v1260_v52 }
  0xf5   : >> { %645 = vrot.lane.b32.xlu2 %v637_v62, %s5451_s8  ;;  %v6001_v38 = vadd.f32 %v537_v26, %v5866_v34  ;;  %v6007_v60 = vadd.f32 %v905_v20, %v5870_v63  ;;  %v511_v34 = vmul.f32 %v5671_v46, %v9396_v56  ;;  %v9397_v26 = vld [vmem:[#allocation40_spill] sm:$0xff]  ;;  %v6016_v16 = vadd.f32 %v1277_v18, %v1269_v51 }
  0xf6   : >> { %v895_v63 = vmul.f32 %v5718_v14, %v9396_v56  ;;  %v640_v20 = vmul.f32 %v5668_v45, %v5877_v4  ;;  %v1270_v13 = vadd.f32 %v1266_v24, %v1258_v48  ;;  %v1280_v11 = vmul.f32 %v5398_v2, %v5877_v4 }
  0xf7   : >> { %9393 = vst [vmem:[#allocation52_spill] sm:$0xff] %v6001_v38  ;;  %v566_v62 = vpop.permute.xlu0 %565  ;;  %v487_v38 = vadd.f32 %v483_v50, %v9397_v26  ;;  %v552_v26 = vmul.f32 %v5679_v49, %v5632_v30 }
  0xf8   : >> { %9394 = vst [vmem:[#allocation53_spill] sm:$0xff] %v6007_v60  ;;  %v577_v22 = vadd.f32 %v566_v62, %v553_v40  ;;  %v1259_v60 = vadd.f32 %v1255_v32, %v5917_v8  ;;  %v1278_v40 = vmul.f32 %v5398_v2, %v5851_v36  ;;  %v899_v23 = vadd.f32 %v895_v63, %v887_v25  ;;  %v9406_v62 = vld [vmem:[#allocation27_spill] sm:$0xff] }
  0xf9   : >> { %9398 = vst [vmem:[#allocation31_spill] sm:$0xff] %v6016_v16  ;;  %v515_v61 = vadd.f32 %v511_v34, %v487_v38  ;;  %v6048_v32 = vadd.f32 %v1280_v11, %v1272_v47  ;;  %v749_v34 = vmul.f32 %v5661_v42, %v9406_v62  ;;  %v584_v63 = vmul.f32 %v5661_v42, %v5634_v31  ;;  %v9409_v11 = vld [vmem:[#allocation18_spill] sm:$0xff] }
  0xfa   : >> { %v6026_v50 = vadd.f32 %v581_v58, %v577_v22  ;;  %v6028_v51 = vpop.permute.xlu1 %530  ;;  %v1271_v5 = vadd.f32 %v1267_v41, %v1259_v60  ;;  %v6046_v18 = vadd.f32 %v1278_v40, %v1270_v13  ;;  %v9407_v22 = vld [vmem:[#allocation19_spill] sm:$0xff]  ;;  %v670_v41 = vmul.f32 %v5603_v19, %v5599_v17  ;;  %v9408_v13 = vld [vmem:[#allocation22_spill] sm:$0xff] }
  0xfb   : >> { %9400 = vst [vmem:[#allocation40_spill] sm:$0xff] %v6028_v51  ;;  %735 = vrot.lane.b32.xlu0 %v726_v29, %s5451_s8  ;;  %v639_v1 = vmul.f32 %v5668_v45, %v6028_v51  ;;  %v539_v8 = vmul.f32 %v5695_v57, %v6028_v51  ;;  %v907_v48 = vmul.f32 %v5873_v21, %v6028_v51  ;;  %v9423_v21 = vld [vmem:[#allocation28_spill] sm:$0xff] }
  0xfc   : >> { %v1279_v29 = vmul.f32 %v5398_v2, %v6028_v51  ;;  %9403 = vst [vmem:[#allocation55_spill] sm:$0xff] %v6046_v18  ;;  %v671_v60 = vmul.f32 %v5603_v19, %v9407_v22  ;;  %v548_v2 = vmul.f32 %v5654_v39, %v9408_v13  ;;  %v592_v19 = vmul.f32 %v5690_v54, %v5770_v0  ;;  %v9422_v18 = vld [vmem:[#allocation29_spill] sm:$0xff] }
  0xfd   : >> { %651 = vrot.lane.b32.xlu2 %v640_v20, %s5451_s8  ;;  %649 = vrot.lane.b32.xlu1 %v639_v1, %s5451_s8  ;;  %v6041_v24 = vadd.f32 %v539_v8, %v515_v61  ;;  %v6043_v58 = vadd.f32 %v907_v48, %v899_v23  ;;  %9404 = vst [vmem:[#allocation56_spill] sm:$0xff] %v6048_v32  ;;  %v9410_v23 = vld [vmem:[#allocation24_spill] sm:$0xff] }
  0xfe   : >> { %v6050_v38 = vadd.f32 %v1279_v29, %v1271_v5  ;;  %v556_v12 = vadd.f32 %v552_v26, %v548_v2  ;;  %v752_v20 = vmul.f32 %v5661_v42, %v5699_v59  ;;  %v694_v47 = vmul.f32 %v5654_v39, %v5638_v33 }
  0xff   : >> { %9401 = vst [vmem:[#allocation41_spill] sm:$0xff] %v6041_v24  ;;  %v693_v1 = vmul.f32 %v5654_v39, %v9409_v11  ;;  %v783_v61 = vmul.f32 %v5668_v45, %v9396_v56  ;;  %v725_v48 = vmul.f32 %v5643_v35, %v9410_v23  ;;  %v696_v5 = vmul.f32 %v5654_v39, %v5625_v27 }
 0x100   : >> { %9402 = vst [vmem:[#allocation54_spill] sm:$0xff] %v6043_v58  ;;  %v546_v29 = vmul.f32 %v5654_v39, %v5778_v10  ;;  %v582_v2 = vmul.f32 %v5661_v42, %v5627_v28  ;;  %v728_v39 = vmul.f32 %v5643_v35, %v5770_v0  ;;  %v719_v16 = vmul.f32 %v5690_v54, %v9422_v18 }
 0x101   : >> { %9405 = vst [vmem:[#allocation57_spill] sm:$0xff] %v6050_v38  ;;  %v1124_v58 = vmul.f32 %v5671_v46, %v5699_v59  ;;  %v1301_v24 = vmul.f32 %v5668_v45, %v9409_v11 }
 0x103   : >> { %757 = vrot.lane.b32.xlu0 %v749_v34, %s5451_s8  ;;  %v550_v34 = vmul.f32 %v5679_v49, %v5599_v17 }
 0x105   : >> { %681 = vrot.lane.b32.xlu2 %v671_v60, %s5451_s8  ;;  %679 = vrot.lane.b32.xlu1 %v670_v41, %s5451_s8  ;;  %v554_v26 = vadd.f32 %v550_v34, %v546_v29  ;;  %v806_v41 = vmul.f32 %v5671_v46, %v5851_v36  ;;  %v630_v34 = vmul.f32 %v5695_v57, %v5932_v9 }
 0x107   : >> { %v572_v25 = vpop.permute.xlu0 %571 }
 0x108   : >> { %v580_v52 = vadd.f32 %v572_v25, %v556_v12  ;;  %v727_v25 = vmul.f32 %v5643_v35, %v9387_v44 }
 0x10a   : >> { %v588_v40 = vadd.f32 %v584_v63, %v580_v52  ;;  %v590_v52 = vmul.f32 %v5690_v54, %v5736_v53 }
 0x10b   : >> { %763 = vrot.lane.b32.xlu0 %v752_v20, %s5451_s8  ;;  %v608_v20 = vpop.permute.xlu2 %607 }
 0x10c   : >> { %v596_v8 = vadd.f32 %v592_v19, %v588_v40  ;;  %v589_v40 = vmul.f32 %v5690_v54, %v9410_v23 }
 0x10d   : >> { %703 = vrot.lane.b32.xlu2 %v694_v47, %s5451_s8  ;;  %701 = vrot.lane.b32.xlu1 %v693_v1, %s5451_s8  ;;  %v622_v47 = vmul.f32 %v5671_v46, %v5738_v55 }
 0x113   : >> { %793 = vrot.lane.b32.xlu0 %v783_v61, %s5451_s8  ;;  %v593_v61 = vadd.f32 %v589_v40, %v6026_v50  ;;  %v750_v50 = vmul.f32 %v5661_v42, %v5647_v37 }
 0x115   : >> { %733 = vrot.lane.b32.xlu2 %v725_v48, %s5451_s8  ;;  %707 = vrot.lane.b32.xlu1 %v696_v5, %s5451_s8  ;;  %v929_v48 = vmul.f32 %v5643_v35, %v9409_v11 }
 0x119   : >> { %v568_v60 = vpop.permute.xlu1 %567 }
 0x11a   : >> { %v578_v12 = vadd.f32 %v568_v60, %v554_v26  ;;  %v9411_v26 = vld [vmem:[#allocation42_spill] sm:$0xff] }
 0x11b   : >> { %815 = vrot.lane.b32.xlu0 %v806_v41, %s5451_s8  ;;  %v621_v60 = vmul.f32 %v5671_v46, %v9411_v26 }
 0x11c   : >> { %v586_v63 = vadd.f32 %v582_v2, %v578_v12  ;;  %v9412_v2 = vld [vmem:[#allocation38_spill] sm:$0xff] }
 0x11d   : >> { %739 = vrot.lane.b32.xlu2 %v728_v39, %s5451_s8  ;;  %737 = vrot.lane.b32.xlu1 %v727_v25, %s5451_s8  ;;  %v751_v12 = vmul.f32 %v5661_v42, %v9412_v2 }
 0x11e   : >> { %v594_v19 = vadd.f32 %v590_v52, %v586_v63  ;;  %v629_v63 = vmul.f32 %v5695_v57, %v5780_v15 }
 0x120   : >> { %v618_v1 = vadd.f32 %v608_v20, %v594_v19  ;;  %v932_v20 = vmul.f32 %v5643_v35, %v5625_v27  ;;  %v624_v19 = vmul.f32 %v5671_v46, %v5875_v3 }
 0x122   : >> { %v626_v5 = vadd.f32 %v622_v47, %v618_v1  ;;  %v606_v29 = vpop.permute.xlu1 %605  ;;  %v782_v1 = vmul.f32 %v5668_v45, %v5932_v9 }
 0x123   : >> { %v617_v41 = vadd.f32 %v606_v29, %v593_v61  ;;  %937 = vrot.lane.b32.xlu0 %v929_v48, %s5451_s8  ;;  %v781_v61 = vmul.f32 %v5668_v45, %v5780_v15  ;;  %v784_v29 = vmul.f32 %v5668_v45, %v9395_v43 }
 0x124   : >> { %v634_v39 = vadd.f32 %v630_v34, %v626_v5  ;;  %v971_v5 = vmul.f32 %v5668_v45, %v9412_v2  ;;  %v9413_v34 = vld [vmem:[#allocation32_spill] sm:$0xff] }
 0x125   : >> { %v625_v25 = vadd.f32 %v621_v60, %v617_v41  ;;  %761 = vrot.lane.b32.xlu2 %v751_v12, %s5451_s8  ;;  %759 = vrot.lane.b32.xlu1 %v750_v50, %s5451_s8  ;;  %v1010_v60 = vmul.f32 %v9413_v34, %v5851_v36  ;;  %v808_v41 = vmul.f32 %v5671_v46, %v5877_v4  ;;  %v9414_v50 = vld [vmem:[#allocation16_spill] sm:$0xff] }
 0x126   : >> { %v807_v12 = vmul.f32 %v5671_v46, %v6028_v51  ;;  %v1012_v32 = vmul.f32 %v9413_v34, %v5877_v4 }
 0x127   : >> { %v633_v52 = vadd.f32 %v629_v63, %v625_v25  ;;  %v1041_v25 = vmul.f32 %v5643_v35, %v9414_v50  ;;  %v9415_v63 = vld [vmem:[#allocation21_spill] sm:$0xff] }
 0x12a   : >> { %v612_v40 = vpop.permute.xlu1 %611 }
 0x12b   : >> { %v620_v47 = vadd.f32 %v612_v40, %v596_v8  ;;  %943 = vrot.lane.b32.xlu0 %v932_v20, %s5451_s8  ;;  %v805_v8 = vmul.f32 %v5671_v46, %v5973_v7  ;;  %v931_v20 = vmul.f32 %v5643_v35, %v9415_v63  ;;  %v930_v40 = vmul.f32 %v5643_v35, %v5638_v33 }
 0x12d   : >> { %v628_v48 = vadd.f32 %v624_v19, %v620_v47  ;;  %791 = vrot.lane.b32.xlu2 %v782_v1, %s5451_s8  ;;  %789 = vrot.lane.b32.xlu1 %v781_v61, %s5451_s8  ;;  %v9416_v47 = vld [vmem:[#allocation25_spill] sm:$0xff]  ;;  %v1044_v61 = vmul.f32 %v5643_v35, %v5632_v30 }
 0x133   : >> { %981 = vrot.lane.b32.xlu0 %v971_v5, %s5451_s8  ;;  %v970_v5 = vmul.f32 %v5668_v45, %v5647_v37 }
 0x135   : >> { %813 = vrot.lane.b32.xlu2 %v805_v8, %s5451_s8  ;;  %795 = vrot.lane.b32.xlu1 %v784_v29, %s5451_s8  ;;  %v969_v29 = vmul.f32 %v5668_v45, %v9406_v62 }
 0x13b   : >> { %1019 = vrot.lane.b32.xlu0 %v1010_v60, %s5451_s8 }
 0x13d   : >> { %819 = vrot.lane.b32.xlu2 %v808_v41, %s5451_s8  ;;  %817 = vrot.lane.b32.xlu1 %v807_v12, %s5451_s8  ;;  %v9417_v12 = vld [vmem:[#allocation50_spill] sm:$0xff] }
 0x143   : >> { %1049 = vrot.lane.b32.xlu0 %v1041_v25, %s5451_s8  ;;  %v1042_v25 = vmul.f32 %v5643_v35, %v5599_v17 }
 0x144   : >> { %v610_v19 = vpop.permute.xlu0 %609 }
 0x145   : >> { %v619_v1 = vadd.f32 %v610_v19, %v9416_v47  ;;  %941 = vrot.lane.b32.xlu2 %v931_v20, %s5451_s8  ;;  %939 = vrot.lane.b32.xlu1 %v930_v40, %s5451_s8  ;;  %v1067_v40 = vmul.f32 %v5661_v42, %v9415_v63  ;;  %v9418_v19 = vld [vmem:[#allocation52_spill] sm:$0xff]  ;;  %v1098_v47 = vmul.f32 %v5668_v45, %v5736_v53 }
 0x14b   : >> { %1055 = vrot.lane.b32.xlu0 %v1044_v61, %s5451_s8  ;;  %v632_v61 = vmul.f32 %v5695_v57, %v9395_v43 }
 0x14d   : >> { %979 = vrot.lane.b32.xlu2 %v970_v5, %s5451_s8  ;;  %977 = vrot.lane.b32.xlu1 %v969_v29, %s5451_s8  ;;  %v648_v8 = vpop.permute.xlu0 %647  ;;  %v972_v5 = vmul.f32 %v5668_v45, %v5699_v59  ;;  %v636_v29 = vadd.f32 %v632_v61, %v628_v48 }
 0x14e   : >> { %v6172_v60 = vadd.f32 %v648_v8, %v634_v39  ;;  %v1009_v39 = vmul.f32 %v9413_v34, %v5973_v7 }
 0x14f   : >> { %v646_v41 = vpop.permute.xlu2 %645 }
 0x150   : >> { %v6176_v20 = vadd.f32 %v646_v41, %v633_v52 }
 0x153   : >> { %1077 = vrot.lane.b32.xlu0 %v1067_v40, %s5451_s8  ;;  %v9420_v40 = vld [vmem:[#allocation48_spill] sm:$0xff] }
 0x155   : >> { %1017 = vrot.lane.b32.xlu2 %v1009_v39, %s5451_s8  ;;  %983 = vrot.lane.b32.xlu1 %v972_v5, %s5451_s8  ;;  %v6191_v52 = vpop.permute.xlu0 %677  ;;  %v1011_v39 = vmul.f32 %v9413_v34, %v6028_v51  ;;  %v1121_v5 = vmul.f32 %v5671_v46, %v9406_v62 }
 0x157   : >> { %v652_v8 = vpop.permute.xlu2 %651 }
 0x158   : >> { %v6193_v41 = vadd.f32 %v652_v8, %v636_v29  ;;  %v9421_v29 = vld [vmem:[#allocation20_spill] sm:$0xff] }
 0x159   : >> { %v667_v8 = vmul.f32 %v5679_v49, %v9421_v29 }
 0x15a   : >> { %9419 = vst [vmem:[#allocation27_spill] sm:$0xff] %v6193_v41 }
 0x15b   : >> { %1107 = vrot.lane.b32.xlu0 %v1098_v47, %s5451_s8  ;;  %v1043_v47 = vmul.f32 %v5643_v35, %v9407_v22 }
 0x15d   : >> { %1023 = vrot.lane.b32.xlu2 %v1012_v32, %s5451_s8  ;;  %1021 = vrot.lane.b32.xlu1 %v1011_v39, %s5451_s8  ;;  %v6206_v48 = vpop.permute.xlu0 %683 }
 0x15f   : >> { %v682_v61 = vpop.permute.xlu2 %681 }
 0x160   : >> { %v691_v32 = vadd.f32 %v682_v61, %v667_v8  ;;  %v1065_v61 = vmul.f32 %v5661_v42, %v9409_v11  ;;  %v631_v8 = vmul.f32 %v5695_v57, %v9396_v56 }
 0x163   : >> { %1129 = vrot.lane.b32.xlu0 %v1121_v5, %s5451_s8  ;;  %v623_v5 = vmul.f32 %v5671_v46, %v9423_v21 }
 0x165   : >> { %1053 = vrot.lane.b32.xlu2 %v1043_v47, %s5451_s8  ;;  %1051 = vrot.lane.b32.xlu1 %v1042_v25, %s5451_s8  ;;  %v706_v39 = vpop.permute.xlu0 %705  ;;  %v627_v35 = vadd.f32 %v623_v5, %v619_v1  ;;  %v1066_v25 = vmul.f32 %v5661_v42, %v5638_v33  ;;  %v1097_v5 = vmul.f32 %v5668_v45, %v9410_v23  ;;  %v9425_v23 = vld [vmem:[#allocation35_spill] sm:$0xff] }
 0x166   : >> { %v715_v38 = vadd.f32 %v706_v39, %v691_v32  ;;  %v665_v17 = vmul.f32 %v5679_v49, %v9425_v23 }
 0x167   : >> { %v704_v6 = vpop.permute.xlu2 %703 }
 0x168   : >> { %v6223_v53 = vadd.f32 %v719_v16, %v715_v38  ;;  %v635_v38 = vadd.f32 %v631_v8, %v627_v35 }
 0x16b   : >> { %1135 = vrot.lane.b32.xlu0 %v1124_v58, %s5451_s8  ;;  %v1155_v58 = vmul.f32 %v9413_v34, %v9396_v56  ;;  %v718_v56 = vmul.f32 %v5690_v54, %v5627_v28  ;;  %v9426_v28 = vld [vmem:[#allocation26_spill] sm:$0xff] }
 0x16d   : >> { %1075 = vrot.lane.b32.xlu2 %v1066_v25, %s5451_s8  ;;  %1073 = vrot.lane.b32.xlu1 %v1065_v61, %s5451_s8  ;;  %v736_v16 = vpop.permute.xlu0 %735  ;;  %v1068_v25 = vmul.f32 %v5661_v42, %v5625_v27  ;;  %v666_v61 = vmul.f32 %v5679_v49, %v5778_v10  ;;  %v717_v10 = vmul.f32 %v5690_v54, %v9426_v28 }
 0x16f   : >> { %v734_v47 = vpop.permute.xlu2 %733  ;;  %v650_v32 = vpop.permute.xlu1 %649 }
 0x170   : >> { %v6236_v1 = vadd.f32 %v650_v32, %v635_v38 }
 0x172   : >> { %9424 = vst [vmem:[#allocation19_spill] sm:$0xff] %v6236_v1 }
 0x173   : >> { %1165 = vrot.lane.b32.xlu0 %v1155_v58, %s5451_s8  ;;  %v1178_v58 = vmul.f32 %v5718_v14, %v5851_v36 }
 0x175   : >> { %1105 = vrot.lane.b32.xlu2 %v1097_v5, %s5451_s8  ;;  %1079 = vrot.lane.b32.xlu1 %v1068_v25, %s5451_s8  ;;  %v758_v35 = vpop.permute.xlu0 %757  ;;  %v1100_v5 = vmul.f32 %v5668_v45, %v5770_v0  ;;  %v1099_v25 = vmul.f32 %v5668_v45, %v9387_v44 }
 0x177   : >> { %v740_v8 = vpop.permute.xlu2 %739  ;;  %v680_v38 = vpop.permute.xlu1 %679 }
 0x178   : >> { %v690_v32 = vadd.f32 %v680_v38, %v666_v61  ;;  %v689_v61 = vadd.f32 %v6191_v52, %v665_v17  ;;  %v668_v17 = vmul.f32 %v5679_v49, %v9408_v13  ;;  %v1304_v49 = vmul.f32 %v5668_v45, %v5625_v27 }
 0x17a   : >> { %v714_v39 = vadd.f32 %v704_v6, %v690_v32 }
 0x17b   : >> { %1187 = vrot.lane.b32.xlu0 %v1178_v58, %s5451_s8 }
 0x17c   : >> { %v722_v59 = vadd.f32 %v718_v56, %v714_v39  ;;  %v1123_v56 = vmul.f32 %v5671_v46, %v9412_v2  ;;  %v1122_v39 = vmul.f32 %v5671_v46, %v5647_v37 }
 0x17d   : >> { %1111 = vrot.lane.b32.xlu2 %v1100_v5, %s5451_s8  ;;  %1109 = vrot.lane.b32.xlu1 %v1099_v25, %s5451_s8  ;;  %v764_v6 = vpop.permute.xlu0 %763  ;;  %v720_v25 = vmul.f32 %v5690_v54, %v5634_v31 }
 0x17e   : >> { %v746_v38 = vadd.f32 %v736_v16, %v722_v59  ;;  %v692_v16 = vadd.f32 %v6206_v48, %v668_v17  ;;  %v1154_v48 = vmul.f32 %v9413_v34, %v5932_v9 }
 0x17f   : >> { %v762_v32 = vpop.permute.xlu2 %761  ;;  %v702_v58 = vpop.permute.xlu1 %701 }
 0x180   : >> { %v713_v1 = vadd.f32 %v702_v58, %v689_v61 }
 0x182   : >> { %v721_v41 = vadd.f32 %v717_v10, %v713_v1  ;;  %v773_v10 = vmul.f32 %v5695_v57, %v9411_v26 }
 0x183   : >> { %1309 = vrot.lane.b32.xlu0 %v1301_v24, %s5451_s8 }
 0x184   : >> { %v745_v59 = vadd.f32 %v734_v47, %v721_v41  ;;  %v1153_v47 = vmul.f32 %v9413_v34, %v5780_v15 }
 0x185   : >> { %1133 = vrot.lane.b32.xlu2 %v1123_v56, %s5451_s8  ;;  %1131 = vrot.lane.b32.xlu1 %v1122_v39, %s5451_s8  ;;  %v794_v52 = vpop.permute.xlu0 %793  ;;  %v776_v39 = vmul.f32 %v5695_v57, %v5875_v3 }
 0x186   : >> { %v769_v24 = vadd.f32 %v758_v35, %v745_v59 }
 0x187   : >> { %v792_v1 = vpop.permute.xlu2 %791  ;;  %v708_v5 = vpop.permute.xlu1 %707 }
 0x188   : >> { %v716_v61 = vadd.f32 %v708_v5, %v692_v16  ;;  %v6283_v58 = vadd.f32 %v773_v10, %v769_v24  ;;  %v917_v10 = vmul.f32 %v5661_v42, %v9425_v23 }
 0x18a   : >> { %v724_v41 = vadd.f32 %v720_v25, %v716_v61  ;;  %v921_v25 = vmul.f32 %v5690_v54, %v9414_v50  ;;  %v775_v61 = vmul.f32 %v5695_v57, %v9423_v21 }
 0x18b   : >> { %1315 = vrot.lane.b32.xlu0 %v1304_v49, %s5451_s8 }
 0x18c   : >> { %v748_v35 = vadd.f32 %v740_v8, %v724_v41  ;;  %v1343_v8 = vmul.f32 %v9413_v34, %v9412_v2  ;;  %v925_v49 = vadd.f32 %v921_v25, %v917_v10  ;;  %v924_v10 = vmul.f32 %v5690_v54, %v5632_v30 }
 0x18d   : >> { %1163 = vrot.lane.b32.xlu2 %v1154_v48, %s5451_s8  ;;  %1161 = vrot.lane.b32.xlu1 %v1153_v47, %s5451_s8  ;;  %v816_v56 = vpop.permute.xlu0 %815  ;;  %v953_v48 = vmul.f32 %v5671_v46, %v9426_v28  ;;  %v920_v46 = vmul.f32 %v5661_v42, %v9408_v13 }
 0x18e   : >> { %v772_v17 = vadd.f32 %v764_v6, %v748_v35  ;;  %v1156_v6 = vmul.f32 %v9413_v34, %v9395_v43  ;;  %v774_v34 = vmul.f32 %v5695_v57, %v5738_v55  ;;  %v1180_v57 = vmul.f32 %v5718_v14, %v5877_v4 }
 0x18f   : >> { %v814_v45 = vpop.permute.xlu2 %813  ;;  %v738_v59 = vpop.permute.xlu1 %737 }
 0x190   : >> { %v747_v16 = vadd.f32 %v738_v59, %v6223_v53  ;;  %v6299_v24 = vadd.f32 %v776_v39, %v772_v17  ;;  %v1177_v53 = vmul.f32 %v5718_v14, %v5973_v7 }
 0x192   : >> { %v771_v5 = vadd.f32 %v762_v32, %v747_v16 }
 0x193   : >> { %1353 = vrot.lane.b32.xlu0 %v1343_v8, %s5451_s8  ;;  %v9427_v8 = vld [vmem:[#allocation46_spill] sm:$0xff] }
 0x194   : >> { %v779_v41 = vadd.f32 %v775_v61, %v771_v5  ;;  %v1382_v5 = vmul.f32 %v9427_v8, %v5851_v36  ;;  %v923_v61 = vmul.f32 %v5690_v54, %v9407_v22 }
 0x195   : >> { %1185 = vrot.lane.b32.xlu2 %v1177_v53, %s5451_s8  ;;  %1167 = vrot.lane.b32.xlu1 %v1156_v6, %s5451_s8  ;;  %v938_v32 = vpop.permute.xlu0 %937  ;;  %v928_v6 = vadd.f32 %v924_v10, %v920_v46  ;;  %v6358_v46 = vld [vmem:[%s5565_s30 + $0x2] ss:$0 sm:$0xff] }
 0x196   : >> { %v949_v47 = vadd.f32 %v938_v32, %v925_v49  ;;  %v6316_v35 = vadd.f32 %v794_v52, %v779_v41  ;;  %v919_v52 = vmul.f32 %v5661_v42, %v9421_v29  ;;  %v6340_v41 = vld [vmem:[%s5565_s30 + $0xfa] ss:$0 sm:$0xff] }
 0x197   : >> { %v820_v39 = vpop.permute.xlu2 %819  ;;  %v760_v17 = vpop.permute.xlu1 %759  ;;  %v956_v54 = vmul.f32 %v6340_v41, %v5634_v31 }
 0x198   : >> { %v6318_v59 = vadd.f32 %v953_v48, %v949_v47  ;;  %v770_v16 = vadd.f32 %v760_v17, %v746_v38  ;;  %v1179_v38 = vmul.f32 %v5718_v14, %v6028_v51  ;;  %v927_v48 = vadd.f32 %v923_v61, %v919_v52  ;;  %v6347_v17 = vld [vmem:[%s5565_s30 + $0x1f2] ss:$0 sm:$0xff] }
 0x199   : >> { %v955_v47 = vmul.f32 %v6340_v41, %v9422_v18  ;;  %v1413_v52 = vmul.f32 %v6358_v46, %v9414_v50  ;;  %v963_v61 = vmul.f32 %v6347_v17, %v9387_v44 }
 0x19a   : >> { %v778_v25 = vadd.f32 %v774_v34, %v770_v16  ;;  %v964_v34 = vmul.f32 %v6347_v17, %v5770_v0 }
 0x19b   : >> { %1391 = vrot.lane.b32.xlu0 %v1382_v5, %s5451_s8 }
 0x19c   : >> { %v802_v53 = vadd.f32 %v792_v1, %v778_v25 }
 0x19d   : >> { %1191 = vrot.lane.b32.xlu2 %v1180_v57, %s5451_s8  ;;  %1189 = vrot.lane.b32.xlu1 %v1179_v38, %s5451_s8  ;;  %v944_v42 = vpop.permute.xlu0 %943  ;;  %v9429_v57 = vld [vmem:[#allocation51_spill] sm:$0xff]  ;;  %v9443_v38 = vld [vmem:[#allocation33_spill] sm:$0xff] }
 0x19e   : >> { %v826_v49 = vadd.f32 %v816_v56, %v802_v53  ;;  %v952_v32 = vadd.f32 %v944_v42, %v928_v6  ;;  %v9428_v56 = vmax.f32 %v9417_v12, %v6172_v60  ;;  %v1303_v12 = vmul.f32 %v6358_v46, %v9415_v63 }
 0x19f   : >> { %v942_v14 = vpop.permute.xlu2 %941  ;;  %v790_v1 = vpop.permute.xlu1 %789  ;;  %v9430_v42 = vmax.f32 %v9418_v19, %v6176_v20  ;;  %v1437_v20 = vmul.f32 %v6340_v41, %v9409_v11 }
 0x1a0   : >> { %v6354_v16 = vmax.f32 %v9428_v56, %v826_v49  ;;  %v960_v10 = vadd.f32 %v956_v54, %v952_v32  ;;  %v951_v5 = vadd.f32 %v942_v14, %v927_v48  ;;  %v801_v25 = vadd.f32 %v790_v1, %v6283_v58  ;;  %v9431_v32 = vld [vmem:[#allocation53_spill] sm:$0xff] }
 0x1a1   : >> { %v1302_v58 = vmul.f32 %v6358_v46, %v5638_v33  ;;  %v6389_v56 = vld [vmem:[%s5565_s30 + $0x3] ss:$0 sm:$0xff] }
 0x1a2   : >> { %v959_v53 = vadd.f32 %v955_v47, %v951_v5  ;;  %v825_v6 = vadd.f32 %v814_v45, %v801_v25  ;;  %v6366_v60 = vadd.f32 %v964_v34, %v960_v10  ;;  %v1342_v10 = vmul.f32 %v6389_v56, %v5647_v37  ;;  %v9432_v25 = vld [vmem:[#allocation27_spill] sm:$0xff] }
 0x1a3   : >> { %1421 = vrot.lane.b32.xlu0 %v1413_v52, %s5451_s8  ;;  %v1341_v5 = vmul.f32 %v6389_v56, %v9406_v62  ;;  %v9433_v52 = vmax.f32 %v9420_v40, %v9432_v25  ;;  %v9435_v40 = vld [vmem:[#allocation41_spill] sm:$0xff]  ;;  %v1470_v48 = vmul.f32 %v6389_v56, %v9443_v38 }
 0x1a4   : >> { %v6376_v49 = vmax.f32 %v9430_v42, %v825_v6  ;;  %v967_v54 = vadd.f32 %v963_v61, %v959_v53  ;;  %v9436_v42 = vld [vmem:[#allocation19_spill] sm:$0xff]  ;;  %v9440_v25 = vld [vmem:[#allocation17_spill] sm:$0xff] }
 0x1a5   : >> { %1313 = vrot.lane.b32.xlu2 %v1303_v12, %s5451_s8  ;;  %1311 = vrot.lane.b32.xlu1 %v1302_v58, %s5451_s8  ;;  %v982_v45 = vpop.permute.xlu0 %981  ;;  %v1439_v58 = vmul.f32 %v6340_v41, %v9415_v63 }
 0x1a6   : >> { %v6382_v47 = vadd.f32 %v982_v45, %v967_v54  ;;  %v9437_v54 = vmax.f32 %v9435_v40, %v9436_v42 }
 0x1a7   : >> { %v980_v14 = vpop.permute.xlu2 %979  ;;  %v796_v1 = vpop.permute.xlu1 %795 }
 0x1a8   : >> { %v804_v34 = vadd.f32 %v796_v1, %v6299_v24  ;;  %v5403_v1 = vld [vmem:[%s5565_s30 + $0xf9] ss:$0 sm:$0xff] }
 0x1aa   : >> { %v828_v19 = vadd.f32 %v820_v39, %v804_v34  ;;  %v9434_v39 = vld [vmem:[#allocation49_spill] sm:$0xff] }
 0x1ab   : >> { %1445 = vrot.lane.b32.xlu0 %v1437_v20, %s5451_s8  ;;  %v9438_v34 = vld [vmem:[#allocation37_spill] sm:$0xff] }
 0x1ac   : >> { %v6398_v24 = vmax.f32 %v9433_v52, %v828_v19  ;;  %v918_v20 = vmul.f32 %v5403_v1, %v9438_v34  ;;  %v1381_v19 = vmul.f32 %v9427_v8, %v5973_v7  ;;  %v9441_v52 = vld [vmem:[#allocation54_spill] sm:$0xff] }
 0x1ad   : >> { %1351 = vrot.lane.b32.xlu2 %v1342_v10, %s5451_s8  ;;  %1349 = vrot.lane.b32.xlu1 %v1341_v5, %s5451_s8  ;;  %v6402_v11 = vpop.permute.xlu0 %1019  ;;  %v9439_v10 = vld [vmem:[#allocation30_spill] sm:$0xff] }
 0x1ae   : >> { %v1344_v5 = vmul.f32 %v6389_v56, %v9439_v10 }
 0x1af   : >> { %v1018_v53 = vpop.permute.xlu2 %1017  ;;  %v818_v6 = vpop.permute.xlu1 %817 }
 0x1b0   : >> { %v827_v12 = vadd.f32 %v818_v6, %v6316_v35  ;;  %v6422_v35 = vld [vmem:[%s5565_s30 + $0x1f1] ss:$0 sm:$0xff]  ;;  %v962_v6 = vmul.f32 %v6347_v17, %v9443_v38 }
 0x1b1   : >> { %v922_v63 = vmul.f32 %v6422_v35, %v9440_v25 }
 0x1b2   : >> { %v6412_v45 = vmax.f32 %v9437_v54, %v827_v12  ;;  %v9442_v54 = vld [vmem:[#allocation23_spill] sm:$0xff] }
 0x1b3   : >> { %1449 = vrot.lane.b32.xlu0 %v1439_v58, %s5451_s8  ;;  %v926_v58 = vadd.f32 %v922_v63, %v918_v20  ;;  %v954_v1 = vmul.f32 %v6340_v41, %v9442_v54  ;;  %v1383_v20 = vmul.f32 %v9427_v8, %v6028_v51  ;;  %v9444_v63 = vld [vmem:[#allocation24_spill] sm:$0xff]  ;;  %v1471_v51 = vmul.f32 %v6389_v56, %v9387_v44 }
 0x1b4   : >> { %v961_v50 = vmul.f32 %v6347_v17, %v9444_v63 }
 0x1b5   : >> { %1389 = vrot.lane.b32.xlu2 %v1381_v19, %s5451_s8  ;;  %1355 = vrot.lane.b32.xlu1 %v1344_v5, %s5451_s8  ;;  %v6430_v12 = vpop.permute.xlu0 %1049  ;;  %v1384_v19 = vmul.f32 %v9427_v8, %v5877_v4 }
 0x1b7   : >> { %v1024_v40 = vpop.permute.xlu2 %1023  ;;  %v940_v42 = vpop.permute.xlu1 %939 }
 0x1b8   : >> { %v950_v61 = vadd.f32 %v940_v42, %v926_v58  ;;  %v6450_v42 = vld [vmem:[%s5565_s30 + $0xfb] ss:$0 sm:$0xff] }
 0x1ba   : >> { %v958_v36 = vadd.f32 %v954_v1, %v950_v61  ;;  %v965_v1 = vadd.f32 %v961_v50, %v6318_v59 }
 0x1bb   : >> { %1479 = vrot.lane.b32.xlu0 %v1470_v48, %s5451_s8  ;;  %v994_v48 = vmul.f32 %v6450_v42, %v5738_v55  ;;  %v1039_v55 = vmul.f32 %v6422_v35, %v9421_v29 }
 0x1bc   : >> { %v966_v5 = vadd.f32 %v962_v6, %v958_v36  ;;  %v9445_v36 = vld [vmem:[#allocation44_spill] sm:$0xff] }
 0x1bd   : >> { %1395 = vrot.lane.b32.xlu2 %v1384_v19, %s5451_s8  ;;  %1393 = vrot.lane.b32.xlu1 %v1383_v20, %s5451_s8  ;;  %v6447_v58 = vpop.permute.xlu0 %1055  ;;  %v1002_v6 = vmul.f32 %v9445_v36, %v5932_v9  ;;  %v993_v19 = vmul.f32 %v6450_v42, %v9411_v26  ;;  %v1001_v50 = vmul.f32 %v9445_v36, %v5780_v15 }
 0x1be   : >> { %v990_v61 = vadd.f32 %v980_v14, %v966_v5  ;;  %v1415_v14 = vmul.f32 %v6358_v46, %v9407_v22  ;;  %v1414_v5 = vmul.f32 %v6358_v46, %v9440_v25  ;;  %v995_v25 = vmul.f32 %v6450_v42, %v9423_v21 }
 0x1bf   : >> { %v1054_v38 = vpop.permute.xlu2 %1053  ;;  %v978_v8 = vpop.permute.xlu1 %977 }
 0x1c0   : >> { %v998_v4 = vadd.f32 %v994_v48, %v990_v61  ;;  %v989_v20 = vadd.f32 %v978_v8, %v965_v1  ;;  %v1063_v48 = vadd.f32 %v1054_v38, %v1039_v55 }
 0x1c2   : >> { %v1006_v0 = vadd.f32 %v1002_v6, %v998_v4  ;;  %v997_v59 = vadd.f32 %v993_v19, %v989_v20  ;;  %v1091_v6 = vmul.f32 %v6347_v17, %v9422_v18 }
 0x1c3   : >> { %1481 = vrot.lane.b32.xlu0 %v1471_v51, %s5451_s8  ;;  %v996_v51 = vmul.f32 %v6450_v42, %v5875_v3 }
 0x1c4   : >> { %v1005_v61 = vadd.f32 %v1001_v50, %v997_v59  ;;  %v9446_v50 = vmax.f32 %v6376_v49, %v9431_v32  ;;  %v9447_v59 = vld [vmem:[#allocation47_spill] sm:$0xff] }
 0x1c5   : >> { %1425 = vrot.lane.b32.xlu2 %v1415_v14, %s5451_s8  ;;  %1423 = vrot.lane.b32.xlu1 %v1414_v5, %s5451_s8  ;;  %v1078_v4 = vpop.permute.xlu0 %1077  ;;  %v1549_v14 = vmul.f32 %v9447_v59, %v5973_v7  ;;  %v999_v5 = vadd.f32 %v995_v25, %v6382_v47  ;;  %v9448_v32 = vld [vmem:[#allocation39_spill] sm:$0xff]  ;;  %v1030_v47 = vadd.f32 %v6402_v11, %v1006_v0 }
 0x1c6   : >> { %v1029_v1 = vadd.f32 %v1018_v53, %v1005_v61  ;;  %v1087_v8 = vadd.f32 %v1078_v4, %v1063_v48  ;;  %v1004_v48 = vmul.f32 %v9445_v36, %v9395_v43  ;;  %v1438_v4 = vmul.f32 %v6340_v41, %v5638_v33 }
 0x1c7   : >> { %v1076_v19 = vpop.permute.xlu2 %1075  ;;  %v984_v20 = vpop.permute.xlu1 %983  ;;  %v1496_v59 = vmul.f32 %v6450_v42, %v9439_v10  ;;  %v9451_v0 = vmax.f32 %v6412_v45, %v9441_v52 }
 0x1c8   : >> { %v992_v55 = vadd.f32 %v984_v20, %v6366_v60  ;;  %v6479_v38 = vadd.f32 %v1091_v6, %v1087_v8  ;;  %v6484_v53 = vmax.f32 %v9446_v50, %v1029_v1  ;;  %v1469_v60 = vmul.f32 %v6389_v56, %v9444_v63 }
 0x1c9   : >> { %v1003_v1 = vmul.f32 %v9445_v36, %v9448_v32  ;;  %v9449_v20 = vmax.f32 %v6354_v16, %v9429_v57  ;;  %v9450_v36 = vmax.f32 %v6398_v24, %v9434_v39  ;;  %v1416_v16 = vmul.f32 %v6358_v46, %v5632_v30 }
 0x1ca   : >> { %v1000_v61 = vadd.f32 %v996_v51, %v992_v55  ;;  %v1493_v57 = vmul.f32 %v6450_v42, %v9406_v62  ;;  %v1038_v39 = vmul.f32 %v6422_v35, %v9438_v34  ;;  %v1494_v62 = vmul.f32 %v6450_v42, %v5647_v37 }
 0x1cb   : >> { %1557 = vrot.lane.b32.xlu0 %v1549_v14, %s5451_s8  ;;  %v1007_v8 = vadd.f32 %v1003_v1, %v999_v5  ;;  %v6504_v55 = vmax.f32 %v9449_v20, %v1030_v47  ;;  %v1090_v14 = vmul.f32 %v6347_v17, %v9442_v54  ;;  %v9452_v5 = vld [vmem:[#allocation12_spill] sm:$0xff]  ;;  %v1440_v46 = vmul.f32 %v6340_v41, %v5625_v27 }
 0x1cc   : >> { %v1008_v49 = vadd.f32 %v1004_v48, %v1000_v61  ;;  %v1037_v48 = vmul.f32 %v6422_v35, %v9425_v23  ;;  %v1089_v37 = vmul.f32 %v6347_v17, %v9426_v28 }
 0x1cd   : >> { %1477 = vrot.lane.b32.xlu2 %v1469_v60, %s5451_s8  ;;  %1447 = vrot.lane.b32.xlu1 %v1438_v4, %s5451_s8  ;;  %v1108_v7 = vpop.permute.xlu0 %1107 }
 0x1ce   : >> { %v1032_v25 = vadd.f32 %v1024_v40, %v1008_v49  ;;  %v1061_v60 = vadd.f32 %v6430_v12, %v1037_v48  ;;  %v1040_v12 = vmul.f32 %v6422_v35, %v9408_v13 }
 0x1cf   : >> { %v1106_v6 = vpop.permute.xlu2 %1105  ;;  %v1022_v51 = vpop.permute.xlu1 %1021 }
 0x1d0   : >> { %v1031_v33 = vadd.f32 %v1022_v51, %v1007_v8  ;;  %v6509_v50 = vmax.f32 %v9450_v36, %v1032_v25  ;;  %v9453_v25 = vld [vmem:[#allocation14_spill] sm:$0xff]  ;;  %v1495_v8 = vmul.f32 %v6450_v42, %v9412_v2  ;;  %v5406_v51 = vld [vmem:[%s5565_s30 + $0x4] ss:$0 sm:$0xff]  ;;  %v1064_v36 = vadd.f32 %v6447_v58, %v1040_v12 }
 0x1d1   : >> { %v1525_v20 = vmul.f32 %v5406_v51, %v5780_v15  ;;  %v1325_v12 = vmul.f32 %v6450_v42, %v9426_v28 }
 0x1d2   : >> { %v6516_v11 = vmax.f32 %v9451_v0, %v1031_v33 }
 0x1d3   : >> { %1507 = vrot.lane.b32.xlu0 %v1496_v59, %s5451_s8  ;;  %v6552_v59 = vld [vmem:[%s5565_s30 + $0x1f3] ss:$0 sm:$0xff] }
 0x1d4   : >> { %v1145_v0 = vmul.f32 %v6552_v59, %v9411_v26 }
 0x1d5   : >> { %1427 = vrot.lane.b32.xlu2 %v1416_v16, %s5451_s8  ;;  %1501 = vrot.lane.b32.xlu1 %v1493_v57, %s5451_s8  ;;  %v1130_v24 = vpop.permute.xlu0 %1129 }
 0x1d7   : >> { %v1112_v10 = vpop.permute.xlu2 %1111  ;;  %v1052_v45 = vpop.permute.xlu1 %1051 }
 0x1d8   : >> { %v1062_v52 = vadd.f32 %v1052_v45, %v1038_v39  ;;  %v1092_v39 = vmul.f32 %v6347_v17, %v5634_v31 }
 0x1da   : >> { %v1086_v40 = vadd.f32 %v1076_v19, %v1062_v52  ;;  %v1526_v52 = vmul.f32 %v5406_v51, %v5932_v9 }
 0x1db   : >> { %1579 = vperm.xlu0 %5380, %v9452_v5   ;;  %v1148_v5 = vmul.f32 %v6552_v59, %v5875_v3 }
 0x1dc   : >> { %v1094_v61 = vadd.f32 %v1090_v14, %v1086_v40  ;;  %v9454_v40 = vld [vmem:[#allocation36_spill] sm:$0xff] }
 0x1dd   : >> { %1503 = vrot.lane.b32.xlu2 %v1494_v62, %s5451_s8  ;;  %1451 = vrot.lane.b32.xlu1 %v1440_v46, %s5451_s8  ;;  %v1136_v19 = vpop.permute.xlu0 %1135  ;;  %v1472_v14 = vmul.f32 %v6389_v56, %v9454_v40 }
 0x1de   : >> { %v1118_v4 = vadd.f32 %v1108_v7, %v1094_v61 }
 0x1df   : >> { %v1134_v49 = vpop.permute.xlu2 %1133  ;;  %v1074_v1 = vpop.permute.xlu1 %1073 }
 0x1e0   : >> { %v1085_v47 = vadd.f32 %v1074_v1, %v1061_v60  ;;  %v1289_v60 = vmul.f32 %v6340_v41, %v9425_v23 }
 0x1e2   : >> { %v1093_v27 = vadd.f32 %v1089_v37, %v1085_v47  ;;  %v9455_v37 = vld [vmem:[#allocation16_spill] sm:$0xff]  ;;  %v1147_v47 = vmul.f32 %v6552_v59, %v9423_v21 }
 0x1e3   : >> { %1589 = vperm.xlu0 %5380, %v9453_v25   ;;  %v6574_v25 = vld [vmem:[%s5565_s30 + $0xfc] ss:$0 sm:$0xff] }
 0x1e4   : >> { %v1117_v7 = vadd.f32 %v1106_v6, %v1093_v27  ;;  %v1527_v27 = vmul.f32 %v5406_v51, %v9448_v32 }
 0x1e5   : >> { %1505 = vrot.lane.b32.xlu2 %v1495_v8, %s5451_s8  ;;  %1533 = vrot.lane.b32.xlu1 %v1525_v20, %s5451_s8  ;;  %v1166_v33 = vpop.permute.xlu0 %1165 }
 0x1e6   : >> { %v1141_v2 = vadd.f32 %v1130_v24, %v1117_v7 }
 0x1e7   : >> { %v1164_v16 = vpop.permute.xlu2 %1163  ;;  %v1080_v57 = vpop.permute.xlu1 %1079 }
 0x1e8   : >> { %v1088_v35 = vadd.f32 %v1080_v57, %v1064_v36  ;;  %v1149_v6 = vadd.f32 %v1145_v0, %v1141_v2 }
 0x1ea   : >> { %v1096_v45 = vadd.f32 %v1092_v39, %v1088_v35  ;;  %v9457_v39 = vld [vmem:[#allocation34_spill] sm:$0xff] }
 0x1eb   : >> { %v1146_v35 = vmul.f32 %v6552_v59, %v9457_v39 }
 0x1ec   : >> { %v1120_v58 = vadd.f32 %v1112_v10, %v1096_v45  ;;  %v1293_v10 = vmul.f32 %v6347_v17, %v9455_v37  ;;  %v1328_v37 = vmul.f32 %v6450_v42, %v5634_v31 }
 0x1ed   : >> { %1535 = vrot.lane.b32.xlu2 %v1526_v52, %s5451_s8  ;;  %1483 = vrot.lane.b32.xlu1 %v1472_v14, %s5451_s8  ;;  %v1188_v24 = vpop.permute.xlu0 %1187  ;;  %v1296_v52 = vmul.f32 %v6347_v17, %v5632_v30 }
 0x1ee   : >> { %v1144_v62 = vadd.f32 %v1136_v19, %v1120_v58  ;;  %v9456_v19 = vld [vmem:[#allocation43_spill] sm:$0xff]  ;;  %v1297_v20 = vadd.f32 %v1293_v10, %v1289_v60  ;;  %v1292_v58 = vmul.f32 %v6340_v41, %v9408_v13 }
 0x1ef   : >> { %v1186_v46 = vpop.permute.xlu2 %1185  ;;  %v1110_v48 = vpop.permute.xlu1 %1109  ;;  %v1550_v8 = vmul.f32 %v6574_v25, %v9456_v19 }
 0x1f0   : >> { %v1119_v61 = vadd.f32 %v1110_v48, %v6479_v38  ;;  %v1152_v1 = vadd.f32 %v1148_v5, %v1144_v62  ;;  %v1291_v5 = vmul.f32 %v6340_v41, %v9421_v29  ;;  %v1528_v62 = vmul.f32 %v5406_v51, %v9395_v43  ;;  %v9458_v48 = vld [vmem:[#allocation40_spill] sm:$0xff] }
 0x1f2   : >> { %v1143_v56 = vadd.f32 %v1134_v49, %v1119_v61  ;;  %v1551_v61 = vmul.f32 %v6574_v25, %v9458_v48  ;;  %v9462_v48 = vld [vmem:[#allocation55_spill] sm:$0xff] }
 0x1f4   : >> { %v1151_v38 = vadd.f32 %v1147_v47, %v1143_v56 }
 0x1f5   : >> { %1537 = vrot.lane.b32.xlu2 %v1527_v27, %s5451_s8  ;;  %1559 = vrot.lane.b32.xlu1 %v1550_v8, %s5451_s8  ;;  %v1310_v49 = vpop.permute.xlu0 %1309 }
 0x1f6   : >> { %v1321_v7 = vadd.f32 %v1310_v49, %v1297_v20  ;;  %v1175_v36 = vadd.f32 %v1166_v33, %v1151_v38  ;;  %v1295_v33 = vmul.f32 %v6347_v17, %v9407_v22  ;;  %v1327_v22 = vmul.f32 %v6450_v42, %v9422_v18 }
 0x1f7   : >> { %v1192_v0 = vpop.permute.xlu2 %1191  ;;  %v1132_v2 = vpop.permute.xlu1 %1131  ;;  %v1336_v20 = vmul.f32 %v6552_v59, %v9454_v40 }
 0x1f8   : >> { %v6582_v57 = vadd.f32 %v1325_v12, %v1321_v7  ;;  %v1142_v45 = vadd.f32 %v1132_v2, %v1118_v4  ;;  %v1300_v4 = vadd.f32 %v1296_v52, %v1292_v58  ;;  %v1299_v47 = vadd.f32 %v1295_v33, %v1291_v5  ;;  %v9459_v7 = vld [vmem:[#allocation45_spill] sm:$0xff] }
 0x1f9   : >> { %v1552_v2 = vmul.f32 %v6574_v25, %v9459_v7  ;;  %v9460_v52 = vld [vmem:[#allocation13_spill] sm:$0xff]  ;;  %v1366_v7 = vmul.f32 %v6574_v25, %v9457_v39 }
 0x1fa   : >> { %v1150_v14 = vadd.f32 %v1146_v35, %v1142_v45 }
 0x1fc   : >> { %v1174_v60 = vadd.f32 %v1164_v16, %v1150_v14  ;;  %v9461_v14 = vld [vmem:[#allocation31_spill] sm:$0xff] }
 0x1fd   : >> { %1539 = vrot.lane.b32.xlu2 %v1528_v62, %s5451_s8  ;;  %1561 = vrot.lane.b32.xlu1 %v1551_v61, %s5451_s8  ;;  %v1316_v30 = vpop.permute.xlu0 %1315 }
 0x1fe   : >> { %v1198_v56 = vadd.f32 %v1188_v24, %v1174_v60  ;;  %v1324_v10 = vadd.f32 %v1316_v30, %v1300_v4  ;;  %v1335_v24 = vmul.f32 %v6552_v59, %v9387_v44  ;;  %v9463_v60 = vld [vmem:[#allocation15_spill] sm:$0xff] }
 0x1ff   : >> { %v1314_v51 = vpop.permute.xlu2 %1313  ;;  %v1162_v27 = vpop.permute.xlu1 %1161 }
 0x200   : >> { %v1332_v19 = vadd.f32 %v1328_v37, %v1324_v10  ;;  %v1323_v8 = vadd.f32 %v1314_v51, %v1299_v47  ;;  %v1173_v16 = vadd.f32 %v1162_v27, %v1149_v6  ;;  %v1202_v44 = vmax.f32 %v6504_v55, %v1198_v56 }
 0x202   : >> { %v1331_v38 = vadd.f32 %v1327_v22, %v1323_v8  ;;  %v1197_v49 = vadd.f32 %v1186_v46, %v1173_v16  ;;  %v1340_v12 = vadd.f32 %v1336_v20, %v1332_v19  ;;  %v6617_v61 = vmax.f32 %v1202_v44, %v9462_v48  ;;  %v9466_v8 = vld [vmem:[#allocation56_spill] sm:$0xff]  ;;  %v9467_v20 = vld [vmem:[#allocation33_spill] sm:$0xff] }
 0x203   : >> { %v1290_v22 = vmul.f32 %v6340_v41, %v9438_v34  ;;  %v1334_v41 = vmul.f32 %v6552_v59, %v9467_v20 }
 0x204   : >> { %v1201_v35 = vmax.f32 %v6484_v53, %v1197_v49  ;;  %v1339_v45 = vadd.f32 %v1335_v24, %v1331_v38  ;;  %v1333_v24 = vmul.f32 %v6552_v59, %v9444_v63 }
 0x205   : >> { %1563 = vrot.lane.b32.xlu2 %v1552_v2, %s5451_s8  ;;  %1584 = vperm.xlu1 %5383, %v9460_v52   ;;  %v1354_v6 = vpop.permute.xlu0 %1353 }
 0x206   : >> { %v6613_v58 = vmax.f32 %v1201_v35, %v9461_v14  ;;  %v1363_v40 = vadd.f32 %v1354_v6, %v1339_v45  ;;  %v1337_v35 = vadd.f32 %v1333_v24, %v6582_v57  ;;  %v1365_v14 = vmul.f32 %v6574_v25, %v9411_v26 }
 0x207   : >> { %v1352_v46 = vpop.permute.xlu2 %1351  ;;  %v1168_v5 = vpop.permute.xlu1 %1167  ;;  %v1367_v57 = vmul.f32 %v6574_v25, %v9423_v21 }
 0x208   : >> { %v1176_v33 = vadd.f32 %v1168_v5, %v1152_v1  ;;  %v9464_v1 = vld [vmem:[#allocation17_spill] sm:$0xff] }
 0x209   : >> { %v1294_v55 = vmul.f32 %v6347_v17, %v9464_v1 }
 0x20a   : >> { %v1200_v62 = vadd.f32 %v1192_v0, %v1176_v33  ;;  %v9465_v0 = vld [vmem:[#allocation57_spill] sm:$0xff]  ;;  %v6646_v33 = vld [vmem:[%s5565_s30 + $0x1f4] ss:$0 sm:$0xff] }
 0x20b   : >> { %v1298_v27 = vadd.f32 %v1294_v55, %v1290_v22  ;;  %v1373_v63 = vmul.f32 %v6646_v33, %v5780_v15  ;;  %v1371_v22 = vadd.f32 %v1367_v57, %v1363_v40 }
 0x20c   : >> { %v1204_v53 = vmax.f32 %v6509_v50, %v1200_v62 }
 0x20d   : >> { %1594 = vperm.xlu1 %5383, %v9463_v60   ;;  %v1392_v4 = vpop.permute.xlu0 %1391  ;;  %v1368_v60 = vmul.f32 %v6574_v25, %v5875_v3 }
 0x20e   : >> { %v6630_v16 = vmax.f32 %v1204_v53, %v9466_v8 }
 0x20f   : >> { %v1390_v30 = vpop.permute.xlu2 %1389  ;;  %v1190_v37 = vpop.permute.xlu1 %1189 }
 0x210   : >> { %v1199_v10 = vadd.f32 %v1190_v37, %v1175_v36 }
 0x212   : >> { %v1203_v47 = vmax.f32 %v6516_v11, %v1199_v10  ;;  %v1326_v11 = vmul.f32 %v6450_v42, %v9442_v54 }
 0x214   : >> { %v6627_v56 = vmax.f32 %v1203_v47, %v9465_v0  ;;  %v1374_v47 = vmul.f32 %v6646_v33, %v5932_v9  ;;  %v1376_v9 = vmul.f32 %v6646_v33, %v9395_v43 }
 0x215   : >> { %v1422_v51 = vpop.permute.xlu0 %1421 }
 0x217   : >> { %v1396_v50 = vpop.permute.xlu2 %1395  ;;  %v1312_v19 = vpop.permute.xlu1 %1311 }
 0x218   : >> { %v1322_v36 = vadd.f32 %v1312_v19, %v1298_v27 }
 0x21a   : >> { %v1330_v38 = vadd.f32 %v1326_v11, %v1322_v36 }
 0x21c   : >> { %v1338_v49 = vadd.f32 %v1334_v41, %v1330_v38  ;;  %v1409_v41 = vmul.f32 %v6347_v17, %v9425_v23  ;;  %v1410_v38 = vmul.f32 %v6347_v17, %v9438_v34  ;;  %v1518_v34 = vmul.f32 %v6646_v33, %v9457_v39 }
 0x21d   : >> { %v1446_v42 = vpop.permute.xlu0 %1445 }
 0x21e   : >> { %v1362_v2 = vadd.f32 %v1352_v46, %v1338_v49  ;;  %v1433_v49 = vadd.f32 %v1422_v51, %v1409_v41 }
 0x21f   : >> { %v6641_v45 = vpop.permute.xlu2 %1425  ;;  %v1350_v52 = vpop.permute.xlu1 %1349 }
 0x220   : >> { %v1370_v6 = vadd.f32 %v1366_v7, %v1362_v2  ;;  %v1361_v5 = vadd.f32 %v1350_v52, %v1337_v35  ;;  %v1457_v35 = vadd.f32 %v1446_v42, %v1433_v49  ;;  %v1462_v52 = vmul.f32 %v6552_v59, %v9442_v54 }
 0x221   : >> { %v1517_v42 = vmul.f32 %v6646_v33, %v9411_v26  ;;  %v1464_v26 = vmul.f32 %v6552_v59, %v5634_v31 }
 0x222   : >> { %v1369_v44 = vadd.f32 %v1365_v14, %v1361_v5  ;;  %v1378_v55 = vadd.f32 %v1374_v47, %v1370_v6  ;;  %v1461_v6 = vmul.f32 %v6552_v59, %v9426_v28 }
 0x224   : >> { %v1377_v62 = vadd.f32 %v1373_v63, %v1369_v44  ;;  %v6659_v0 = vadd.f32 %v1392_v4, %v1378_v55  ;;  %v1465_v14 = vadd.f32 %v1461_v6, %v1457_v35  ;;  %v1411_v55 = vmul.f32 %v6347_v17, %v9421_v29 }
 0x225   : >> { %v1450_v1 = vpop.permute.xlu0 %1449  ;;  %v1520_v29 = vmul.f32 %v6646_v33, %v5875_v3 }
 0x226   : >> { %v1401_v48 = vadd.f32 %v1390_v30, %v1377_v62  ;;  %v1375_v30 = vmul.f32 %v6646_v33, %v9448_v32  ;;  %v1406_v25 = vmax.f32 %v6617_v61, %v6659_v0 }
 0x227   : >> { %v1478_v46 = vpop.permute.xlu2 %1477  ;;  %v1356_v53 = vpop.permute.xlu1 %1355 }
 0x228   : >> { %v1364_v37 = vadd.f32 %v1356_v53, %v1340_v12  ;;  %v1405_v10 = vmax.f32 %v6613_v58, %v1401_v48  ;;  %v1379_v27 = vadd.f32 %v1375_v30, %v1371_v22  ;;  %v1489_v23 = vadd.f32 %v1478_v46, %v1465_v14 }
 0x22a   : >> { %v1372_v15 = vadd.f32 %v1368_v60, %v1364_v37  ;;  %v1412_v37 = vmul.f32 %v6347_v17, %v9408_v13 }
 0x22c   : >> { %v1380_v40 = vadd.f32 %v1376_v9, %v1372_v15  ;;  %v1435_v9 = vadd.f32 %v6641_v45, %v1411_v55 }
 0x22d   : >> { %v1480_v11 = vpop.permute.xlu0 %1479 }
 0x22e   : >> { %v6669_v4 = vadd.f32 %v1396_v50, %v1380_v40  ;;  %v1459_v13 = vadd.f32 %v1450_v1, %v1435_v9  ;;  %v1519_v1 = vmul.f32 %v6646_v33, %v9423_v21 }
 0x22f   : >> { %v1428_v19 = vpop.permute.xlu2 %1427  ;;  %v1394_v8 = vpop.permute.xlu1 %1393 }
 0x230   : >> { %v6663_v12 = vadd.f32 %v1394_v8, %v1379_v27  ;;  %v1408_v20 = vmax.f32 %v6630_v16, %v6669_v4  ;;  %v1436_v47 = vadd.f32 %v1428_v19, %v1412_v37  ;;  %v1463_v19 = vmul.f32 %v6552_v59, %v9422_v18 }
 0x232   : >> { %v1407_v58 = vmax.f32 %v6627_v56, %v6663_v12 }
 0x235   : >> { %v1482_v43 = vpop.permute.xlu0 %1481 }
 0x237   : >> { %v1504_v36 = vpop.permute.xlu2 %1503  ;;  %v1424_v32 = vpop.permute.xlu1 %1423 }
 0x238   : >> { %v1434_v24 = vadd.f32 %v1424_v32, %v1410_v38 }
 0x23d   : >> { %v1558_v48 = vpop.permute.xlu0 %1557 }
 0x23f   : >> { %v1506_v7 = vpop.permute.xlu2 %1505  ;;  %v1448_v2 = vpop.permute.xlu1 %1447 }
 0x240   : >> { %v1458_v50 = vadd.f32 %v1448_v2, %v1434_v24 }
 0x242   : >> { %v1466_v16 = vadd.f32 %v1462_v52, %v1458_v50 }
 0x244   : >> { %v1490_v5 = vadd.f32 %v1480_v11, %v1466_v16 }
 0x245   : >> { %v1508_v60 = vpop.permute.xlu0 %1507 }
 0x246   : >> { %v1514_v51 = vadd.f32 %v1504_v36, %v1490_v5 }
 0x247   : >> { %v1502_v63 = vpop.permute.xlu1 %1501  ;;  %v1536_v54 = vpop.permute.xlu2 %1535 }
 0x248   : >> { %v1522_v44 = vadd.f32 %v1518_v34, %v1514_v51  ;;  %v1513_v62 = vadd.f32 %v1502_v63, %v1489_v23  ;;  %v6721_v63 = vld [vmem:[%s9231_s4] sm:$0x1] (%p289_p4) }
 0x249   : > { %9468 = vst [vmem:[#allocation8_spill] sm:$0xff] (%p289_p4), %v6721_v63 }
 0x24a   : >> { %v1521_v53 = vadd.f32 %v1517_v42, %v1513_v62  ;;  %v1546_v41 = vadd.f32 %v1536_v54, %v1522_v44 }
 0x24d   : >> { %v1580_v27 = vpop.permute.xlu0 %1579 }
 0x24f   : >> { %v1452_v57 = vpop.permute.xlu1 %1451  ;;  %v1538_v28 = vpop.permute.xlu2 %1537 }
 0x250   : >> { %v1460_v39 = vadd.f32 %v1452_v57, %v1436_v47 }
 0x252   : >> { %v1468_v11 = vadd.f32 %v1464_v26, %v1460_v39 }
 0x255   : >> { %v1590_v14 = vpop.permute.xlu0 %1589 }
 0x257   : >> { %v1534_v46 = vpop.permute.xlu1 %1533  ;;  %v1540_v8 = vpop.permute.xlu2 %1539 }
 0x258   : >> { %v1545_v22 = vadd.f32 %v1534_v46, %v1521_v53 }
 0x25a   : >> { %v1569_v15 = vadd.f32 %v1558_v48, %v1545_v22 }
 0x25c   : >> { %v1573_v30 = vmax.f32 %v1405_v10, %v1569_v15  ;;  %v1467_v10 = vadd.f32 %v1463_v19, %v1459_v13 }
 0x25e   : >> { %v1597_v40 = vadd.f32 %v1580_v27, %v1573_v30  ;;  %v1491_v31 = vadd.f32 %v1482_v43, %v1467_v10 }
 0x25f   : >> { %v1484_v36 = vpop.permute.xlu1 %1483  ;;  %v1564_v49 = vpop.permute.xlu2 %1563 }
 0x260   : >> { %v1492_v32 = vadd.f32 %v1484_v36, %v1468_v11  ;;  %1601 = vxpose.xlu2.b32.start [1/4] (short) (narrow) %v1597_v40, 80  ;;  %v1515_v24 = vadd.f32 %v1506_v7, %v1491_v31 }
 0x262   : >> { %v1516_v17 = vadd.f32 %v1508_v60, %v1492_v32  ;;  %v1523_v59 = vadd.f32 %v1519_v1, %v1515_v24 }
 0x264   : >> { %v1524_v4 = vadd.f32 %v1520_v29, %v1516_v17  ;;  %v1547_v52 = vadd.f32 %v1538_v28, %v1523_v59 }
 0x266   : >> { %v1548_v38 = vadd.f32 %v1540_v8, %v1524_v4 }
 0x267   : >> { %v1560_v45 = vpop.permute.xlu1 %1559 }
 0x268   : >> { %v1570_v2 = vadd.f32 %v1560_v45, %v1546_v41  ;;  %v1572_v35 = vadd.f32 %v1564_v49, %v1548_v38 }
 0x26a   : >> { %v1574_v18 = vmax.f32 %v1406_v25, %v1570_v2  ;;  %v1576_v3 = vmax.f32 %v1408_v20, %v1572_v35 }
 0x26f   : >> { %v1562_v50 = vpop.permute.xlu1 %1561 }
 0x270   : >> { %v1571_v43 = vadd.f32 %v1562_v50, %v1547_v52 }
 0x272   : >> { %v1575_v6 = vmax.f32 %v1407_v58, %v1571_v43 }
 0x274   : >> { %v1599_v5 = vadd.f32 %v1590_v14, %v1575_v6 }
 0x277   : >> { %v1585_v7 = vpop.permute.xlu1 %1584 }
 0x278   : >> { %v1598_v16 = vadd.f32 %v1585_v7, %v1574_v18 }
 0x27a   : >> { %1602 = vxpose.xlu2.b32.cont [2/4] (short) (narrow) %v1598_v16, 80 }
 0x27f   : >> { %v1595_v21 = vpop.permute.xlu1 %1594 }
 0x280   : >> { %v1600_v33 = vadd.f32 %v1595_v21, %v1576_v3 }
 0x282   : >> { %1603 = vxpose.xlu2.b32.cont [3/4] (short) (narrow) %v1599_v5, 80 }
 0x28a   : >> { %1604 = vxpose.xlu2.b32.end [4/4] (short) (narrow) %v1600_v33, 80 }
 0x30b   : >> { %v1617_v61 = vpop.trf.xlu2 }
 0x30c   : >> { %1636 = vst.msk [vmem:[%s1634_s10] sm:$0xff] %vm1635_vm0, %v1617_v61 }
 0x313   : >> { %v1618_v0 = vpop.trf.xlu2 }
 0x314   : >> { %1637 = vst.msk [vmem:[%s1634_s10 + $0x8] sm:$0xff] %vm1635_vm0, %v1618_v0 }
 0x31b   : >> { %v1619_v56 = vpop.trf.xlu2 }
 0x31c   : >> { %1638 = vst.msk [vmem:[%s1634_s10 + $0x10] sm:$0xff] %vm1635_vm0, %v1619_v56 }
 0x323   : >> { %v1620_v25 = vpop.trf.xlu2 }
 0x324   : >> { %1639 = vst.msk [vmem:[%s1634_s10 + $0x18] sm:$0xff] %vm1635_vm0, %v1620_v25 }
 0x32b   : >> { %v1621_v12 = vpop.trf.xlu2 }
 0x32c   : >> { %1640 = vst.msk [vmem:[%s1634_s10 + $0x20] sm:$0xff] %vm1635_vm0, %v1621_v12 }
 0x333   : >> { %v1622_v58 = vpop.trf.xlu2 }
 0x334   : >> { %1641 = vst.msk [vmem:[%s1634_s10 + $0x28] sm:$0xff] %vm1635_vm0, %v1622_v58 }
 0x33b   : >> { %v1623_v20 = vpop.trf.xlu2 }
 0x33c   : >> { %1642 = vst.msk [vmem:[%s1634_s10 + $0x30] sm:$0xff] %vm1635_vm0, %v1623_v20 }
 0x343   : >> { %v1624_v23 = vpop.trf.xlu2 }
 0x344   : >> { %1643 = vst.msk [vmem:[%s1634_s10 + $0x38] sm:$0xff] %vm1635_vm0, %v1624_v23 }
 0x34b   : >> { %v1625_v34 = vpop.trf.xlu2 }
 0x34c   : >> { %1644 = vst.msk [vmem:[%s1634_s10 + $0x40] sm:$0xff] %vm1635_vm0, %v1625_v34 }
 0x350   : > { %291 = sbr.rel (!%p289_p4) target bundleno = 20 (0x14), region = 140 }
 0x353   : >> { %v1626_v51 = vpop.trf.xlu2 }
 0x354   : >> { %1645 = vst.msk [vmem:[%s1634_s10 + $0x48] sm:$0xff] %vm1635_vm0, %v1626_v51 }
 0x355 LB: >> { %s4933_s14 = smul.u32 240, %s5436_s13  ;;  %s5452_s16 = smov 32   ;;  %vm1728_vm1 = vcmask 523520   ;;  %vm1676_vm2 = vcmask 259072   ;;  %v6901_v56 = vld [vmem:[%s9230_s3 + $0x78] sm:$0xff]  ;;  %v6913_v58 = vld [vmem:[%s9230_s3 + $0x70] sm:$0xff]  ;;  %s5436_s13 = sphi %s6723_s13, %s1652_s13  }
 0x356   : >> { %s5453_s17 = smov 64   ;;  %s5454_s18 = smov 96   ;;  %2186 = vmatpush.msra.mxu0 %v6901_v56  ;;  %v6921_v23 = vld [vmem:[%s9230_s3 + $0x68] sm:$0xff]  ;;  %v6931_v34 = vld [vmem:[%s9230_s3 + $0x60] sm:$0xff]  ;;  %vm1790_vm3 = vcmask 785920   ;;  %vm1738_vm4 = vcmask 521472  }
 0x357   : >> { %s6729_s15 = scalar_lea.vmem [#allocation2], %s4933_s14  ;;  %vm1855_vm5 = vcmask 1048320   ;;  %vm1800_vm6 = vcmask 783872   ;;  %vm1865_vm7 = vcmask 1046272   ;;  %vm3667_vm8 = vcmask 523264  }
 0x358   : >> { %2187 = vmatpush.msra.mxu0 %v6913_v58  ;;  %vm3677_vm9 = vcmask 521216   ;;  %vm3722_vm10 = vcmask 517120  }
 0x35a   : >> { %2188 = vmatpush.msra.mxu0 %v6921_v23 }
 0x35b   : >> { %v1680_v44 = vld [vmem:[%s6729_s15 + $0x11] sm:$0xff]  ;;  %v1678_v62 = vld [vmem:[%s6729_s15 + $0x1] sm:$0xff]  ;;  %v1681_v48 = vld [vmem:[%s6729_s15 + $0x19] sm:$0xff] }
 0x35c   : >> { %v1682_v42 = vld [vmem:[%s6729_s15 + $0x21] sm:$0xff]  ;;  %1702 = vrot.lane.b32.xlu1 %v1680_v44, %s5452_s16  ;;  %1698 = vrot.lane.b32.xlu0 %v1678_v62, %s5452_s16  ;;  %v1679_v54 = vld [vmem:[%s6729_s15 + $0x9] sm:$0xff] }
 0x35d   : >> { %1706 = vrot.lane.b32.xlu2 %v1682_v42, %s5452_s16  ;;  %v1683_v53 = vld [vmem:[%s6729_s15 + $0x29] sm:$0xff]  ;;  %v1685_v57 = vld [vmem:[%s6729_s15 + $0x39] sm:$0xff]  ;;  %v1684_v60 = vld [vmem:[%s6729_s15 + $0x31] sm:$0xff]  ;;  %2189 = vmatpush.msra.mxu0 %v6931_v34 }
 0x35e   : >> { %v1686_v28 = vld [vmem:[%s6729_s15 + $0x41] sm:$0xff]  ;;  %v1687_v46 = vld [vmem:[%s6729_s15 + $0x49] sm:$0x3f]  ;;  %v1742_v39 = vld [vmem:[%s6729_s15 + $0x12] sm:$0xff] }
 0x35f   : >> { %v1740_v37 = vld [vmem:[%s6729_s15 + $0x2] sm:$0xff]  ;;  %v1741_v47 = vld [vmem:[%s6729_s15 + $0xa] sm:$0xff]  ;;  %v1743_v22 = vld [vmem:[%s6729_s15 + $0x1a] sm:$0xff] }
 0x360   : >> { %v1744_v15 = vld [vmem:[%s6729_s15 + $0x22] sm:$0xff]  ;;  %v1746_v55 = vld [vmem:[%s6729_s15 + $0x32] sm:$0xff]  ;;  %v1745_v30 = vld [vmem:[%s6729_s15 + $0x2a] sm:$0xff] }
 0x361   : >> { %v1747_v26 = vld [vmem:[%s6729_s15 + $0x3a] sm:$0xff]  ;;  %v1749_v27 = vld [vmem:[%s6729_s15 + $0x4a] sm:$0x3f]  ;;  %v1748_v8 = vld [vmem:[%s6729_s15 + $0x42] sm:$0xff] }
 0x362   : >> { %v6770_v9 = vld [vmem:[%s6729_s15 + $0x50] sm:$0xff]  ;;  %v6777_v40 = vld [vmem:[%s6729_s15 + $0x60] sm:$0xff]  ;;  %v6780_v11 = vld [vmem:[%s6729_s15 + $0x58] sm:$0xff] }
 0x363   : >> { %v6783_v36 = vld [vmem:[%s6729_s15 + $0x68] sm:$0xff]  ;;  %v1660_v13 = vld [vmem:[%s6729_s15 + $0x20] sm:$0xff]  ;;  %v6794_v32 = vld [vmem:[%s6729_s15 + $0x78] sm:$0xff] }
 0x364   : >> { %1704 = vrot.lane.b32.xlu1 %v1681_v48, %s5452_s16  ;;  %1700 = vrot.lane.b32.xlu0 %v1679_v54, %s5452_s16  ;;  %1671 = vst.msk [vmem:[#allocation4 + $0x60] sm:$0xff] %vm1635_vm0, %v1660_v13  ;;  %v6797_v19 = vld [vmem:[%s6729_s15 + $0x70] sm:$0xff]  ;;  %v6800_v29 = vld [vmem:[%s6729_s15 + $0x80] sm:$0xff] }
 0x365   : >> { %1708 = vrot.lane.b32.xlu2 %v1683_v53, %s5452_s16  ;;  %v1661_v17 = vld [vmem:[%s6729_s15 + $0x28] sm:$0xff]  ;;  %v6811_v10 = vld [vmem:[%s6729_s15 + $0x90] sm:$0xff]  ;;  %v4944_v31 = vld [vmem:[%s6729_s15 + $0x98] sm:$0x3f] }
 0x366   : >> { %1672 = vst.msk [vmem:[#allocation4 + $0x78] sm:$0xff] %vm1635_vm0, %v1661_v17  ;;  %v6814_v4 = vld [vmem:[%s6729_s15 + $0x88] sm:$0xff]  ;;  %v1664_v41 = vld [vmem:[%s6729_s15 + $0x40] sm:$0xff]  ;;  %v6828_v49 = vld [vmem:[%s6729_s15 + $0x52] sm:$0xff] }
 0x367   : >> { %1675 = vst.msk [vmem:[#allocation4 + $0xc0] sm:$0xff] %vm1635_vm0, %v1664_v41  ;;  %v6825_v38 = vld [vmem:[%s6729_s15 + $0x5a] sm:$0xff]  ;;  %v6831_v45 = vld [vmem:[%s6729_s15 + $0x62] sm:$0xff]  ;;  %v1658_v2 = vld [vmem:[%s6729_s15 + $0x10] sm:$0xff] }
 0x368   : >> { %v1656_v24 = vld [vmem:[%s6729_s15] sm:$0xff]  ;;  %1669 = vst.msk [vmem:[#allocation4 + $0x30] sm:$0xff] %vm1635_vm0, %v1658_v2  ;;  %v6844_v35 = vld [vmem:[%s6729_s15 + $0x72] sm:$0xff]  ;;  %v6847_v1 = vld [vmem:[%s6729_s15 + $0x6a] sm:$0xff] }
 0x369   : >> { %1667 = vst.msk [vmem:[#allocation4] sm:$0xff] %vm1635_vm0, %v1656_v24  ;;  %v6850_v18 = vld [vmem:[%s6729_s15 + $0x7a] sm:$0xff]  ;;  %v1657_v59 = vld [vmem:[%s6729_s15 + $0x8] sm:$0xff]  ;;  %v6870_v6 = vld [vmem:[%s6729_s15 + $0x92] sm:$0xff] }
 0x36a   : >> { %v1659_v3 = vld [vmem:[%s6729_s15 + $0x18] sm:$0xff]  ;;  %v6863_v50 = vld [vmem:[%s6729_s15 + $0x8a] sm:$0xff]  ;;  %v6866_v43 = vld [vmem:[%s6729_s15 + $0x82] sm:$0xff]  ;;  %1668 = vst.msk [vmem:[#allocation4 + $0x18] sm:$0xff] %vm1635_vm0, %v1657_v59 }
 0x36b   : >> { %1670 = vst.msk [vmem:[#allocation4 + $0x48] sm:$0xff] %vm1635_vm0, %v1659_v3  ;;  %v1663_v7 = vld [vmem:[%s6729_s15 + $0x38] sm:$0xff]  ;;  %v1662_v16 = vld [vmem:[%s6729_s15 + $0x30] sm:$0xff]  ;;  %v6883_v5 = vld [vmem:[%s6729_s15 + $0xa0] sm:$0xff] }
 0x36c   : >> { %1712 = vrot.lane.b32.xlu1 %v1685_v57, %s5452_s16  ;;  %1710 = vrot.lane.b32.xlu0 %v1684_v60, %s5452_s16  ;;  %9469 = vst [vmem:[#allocation58_spill] sm:$0xff] %v6870_v6  ;;  %v4964_v21 = vld [vmem:[%s6729_s15 + $0x9a] sm:$0x3f]  ;;  %v6888_v33 = vld [vmem:[%s6729_s15 + $0xa8] sm:$0xff] }
 0x36d   : >> { %1714 = vrot.lane.b32.xlu2 %v1686_v28, %s5452_s16  ;;  %1674 = vst.msk [vmem:[#allocation4 + $0xa8] sm:$0xff] %vm1635_vm0, %v1663_v7  ;;  %v1665_v61 = vld [vmem:[%s6729_s15 + $0x48] sm:$0x3f]  ;;  %v6904_v25 = vld [vmem:[%s6729_s15 + $0xb8] sm:$0xff]  ;;  %v6907_v12 = vld [vmem:[%s6729_s15 + $0xb0] sm:$0xff] }
 0x36e   : >> { %1673 = vst.msk [vmem:[#allocation4 + $0x90] sm:$0xff] %vm1635_vm0, %v1662_v16  ;;  %v6916_v20 = vld [vmem:[%s6729_s15 + $0xc0] sm:$0xff]  ;;  %v6942_v42 = vld [vmem:[%s9230_s3 + $0x58] sm:$0xff]  ;;  %v6945_v48 = vld [vmem:[%s6729_s15 + $0xd0] sm:$0xff] }
 0x36f   : >> { %1677 = vst.msk [vmem:[#allocation4 + $0xd8] sm:$0x3f] %vm1676_vm2, %v1665_v61  ;;  %v6948_v54 = vld [vmem:[%s6729_s15 + $0xc8] sm:$0xff]  ;;  %2190 = vmatpush.msra.mxu0 %v6942_v42  ;;  %v6954_v53 = vld [vmem:[%s9230_s3 + $0x50] sm:$0xff]  ;;  %v4973_v57 = vld [vmem:[%s6729_s15 + $0xd8] sm:$0xff] }
 0x370   : >> { %v6960_v60 = vld [vmem:[%s9230_s3 + $0x48] sm:$0xff]  ;;  %v6970_v28 = vld [vmem:[%s9230_s3 + $0x40] sm:$0xff]  ;;  %v7027_v24 = vld [vmem:[%s9230_s3 + $0x18] sm:$0xff] }
 0x371   : >> { %2191 = vmatpush.msra.mxu0 %v6954_v53  ;;  %v7017_v13 = vld [vmem:[%s9230_s3 + $0x20] sm:$0xff]  ;;  %v7031_v2 = vld [vmem:[%s6729_s15 + $0xb1] sm:$0xff]  ;;  %v7034_v3 = vld [vmem:[%s6729_s15 + $0xa9] sm:$0xff] }
 0x372   : >> { %v7038_v59 = vld [vmem:[%s6729_s15 + $0xb9] sm:$0xff]  ;;  %v7053_v7 = vld [vmem:[%s9230_s3 + $0x8] sm:$0xff]  ;;  %v5077_v63 = vld [vmem:[%s6729_s15 + $0xf1] sm:$0xff] }
 0x373   : >> { %2192 = vmatpush.msra.mxu0 %v6960_v60 }
 0x374   : >> { %1760 = vrot.lane.b32.xlu1 %v1740_v37, %s5453_s17  ;;  %1716 = vrot.lane.b32.xlu0 %v1687_v46, %s5452_s16 }
 0x375   : >> { %1762 = vrot.lane.b32.xlu2 %v1741_v47, %s5453_s17  ;;  %2193 = vmatpush.msra.mxu0 %v6970_v28 }
 0x37c   : >> { %1766 = vrot.lane.b32.xlu1 %v1743_v22, %s5453_s17  ;;  %1764 = vrot.lane.b32.xlu0 %v1742_v39, %s5453_s17  ;;  %v6980_v22 = vld [vmem:[%s9230_s3 + $0x38] sm:$0xff]  ;;  %v4975_v39 = vld [vmem:[%s6729_s15 + $0xe8] sm:$0x3f] }
 0x37d   : >> { %1768 = vrot.lane.b32.xlu2 %v1744_v15, %s5453_s17  ;;  %v4974_v15 = vld [vmem:[%s6729_s15 + $0xe0] sm:$0xff]  ;;  %2194 = vmatpush.msra.mxu0 %v6980_v22 }
 0x384   : >> { %1772 = vrot.lane.b32.xlu1 %v1746_v55, %s5453_s17  ;;  %1770 = vrot.lane.b32.xlu0 %v1745_v30, %s5453_s17  ;;  %v6989_v55 = vld [vmem:[%s9230_s3 + $0x30] sm:$0xff]  ;;  %v6993_v30 = vld [vmem:[%s6729_s15 + $0xa1] sm:$0xff] }
 0x385   : >> { %1774 = vrot.lane.b32.xlu2 %v1747_v26, %s5453_s17  ;;  %v6998_v26 = vld [vmem:[%s9230_s3 + $0x28] sm:$0xff]  ;;  %2195 = vmatpush.msra.mxu0 %v6989_v55 }
 0x387   : >> { %2196 = vmatpush.msra.mxu0 %v6998_v26 }
 0x389   : >> { %2197 = vmatpush.msra.mxu0 %v7017_v13 }
 0x38b   : >> { %2198 = vmatpush.msra.mxu0 %v7027_v24 }
 0x38c   : >> { %1778 = vrot.lane.b32.xlu1 %v1749_v27, %s5453_s17  ;;  %1776 = vrot.lane.b32.xlu0 %v1748_v8, %s5453_s17  ;;  %v7001_v27 = vld [vmem:[%s6729_s15 + $0x59] sm:$0xff]  ;;  %v7009_v8 = vld [vmem:[%s6729_s15 + $0x51] sm:$0xff] }
 0x38d   : >> { %1825 = vrot.lane.b32.xlu2 %v6770_v9, %s5454_s18  ;;  %1878 = vst.msk [vmem:[#allocation4 + $0x20] sm:$0xff] %vm1635_vm0, %v7001_v27 }
 0x38e   : >> { %1877 = vst.msk [vmem:[#allocation4 + $0x8] sm:$0xff] %vm1635_vm0, %v7009_v8 }
 0x394   : >> { %1829 = vrot.lane.b32.xlu1 %v6777_v40, %s5454_s18  ;;  %1827 = vrot.lane.b32.xlu0 %v6780_v11, %s5454_s18 }
 0x395   : >> { %1831 = vrot.lane.b32.xlu2 %v6783_v36, %s5454_s18 }
 0x39c   : >> { %1835 = vrot.lane.b32.xlu1 %v6794_v32, %s5454_s18  ;;  %1833 = vrot.lane.b32.xlu0 %v6797_v19, %s5454_s18 }
 0x39d   : >> { %1837 = vrot.lane.b32.xlu2 %v6800_v29, %s5454_s18 }
 0x3a4   : >> { %1841 = vrot.lane.b32.xlu1 %v6811_v10, %s5454_s18  ;;  %1839 = vrot.lane.b32.xlu0 %v6814_v4, %s5454_s18 }
 0x3a5   : >> { %1843 = vrot.lane.b32.xlu2 %v4944_v31, %s5454_s18 }
 0x3ac   : >> { %1909 = vrot.lane.b32.xlu1 %v6825_v38, %s5452_s16  ;;  %1907 = vrot.lane.b32.xlu0 %v6828_v49, %s5452_s16 }
 0x3ad   : >> { %1911 = vrot.lane.b32.xlu2 %v6831_v45, %s5452_s16 }
 0x3b4   : >> { %1915 = vrot.lane.b32.xlu1 %v6844_v35, %s5452_s16  ;;  %1913 = vrot.lane.b32.xlu0 %v6847_v1, %s5452_s16 }
 0x3b5   : >> { %1917 = vrot.lane.b32.xlu2 %v6850_v18, %s5452_s16 }
 0x3b7   : >> { %v1707_v52 = vpop.permute.xlu2 %1706 }
 0x3b8   : >> { %1733 = vst.msk [vmem:[#allocation4 + $0x60] sm:$0xff] %vm1728_vm1, %v1707_v52  ;;  %v7043_v52 = vld [vmem:[%s9230_s3 + $0x10] sm:$0xff] }
 0x3b9   : >> { %2199 = vmatpush.msra.mxu0 %v7043_v52 }
 0x3bb   : >> { %2200 = vmatpush.msra.mxu0 %v7053_v7 }
 0x3bc   : >> { %1921 = vrot.lane.b32.xlu1 %v6863_v50, %s5452_s16  ;;  %1919 = vrot.lane.b32.xlu0 %v6866_v43, %s5452_s16 }
 0x3bd   : >> { %1923 = vrot.lane.b32.xlu2 %v6870_v6, %s5452_s16 }
 0x3bf   : >> { %v1709_v14 = vpop.permute.xlu2 %1708 }
 0x3c0   : >> { %1734 = vst.msk [vmem:[#allocation4 + $0x78] sm:$0xff] %vm1728_vm1, %v1709_v14 }
 0x3c4   : >> { %1970 = vrot.lane.b32.xlu1 %v6883_v5, %s5453_s17  ;;  %1925 = vrot.lane.b32.xlu0 %v4964_v21, %s5452_s16  ;;  %v7061_v21 = vld [vmem:[%s9230_s3] sm:$0xff] }
 0x3c5   : >> { %1972 = vrot.lane.b32.xlu2 %v6888_v33, %s5453_s17  ;;  %2201 = vmatpush.msra.mxu0 %v7061_v21 }
 0x3c7   : >> { %v1715_v0 = vpop.permute.xlu2 %1714 }
 0x3c8   : >> { %1737 = vst.msk [vmem:[#allocation4 + $0xc0] sm:$0xff] %vm1728_vm1, %v1715_v0  ;;  %v7068_v0 = vld [vmem:[%s6729_s15 + $0xc9] sm:$0xff] }
 0x3c9   : >> { %9470 = vst [vmem:[#allocation59_spill] sm:$0xff] %v7068_v0 }
 0x3cc   : >> { %1976 = vrot.lane.b32.xlu1 %v6904_v25, %s5453_s17  ;;  %1974 = vrot.lane.b32.xlu0 %v6907_v12, %s5453_s17 }
 0x3cd   : >> { %1978 = vrot.lane.b32.xlu2 %v6916_v20, %s5453_s17 }
 0x3ce   : >> { %v1703_v51 = vpop.permute.xlu1 %1702  ;;  %v1699_v44 = vpop.permute.xlu0 %1698 }
 0x3cf   : >> { %1731 = vst.msk [vmem:[#allocation4 + $0x30] sm:$0xff] %vm1728_vm1, %v1703_v51  ;;  %v1763_v62 = vpop.permute.xlu2 %1762  ;;  %v7071_v51 = vld [vmem:[%s6729_s15 + $0xc1] sm:$0xff] }
 0x3d0   : >> { %1729 = vst.msk [vmem:[#allocation4] sm:$0xff] %vm1728_vm1, %v1699_v44  ;;  %v4947_v44 = vld [vmem:[%s6729_s15 + $0x61] sm:$0xff] }
 0x3d1   : >> { %9471 = vst [vmem:[#allocation60_spill] sm:$0xff] %v7071_v51 }
 0x3d2   : >> { %1879 = vst.msk [vmem:[#allocation4 + $0x38] sm:$0xff] %vm1635_vm0, %v4947_v44 }
 0x3d4   : >> { %1982 = vrot.lane.b32.xlu1 %v6945_v48, %s5453_s17  ;;  %1980 = vrot.lane.b32.xlu0 %v6948_v54, %s5453_s17 }
 0x3d5   : >> { %1984 = vrot.lane.b32.xlu2 %v4973_v57, %s5453_s17 }
 0x3d6   : >> { %v1705_v37 = vpop.permute.xlu1 %1704  ;;  %v1701_v46 = vpop.permute.xlu0 %1700 }
 0x3d7   : >> { %1732 = vst.msk [vmem:[#allocation4 + $0x48] sm:$0xff] %vm1728_vm1, %v1705_v37  ;;  %v1769_v47 = vpop.permute.xlu2 %1768 }
 0x3d8   : >> { %1730 = vst.msk [vmem:[#allocation4 + $0x18] sm:$0xff] %vm1728_vm1, %v1701_v46 }
 0x3d9   : >> { %1795 = vst.msk [vmem:[#allocation4 + $0x60] sm:$0xff] %vm1790_vm3, %v1769_v47 }
 0x3da   : >> { %1792 = vst.msk [vmem:[#allocation4 + $0x18] sm:$0xff] %vm1790_vm3, %v1763_v62  ;;  %v7075_v62 = vld [vmem:[%s6729_s15 + $0xd1] sm:$0xff] }
 0x3dc   : >> { %1988 = vrot.lane.b32.xlu1 %v4975_v39, %s5453_s17  ;;  %1986 = vrot.lane.b32.xlu0 %v4974_v15, %s5453_s17  ;;  %v7087_v39 = vld [vmem:[%s6729_s15 + $0x79] sm:$0xff]  ;;  %v4984_v15 = vld [vmem:[%s6729_s15 + $0xe1] sm:$0xff] }
 0x3dd   : >> { %2030 = vrot.lane.b32.xlu2 %v6993_v30, %s5454_s18  ;;  %1882 = vst.msk [vmem:[#allocation4 + $0x80] sm:$0xff] %vm1635_vm0, %v7087_v39 }
 0x3de   : >> { %v1713_v17 = vpop.permute.xlu1 %1712  ;;  %v1711_v31 = vpop.permute.xlu0 %1710 }
 0x3df   : >> { %1736 = vst.msk [vmem:[#allocation4 + $0xa8] sm:$0xff] %vm1728_vm1, %v1713_v17  ;;  %v1775_v41 = vpop.permute.xlu2 %1774  ;;  %v4983_v17 = vld [vmem:[%s6729_s15 + $0xd9] sm:$0xff] }
 0x3e0   : >> { %1735 = vst.msk [vmem:[#allocation4 + $0x90] sm:$0xff] %vm1728_vm1, %v1711_v31  ;;  %v4985_v31 = vld [vmem:[%s6729_s15 + $0xe9] sm:$0x3f] }
 0x3e1   : >> { %1798 = vst.msk [vmem:[#allocation4 + $0xa8] sm:$0xff] %vm1790_vm3, %v1775_v41 }
 0x3e4   : >> { %2034 = vrot.lane.b32.xlu1 %v7031_v2, %s5454_s18  ;;  %2032 = vrot.lane.b32.xlu0 %v7034_v3, %s5454_s18 }
 0x3e5   : >> { %2036 = vrot.lane.b32.xlu2 %v7038_v59, %s5454_s18 }
 0x3e6   : >> { %v1761_v16 = vpop.permute.xlu1 %1760  ;;  %v1717_v14 = vpop.permute.xlu0 %1716 }
 0x3e7   : >> { %1791 = vst.msk [vmem:[#allocation4] sm:$0xff] %vm1790_vm3, %v1761_v16  ;;  %v1826_v61 = vpop.permute.xlu2 %1825 }
 0x3e8   : >> { %1739 = vst.msk [vmem:[#allocation4 + $0xd8] sm:$0x3f] %vm1738_vm4, %v1717_v14 }
 0x3e9   : >> { %1856 = vst.msk [vmem:[#allocation4] sm:$0xff] %vm1855_vm5, %v1826_v61  ;;  %v7103_v61 = vld [vmem:[%s6729_s15 + $0x91] sm:$0xff] }
 0x3ea   : >> { %9472 = vst [vmem:[#allocation61_spill] sm:$0xff] %v7103_v61 }
 0x3eb   : >> { %1885 = vst.msk [vmem:[#allocation4 + $0xc8] sm:$0xff] %vm1635_vm0, %v7103_v61  ;;  %v7222_v61 = vld [vmem:[%s6729_s15 + $0x81] sm:$0xff] }
 0x3ec   : >> { %2040 = vrot.lane.b32.xlu1 %v7068_v0, %s5454_s18  ;;  %2038 = vrot.lane.b32.xlu0 %v7071_v51, %s5454_s18  ;;  %1883 = vst.msk [vmem:[#allocation4 + $0x98] sm:$0xff] %vm1635_vm0, %v7222_v61  ;;  %v7271_v51 = vld [vmem:[%s6729_s15 + $0xf8] sm:$0xff] }
 0x3ed   : >> { %2042 = vrot.lane.b32.xlu2 %v7075_v62, %s5454_s18  ;;  %9474 = vst [vmem:[#allocation63_spill] sm:$0xff] %v7271_v51 }
 0x3ee   : >> { %v1767_v57 = vpop.permute.xlu1 %1766  ;;  %v1765_v37 = vpop.permute.xlu0 %1764 }
 0x3ef   : >> { %1794 = vst.msk [vmem:[#allocation4 + $0x48] sm:$0xff] %vm1790_vm3, %v1767_v57  ;;  %v1832_v46 = vpop.permute.xlu2 %1831  ;;  %v7111_v57 = vld [vmem:[%s6729_s15 + $0xaa] sm:$0xff] }
 0x3f0   : >> { %1793 = vst.msk [vmem:[#allocation4 + $0x30] sm:$0xff] %vm1790_vm3, %v1765_v37  ;;  %v2090_v47 = vld [vmem:[#allocation4] sm:$0xff]  ;;  %v5019_v37 = vld [vmem:[%s6729_s15 + $0x69] sm:$0xff] }
 0x3f1   : >> { %1859 = vst.msk [vmem:[#allocation4 + $0x48] sm:$0xff] %vm1855_vm5, %v1832_v46  ;;  %2202 = vmatmul.f32.vlgmr.msra.gmra.mxu0 %v2090_v47 }
 0x3f2   : >> { %2337 = vst.msk [vmem:[#allocation4] sm:$0xff] %vm1635_vm0, %v6770_v9 }
 0x3f3   : >> { %2081 = vst.msk [vmem:[#allocation4 + $0x28] sm:$0xff] %vm1635_vm0, %v7111_v57 }
 0x3f4   : >> { %2046 = vrot.lane.b32.xlu1 %v4984_v15, %s5454_s18  ;;  %2044 = vrot.lane.b32.xlu0 %v4983_v17, %s5454_s18  ;;  %1880 = vst.msk [vmem:[#allocation4 + $0x50] sm:$0xff] %vm1635_vm0, %v5019_v37  ;;  %v7149_v15 = vld [vmem:[%s9230_s3 + $0xe8] sm:$0xff]  ;;  %v7154_v17 = vld [vmem:[%s6729_s15 + $0x71] sm:$0xff] }
 0x3f5   : >> { %2048 = vrot.lane.b32.xlu2 %v4985_v31, %s5454_s18  ;;  %v5015_v31 = vld [vmem:[%s6729_s15 + $0x98] sm:$0x3f]  ;;  %1881 = vst.msk [vmem:[#allocation4 + $0x68] sm:$0xff] %vm1635_vm0, %v7154_v17 }
 0x3f6   : >> { %v1773_v41 = vpop.permute.xlu1 %1772  ;;  %v1771_v16 = vpop.permute.xlu0 %1770 }
 0x3f7   : >> { %1797 = vst.msk [vmem:[#allocation4 + $0x90] sm:$0xff] %vm1790_vm3, %v1773_v41  ;;  %v1838_v14 = vpop.permute.xlu2 %1837 }
 0x3f8   : >> { %1796 = vst.msk [vmem:[#allocation4 + $0x78] sm:$0xff] %vm1790_vm3, %v1771_v16  ;;  %v7108_v9 = vld [vmem:[#allocation4 + $0x48] sm:$0xff] }
 0x3f9   : >> { %1862 = vst.msk [vmem:[#allocation4 + $0x90] sm:$0xff] %vm1855_vm5, %v1838_v14  ;;  %v7174_v14 = vld [vmem:[%s9230_s3 + $0xd8] sm:$0xff] }
 0x3fa   : >> { %2340 = vst.msk [vmem:[#allocation4 + $0x48] sm:$0xff] %vm1635_vm0, %v6783_v36 }
 0x3fc   : >> { %2369 = vrot.lane.b32.xlu1 %v7001_v27, %s5452_s16  ;;  %2367 = vrot.lane.b32.xlu0 %v7009_v8, %s5452_s16  ;;  %v7130_v27 = vld [vmem:[%s9230_s3 + $0xf8] sm:$0xff] }
 0x3fd   : >> { %2371 = vrot.lane.b32.xlu2 %v4947_v44, %s5452_s16  ;;  %2233 = vmatpush.msra.mxu1 %v7130_v27  ;;  %v7138_v44 = vld [vmem:[%s9230_s3 + $0xf0] sm:$0xff] }
 0x3fe   : >> { %v1779_v46 = vpop.permute.xlu1 %1778  ;;  %v1777_v47 = vpop.permute.xlu0 %1776 }
 0x3ff   : >> { %1801 = vst.msk [vmem:[#allocation4 + $0xd8] sm:$0x3f] %vm1800_vm6, %v1779_v46  ;;  %v1844_v36 = vpop.permute.xlu2 %1843  ;;  %2234 = vmatpush.msra.mxu1 %v7138_v44  ;;  %v7183_v46 = vld [vmem:[%s9230_s3 + $0xd0] sm:$0xff] }
 0x400   : >> { %1799 = vst.msk [vmem:[#allocation4 + $0xc0] sm:$0xff] %vm1790_vm3, %v1777_v47  ;;  %v7132_v8 = vld [vmem:[#allocation4 + $0x90] sm:$0xff] }
 0x401   : >> { %1866 = vst.msk [vmem:[#allocation4 + $0xd8] sm:$0x3f] %vm1865_vm7, %v1844_v36  ;;  %2235 = vmatpush.msra.mxu1 %v7149_v15  ;;  %v7193_v47 = vld [vmem:[%s6729_s15 + $0xb2] sm:$0xff]  ;;  %v7198_v36 = vld [vmem:[%s9230_s3 + $0xc8] sm:$0xff] }
 0x402   : >> { %2343 = vst.msk [vmem:[#allocation4 + $0x90] sm:$0xff] %vm1635_vm0, %v6800_v29 }
 0x403   : >> { %2082 = vst.msk [vmem:[#allocation4 + $0x40] sm:$0xff] %vm1635_vm0, %v7193_v47 }
 0x404   : >> { %2487 = vrot.lane.b32.xlu1 %v6883_v5, %s5454_s18  ;;  %2427 = vrot.lane.b32.xlu0 %v6828_v49, %s5453_s17  ;;  %v7164_v5 = vld [vmem:[%s9230_s3 + $0xe0] sm:$0xff] }
 0x405   : >> { %2373 = vrot.lane.b32.xlu2 %v5019_v37, %s5452_s16  ;;  %2236 = vmatpush.msra.mxu1 %v7164_v5  ;;  %v7178_v37 = vld [vmem:[%s6729_s15 + $0xa2] sm:$0xff] }
 0x406   : >> { %v1830_v29 = vpop.permute.xlu1 %1829  ;;  %v1828_v41 = vpop.permute.xlu0 %1827  ;;  %9473 = vst [vmem:[#allocation62_spill] sm:$0xff] %v7178_v37 }
 0x407   : >> { %1858 = vst.msk [vmem:[#allocation4 + $0x30] sm:$0xff] %vm1855_vm5, %v1830_v29  ;;  %v1912_v49 = vpop.permute.xlu2 %1911  ;;  %2237 = vmatpush.msra.mxu1 %v7174_v14 }
 0x408   : >> { %v7166_v16 = vld [vmem:[#allocation4 + $0xd8] sm:$0x3f]  ;;  %1857 = vst.msk [vmem:[#allocation4 + $0x18] sm:$0xff] %vm1855_vm5, %v1828_v41 }
 0x409   : >> { %2346 = vst.msk [vmem:[#allocation4 + $0xd8] sm:$0x3f] %vm1676_vm2, %v5015_v31  ;;  %2238 = vmatpush.msra.mxu1 %v7183_v46  ;;  %v7204_v31 = vld [vmem:[%s6729_s15 + $0x89] sm:$0xff] }
 0x40a   : >> { %1939 = vst.msk [vmem:[#allocation4 + $0x38] sm:$0xff] %vm1728_vm1, %v1912_v49  ;;  %v7215_v49 = vld [vmem:[%s9230_s3 + $0xc0] sm:$0xff] }
 0x40b   : >> { %2080 = vst.msk [vmem:[#allocation4 + $0x10] sm:$0xff] %vm1635_vm0, %v7178_v37  ;;  %2239 = vmatpush.msra.mxu1 %v7198_v36 }
 0x40c   : >> { %2489 = vrot.lane.b32.xlu1 %v6888_v33, %s5454_s18  ;;  %2429 = vrot.lane.b32.xlu0 %v6825_v38, %s5453_s17  ;;  %1884 = vst.msk [vmem:[#allocation4 + $0xb0] sm:$0xff] %vm1635_vm0, %v7204_v31 }
 0x40d   : >> { %2567 = vrot.lane.b32.xlu2 %v7178_v37, %s5452_s16  ;;  %v5067_v37 = vld [vmem:[%s6729_s15 + $0xf0] sm:$0xff]  ;;  %2240 = vmatpush.msra.mxu1 %v7215_v49 }
 0x40e   : >> { %v1836_v38 = vpop.permute.xlu1 %1835  ;;  %v1834_v33 = vpop.permute.xlu0 %1833  ;;  %v2096_v6 = vld [vmem:[#allocation4 + $0x30] sm:$0xff] }
 0x40f   : >> { %1861 = vst.msk [vmem:[#allocation4 + $0x78] sm:$0xff] %vm1855_vm5, %v1836_v38  ;;  %v1918_v29 = vpop.permute.xlu2 %1917  ;;  %v2093_v41 = vld [vmem:[#allocation4 + $0x18] sm:$0xff] }
 0x410   : >> { %1860 = vst.msk [vmem:[#allocation4 + $0x60] sm:$0xff] %vm1855_vm5, %v1834_v33  ;;  %2205 = vmatmul.f32.gmra.mxu0 %v2093_v41  ;;  %v7228_v38 = vld [vmem:[%s9230_s3 + $0xb8] sm:$0xff]  ;;  %v7235_v33 = vld [vmem:[%s9230_s3 + $0xb0] sm:$0xff] }
 0x411   : >> { %1942 = vst.msk [vmem:[#allocation4 + $0x80] sm:$0xff] %vm1728_vm1, %v1918_v29  ;;  %2241 = vmatpush.msra.mxu1 %v7228_v38  ;;  %v4954_v41 = vld [vmem:[%s6729_s15 + $0x99] sm:$0x3f] }
 0x412   : >> { %2338 = vst.msk [vmem:[#allocation4 + $0x18] sm:$0xff] %vm1635_vm0, %v6780_v11  ;;  %v7247_v11 = vld [vmem:[%s9230_s3 + $0xa8] sm:$0xff] }
 0x413   : >> { %2339 = vst.msk [vmem:[#allocation4 + $0x30] sm:$0xff] %vm1635_vm0, %v6777_v40  ;;  %2242 = vmatpush.msra.mxu1 %v7235_v33 }
 0x414   : >> { %2690 = vrot.lane.b32.xlu1 %v5077_v63, %s5454_s18  ;;  %2630 = vrot.lane.b32.xlu0 %v5067_v37, %s5453_s17  ;;  %v7257_v37 = vld [vmem:[%s9230_s3 + $0xa0] sm:$0xff]  ;;  %1886 = vst.msk [vmem:[#allocation4 + $0xe0] sm:$0x3f] %vm1676_vm2, %v4954_v41 }
 0x415   : >> { %2431 = vrot.lane.b32.xlu2 %v6831_v45, %s5453_s17  ;;  %2243 = vmatpush.msra.mxu1 %v7247_v11  ;;  %v7310_v41 = vld [vmem:[%s6729_s15 + $0xf9] sm:$0xff] }
 0x416   : >> { %v1842_v40 = vpop.permute.xlu1 %1841  ;;  %v1840_v29 = vpop.permute.xlu0 %1839  ;;  %v2105_v0 = vld [vmem:[#allocation4 + $0x78] sm:$0xff] }
 0x417   : >> { %1864 = vst.msk [vmem:[#allocation4 + $0xc0] sm:$0xff] %vm1855_vm5, %v1842_v40  ;;  %v1924_v63 = vpop.permute.xlu2 %1923  ;;  %v2102_v45 = vld [vmem:[#allocation4 + $0x60] sm:$0xff]  ;;  %2244 = vmatpush.msra.mxu1 %v7257_v37  ;;  %v7266_v40 = vld [vmem:[%s9230_s3 + $0x98] sm:$0xff] }
 0x418   : >> { %1863 = vst.msk [vmem:[#allocation4 + $0xa8] sm:$0xff] %vm1855_vm5, %v1840_v29  ;;  %2208 = vmatmul.f32.gmra.mxu0 %v2096_v6  ;;  %v7276_v6 = vld [vmem:[%s9230_s3 + $0x90] sm:$0xff]  ;;  %v7292_v29 = vld [vmem:[%s9230_s3 + $0x88] sm:$0xff] }
 0x419   : >> { %1945 = vst.msk [vmem:[#allocation4 + $0xc8] sm:$0xff] %vm1728_vm1, %v1924_v63  ;;  %2245 = vmatpush.msra.mxu1 %v7266_v40  ;;  %v7304_v63 = vld [vmem:[%s9230_s3 + $0x80] sm:$0xff] }
 0x41a   : >> { %2341 = vst.msk [vmem:[#allocation4 + $0x60] sm:$0xff] %vm1635_vm0, %v6797_v19  ;;  %v7287_v19 = vld [vmem:[%s6729_s15 + $0xba] sm:$0xff] }
 0x41b   : >> { %2342 = vst.msk [vmem:[#allocation4 + $0x78] sm:$0xff] %vm1635_vm0, %v6794_v32  ;;  %2246 = vmatpush.msra.mxu1 %v7276_v6 }
 0x41c   : >> { %2569 = vrot.lane.b32.xlu1 %v7111_v57, %s5452_s16  ;;  %2491 = vrot.lane.b32.xlu0 %v6907_v12, %s5454_s18  ;;  %2083 = vst.msk [vmem:[#allocation4 + $0x58] sm:$0xff] %vm1635_vm0, %v7287_v19 }
 0x41d   : >> { %2632 = vrot.lane.b32.xlu2 %v7271_v51, %s5453_s17  ;;  %2247 = vmatpush.msra.mxu1 %v7292_v29 }
 0x41e   : >> { %v1910_v32 = vpop.permute.xlu1 %1909  ;;  %v1908_v12 = vpop.permute.xlu0 %1907 }
 0x41f   : >> { %1938 = vst.msk [vmem:[#allocation4 + $0x20] sm:$0xff] %vm1728_vm1, %v1910_v32  ;;  %v1973_v57 = vpop.permute.xlu2 %1972  ;;  %v7312_v51 = vld [vmem:[#allocation4 + $0xa8] sm:$0xff]  ;;  %2248 = vmatpush.msra.mxu1 %v7304_v63  ;;  %v7317_v32 = vld [vmem:[#allocation4 + $0xc0] sm:$0xff] }
 0x420   : >> { %1937 = vst.msk [vmem:[#allocation4 + $0x8] sm:$0xff] %vm1728_vm1, %v1908_v12  ;;  %2211 = vmatmul.f32.gmra.mxu0 %v7108_v9 }
 0x421   : >> { %2001 = vst.msk [vmem:[#allocation4 + $0x20] sm:$0xff] %vm1790_vm3, %v1973_v57  ;;  %v7332_v57 = vld [vmem:[%s6729_s15 + $0x101] sm:$0xff] }
 0x422   : >> { %2344 = vst.msk [vmem:[#allocation4 + $0xa8] sm:$0xff] %vm1635_vm0, %v6814_v4 }
 0x423   : >> { %2345 = vst.msk [vmem:[#allocation4 + $0xc0] sm:$0xff] %vm1635_vm0, %v6811_v10  ;;  %v5069_v10 = vld [vmem:[%s6729_s15 + $0x100] sm:$0xff] }
 0x424   : >> { %2433 = vrot.lane.b32.xlu1 %v6847_v1, %s5453_s17  ;;  %2692 = vrot.lane.b32.xlu0 %v7310_v41, %s5454_s18  ;;  %v7338_v1 = vld [vmem:[%s6729_s15 + $0xc2] sm:$0xff] }
 0x425   : >> { %2493 = vrot.lane.b32.xlu2 %v6904_v25, %s5454_s18  ;;  %2084 = vst.msk [vmem:[#allocation4 + $0x70] sm:$0xff] %vm1635_vm0, %v7338_v1 }
 0x426   : >> { %v1916_v9 = vpop.permute.xlu1 %1915  ;;  %v1914_v12 = vpop.permute.xlu0 %1913 }
 0x427   : >> { %1941 = vst.msk [vmem:[#allocation4 + $0x68] sm:$0xff] %vm1728_vm1, %v1916_v9  ;;  %v1979_v4 = vpop.permute.xlu2 %1978 }
 0x428   : >> { %1940 = vst.msk [vmem:[#allocation4 + $0x50] sm:$0xff] %vm1728_vm1, %v1914_v12  ;;  %2214 = vmatmul.f32.gmra.mxu0 %v2102_v45  ;;  %v2154_v12 = vld [vmem:[%s9230_s3 + $0x110] sm:$0xff] }
 0x429   : >> { %2004 = vst.msk [vmem:[#allocation4 + $0x68] sm:$0xff] %vm1790_vm3, %v1979_v4  ;;  %v2153_v4 = vld [vmem:[%s9230_s3 + $0x108] sm:$0xff] }
 0x42c   : >> { %2634 = vrot.lane.b32.xlu1 %v5069_v10, %s5453_s17  ;;  %2571 = vrot.lane.b32.xlu0 %v7193_v47, %s5452_s16  ;;  %v2155_v47 = vld [vmem:[%s9230_s3 + $0x118] sm:$0xff] }
 0x42d   : >> { %2694 = vrot.lane.b32.xlu2 %v7332_v57, %s5454_s18  ;;  %2292 = vmatpush.msrb.mxu0 %v2155_v47 }
 0x42e   : >> { %v1922_v25 = vpop.permute.xlu1 %1921  ;;  %v1920_v45 = vpop.permute.xlu0 %1919  ;;  %5299 = vmatpush.msra.mxu2 %v2155_v47  ;;  %5300 = vmatpush.msra.mxu3 %v2155_v47 }
 0x42f   : >> { %1944 = vst.msk [vmem:[#allocation4 + $0xb0] sm:$0xff] %vm1728_vm1, %v1922_v25  ;;  %v1985_v9 = vpop.permute.xlu2 %1984  ;;  %2293 = vmatpush.msrb.mxu0 %v2154_v12 }
 0x430   : >> { %1943 = vst.msk [vmem:[#allocation4 + $0x98] sm:$0xff] %vm1728_vm1, %v1920_v45  ;;  %2217 = vmatmul.f32.gmra.mxu0 %v2105_v0  ;;  %5301 = vmatpush.msra.mxu2 %v2154_v12  ;;  %v7363_v0 = vld [vmem:[%s9230_s3 + $0x100] sm:$0xff] }
 0x431   : >> { %2007 = vst.msk [vmem:[#allocation4 + $0xb0] sm:$0xff] %vm1790_vm3, %v1985_v9  ;;  %2294 = vmatpush.msrb.mxu0 %v2153_v4  ;;  %5302 = vmatpush.msra.mxu3 %v2154_v12  ;;  %v7376_v45 = vld [vmem:[%s6729_s15 + $0xfa] sm:$0xff]  ;;  %v7380_v9 = vld [vmem:[%s6729_s15 + $0x108] sm:$0xff] }
 0x432   : >> { %5303 = vmatpush.msra.mxu2 %v2153_v4 }
 0x433   : >> { %2295 = vmatpush.msrb.mxu0 %v7363_v0  ;;  %5304 = vmatpush.msra.mxu3 %v2153_v4 }
 0x434   : >> { %2435 = vrot.lane.b32.xlu1 %v6844_v35, %s5453_s17  ;;  %2375 = vrot.lane.b32.xlu0 %v7154_v17, %s5452_s16  ;;  %v7372_v17 = vld [vmem:[%s6729_s15 + $0xf2] sm:$0xff] }
 0x435   : >> { %2495 = vrot.lane.b32.xlu2 %v6916_v20, %s5454_s18  ;;  %5305 = vmatpush.msra.mxu2 %v7363_v0  ;;  %v2095_v20 = vld [vmem:[#allocation4 + $0x28] sm:$0xff] }
 0x436   : >> { %v1971_v10 = vpop.permute.xlu1 %1970  ;;  %v1926_v25 = vpop.permute.xlu0 %1925  ;;  %4997 = vmatmul.msk.f32.vlgmr.msra.gmra.mxu2 %vm1635_vm0, %v2095_v20  ;;  %2952 = vmatpush.msra.mxu0 %v2155_v47  ;;  %2741 = vst.msk [vmem:[#allocation4 + $0x28] sm:$0xff] %vm1635_vm0, %v7376_v45  ;;  %v7420_v20 = vld [vmem:[%s6729_s15 + $0x122] sm:$0xff] }
 0x437   : >> { %2000 = vst.msk [vmem:[#allocation4 + $0x8] sm:$0xff] %vm1790_vm3, %v1971_v10  ;;  %v2031_v35 = vpop.permute.xlu2 %2030  ;;  %v7382_v10 = vld [vmem:[#allocation4 + $0x10] sm:$0xff]  ;;  %2893 = vmatpush.msrb.mxu2 %v7130_v27  ;;  %5306 = vmatpush.msra.mxu3 %v7363_v0 }
 0x438   : >> { %1946 = vst.msk [vmem:[#allocation4 + $0xe0] sm:$0x3f] %vm1738_vm4, %v1926_v25  ;;  %2220 = vmatmul.f32.gmra.mxu0 %v7132_v8  ;;  %v7386_v25 = vld [vmem:[%s6729_s15 + $0xd2] sm:$0xff]  ;;  %v7389_v8 = vld [vmem:[%s6729_s15 + $0x109] sm:$0xff] }
 0x439   : >> { %2060 = vst.msk [vmem:[#allocation4 + $0x8] sm:$0xff] %vm1855_vm5, %v2031_v35  ;;  %v7402_v35 = vld [vmem:[%s6729_s15 + $0xca] sm:$0xff]  ;;  %2846 = vmatpush.msrb.mxu3 %v6901_v56  ;;  %2894 = vmatpush.msrb.mxu2 %v7138_v44  ;;  %v2098_v44 = vld [vmem:[#allocation4 + $0x40] sm:$0xff] }
 0x43a   : >> { %2740 = vst.msk [vmem:[#allocation4 + $0x10] sm:$0xff] %vm1635_vm0, %v7372_v17  ;;  %2953 = vmatpush.msra.mxu0 %v2154_v12  ;;  %v7423_v12 = vld [vmem:[%s6729_s15 + $0x102] sm:$0xff] }
 0x43b   : >> { %2086 = vst.msk [vmem:[#allocation4 + $0xa0] sm:$0xff] %vm1635_vm0, %v7386_v25  ;;  %2847 = vmatpush.msrb.mxu3 %v6913_v58  ;;  %2895 = vmatpush.msrb.mxu2 %v7149_v15  ;;  %v7429_v58 = vld [vmem:[%s6729_s15 + $0xda] sm:$0xff]  ;;  %v5094_v15 = vld [vmem:[%s6729_s15 + $0x12a] sm:$0xff] }
 0x43c   : >> { %2636 = vrot.lane.b32.xlu1 %v7380_v9, %s5453_s17  ;;  %2573 = vrot.lane.b32.xlu0 %v7287_v19, %s5452_s16  ;;  %2085 = vst.msk [vmem:[#allocation4 + $0x88] sm:$0xff] %vm1635_vm0, %v7402_v35 }
 0x43d   : >> { %2696 = vrot.lane.b32.xlu2 %v7389_v8, %s5454_s18  ;;  %2848 = vmatpush.msrb.mxu3 %v6921_v23  ;;  %2742 = vst.msk [vmem:[#allocation4 + $0x40] sm:$0xff] %vm1635_vm0, %v7423_v12 }
 0x43e   : >> { %v1977_v27 = vpop.permute.xlu1 %1976  ;;  %v1975_v47 = vpop.permute.xlu0 %1974  ;;  %4998 = vmatmul.msk.f32.gmra.mxu2 %vm1635_vm0, %v2098_v44  ;;  %2954 = vmatpush.msra.mxu0 %v2153_v4  ;;  %2087 = vst.msk [vmem:[#allocation4 + $0xb8] sm:$0xff] %vm1635_vm0, %v7429_v58  ;;  %v4995_v4 = vld [vmem:[%s6729_s15 + $0xea] sm:$0x3f]  ;;  %v9478_v44 = vld [vmem:[#allocation61_spill] sm:$0xff] }
 0x43f   : >> { %2003 = vst.msk [vmem:[#allocation4 + $0x50] sm:$0xff] %vm1790_vm3, %v1977_v27  ;;  %v2037_v19 = vpop.permute.xlu2 %2036  ;;  %2849 = vmatpush.msrb.mxu3 %v6931_v34  ;;  %2896 = vmatpush.msrb.mxu2 %v7164_v5 }
 0x440   : >> { %2002 = vst.msk [vmem:[#allocation4 + $0x38] sm:$0xff] %vm1790_vm3, %v1975_v47  ;;  %2223 = vmatmul.f32.gmra.mxu0 %v7312_v51  ;;  %v2091_v56 = vld [vmem:[#allocation4 + $0x8] sm:$0xff] }
 0x441   : >> { %2249 = vmatmul.f32.vlgmr.msra.gmra.mxu1 %v2091_v56  ;;  %2537 = vst.msk [vmem:[#allocation4 + $0x8] sm:$0xff] %vm1635_vm0, %v6993_v30  ;;  %2850 = vmatpush.msrb.mxu3 %v6942_v42  ;;  %v7454_v30 = vld [vmem:[%s6729_s15 + $0x110] sm:$0xff]  ;;  %v9477_v56 = vld [vmem:[#allocation58_spill] sm:$0xff] }
 0x442   : >> { %2063 = vst.msk [vmem:[#allocation4 + $0x50] sm:$0xff] %vm1855_vm5, %v2037_v19  ;;  %v2110_v51 = vld [vmem:[#allocation4 + $0xa0] sm:$0xff]  ;;  %2897 = vmatpush.msrb.mxu2 %v7174_v14  ;;  %2955 = vmatpush.msra.mxu0 %v7363_v0  ;;  %v7458_v42 = vld [vmem:[%s6729_s15 + $0x111] sm:$0xff] }
 0x443   : >> { %2746 = vst.msk [vmem:[#allocation4 + $0xa0] sm:$0xff] %vm1635_vm0, %v7420_v20  ;;  %5002 = vmatmul.msk.f32.vlgmr.msra.gmra.mxu3 %vm1635_vm0, %v2110_v51  ;;  %v7602_v19 = vld [vmem:[%s6729_s15 + $0xd9] sm:$0xff] }
 0x444   : >> { %2437 = vrot.lane.b32.xlu1 %v6850_v18, %s5453_s17  ;;  %2377 = vrot.lane.b32.xlu0 %v7087_v39, %s5452_s16  ;;  %v7461_v39 = vld [vmem:[%s6729_s15 + $0x10a] sm:$0xff]  ;;  %2089 = vst.msk [vmem:[#allocation4 + $0xe8] sm:$0x3f] %vm1676_vm2, %v4995_v4  ;;  %v5035_v4 = vld [vmem:[%s6729_s15 + $0x9a] sm:$0x3f] }
 0x445   : >> { %2497 = vrot.lane.b32.xlu2 %v6948_v54, %s5454_s18  ;;  %v2101_v54 = vld [vmem:[#allocation4 + $0x58] sm:$0xff]  ;;  %2851 = vmatpush.msrb.mxu3 %v6954_v53  ;;  %v7472_v53 = vld [vmem:[%s6729_s15 + $0xe2] sm:$0xff] }
 0x446   : >> { %v1983_v23 = vpop.permute.xlu1 %1982  ;;  %v1981_v18 = vpop.permute.xlu0 %1980  ;;  %2898 = vmatpush.msrb.mxu2 %v7183_v46  ;;  %2743 = vst.msk [vmem:[#allocation4 + $0x58] sm:$0xff] %vm1635_vm0, %v7461_v39  ;;  %v2113_v14 = vld [vmem:[#allocation4 + $0xb8] sm:$0xff] }
 0x447   : >> { %2006 = vst.msk [vmem:[#allocation4 + $0x98] sm:$0xff] %vm1790_vm3, %v1983_v23  ;;  %v2043_v34 = vpop.permute.xlu2 %2042  ;;  %4999 = vmatmul.msk.f32.gmra.mxu2 %vm1635_vm0, %v2101_v54  ;;  %2852 = vmatpush.msrb.mxu3 %v6960_v60  ;;  %v7618_v54 = vld [vmem:[%s6729_s15 + $0x128] sm:$0xff] }
 0x448   : >> { %2005 = vst.msk [vmem:[#allocation4 + $0x80] sm:$0xff] %vm1790_vm3, %v1981_v18  ;;  %2226 = vmatmul.f32.gmra.mxu0 %v7317_v32  ;;  %2899 = vmatpush.msrb.mxu2 %v7198_v36  ;;  %v2104_v36 = vld [vmem:[#allocation4 + $0x70] sm:$0xff] }
 0x449   : >> { %2066 = vst.msk [vmem:[#allocation4 + $0x98] sm:$0xff] %vm1855_vm5, %v2043_v34  ;;  %v7469_v5 = vld [vmem:[#allocation4 + $0x50] sm:$0xff]  ;;  %2853 = vmatpush.msrb.mxu3 %v6970_v28 }
 0x44a   : >> { %2540 = vst.msk [vmem:[#allocation4 + $0x50] sm:$0xff] %vm1635_vm0, %v7038_v59  ;;  %2900 = vmatpush.msrb.mxu2 %v7215_v49  ;;  %v7494_v32 = vld [vmem:[%s6729_s15 + $0x112] sm:$0xff]  ;;  %v2107_v49 = vld [vmem:[#allocation4 + $0x88] sm:$0xff] }
 0x44b   : >> { %2088 = vst.msk [vmem:[#allocation4 + $0xd0] sm:$0xff] %vm1635_vm0, %v7472_v53  ;;  %5003 = vmatmul.msk.f32.gmra.mxu3 %vm1635_vm0, %v2113_v14  ;;  %v2752_v34 = vld [vmem:[#allocation4 + $0x10] sm:$0xff] }
 0x44c   : >> { %2638 = vrot.lane.b32.xlu1 %v7454_v30, %s5453_s17  ;;  %2575 = vrot.lane.b32.xlu0 %v7338_v1, %s5452_s16  ;;  %2747 = vst.msk [vmem:[#allocation4 + $0xb8] sm:$0xff] %vm1635_vm0, %v5094_v15  ;;  %v5095_v1 = vld [vmem:[%s6729_s15 + $0x132] sm:$0xff]  ;;  %v7627_v14 = vld [vmem:[%s6729_s15 + $0x129] sm:$0xff] }
 0x44d   : >> { %2698 = vrot.lane.b32.xlu2 %v7458_v42, %s5454_s18  ;;  %2854 = vmatpush.msrb.mxu3 %v6980_v22  ;;  %2744 = vst.msk [vmem:[#allocation4 + $0x70] sm:$0xff] %vm1635_vm0, %v7494_v32 }
 0x44e   : >> { %v1989_v60 = vpop.permute.xlu1 %1988  ;;  %v1987_v59 = vpop.permute.xlu0 %1986  ;;  %2901 = vmatpush.msrb.mxu2 %v7228_v38  ;;  %v7530_v38 = vld [vmem:[%s6729_s15 + $0x118] sm:$0xff] }
 0x44f   : >> { %2009 = vst.msk [vmem:[#allocation4 + $0xe0] sm:$0x3f] %vm1800_vm6, %v1989_v60  ;;  %v2049_v46 = vpop.permute.xlu2 %2048  ;;  %5000 = vmatmul.msk.f32.gmra.mxu2 %vm1635_vm0, %v2104_v36  ;;  %2855 = vmatpush.msrb.mxu3 %v6989_v55  ;;  %v5188_v60 = vld [vmem:[%s6729_s15 + $0x142] sm:$0xff] }
 0x450   : >> { %2008 = vst.msk [vmem:[#allocation4 + $0xc8] sm:$0xff] %vm1790_vm3, %v1987_v59  ;;  %2229 = vmatmul.f32.gmra.mxu0 %v7166_v16  ;;  %2902 = vmatpush.msrb.mxu2 %v7235_v33  ;;  %v7511_v22 = vld [vmem:[#allocation4 + $0x98] sm:$0xff]  ;;  %v5055_v16 = vld [vmem:[%s6729_s15 + $0xe9] sm:$0x3f] }
 0x451   : >> { %2069 = vst.msk [vmem:[#allocation4 + $0xe0] sm:$0x3f] %vm1865_vm7, %v2049_v46  ;;  %2856 = vmatpush.msrb.mxu3 %v6998_v26  ;;  %v7534_v26 = vld [vmem:[%s6729_s15 + $0x11a] sm:$0xff] }
 0x452   : >> { %v2116_v28 = vld [vmem:[#allocation4 + $0xd0] sm:$0xff]  ;;  %2543 = vst.msk [vmem:[#allocation4 + $0x98] sm:$0xff] %vm1635_vm0, %v7075_v62  ;;  %2903 = vmatpush.msrb.mxu2 %v7247_v11  ;;  %v5096_v62 = vld [vmem:[%s6729_s15 + $0x13a] sm:$0x3f]  ;;  %v2119_v11 = vld [vmem:[#allocation4 + $0xe8] sm:$0x3f] }
 0x453   : >> { %2748 = vst.msk [vmem:[#allocation4 + $0xd0] sm:$0xff] %vm1635_vm0, %v5095_v1  ;;  %5004 = vmatmul.msk.f32.gmra.mxu3 %vm1635_vm0, %v2116_v28  ;;  %v7539_v33 = vld [vmem:[%s6729_s15 + $0x119] sm:$0xff] }
 0x454   : >> { %2439 = vrot.lane.b32.xlu1 %v6866_v43, %s5453_s17  ;;  %2379 = vrot.lane.b32.xlu0 %v7222_v61, %s5452_s16  ;;  %2749 = vst.msk [vmem:[#allocation4 + $0xe8] sm:$0x3f] %vm1676_vm2, %v5096_v62  ;;  %v5025_v28 = vld [vmem:[%s6729_s15 + $0x99] sm:$0x3f] }
 0x455   : >> { %2499 = vrot.lane.b32.xlu2 %v6945_v48, %s5454_s18  ;;  %2857 = vmatpush.msrb.mxu3 %v7017_v13  ;;  %2745 = vst.msk [vmem:[#allocation4 + $0x88] sm:$0xff] %vm1635_vm0, %v7534_v26 }
 0x456   : >> { %v2035_v55 = vpop.permute.xlu1 %2034  ;;  %v2033_v43 = vpop.permute.xlu0 %2032  ;;  %2904 = vmatpush.msrb.mxu2 %v7257_v37  ;;  %3410 = vst.msk [vmem:[#allocation4 + $0x10] sm:$0xff] %vm1635_vm0, %v5188_v60 }
 0x457   : >> { %2062 = vst.msk [vmem:[#allocation4 + $0x38] sm:$0xff] %vm1855_vm5, %v2035_v55  ;;  %v2372_v61 = vpop.permute.xlu2 %2371  ;;  %2858 = vmatpush.msrb.mxu3 %v7027_v24  ;;  %5001 = vmatmul.msk.f32.gmra.mxu2 %vm1635_vm0, %v2107_v49  ;;  %v5045_v55 = vld [vmem:[%s6729_s15 + $0xe8] sm:$0x3f] }
 0x458   : >> { %2061 = vst.msk [vmem:[#allocation4 + $0x20] sm:$0xff] %vm1855_vm5, %v2033_v43  ;;  %4996 = vmatmul.msk.f32.vlgmr.msrb.gmra.mxu0 %vm1635_vm0, %v7382_v10  ;;  %v7525_v48 = vld [vmem:[#allocation4 + $0xe0] sm:$0x3f]  ;;  %2905 = vmatpush.msrb.mxu2 %v7266_v40 }
 0x459   : >> { %2546 = vst.msk [vmem:[#allocation4 + $0xe0] sm:$0x3f] %vm1676_vm2, %v5055_v16  ;;  %2859 = vmatpush.msrb.mxu3 %v7043_v52  ;;  %v7565_v52 = vld [vmem:[%s6729_s15 + $0xd8] sm:$0xff] }
 0x45a   : >> { %2399 = vst.msk [vmem:[#allocation4 + $0x30] sm:$0xff] %vm1728_vm1, %v2372_v61  ;;  %2906 = vmatpush.msrb.mxu2 %v7276_v6  ;;  %v7579_v6 = vld [vmem:[%s6729_s15 + $0x120] sm:$0xff]  ;;  %v5108_v61 = vld [vmem:[%s6729_s15 + $0xa8] sm:$0xff] }
 0x45b   : >> { %5005 = vmatmul.msk.f32.gmra.mxu3 %vm1635_vm0, %v2119_v11  ;;  %v2755_v11 = vld [vmem:[#allocation4 + $0x28] sm:$0xff] }
 0x45c   : >> { %2640 = vrot.lane.b32.xlu1 %v7530_v38, %s5453_s17  ;;  %2577 = vrot.lane.b32.xlu0 %v7402_v35, %s5452_s16 }
 0x45d   : >> { %2700 = vrot.lane.b32.xlu2 %v7539_v33, %s5454_s18  ;;  %2860 = vmatpush.msrb.mxu3 %v7053_v7 }
 0x45e   : >> { %v2041_v13 = vpop.permute.xlu1 %2040  ;;  %v2039_v24 = vpop.permute.xlu0 %2038  ;;  %v2097_v0 = vld [vmem:[#allocation4 + $0x38] sm:$0xff]  ;;  %2907 = vmatpush.msrb.mxu2 %v7292_v29  ;;  %v9475_v29 = vld [vmem:[#allocation60_spill] sm:$0xff] }
 0x45f   : >> { %2065 = vst.msk [vmem:[#allocation4 + $0x80] sm:$0xff] %vm1855_vm5, %v2041_v13  ;;  %v2094_v37 = vld [vmem:[#allocation4 + $0x20] sm:$0xff]  ;;  %v2374_v40 = vpop.permute.xlu2 %2373  ;;  %2861 = vmatpush.msrb.mxu3 %v7061_v21  ;;  %v7655_v13 = vld [vmem:[%s6729_s15 + $0x130] sm:$0xff] }
 0x460   : >> { %2064 = vst.msk [vmem:[#allocation4 + $0x68] sm:$0xff] %vm1855_vm5, %v2039_v24  ;;  %2252 = vmatmul.f32.gmra.mxu1 %v2094_v37  ;;  %2908 = vmatpush.msrb.mxu2 %v7304_v63  ;;  %v9476_v63 = vld [vmem:[#allocation59_spill] sm:$0xff]  ;;  %v5189_v24 = vld [vmem:[%s6729_s15 + $0x14a] sm:$0xff] }
 0x461   : >> { %2538 = vst.msk [vmem:[#allocation4 + $0x20] sm:$0xff] %vm1635_vm0, %v7034_v3  ;;  %5097 = vmatmul.msk.f32.vlgmr.msra.gmra.mxu0 %vm1635_vm0, %v2752_v34  ;;  %v7660_v37 = vld [vmem:[%s6729_s15 + $0x131] sm:$0xff] }
 0x462   : >> { %2539 = vst.msk [vmem:[#allocation4 + $0x38] sm:$0xff] %vm1635_vm0, %v7031_v2 }
 0x463   : >> { %2400 = vst.msk [vmem:[#allocation4 + $0x48] sm:$0xff] %vm1728_vm1, %v2374_v40 }
 0x464   : >> { %2441 = vrot.lane.b32.xlu1 %v6863_v50, %s5453_s17  ;;  %2381 = vrot.lane.b32.xlu0 %v7204_v31, %s5452_s16  ;;  %v7585_v31 = vld [vmem:[%s6729_s15 + $0x121] sm:$0xff]  ;;  %3411 = vst.msk [vmem:[#allocation4 + $0x28] sm:$0xff] %vm1635_vm0, %v5189_v24 }
 0x465   : >> { %2501 = vrot.lane.b32.xlu2 %v7565_v52, %s5454_s18 }
 0x466   : >> { %v2047_v3 = vpop.permute.xlu1 %2046  ;;  %v2045_v2 = vpop.permute.xlu0 %2044  ;;  %v2106_v50 = vld [vmem:[#allocation4 + $0x80] sm:$0xff] }
 0x467   : >> { %2068 = vst.msk [vmem:[#allocation4 + $0xc8] sm:$0xff] %vm1855_vm5, %v2047_v3  ;;  %v2568_v7 = vpop.permute.xlu2 %2567  ;;  %v2103_v21 = vld [vmem:[#allocation4 + $0x68] sm:$0xff] }
 0x468   : >> { %2067 = vst.msk [vmem:[#allocation4 + $0xb0] sm:$0xff] %vm1855_vm5, %v2045_v2  ;;  %2255 = vmatmul.f32.gmra.mxu1 %v2097_v0 }
 0x469   : >> { %2541 = vst.msk [vmem:[#allocation4 + $0x68] sm:$0xff] %vm1635_vm0, %v9475_v29  ;;  %5098 = vmatmul.msk.f32.gmra.mxu0 %vm1635_vm0, %v2755_v11 }
 0x46a   : >> { %2597 = vst.msk [vmem:[#allocation4 + $0x8] sm:$0xff] %vm1728_vm1, %v2568_v7  ;;  %v2758_v7 = vld [vmem:[#allocation4 + $0x40] sm:$0xff] }
 0x46b   : >> { %2542 = vst.msk [vmem:[#allocation4 + $0x80] sm:$0xff] %vm1635_vm0, %v9476_v63 }
 0x46c   : >> { %2642 = vrot.lane.b32.xlu1 %v7579_v6, %s5453_s17  ;;  %2579 = vrot.lane.b32.xlu0 %v7386_v25, %s5452_s16  ;;  %v7605_v25 = vld [vmem:[%s6729_s15 + $0xe0] sm:$0xff] }
 0x46d   : >> { %2702 = vrot.lane.b32.xlu2 %v7585_v31, %s5454_s18 }
 0x46e   : >> { %v2370_v10 = vpop.permute.xlu1 %2369  ;;  %v2368_v35 = vpop.permute.xlu0 %2367  ;;  %v7620_v15 = vld [vmem:[#allocation4 + $0xc8] sm:$0xff] }
 0x46f   : >> { %2398 = vst.msk [vmem:[#allocation4 + $0x18] sm:$0xff] %vm1728_vm1, %v2370_v10  ;;  %v2432_v27 = vpop.permute.xlu2 %2431  ;;  %v7599_v47 = vld [vmem:[#allocation4 + $0xb0] sm:$0xff]  ;;  %v7644_v43 = vpop.f32.mrf.mxu0 }
 0x470   : >> { %2397 = vst.msk [vmem:[#allocation4] sm:$0xff] %vm1728_vm1, %v2368_v35  ;;  %2258 = vmatmul.f32.gmra.mxu1 %v7469_v5  ;;  %v7623_v5 = vld [vmem:[%s6729_s15 + $0xe1] sm:$0xff] }
 0x471   : >> { %2459 = vst.msk [vmem:[#allocation4 + $0x30] sm:$0xff] %vm1790_vm3, %v2432_v27  ;;  %5099 = vmatmul.msk.f32.gmra.mxu0 %vm1635_vm0, %v2758_v7  ;;  %v5109_v27 = vld [vmem:[%s6729_s15 + $0xb0] sm:$0xff]  ;;  %v9480_v7 = vld [vmem:[#allocation63_spill] sm:$0xff] }
 0x472   : >> { %2544 = vst.msk [vmem:[#allocation4 + $0xb0] sm:$0xff] %vm1635_vm0, %v7602_v19 }
 0x473   : >> { %2545 = vst.msk [vmem:[#allocation4 + $0xc8] sm:$0xff] %vm1635_vm0, %v7623_v5 }
 0x474   : >> { %2443 = vrot.lane.b32.xlu1 %v9477_v56, %s5453_s17  ;;  %2383 = vrot.lane.b32.xlu0 %v9478_v44, %s5452_s16  ;;  %v5168_v56 = vld [vmem:[%s6729_s15 + $0x140] sm:$0xff]  ;;  %v5137_v44 = vld [vmem:[%s6729_s15 + $0xf0] sm:$0xff] }
 0x475   : >> { %2503 = vrot.lane.b32.xlu2 %v7605_v25, %s5454_s18 }
 0x476   : >> { %v2488_v51 = vpop.permute.xlu1 %2487  ;;  %v2428_v23 = vpop.permute.xlu0 %2427 }
 0x477   : >> { %2457 = vst.msk [vmem:[#allocation4] sm:$0xff] %vm1790_vm3, %v2428_v23  ;;  %v2633_v18 = vpop.permute.xlu2 %2632 }
 0x478   : >> { %2517 = vst.msk [vmem:[#allocation4] sm:$0xff] %vm1855_vm5, %v2488_v51  ;;  %2261 = vmatmul.f32.gmra.mxu1 %v2103_v21  ;;  %v5190_v21 = vld [vmem:[%s6729_s15 + $0x152] sm:$0xff] }
 0x479   : >> { %3412 = vst.msk [vmem:[#allocation4 + $0x40] sm:$0xff] %vm1635_vm0, %v5190_v21 }
 0x47c   : >> { %2644 = vrot.lane.b32.xlu1 %v7618_v54, %s5453_s17  ;;  %2581 = vrot.lane.b32.xlu0 %v7429_v58, %s5452_s16 }
 0x47d   : >> { %2704 = vrot.lane.b32.xlu2 %v7627_v14, %s5454_s18 }
 0x47e   : >> { %v2490_v59 = vpop.permute.xlu1 %2489  ;;  %v2430_v46 = vpop.permute.xlu0 %2429 }
 0x47f   : >> { %2458 = vst.msk [vmem:[#allocation4 + $0x18] sm:$0xff] %vm1790_vm3, %v2430_v46  ;;  %v2750_v36 = vld [vmem:[#allocation4] sm:$0xff]  ;;  %v2494_v1 = vpop.permute.xlu2 %2493  ;;  %v5076_v46 = vld [vmem:[%s6729_s15 + $0x138] sm:$0x3f] }
 0x480   : >> { %2518 = vst.msk [vmem:[#allocation4 + $0x18] sm:$0xff] %vm1855_vm5, %v2490_v59  ;;  %2264 = vmatmul.f32.gmra.mxu1 %v2106_v50  ;;  %2862 = vmatmul.f32.vlgmr.msrb.gmra.mxu3 %v2750_v36  ;;  %v9479_v50 = vld [vmem:[#allocation62_spill] sm:$0xff]  ;;  %v5178_v36 = vld [vmem:[%s6729_s15 + $0x141] sm:$0xff] }
 0x481   : >> { %v5110_v59 = vld [vmem:[%s6729_s15 + $0xb8] sm:$0xff] }
 0x484   : >> { %2445 = vrot.lane.b32.xlu1 %v5035_v4, %s5453_s17  ;;  %2385 = vrot.lane.b32.xlu0 %v5025_v28, %s5452_s16  ;;  %v5086_v4 = vld [vmem:[%s6729_s15 + $0x139] sm:$0x3f] }
 0x485   : >> { %2505 = vrot.lane.b32.xlu2 %v5045_v55, %s5454_s18  ;;  %v5191_v28 = vld [vmem:[%s6729_s15 + $0x15a] sm:$0xff] }
 0x486   : >> { %v2691_v58 = vpop.permute.xlu1 %2690  ;;  %v2631_v16 = vpop.permute.xlu0 %2630 }
 0x487   : >> { %2660 = vst.msk [vmem:[#allocation4 + $0x8] sm:$0xff] %vm1790_vm3, %v2631_v16  ;;  %v2753_v62 = vld [vmem:[#allocation4 + $0x18] sm:$0xff]  ;;  %v2695_v49 = vpop.permute.xlu2 %2694 }
 0x488   : >> { %2720 = vst.msk [vmem:[#allocation4 + $0x8] sm:$0xff] %vm1855_vm5, %v2691_v58  ;;  %2267 = vmatmul.f32.gmra.mxu1 %v7511_v22  ;;  %2865 = vmatmul.f32.gmra.mxu3 %v2753_v62  ;;  %v5128_v62 = vld [vmem:[%s6729_s15 + $0xaa] sm:$0xff] }
 0x489   : >> { %3008 = vst.msk [vmem:[#allocation4 + $0x18] sm:$0xff] %vm1635_vm0, %v5108_v61  ;;  %v5118_v61 = vld [vmem:[%s6729_s15 + $0xa9] sm:$0xff] }
 0x48c   : >> { %2646 = vrot.lane.b32.xlu1 %v7655_v13, %s5453_s17  ;;  %2583 = vrot.lane.b32.xlu0 %v7472_v53, %s5452_s16  ;;  %v5117_v53 = vld [vmem:[%s6729_s15 + $0xa1] sm:$0xff] }
 0x48d   : >> { %v7667_v22 = vpop.f32.mrf.mxu0  ;;  %2706 = vrot.lane.b32.xlu2 %v7660_v37, %s5454_s18 }
 0x48e   : >> { %v2570_v40 = vpop.permute.xlu1 %2569  ;;  %v2492_v0 = vpop.permute.xlu0 %2491 }
 0x48f   : >> { %2598 = vst.msk [vmem:[#allocation4 + $0x20] sm:$0xff] %vm1728_vm1, %v2570_v40  ;;  %v2751_v3 = vld [vmem:[#allocation4 + $0x8] sm:$0xff]  ;;  %v7672_v2 = vpop.permute.xlu2 %2495  ;;  %v5111_v40 = vld [vmem:[%s6729_s15 + $0xc0] sm:$0xff] }
 0x490   : >> { %2519 = vst.msk [vmem:[#allocation4 + $0x30] sm:$0xff] %vm1855_vm5, %v2492_v0  ;;  %2270 = vmatmul.f32.gmra.mxu1 %v7599_v47  ;;  %2909 = vmatmul.f32.vlgmr.msrb.gmra.mxu2 %v2751_v3  ;;  %v2764_v3 = vld [vmem:[#allocation4 + $0x70] sm:$0xff] }
 0x491   : >> { %2661 = vst.msk [vmem:[#allocation4 + $0x20] sm:$0xff] %vm1790_vm3, %v2633_v18 }
 0x494   : >> { %3237 = vrot.lane.b32.xlu1 %v7372_v17, %s5452_s16  ;;  %3037 = vrot.lane.b32.xlu0 %v5117_v53, %s5452_s16  ;;  %v5065_v17 = vld [vmem:[%s6729_s15 + $0xea] sm:$0x3f]  ;;  %v5192_v53 = vld [vmem:[%s6729_s15 + $0x162] sm:$0xff] }
 0x495   : >> { %v7684_v29 = vpop.f32.mrf.mxu0  ;;  %3097 = vrot.lane.b32.xlu2 %v9479_v50, %s5453_s17  ;;  %3414 = vst.msk [vmem:[#allocation4 + $0x70] sm:$0xff] %vm1635_vm0, %v5192_v53 }
 0x496   : >> { %v2434_v63 = vpop.permute.xlu1 %2433  ;;  %v2693_v10 = vpop.permute.xlu0 %2692 }
 0x497   : >> { %2460 = vst.msk [vmem:[#allocation4 + $0x48] sm:$0xff] %vm1790_vm3, %v2434_v63  ;;  %v2756_v35 = vld [vmem:[#allocation4 + $0x30] sm:$0xff]  ;;  %v2697_v47 = vpop.permute.xlu2 %2696 }
 0x498   : >> { %2721 = vst.msk [vmem:[#allocation4 + $0x20] sm:$0xff] %vm1855_vm5, %v2693_v10  ;;  %2273 = vmatmul.f32.gmra.mxu1 %v7620_v15  ;;  %2868 = vmatmul.f32.gmra.mxu3 %v2756_v35 }
 0x499   : >> { %2520 = vst.msk [vmem:[#allocation4 + $0x48] sm:$0xff] %vm1855_vm5, %v2494_v1  ;;  %v2761_v1 = vld [vmem:[#allocation4 + $0x58] sm:$0xff] }
 0x49a   : >> { %3009 = vst.msk [vmem:[#allocation4 + $0x30] sm:$0xff] %vm1635_vm0, %v5109_v27  ;;  %5100 = vmatmul.msk.f32.gmra.mxu0 %vm1635_vm0, %v2761_v1  ;;  %v5119_v27 = vld [vmem:[%s6729_s15 + $0xb1] sm:$0xff] }
 0x49b   : >> { %3413 = vst.msk [vmem:[#allocation4 + $0x58] sm:$0xff] %vm1635_vm0, %v5191_v28 }
 0x49c   : >> { %2585 = vrot.lane.b32.xlu1 %v5065_v17, %s5452_s16  ;;  %3300 = vrot.lane.b32.xlu0 %v5168_v56, %s5453_s17 }
 0x49d   : >> { %v7699_v51 = vpop.f32.mrf.mxu0  ;;  %3157 = vrot.lane.b32.xlu2 %v5137_v44, %s5454_s18 }
 0x49e   : >> { %v2635_v23 = vpop.permute.xlu1 %2634  ;;  %v2572_v18 = vpop.permute.xlu0 %2571 }
 0x49f   : >> { %2599 = vst.msk [vmem:[#allocation4 + $0x38] sm:$0xff] %vm1728_vm1, %v2572_v18  ;;  %v2754_v34 = vld [vmem:[#allocation4 + $0x20] sm:$0xff]  ;;  %v2498_v15 = vpop.permute.xlu2 %2497 }
 0x4a0   : >> { %2662 = vst.msk [vmem:[#allocation4 + $0x38] sm:$0xff] %vm1790_vm3, %v2635_v23  ;;  %2276 = vmatmul.f32.gmra.mxu1 %v7525_v48  ;;  %2912 = vmatmul.f32.gmra.mxu2 %v2754_v34  ;;  %v2759_v60 = vld [vmem:[#allocation4 + $0x48] sm:$0xff] }
 0x4a1   : >> { %2722 = vst.msk [vmem:[#allocation4 + $0x38] sm:$0xff] %vm1855_vm5, %v2695_v49  ;;  %2871 = vmatmul.f32.gmra.mxu3 %v2759_v60  ;;  %v5170_v60 = vld [vmem:[%s6729_s15 + $0x150] sm:$0xff] }
 0x4a2   : >> { %3208 = vst.msk [vmem:[#allocation4 + $0x20] sm:$0xff] %vm1635_vm0, %v7310_v41  ;;  %5101 = vmatmul.msk.f32.gmra.mxu0 %vm1635_vm0, %v2764_v3 }
 0x4a3   : >> { %3010 = vst.msk [vmem:[#allocation4 + $0x48] sm:$0xff] %vm1635_vm0, %v5110_v59  ;;  %v2767_v59 = vld [vmem:[#allocation4 + $0x88] sm:$0xff] }
 0x4a4   : >> { %2648 = vrot.lane.b32.xlu1 %v5076_v46, %s5453_s17  ;;  %3360 = vrot.lane.b32.xlu0 %v5178_v36, %s5454_s18  ;;  %v5180_v46 = vld [vmem:[%s6729_s15 + $0x151] sm:$0xff] }
 0x4a5   : >> { %v7718_v48 = vpop.f32.mrf.mxu0  ;;  %2708 = vrot.lane.b32.xlu2 %v5086_v4, %s5454_s18 }
 0x4a6   : >> { %v2436_v55 = vpop.permute.xlu1 %2435  ;;  %v2376_v41 = vpop.permute.xlu0 %2375 }
 0x4a7   : >> { %2401 = vst.msk [vmem:[#allocation4 + $0x60] sm:$0xff] %vm1728_vm1, %v2376_v41  ;;  %v2699_v58 = vpop.permute.xlu2 %2698  ;;  %v5120_v41 = vld [vmem:[%s6729_s15 + $0xb9] sm:$0xff] }
 0x4a8   : >> { %2461 = vst.msk [vmem:[#allocation4 + $0x60] sm:$0xff] %vm1790_vm3, %v2436_v55  ;;  %v2757_v16 = vld [vmem:[#allocation4 + $0x38] sm:$0xff] }
 0x4a9   : >> { %2521 = vst.msk [vmem:[#allocation4 + $0x60] sm:$0xff] %vm1855_vm5, %v7672_v2  ;;  %2915 = vmatmul.f32.gmra.mxu2 %v2757_v16  ;;  %v5179_v2 = vld [vmem:[%s6729_s15 + $0x149] sm:$0xff] }
 0x4aa   : >> { %3209 = vst.msk [vmem:[#allocation4 + $0x38] sm:$0xff] %vm1635_vm0, %v7332_v57  ;;  %5102 = vmatmul.msk.f32.gmra.mxu0 %vm1635_vm0, %v2767_v59  ;;  %v3461_v59 = vld [vmem:[%s9230_s3 + $0x58] sm:$0xff] }
 0x4ac   : >> { %3239 = vrot.lane.b32.xlu1 %v7376_v45, %s5452_s16  ;;  %3039 = vrot.lane.b32.xlu0 %v5118_v61, %s5452_s16  ;;  %v5169_v45 = vld [vmem:[%s6729_s15 + $0x148] sm:$0xff] }
 0x4ad   : >> { %v7732_v49 = vpop.f32.mrf.mxu0  ;;  %3099 = vrot.lane.b32.xlu2 %v5128_v62, %s5453_s17 }
 0x4ae   : >> { %v2637_v11 = vpop.permute.xlu1 %2636  ;;  %v2574_v24 = vpop.permute.xlu0 %2573 }
 0x4af   : >> { %2600 = vst.msk [vmem:[#allocation4 + $0x50] sm:$0xff] %vm1728_vm1, %v2574_v24  ;;  %v2500_v0 = vpop.permute.xlu2 %2499  ;;  %v5113_v24 = vld [vmem:[%s6729_s15 + $0xd0] sm:$0xff] }
 0x4b0   : >> { %2663 = vst.msk [vmem:[#allocation4 + $0x50] sm:$0xff] %vm1790_vm3, %v2637_v11  ;;  %v2762_v57 = vld [vmem:[#allocation4 + $0x60] sm:$0xff] }
 0x4b1   : >> { %2723 = vst.msk [vmem:[#allocation4 + $0x50] sm:$0xff] %vm1855_vm5, %v2697_v47  ;;  %2874 = vmatmul.f32.gmra.mxu3 %v2762_v57  ;;  %v5129_v47 = vld [vmem:[%s6729_s15 + $0xb2] sm:$0xff] }
 0x4b2   : >> { %3011 = vst.msk [vmem:[#allocation4 + $0x60] sm:$0xff] %vm1635_vm0, %v5111_v40  ;;  %v5171_v40 = vld [vmem:[%s6729_s15 + $0x158] sm:$0xff] }
 0x4b3   : >> { %v5194_v57 = vld [vmem:[%s6729_s15 + $0x172] sm:$0xff] }
 0x4b4   : >> { %3159 = vrot.lane.b32.xlu1 %v9480_v7, %s5454_s18  ;;  %3302 = vrot.lane.b32.xlu0 %v5169_v45, %s5453_s17 }
 0x4b5   : >> { %v7748_v21 = vpop.f32.mrf.mxu0  ;;  %3362 = vrot.lane.b32.xlu2 %v5179_v2, %s5454_s18 }
 0x4b6   : >> { %v2438_v50 = vpop.permute.xlu1 %2437  ;;  %v2378_v63 = vpop.permute.xlu0 %2377 }
 0x4b7   : >> { %2402 = vst.msk [vmem:[#allocation4 + $0x78] sm:$0xff] %vm1728_vm1, %v2378_v63  ;;  %v2701_v10 = vpop.permute.xlu2 %2700  ;;  %v5121_v63 = vld [vmem:[%s6729_s15 + $0xc1] sm:$0xff] }
 0x4b8   : >> { %2462 = vst.msk [vmem:[#allocation4 + $0x78] sm:$0xff] %vm1790_vm3, %v2438_v50  ;;  %v2760_v35 = vld [vmem:[#allocation4 + $0x50] sm:$0xff] }
 0x4b9   : >> { %2522 = vst.msk [vmem:[#allocation4 + $0x78] sm:$0xff] %vm1855_vm5, %v2498_v15  ;;  %2918 = vmatmul.f32.gmra.mxu2 %v2760_v35  ;;  %v5112_v15 = vld [vmem:[%s6729_s15 + $0xc8] sm:$0xff]  ;;  %v2300_v45 = vpop.f32.mrf.mxu2 }
 0x4ba   : >> { %3210 = vst.msk [vmem:[#allocation4 + $0x50] sm:$0xff] %vm1635_vm0, %v7389_v8  ;;  %v5131_v35 = vld [vmem:[%s6729_s15 + $0xc2] sm:$0xff] }
 0x4bc   : >> { %3241 = vrot.lane.b32.xlu1 %v7423_v12, %s5452_s16  ;;  %3041 = vrot.lane.b32.xlu0 %v5119_v27, %s5452_s16  ;;  %v5139_v12 = vld [vmem:[%s6729_s15 + $0x100] sm:$0xff]  ;;  %v3464_v27 = vld [vmem:[%s9230_s3 + $0x70] sm:$0xff] }
 0x4bd   : >> { %v7761_v17 = vpop.f32.mrf.mxu0  ;;  %3101 = vrot.lane.b32.xlu2 %v5129_v47, %s5453_s17 }
 0x4be   : >> { %v2250_v56 = vpop.f32.mrf.mxu1  ;;  %v2639_v44 = vpop.permute.xlu1 %2638 }
 0x4bf   : >> { %v2251_v23 = vadd.f32 %v2250_v56, %v7644_v43  ;;  %v2576_v18 = vpop.permute.xlu0 %2575  ;;  %v7765_v8 = vpop.permute.xlu2 %2501  ;;  %v5193_v43 = vld [vmem:[%s6729_s15 + $0x16a] sm:$0xff] }
 0x4c0   : >> { %2601 = vst.msk [vmem:[#allocation4 + $0x68] sm:$0xff] %vm1728_vm1, %v2576_v18  ;;  %v2765_v34 = vld [vmem:[#allocation4 + $0x78] sm:$0xff]  ;;  %v3463_v56 = vld [vmem:[%s9230_s3 + $0x68] sm:$0xff] }
 0x4c1   : >> { %2664 = vst.msk [vmem:[#allocation4 + $0x68] sm:$0xff] %vm1790_vm3, %v2639_v44  ;;  %2877 = vmatmul.f32.gmra.mxu3 %v2765_v34 }
 0x4c2   : >> { %2724 = vst.msk [vmem:[#allocation4 + $0x68] sm:$0xff] %vm1855_vm5, %v2699_v58  ;;  %v5130_v58 = vld [vmem:[%s6729_s15 + $0xba] sm:$0xff] }
 0x4c3   : >> { %3012 = vst.msk [vmem:[#allocation4 + $0x78] sm:$0xff] %vm1635_vm0, %v5112_v15  ;;  %v5172_v15 = vld [vmem:[%s6729_s15 + $0x160] sm:$0xff] }
 0x4c4   : >> { %3161 = vrot.lane.b32.xlu1 %v5139_v12, %s5454_s18  ;;  %3304 = vrot.lane.b32.xlu0 %v5170_v60, %s5453_s17  ;;  %3415 = vst.msk [vmem:[#allocation4 + $0x88] sm:$0xff] %vm1635_vm0, %v5193_v43  ;;  %v2773_v60 = vld [vmem:[#allocation4 + $0xb8] sm:$0xff] }
 0x4c5   : >> { %v7780_v36 = vpop.f32.mrf.mxu0  ;;  %3364 = vrot.lane.b32.xlu2 %v5180_v46, %s5454_s18  ;;  %v5182_v46 = vld [vmem:[%s6729_s15 + $0x161] sm:$0xff] }
 0x4c6   : >> { %v2440_v1 = vpop.permute.xlu1 %2439  ;;  %v5195_v43 = vld [vmem:[%s6729_s15 + $0x17a] sm:$0xff] }
 0x4c7   : >> { %v2380_v4 = vpop.permute.xlu0 %2379  ;;  %v7783_v28 = vpop.permute.xlu2 %2702  ;;  %3417 = vst.msk [vmem:[#allocation4 + $0xb8] sm:$0xff] %vm1635_vm0, %v5195_v43  ;;  %v3471_v43 = vld [vmem:[%s9230_s3 + $0xa8] sm:$0xff] }
 0x4c8   : >> { %2403 = vst.msk [vmem:[#allocation4 + $0x90] sm:$0xff] %vm1728_vm1, %v2380_v4  ;;  %v3460_v4 = vld [vmem:[%s9230_s3 + $0x50] sm:$0xff] }
 0x4c9   : >> { %2463 = vst.msk [vmem:[#allocation4 + $0x90] sm:$0xff] %vm1790_vm3, %v2440_v1  ;;  %v2763_v55 = vld [vmem:[#allocation4 + $0x68] sm:$0xff]  ;;  %v3480_v1 = vld [vmem:[%s9230_s3 + $0xf0] sm:$0xff] }
 0x4ca   : >> { %2523 = vst.msk [vmem:[#allocation4 + $0x90] sm:$0xff] %vm1855_vm5, %v2500_v0  ;;  %2921 = vmatmul.f32.gmra.mxu2 %v2763_v55  ;;  %v2770_v0 = vld [vmem:[#allocation4 + $0xa0] sm:$0xff] }
 0x4cb   : >> { %3211 = vst.msk [vmem:[#allocation4 + $0x68] sm:$0xff] %vm1635_vm0, %v7458_v42  ;;  %5103 = vmatmul.msk.f32.gmra.mxu0 %vm1635_vm0, %v2770_v0  ;;  %v3477_v0 = vld [vmem:[%s9230_s3 + $0xd8] sm:$0xff] }
 0x4cc   : >> { %3243 = vrot.lane.b32.xlu1 %v7461_v39, %s5452_s16  ;;  %3043 = vrot.lane.b32.xlu0 %v5120_v41, %s5452_s16  ;;  %v5181_v39 = vld [vmem:[%s6729_s15 + $0x159] sm:$0xff]  ;;  %3416 = vst.msk [vmem:[#allocation4 + $0xa0] sm:$0xff] %vm1635_vm0, %v5194_v57 }
 0x4cd   : >> { %v7795_v16 = vpop.f32.mrf.mxu0  ;;  %3103 = vrot.lane.b32.xlu2 %v5130_v58, %s5453_s17 }
 0x4ce   : >> { %v2641_v61 = vpop.permute.xlu1 %2640 }
 0x4cf   : >> { %v2578_v62 = vpop.permute.xlu0 %2577  ;;  %v7798_v11 = vpop.permute.xlu2 %2503 }
 0x4d0   : >> { %2602 = vst.msk [vmem:[#allocation4 + $0x80] sm:$0xff] %vm1728_vm1, %v2578_v62 }
 0x4d1   : >> { %2665 = vst.msk [vmem:[#allocation4 + $0x80] sm:$0xff] %vm1790_vm3, %v2641_v61  ;;  %v2768_v42 = vld [vmem:[#allocation4 + $0x90] sm:$0xff]  ;;  %v5107_v61 = vld [vmem:[%s6729_s15 + $0xa0] sm:$0xff] }
 0x4d2   : >> { %2725 = vst.msk [vmem:[#allocation4 + $0x80] sm:$0xff] %vm1855_vm5, %v2701_v10  ;;  %2880 = vmatmul.f32.gmra.mxu3 %v2768_v42  ;;  %v3465_v10 = vld [vmem:[%s9230_s3 + $0x78] sm:$0xff]  ;;  %v3458_v42 = vld [vmem:[%s9230_s3 + $0x40] sm:$0xff] }
 0x4d3   : >> { %3013 = vst.msk [vmem:[#allocation4 + $0x90] sm:$0xff] %vm1635_vm0, %v5113_v24  ;;  %3516 = vmatpush.msrb.mxu1 %v3465_v10  ;;  %5104 = vmatmul.msk.f32.gmra.mxu0 %vm1635_vm0, %v2773_v60 }
 0x4d4   : >> { %3163 = vrot.lane.b32.xlu1 %v7380_v9, %s5454_s18  ;;  %3306 = vrot.lane.b32.xlu0 %v5171_v40, %s5453_s17  ;;  %3007 = vst.msk [vmem:[#allocation4] sm:$0xff] %vm1635_vm0, %v5107_v61  ;;  %v5122_v40 = vld [vmem:[%s6729_s15 + $0xc9] sm:$0xff]  ;;  %v5133_v61 = vld [vmem:[%s6729_s15 + $0xd2] sm:$0xff] }
 0x4d5   : >> { %v2297_v3 = vpop.f32.mrf.mxu0  ;;  %3366 = vrot.lane.b32.xlu2 %v5181_v39, %s5454_s18  ;;  %3517 = vmatpush.msrb.mxu1 %v3464_v27  ;;  %v3474_v27 = vld [vmem:[%s9230_s3 + $0xc0] sm:$0xff] }
 0x4d6   : >> { %v7814_v2 = vadd.f32 %v2297_v3, %v2251_v23  ;;  %v2442_v53 = vpop.permute.xlu1 %2441  ;;  %v2303_v23 = vpop.f32.mrf.mxu2  ;;  %v3457_v3 = vld [vmem:[%s9230_s3 + $0x38] sm:$0xff] }
 0x4d7   : >> { %v2382_v7 = vpop.permute.xlu0 %2381  ;;  %v7816_v50 = vpop.permute.xlu2 %2704  ;;  %3518 = vmatpush.msrb.mxu1 %v3463_v56 }
 0x4d8   : >> { %2404 = vst.msk [vmem:[#allocation4 + $0xa8] sm:$0xff] %vm1728_vm1, %v2382_v7  ;;  %v5132_v7 = vld [vmem:[%s6729_s15 + $0xca] sm:$0xff] }
 0x4d9   : >> { %2464 = vst.msk [vmem:[#allocation4 + $0xa8] sm:$0xff] %vm1790_vm3, %v2442_v53  ;;  %v2766_v9 = vld [vmem:[#allocation4 + $0x80] sm:$0xff]  ;;  %v7903_v53 = vpop.f32.mrf.mxu3 }
 0x4da   : >> { %2524 = vst.msk [vmem:[#allocation4 + $0xa8] sm:$0xff] %vm1855_vm5, %v7765_v8  ;;  %2924 = vmatmul.f32.gmra.mxu2 %v2766_v9  ;;  %v3476_v9 = vld [vmem:[%s9230_s3 + $0xd0] sm:$0xff] }
 0x4db   : >> { %3212 = vst.msk [vmem:[#allocation4 + $0x80] sm:$0xff] %vm1635_vm0, %v7539_v33 }
 0x4dc   : >> { %3245 = vrot.lane.b32.xlu1 %v7494_v32, %s5452_s16  ;;  %3045 = vrot.lane.b32.xlu0 %v5121_v63, %s5452_s16  ;;  %v3462_v32 = vld [vmem:[%s9230_s3 + $0x60] sm:$0xff]  ;;  %v3456_v63 = vld [vmem:[%s9230_s3 + $0x30] sm:$0xff] }
 0x4dd   : >> { %v2253_v47 = vpop.f32.mrf.mxu1  ;;  %3105 = vrot.lane.b32.xlu2 %v5131_v35, %s5453_s17  ;;  %3519 = vmatpush.msrb.mxu1 %v3462_v32  ;;  %v5173_v32 = vld [vmem:[%s6729_s15 + $0x168] sm:$0xff] }
 0x4de   : >> { %v2254_v33 = vadd.f32 %v2253_v47, %v7667_v22  ;;  %v2643_v44 = vpop.permute.xlu1 %2642  ;;  %v3481_v22 = vld [vmem:[%s9230_s3 + $0xf8] sm:$0xff]  ;;  %v2306_v57 = vpop.f32.mrf.mxu2 }
 0x4df   : >> { %v2580_v18 = vpop.permute.xlu0 %2579  ;;  %v7840_v8 = vpop.permute.xlu2 %2505  ;;  %3563 = vmatpush.msra.mxu3 %v3481_v22  ;;  %3520 = vmatpush.msrb.mxu1 %v3461_v59  ;;  %v5183_v22 = vld [vmem:[%s6729_s15 + $0x169] sm:$0xff] }
 0x4e0   : >> { %v7845_v34 = vadd.f32 %v2300_v45, %v2254_v33  ;;  %2603 = vst.msk [vmem:[#allocation4 + $0x98] sm:$0xff] %vm1728_vm1, %v2580_v18  ;;  %v5147_v45 = vld [vmem:[%s6729_s15 + $0xf1] sm:$0xff]  ;;  %v3454_v33 = vld [vmem:[%s9230_s3 + $0x20] sm:$0xff] }
 0x4e1   : >> { %2666 = vst.msk [vmem:[#allocation4 + $0x98] sm:$0xff] %vm1790_vm3, %v2643_v44  ;;  %v2771_v12 = vld [vmem:[#allocation4 + $0xa8] sm:$0xff]  ;;  %3564 = vmatpush.msra.mxu3 %v3480_v1  ;;  %3521 = vmatpush.msrb.mxu1 %v3460_v4  ;;  %v3472_v59 = vld [vmem:[%s9230_s3 + $0xb0] sm:$0xff] }
 0x4e2   : >> { %2726 = vst.msk [vmem:[#allocation4 + $0x98] sm:$0xff] %vm1855_vm5, %v7783_v28  ;;  %2883 = vmatmul.f32.gmra.mxu3 %v2771_v12  ;;  %v3479_v28 = vld [vmem:[%s9230_s3 + $0xe8] sm:$0xff]  ;;  %v3453_v12 = vld [vmem:[%s9230_s3 + $0x18] sm:$0xff] }
 0x4e3   : >> { %3014 = vst.msk [vmem:[#allocation4 + $0xa8] sm:$0xff] %vm1635_vm0, %v7565_v52  ;;  %v3459_v52 = vld [vmem:[%s9230_s3 + $0x48] sm:$0xff]  ;;  %3565 = vmatpush.msra.mxu3 %v3479_v28 }
 0x4e4   : >> { %3165 = vrot.lane.b32.xlu1 %v7454_v30, %s5454_s18  ;;  %3308 = vrot.lane.b32.xlu0 %v5172_v15, %s5453_s17  ;;  %v3478_v30 = vld [vmem:[%s9230_s3 + $0xe0] sm:$0xff]  ;;  %3207 = vst.msk [vmem:[#allocation4 + $0x8] sm:$0xff] %vm1635_vm0, %v5147_v45  ;;  %v3451_v4 = vld [vmem:[%s9230_s3 + $0x8] sm:$0xff] }
 0x4e5   : >> { %v2256_v55 = vpop.f32.mrf.mxu1  ;;  %3368 = vrot.lane.b32.xlu2 %v5182_v46, %s5454_s18  ;;  %3522 = vmatpush.msrb.mxu1 %v3459_v52  ;;  %v5196_v15 = vld [vmem:[%s6729_s15 + $0x182] sm:$0xff]  ;;  %v7957_v46 = vpop.f32.mrf.mxu3 }
 0x4e6   : >> { %v2257_v41 = vadd.f32 %v2256_v55, %v7684_v29  ;;  %v2444_v58 = vpop.permute.xlu1 %2443  ;;  %3566 = vmatpush.msra.mxu3 %v3478_v30  ;;  %v2309_v60 = vpop.f32.mrf.mxu2  ;;  %v3470_v52 = vld [vmem:[%s9230_s3 + $0xa0] sm:$0xff]  ;;  %v5123_v30 = vld [vmem:[%s6729_s15 + $0xd1] sm:$0xff] }
 0x4e7   : >> { %v2384_v62 = vpop.permute.xlu0 %2383  ;;  %v7885_v24 = vpop.permute.xlu2 %2706  ;;  %3523 = vmatpush.msrb.mxu1 %v3458_v42 }
 0x4e8   : >> { %v7891_v29 = vadd.f32 %v2303_v23, %v2257_v41  ;;  %2405 = vst.msk [vmem:[#allocation4 + $0xc0] sm:$0xff] %vm1728_vm1, %v2384_v62  ;;  %3567 = vmatpush.msra.mxu3 %v3477_v0  ;;  %v2776_v23 = vld [vmem:[#allocation4 + $0xd0] sm:$0xff]  ;;  %v3469_v62 = vld [vmem:[%s9230_s3 + $0x98] sm:$0xff] }
 0x4e9   : >> { %2465 = vst.msk [vmem:[#allocation4 + $0xc0] sm:$0xff] %vm1790_vm3, %v2444_v58  ;;  %v2769_v39 = vld [vmem:[#allocation4 + $0x98] sm:$0xff]  ;;  %3524 = vmatpush.msrb.mxu1 %v3457_v3  ;;  %5105 = vmatmul.msk.f32.gmra.mxu0 %vm1635_vm0, %v2776_v23 }
 0x4ea   : >> { %2525 = vst.msk [vmem:[#allocation4 + $0xc0] sm:$0xff] %vm1855_vm5, %v7798_v11  ;;  %2927 = vmatmul.f32.gmra.mxu2 %v2769_v39  ;;  %v3475_v11 = vld [vmem:[%s9230_s3 + $0xc8] sm:$0xff]  ;;  %3568 = vmatpush.msra.mxu3 %v3476_v9  ;;  %v5174_v9 = vld [vmem:[%s6729_s15 + $0x170] sm:$0xff]  ;;  %v5134_v23 = vld [vmem:[%s6729_s15 + $0xda] sm:$0xff] }
 0x4eb   : >> { %3213 = vst.msk [vmem:[#allocation4 + $0x98] sm:$0xff] %vm1635_vm0, %v7585_v31  ;;  %v3455_v31 = vld [vmem:[%s9230_s3 + $0x28] sm:$0xff]  ;;  %3525 = vmatpush.msrb.mxu1 %v3456_v63  ;;  %v5184_v63 = vld [vmem:[%s6729_s15 + $0x171] sm:$0xff] }
 0x4ec   : >> { %3247 = vrot.lane.b32.xlu1 %v7534_v26, %s5452_s16  ;;  %3047 = vrot.lane.b32.xlu0 %v5122_v40, %s5452_s16  ;;  %3418 = vst.msk [vmem:[#allocation4 + $0xd0] sm:$0xff] %vm1635_vm0, %v5196_v15  ;;  %v3483_v15 = vld [vmem:[%s9230_s3 + $0x108] sm:$0xff] }
 0x4ed   : >> { %v2259_v10 = vpop.f32.mrf.mxu1  ;;  %3107 = vrot.lane.b32.xlu2 %v5132_v7, %s5453_s17  ;;  %3569 = vmatpush.msra.mxu3 %v3475_v11  ;;  %v8002_v0 = vpop.f32.mrf.mxu3  ;;  %v3466_v7 = vld [vmem:[%s9230_s3 + $0x80] sm:$0xff]  ;;  %v3485_v11 = vld [vmem:[%s9230_s3 + $0x118] sm:$0xff] }
 0x4ee   : >> { %v2260_v35 = vadd.f32 %v2259_v10, %v7699_v51  ;;  %v2645_v26 = vpop.permute.xlu1 %2644  ;;  %3526 = vmatpush.msrb.mxu1 %v3455_v31  ;;  %v3473_v51 = vld [vmem:[%s9230_s3 + $0xb8] sm:$0xff]  ;;  %v2312_v40 = vpop.f32.mrf.mxu2  ;;  %5307 = vmatpush.msra.mxu2 %v3485_v11 }
 0x4ef   : >> { %v2582_v47 = vpop.permute.xlu0 %2581  ;;  %v7931_v56 = vpop.permute.xlu2 %3097  ;;  %3570 = vmatpush.msra.mxu3 %v3474_v27  ;;  %v2779_v27 = vld [vmem:[#allocation4 + $0xe8] sm:$0x3f] }
 0x4f0   : >> { %v7936_v44 = vadd.f32 %v2306_v57, %v2260_v35  ;;  %2604 = vst.msk [vmem:[#allocation4 + $0xb0] sm:$0xff] %vm1728_vm1, %v2582_v47  ;;  %3527 = vmatpush.msrb.mxu1 %v3454_v33  ;;  %v5164_v33 = vld [vmem:[%s6729_s15 + $0x12a] sm:$0xff] }
 0x4f1   : >> { %2667 = vst.msk [vmem:[#allocation4 + $0xb0] sm:$0xff] %vm1790_vm3, %v2645_v26  ;;  %v2774_v18 = vld [vmem:[#allocation4 + $0xc0] sm:$0xff]  ;;  %3571 = vmatpush.msra.mxu3 %v3473_v51  ;;  %5106 = vmatmul.msk.f32.gmra.mxu0 %vm1635_vm0, %v2779_v27  ;;  %v5197_v51 = vld [vmem:[%s6729_s15 + $0x18a] sm:$0x3f] }
 0x4f2   : >> { %2727 = vst.msk [vmem:[#allocation4 + $0xb0] sm:$0xff] %vm1855_vm5, %v7816_v50  ;;  %2886 = vmatmul.f32.gmra.mxu3 %v2774_v18  ;;  %v3452_v50 = vld [vmem:[%s9230_s3 + $0x10] sm:$0xff]  ;;  %3528 = vmatpush.msrb.mxu1 %v3453_v12  ;;  %v3482_v12 = vld [vmem:[%s9230_s3 + $0x100] sm:$0xff] }
 0x4f3   : >> { %3015 = vst.msk [vmem:[#allocation4 + $0xc0] sm:$0xff] %vm1635_vm0, %v7605_v25  ;;  %3572 = vmatpush.msra.mxu3 %v3472_v59 }
 0x4f4   : >> { %3167 = vrot.lane.b32.xlu1 %v7530_v38, %s5454_s18  ;;  %3310 = vrot.lane.b32.xlu0 %v5173_v32, %s5453_s17  ;;  %3419 = vst.msk [vmem:[#allocation4 + $0xe8] sm:$0x3f] %vm1676_vm2, %v5197_v51 }
 0x4f5   : >> { %v2262_v25 = vpop.f32.mrf.mxu1  ;;  %3370 = vrot.lane.b32.xlu2 %v5183_v22, %s5454_s18  ;;  %3529 = vmatpush.msrb.mxu1 %v3452_v50  ;;  %v8036_v47 = vpop.f32.mrf.mxu3  ;;  %v5185_v50 = vld [vmem:[%s6729_s15 + $0x179] sm:$0xff] }
 0x4f6   : >> { %v2263_v1 = vadd.f32 %v2262_v25, %v7718_v48  ;;  %v2446_v38 = vpop.permute.xlu1 %2445  ;;  %3573 = vmatpush.msra.mxu3 %v3471_v43  ;;  %v3450_v48 = vld [vmem:[%s9230_s3] sm:$0xff] }
 0x4f7   : >> { %v2386_v28 = vpop.permute.xlu0 %2385  ;;  %v7974_v55 = vpop.permute.xlu2 %3157  ;;  %3530 = vmatpush.msrb.mxu1 %v3451_v4 }
 0x4f8   : >> { %v7979_v41 = vadd.f32 %v2309_v60, %v2263_v1  ;;  %2406 = vst.msk [vmem:[#allocation4 + $0xd8] sm:$0x3f] %vm1738_vm4, %v2386_v28  ;;  %3574 = vmatpush.msra.mxu3 %v3470_v52  ;;  %v2957_v60 = vpop.f32.mrf.mxu0 }
 0x4f9   : >> { %2466 = vst.msk [vmem:[#allocation4 + $0xd8] sm:$0x3f] %vm1800_vm6, %v2446_v38  ;;  %v2772_v58 = vld [vmem:[#allocation4 + $0xb0] sm:$0xff]  ;;  %3531 = vmatpush.msrb.mxu1 %v3450_v48 }
 0x4fa   : >> { %2526 = vst.msk [vmem:[#allocation4 + $0xd8] sm:$0x3f] %vm1865_vm7, %v7840_v8  ;;  %2930 = vmatmul.f32.gmra.mxu2 %v2772_v58  ;;  %v3468_v8 = vld [vmem:[%s9230_s3 + $0x90] sm:$0xff]  ;;  %3575 = vmatpush.msra.mxu3 %v3469_v62  ;;  %v5135_v58 = vld [vmem:[%s6729_s15 + $0xe2] sm:$0xff] }
 0x4fb   : >> { %3214 = vst.msk [vmem:[#allocation4 + $0xb0] sm:$0xff] %vm1635_vm0, %v7627_v14  ;;  %3622 = vmatpush.msra.mxu1 %v3485_v11  ;;  %v5126_v11 = vld [vmem:[%s6729_s15 + $0xe9] sm:$0x3f] }
 0x4fc   : >> { %3249 = vrot.lane.b32.xlu1 %v7420_v20, %s5452_s16  ;;  %3049 = vrot.lane.b32.xlu0 %v5123_v30, %s5452_s16  ;;  %v3467_v20 = vld [vmem:[%s9230_s3 + $0x88] sm:$0xff] }
 0x4fd   : >> { %v2265_v42 = vpop.f32.mrf.mxu1  ;;  %3109 = vrot.lane.b32.xlu2 %v5133_v61, %s5453_s17  ;;  %3576 = vmatpush.msra.mxu3 %v3468_v8 }
 0x4fe   : >> { %v2266_v14 = vadd.f32 %v2265_v42, %v7732_v49  ;;  %v2647_v39 = vpop.permute.xlu1 %2646 }
 0x4ff   : >> { %v2584_v57 = vpop.permute.xlu0 %2583  ;;  %v8008_v45 = vpop.permute.xlu2 %2708  ;;  %3577 = vmatpush.msra.mxu3 %v3467_v20 }
 0x500   : >> { %v8010_v3 = vadd.f32 %v2312_v40, %v2266_v14  ;;  %2605 = vst.msk [vmem:[#allocation4 + $0xc8] sm:$0xff] %vm1728_vm1, %v2584_v57  ;;  %v5176_v40 = vld [vmem:[%s6729_s15 + $0x180] sm:$0xff] }
 0x501   : >> { %2668 = vst.msk [vmem:[#allocation4 + $0xc8] sm:$0xff] %vm1790_vm3, %v2647_v39  ;;  %v2777_v49 = vld [vmem:[#allocation4 + $0xd8] sm:$0x3f]  ;;  %3578 = vmatpush.msra.mxu3 %v3466_v7  ;;  %v5186_v14 = vld [vmem:[%s6729_s15 + $0x181] sm:$0xff] }
 0x502   : >> { %2728 = vst.msk [vmem:[#allocation4 + $0xc8] sm:$0xff] %vm1855_vm5, %v7885_v24  ;;  %2889 = vmatmul.f32.gmra.mxu3 %v2777_v49  ;;  %v3425_v7 = vld [vmem:[#allocation4 + $0x28] sm:$0xff] }
 0x503   : >> { %v2863_v25 = vpop.f32.mrf.mxu3 }
 0x504   : >> { %3169 = vrot.lane.b32.xlu1 %v7579_v6, %s5454_s18  ;;  %3312 = vrot.lane.b32.xlu0 %v5174_v9, %s5453_s17 }
 0x505   : >> { %v2268_v10 = vpop.f32.mrf.mxu1  ;;  %3372 = vrot.lane.b32.xlu2 %v5184_v63, %s5454_s18 }
 0x506   : >> { %v2269_v24 = vadd.f32 %v2268_v10, %v7748_v21  ;;  %v3238_v31 = vpop.permute.xlu1 %3237  ;;  %v5136_v10 = vld [vmem:[%s6729_s15 + $0xea] sm:$0x3f] }
 0x507   : >> { %3267 = vst.msk [vmem:[#allocation4 + $0x8] sm:$0xff] %vm1728_vm1, %v3238_v31  ;;  %v3038_v6 = vpop.permute.xlu0 %3037  ;;  %v8030_v35 = vpop.permute.xlu2 %3099 }
 0x508   : >> { %v8033_v26 = vadd.f32 %v7903_v53, %v2269_v24  ;;  %3067 = vst.msk [vmem:[#allocation4] sm:$0xff] %vm1728_vm1, %v3038_v6 }
 0x509   : >> { %3127 = vst.msk [vmem:[#allocation4] sm:$0xff] %vm1790_vm3, %v7931_v56  ;;  %v2775_v21 = vld [vmem:[#allocation4 + $0xc8] sm:$0xff]  ;;  %v3484_v56 = vld [vmem:[%s9230_s3 + $0x110] sm:$0xff] }
 0x50a   : >> { %2933 = vmatmul.f32.gmra.mxu2 %v2775_v21  ;;  %3215 = vst.msk [vmem:[#allocation4 + $0xc8] sm:$0xff] %vm1635_vm0, %v7660_v37  ;;  %3623 = vmatpush.msra.mxu1 %v3484_v56 }
 0x50b   : >> { %3187 = vst.msk [vmem:[#allocation4] sm:$0xff] %vm1855_vm5, %v7974_v55  ;;  %5308 = vmatpush.msra.mxu2 %v3484_v56 }
 0x50c   : >> { %3251 = vrot.lane.b32.xlu1 %v5164_v33, %s5452_s16  ;;  %3051 = vrot.lane.b32.xlu0 %v7602_v19, %s5452_s16  ;;  %v3428_v33 = vld [vmem:[#allocation4 + $0x40] sm:$0xff] }
 0x50d   : >> { %v2271_v53 = vpop.f32.mrf.mxu1  ;;  %3111 = vrot.lane.b32.xlu2 %v5134_v23, %s5453_s17  ;;  %5309 = vmatpush.msra.mxu2 %v3483_v15 }
 0x50e   : >> { %v2272_v37 = vadd.f32 %v2271_v53, %v7761_v17  ;;  %v2586_v18 = vpop.permute.xlu1 %2585  ;;  %3624 = vmatpush.msra.mxu1 %v3483_v15  ;;  %v5175_v17 = vld [vmem:[%s6729_s15 + $0x178] sm:$0xff] }
 0x50f   : >> { %2606 = vst.msk [vmem:[#allocation4 + $0xe0] sm:$0x3f] %vm1738_vm4, %v2586_v18  ;;  %v3301_v32 = vpop.permute.xlu0 %3300  ;;  %v8058_v19 = vpop.permute.xlu2 %3362  ;;  %5310 = vmatpush.msra.mxu2 %v3482_v12  ;;  %v5146_v18 = vld [vmem:[%s6729_s15 + $0x138] sm:$0x3f] }
 0x510   : >> { %v8064_v22 = vadd.f32 %v7957_v46, %v2272_v37  ;;  %3330 = vst.msk [vmem:[#allocation4 + $0x8] sm:$0xff] %vm1790_vm3, %v3301_v32  ;;  %3625 = vmatpush.msra.mxu1 %v3482_v12  ;;  %v5177_v32 = vld [vmem:[%s6729_s15 + $0x188] sm:$0x3f] }
 0x512   : >> { %v3420_v59 = vld [vmem:[#allocation4] sm:$0xff] }
 0x513   : >> { %v2910_v43 = vpop.f32.mrf.mxu2  ;;  %3532 = vmatmul.f32.vlgmr.msrb.gmra.mxu1 %v3420_v59 }
 0x514   : >> { %v2911_v46 = vadd.f32 %v2910_v43, %v2863_v25  ;;  %3171 = vrot.lane.b32.xlu1 %v7618_v54, %s5454_s18  ;;  %3314 = vrot.lane.b32.xlu0 %v5175_v17, %s5453_s17  ;;  %v3431_v17 = vld [vmem:[#allocation4 + $0x58] sm:$0xff] }
 0x515   : >> { %v2274_v1 = vpop.f32.mrf.mxu1  ;;  %3374 = vrot.lane.b32.xlu2 %v5185_v50, %s5454_s18 }
 0x516   : >> { %v2275_v38 = vadd.f32 %v2274_v1, %v7780_v36  ;;  %v8077_v4 = vadd.f32 %v2957_v60, %v2911_v46  ;;  %v2649_v28 = vpop.permute.xlu1 %2648  ;;  %v5165_v36 = vld [vmem:[%s6729_s15 + $0x132] sm:$0xff] }
 0x517   : >> { %2669 = vst.msk [vmem:[#allocation4 + $0xe0] sm:$0x3f] %vm1800_vm6, %v2649_v28  ;;  %v3361_v55 = vpop.permute.xlu0 %3360  ;;  %v3102_v52 = vpop.permute.xlu2 %3101 }
 0x518   : >> { %v8081_v48 = vadd.f32 %v8002_v0, %v2275_v38  ;;  %v2987_v54 = vmax.f32 %v7814_v2, %v8077_v4  ;;  %3390 = vst.msk [vmem:[#allocation4 + $0x8] sm:$0xff] %vm1855_vm5, %v3361_v55  ;;  %v2960_v0 = vpop.f32.mrf.mxu0 }
 0x519   : >> { %2729 = vst.msk [vmem:[#allocation4 + $0xe0] sm:$0x3f] %vm1865_vm7, %v8008_v45 }
 0x51c   : >> { %3253 = vrot.lane.b32.xlu1 %v5165_v36, %s5452_s16  ;;  %3053 = vrot.lane.b32.xlu0 %v7623_v5, %s5452_s16  ;;  %v2866_v5 = vpop.f32.mrf.mxu3 }
 0x51d   : >> { %3113 = vrot.lane.b32.xlu2 %v5135_v58, %s5453_s17  ;;  %v3434_v58 = vld [vmem:[#allocation4 + $0x70] sm:$0xff] }
 0x51e   : >> { %v3240_v30 = vpop.permute.xlu1 %3239 }
 0x51f   : >> { %3268 = vst.msk [vmem:[#allocation4 + $0x20] sm:$0xff] %vm1728_vm1, %v3240_v30  ;;  %v3040_v61 = vpop.permute.xlu0 %3039  ;;  %v3421_v62 = vld [vmem:[#allocation4 + $0x8] sm:$0xff]  ;;  %v3365_v8 = vpop.permute.xlu2 %3364 }
 0x520   : >> { %3068 = vst.msk [vmem:[#allocation4 + $0x18] sm:$0xff] %vm1728_vm1, %v3040_v61  ;;  %3579 = vmatmul.f32.vlgmr.msra.gmra.mxu3 %v3421_v62  ;;  %v2778_v42 = vld [vmem:[#allocation4 + $0xe0] sm:$0x3f]  ;;  %v2963_v24 = vpop.f32.mrf.mxu0 }
 0x521   : >> { %3128 = vst.msk [vmem:[#allocation4 + $0x18] sm:$0xff] %vm1790_vm3, %v8030_v35  ;;  %2936 = vmatmul.f32.gmra.mxu2 %v2778_v42 }
 0x523   : >> { %v2913_v39 = vpop.f32.mrf.mxu2 }
 0x524   : >> { %v2914_v20 = vadd.f32 %v2913_v39, %v2866_v5  ;;  %3173 = vrot.lane.b32.xlu1 %v7655_v13, %s5454_s18  ;;  %3316 = vrot.lane.b32.xlu0 %v5176_v40, %s5453_s17  ;;  %v5166_v13 = vld [vmem:[%s6729_s15 + $0x13a] sm:$0x3f]  ;;  %v2869_v31 = vpop.f32.mrf.mxu3 }
 0x525   : >> { %3376 = vrot.lane.b32.xlu2 %v5186_v14, %s5454_s18 }
 0x526   : >> { %v8104_v57 = vadd.f32 %v2960_v0, %v2914_v20  ;;  %v3160_v45 = vpop.permute.xlu1 %3159 }
 0x527   : >> { %3188 = vst.msk [vmem:[#allocation4 + $0x18] sm:$0xff] %vm1855_vm5, %v3160_v45  ;;  %v3303_v49 = vpop.permute.xlu0 %3302  ;;  %v3104_v9 = vpop.permute.xlu2 %3103 }
 0x528   : >> { %v2988_v63 = vmax.f32 %v7845_v34, %v8104_v57  ;;  %3331 = vst.msk [vmem:[#allocation4 + $0x20] sm:$0xff] %vm1790_vm3, %v3303_v49  ;;  %v2966_v59 = vpop.f32.mrf.mxu0  ;;  %v3437_v49 = vld [vmem:[#allocation4 + $0x88] sm:$0xff] }
 0x529   : >> { %3391 = vst.msk [vmem:[#allocation4 + $0x20] sm:$0xff] %vm1855_vm5, %v8058_v19  ;;  %5199 = vmatmul.msk.f32.vlgmr.msra.gmra.mxu2 %vm1635_vm0, %v3425_v7  ;;  %v5187_v19 = vld [vmem:[%s6729_s15 + $0x189] sm:$0x3f] }
 0x52c   : >> { %3255 = vrot.lane.b32.xlu1 %v5166_v13, %s5452_s16  ;;  %3055 = vrot.lane.b32.xlu0 %v5126_v11, %s5452_s16  ;;  %v2916_v6 = vpop.f32.mrf.mxu2  ;;  %v2872_v50 = vpop.f32.mrf.mxu3 }
 0x52d   : >> { %v2917_v35 = vadd.f32 %v2916_v6, %v2869_v31  ;;  %3115 = vrot.lane.b32.xlu2 %v5136_v10, %s5453_s17 }
 0x52e   : >> { %v3242_v27 = vpop.permute.xlu1 %3241  ;;  %v3423_v21 = vld [vmem:[#allocation4 + $0x18] sm:$0xff] }
 0x52f   : >> { %3269 = vst.msk [vmem:[#allocation4 + $0x38] sm:$0xff] %vm1728_vm1, %v3242_v27  ;;  %v3042_v51 = vpop.permute.xlu0 %3041  ;;  %v8120_v23 = vadd.f32 %v2963_v24, %v2917_v35  ;;  %3535 = vmatmul.f32.gmra.mxu1 %v3423_v21  ;;  %v3367_v53 = vpop.permute.xlu2 %3366 }
 0x530   : >> { %3069 = vst.msk [vmem:[#allocation4 + $0x30] sm:$0xff] %vm1728_vm1, %v3042_v51  ;;  %v3424_v56 = vld [vmem:[#allocation4 + $0x20] sm:$0xff]  ;;  %v2969_v62 = vpop.f32.mrf.mxu0 }
 0x531   : >> { %v2989_v37 = vmax.f32 %v7891_v29, %v8120_v23  ;;  %3129 = vst.msk [vmem:[#allocation4 + $0x30] sm:$0xff] %vm1790_vm3, %v3102_v52  ;;  %3582 = vmatmul.f32.gmra.mxu3 %v3424_v56  ;;  %5200 = vmatmul.msk.f32.gmra.mxu2 %vm1635_vm0, %v3428_v33 }
 0x534   : >> { %3175 = vrot.lane.b32.xlu1 %v5146_v18, %s5454_s18  ;;  %3318 = vrot.lane.b32.xlu0 %v5177_v32, %s5453_s17  ;;  %v2875_v42 = vpop.f32.mrf.mxu3  ;;  %v3440_v18 = vld [vmem:[#allocation4 + $0xa0] sm:$0xff] }
 0x535   : >> { %3378 = vrot.lane.b32.xlu2 %v5187_v19, %s5454_s18 }
 0x536   : >> { %v3162_v15 = vpop.permute.xlu1 %3161 }
 0x537   : >> { %3189 = vst.msk [vmem:[#allocation4 + $0x30] sm:$0xff] %vm1855_vm5, %v3162_v15  ;;  %v3305_v12 = vpop.permute.xlu0 %3304  ;;  %v3106_v60 = vpop.permute.xlu2 %3105 }
 0x538   : >> { %3332 = vst.msk [vmem:[#allocation4 + $0x38] sm:$0xff] %vm1790_vm3, %v3305_v12  ;;  %v2972_v10 = vpop.f32.mrf.mxu0 }
 0x539   : >> { %3392 = vst.msk [vmem:[#allocation4 + $0x38] sm:$0xff] %vm1855_vm5, %v3365_v8  ;;  %5201 = vmatmul.msk.f32.gmra.mxu2 %vm1635_vm0, %v3431_v17 }
 0x53c   : >> { %v2919_v25 = vpop.f32.mrf.mxu2 }
 0x53d   : >> { %v2920_v43 = vadd.f32 %v2919_v25, %v2872_v50 }
 0x53e   : >> { %v3244_v46 = vpop.permute.xlu1 %3243  ;;  %v3426_v1 = vld [vmem:[#allocation4 + $0x30] sm:$0xff] }
 0x53f   : >> { %3270 = vst.msk [vmem:[#allocation4 + $0x50] sm:$0xff] %vm1728_vm1, %v3244_v46  ;;  %v3044_v38 = vpop.permute.xlu0 %3043  ;;  %v8138_v28 = vadd.f32 %v2966_v59, %v2920_v43  ;;  %3538 = vmatmul.f32.gmra.mxu1 %v3426_v1  ;;  %v3369_v36 = vpop.permute.xlu2 %3368 }
 0x540   : >> { %3070 = vst.msk [vmem:[#allocation4 + $0x48] sm:$0xff] %vm1728_vm1, %v3044_v38  ;;  %v3427_v55 = vld [vmem:[#allocation4 + $0x38] sm:$0xff] }
 0x541   : >> { %v2990_v52 = vmax.f32 %v7936_v44, %v8138_v28  ;;  %3130 = vst.msk [vmem:[#allocation4 + $0x48] sm:$0xff] %vm1790_vm3, %v3104_v9  ;;  %3585 = vmatmul.f32.gmra.mxu3 %v3427_v55  ;;  %5202 = vmatmul.msk.f32.gmra.mxu2 %vm1635_vm0, %v3434_v58  ;;  %v3443_v55 = vld [vmem:[#allocation4 + $0xb8] sm:$0xff] }
 0x544   : >> { %v2878_v24 = vpop.f32.mrf.mxu3 }
 0x546   : >> { %v3164_v30 = vpop.permute.xlu1 %3163 }
 0x547   : >> { %3190 = vst.msk [vmem:[#allocation4 + $0x48] sm:$0xff] %vm1855_vm5, %v3164_v30  ;;  %v3307_v61 = vpop.permute.xlu0 %3306  ;;  %v3108_v8 = vpop.permute.xlu2 %3107 }
 0x548   : >> { %3333 = vst.msk [vmem:[#allocation4 + $0x50] sm:$0xff] %vm1790_vm3, %v3307_v61  ;;  %v2975_v17 = vpop.f32.mrf.mxu0  ;;  %v5156_v61 = vld [vmem:[%s6729_s15 + $0x139] sm:$0x3f] }
 0x549   : >> { %3393 = vst.msk [vmem:[#allocation4 + $0x50] sm:$0xff] %vm1855_vm5, %v3367_v53  ;;  %5203 = vmatmul.msk.f32.gmra.mxu2 %vm1635_vm0, %v3437_v49 }
 0x54a   : >> { %3216 = vst.msk [vmem:[#allocation4 + $0xe0] sm:$0x3f] %vm1676_vm2, %v5156_v61 }
 0x54d   : >> { %v2922_v40 = vpop.f32.mrf.mxu2 }
 0x54e   : >> { %v2923_v0 = vadd.f32 %v2922_v40, %v2875_v42  ;;  %v3246_v14 = vpop.permute.xlu1 %3245  ;;  %v3429_v5 = vld [vmem:[#allocation4 + $0x48] sm:$0xff] }
 0x54f   : >> { %3271 = vst.msk [vmem:[#allocation4 + $0x68] sm:$0xff] %vm1728_vm1, %v3246_v14  ;;  %v3046_v39 = vpop.permute.xlu0 %3045  ;;  %3541 = vmatmul.f32.gmra.mxu1 %v3429_v5  ;;  %v3371_v13 = vpop.permute.xlu2 %3370 }
 0x550   : >> { %3071 = vst.msk [vmem:[#allocation4 + $0x60] sm:$0xff] %vm1728_vm1, %v3046_v39  ;;  %v8150_v20 = vadd.f32 %v2969_v62, %v2923_v0  ;;  %v3430_v45 = vld [vmem:[#allocation4 + $0x50] sm:$0xff]  ;;  %v2978_v62 = vpop.f32.mrf.mxu0 }
 0x551   : >> { %3131 = vst.msk [vmem:[#allocation4 + $0x60] sm:$0xff] %vm1790_vm3, %v3106_v60  ;;  %3588 = vmatmul.f32.gmra.mxu3 %v3430_v45  ;;  %5204 = vmatmul.msk.f32.gmra.mxu2 %vm1635_vm0, %v3440_v18  ;;  %v5116_v45 = vld [vmem:[%s6729_s15 + $0xe8] sm:$0x3f]  ;;  %s5208_s15 = sshll.u32 %s5436_s13, 5  ;;  %s1652_s13 = sadd.s32 1, %s5436_s13  }
 0x552   : >> { %v2991_v7 = vmax.f32 %v7979_v41, %v8150_v20  ;;  %3016 = vst.msk [vmem:[#allocation4 + $0xd8] sm:$0x3f] %vm1676_vm2, %v5116_v45  ;;  %s8246_s16 = scalar_lea.vmem [#allocation3], %s5208_s15  ;;  %p1649_p5 = scmp.ge.s32.totalorder %s1652_s13, 26  }
 0x553   : > { %s8283_s19 = smov (%p1649_p5), 0  }
 0x555   : >> { %v2881_v12 = vpop.f32.mrf.mxu3 }
 0x556   : >> { %v3166_v9 = vpop.permute.xlu1 %3165 }
 0x557   : >> { %3191 = vst.msk [vmem:[#allocation4 + $0x60] sm:$0xff] %vm1855_vm5, %v3166_v9  ;;  %v3309_v11 = vpop.permute.xlu0 %3308  ;;  %v3110_v53 = vpop.permute.xlu2 %3109 }
 0x558   : >> { %3334 = vst.msk [vmem:[#allocation4 + $0x68] sm:$0xff] %vm1790_vm3, %v3309_v11  ;;  %v3446_v11 = vld [vmem:[#allocation4 + $0xd0] sm:$0xff] }
 0x559   : >> { %3394 = vst.msk [vmem:[#allocation4 + $0x68] sm:$0xff] %vm1855_vm5, %v3369_v36  ;;  %5205 = vmatmul.msk.f32.gmra.mxu2 %vm1635_vm0, %v3443_v55 }
 0x55d   : >> { %v2925_v31 = vpop.f32.mrf.mxu2 }
 0x55e   : >> { %v2926_v6 = vadd.f32 %v2925_v31, %v2878_v24  ;;  %v3248_v35 = vpop.permute.xlu1 %3247  ;;  %v3432_v27 = vld [vmem:[#allocation4 + $0x60] sm:$0xff] }
 0x55f   : >> { %3272 = vst.msk [vmem:[#allocation4 + $0x80] sm:$0xff] %vm1728_vm1, %v3248_v35  ;;  %v3048_v21 = vpop.permute.xlu0 %3047  ;;  %3544 = vmatmul.f32.gmra.mxu1 %v3432_v27  ;;  %v3373_v15 = vpop.permute.xlu2 %3372 }
 0x560   : >> { %3072 = vst.msk [vmem:[#allocation4 + $0x78] sm:$0xff] %vm1728_vm1, %v3048_v21  ;;  %v8161_v33 = vadd.f32 %v2972_v10, %v2926_v6  ;;  %v3433_v51 = vld [vmem:[#allocation4 + $0x68] sm:$0xff] }
 0x561   : >> { %3132 = vst.msk [vmem:[#allocation4 + $0x78] sm:$0xff] %vm1790_vm3, %v3108_v8  ;;  %3591 = vmatmul.f32.gmra.mxu3 %v3433_v51  ;;  %5206 = vmatmul.msk.f32.gmra.mxu2 %vm1635_vm0, %v3446_v11 }
 0x562   : >> { %v2992_v56 = vmax.f32 %v8010_v3, %v8161_v33 }
 0x565   : >> { %v2884_v8 = vpop.f32.mrf.mxu3 }
 0x566   : >> { %v3168_v32 = vpop.permute.xlu1 %3167  ;;  %v2981_v6 = vpop.f32.mrf.mxu0 }
 0x567   : >> { %3192 = vst.msk [vmem:[#allocation4 + $0x78] sm:$0xff] %vm1855_vm5, %v3168_v32  ;;  %v3311_v19 = vpop.permute.xlu0 %3310  ;;  %v3112_v36 = vpop.permute.xlu2 %3111 }
 0x568   : >> { %3335 = vst.msk [vmem:[#allocation4 + $0x80] sm:$0xff] %vm1790_vm3, %v3311_v19 }
 0x569   : >> { %3395 = vst.msk [vmem:[#allocation4 + $0x80] sm:$0xff] %vm1855_vm5, %v3371_v13 }
 0x56d   : >> { %v2928_v60 = vpop.f32.mrf.mxu2 }
 0x56e   : >> { %v2929_v59 = vadd.f32 %v2928_v60, %v2881_v12  ;;  %v3250_v50 = vpop.permute.xlu1 %3249  ;;  %v3435_v25 = vld [vmem:[#allocation4 + $0x78] sm:$0xff] }
 0x56f   : >> { %3273 = vst.msk [vmem:[#allocation4 + $0x98] sm:$0xff] %vm1728_vm1, %v3250_v50  ;;  %v3050_v43 = vpop.permute.xlu0 %3049  ;;  %3547 = vmatmul.f32.gmra.mxu1 %v3435_v25  ;;  %v3375_v5 = vpop.permute.xlu2 %3374 }
 0x570   : >> { %3073 = vst.msk [vmem:[#allocation4 + $0x90] sm:$0xff] %vm1728_vm1, %v3050_v43  ;;  %v8172_v46 = vadd.f32 %v2975_v17, %v2929_v59  ;;  %v3436_v1 = vld [vmem:[#allocation4 + $0x80] sm:$0xff]  ;;  %v2277_v50 = vpop.f32.mrf.mxu1 }
 0x571   : >> { %3133 = vst.msk [vmem:[#allocation4 + $0x90] sm:$0xff] %vm1790_vm3, %v3110_v53  ;;  %3594 = vmatmul.f32.gmra.mxu3 %v3436_v1 }
 0x572   : >> { %v2993_v38 = vmax.f32 %v8033_v26, %v8172_v46 }
 0x575   : >> { %v2887_v35 = vpop.f32.mrf.mxu3 }
 0x576   : >> { %v3170_v58 = vpop.permute.xlu1 %3169 }
 0x577   : >> { %3193 = vst.msk [vmem:[#allocation4 + $0x90] sm:$0xff] %vm1855_vm5, %v3170_v58  ;;  %v3313_v30 = vpop.permute.xlu0 %3312  ;;  %v3114_v31 = vpop.permute.xlu2 %3113 }
 0x578   : >> { %3336 = vst.msk [vmem:[#allocation4 + $0x98] sm:$0xff] %vm1790_vm3, %v3313_v30  ;;  %v2278_v30 = vadd.f32 %v2277_v50, %v7795_v16 }
 0x579   : >> { %3396 = vst.msk [vmem:[#allocation4 + $0x98] sm:$0xff] %vm1855_vm5, %v3373_v15  ;;  %v3449_v15 = vld [vmem:[#allocation4 + $0xe8] sm:$0x3f] }
 0x57a   : >> { %5207 = vmatmul.msk.f32.gmra.mxu2 %vm1635_vm0, %v3449_v15 }
 0x57d   : >> { %v2931_v42 = vpop.f32.mrf.mxu2 }
 0x57e   : >> { %v2932_v40 = vadd.f32 %v2931_v42, %v2884_v8  ;;  %v3252_v0 = vpop.permute.xlu1 %3251  ;;  %v3438_v14 = vld [vmem:[#allocation4 + $0x90] sm:$0xff] }
 0x57f   : >> { %3274 = vst.msk [vmem:[#allocation4 + $0xb0] sm:$0xff] %vm1728_vm1, %v3252_v0  ;;  %v3052_v39 = vpop.permute.xlu0 %3051  ;;  %3550 = vmatmul.f32.gmra.mxu1 %v3438_v14  ;;  %v3377_v12 = vpop.permute.xlu2 %3376 }
 0x580   : >> { %3074 = vst.msk [vmem:[#allocation4 + $0xa8] sm:$0xff] %vm1728_vm1, %v3052_v39  ;;  %v8186_v49 = vadd.f32 %v2978_v62, %v2932_v40  ;;  %v3439_v9 = vld [vmem:[#allocation4 + $0x98] sm:$0xff]  ;;  %v2984_v40 = vpop.f32.mrf.mxu0  ;;  %v8214_v39 = vadd.f32 %v8036_v47, %v2278_v30 }
 0x581   : >> { %3134 = vst.msk [vmem:[#allocation4 + $0xa8] sm:$0xff] %vm1790_vm3, %v3112_v36  ;;  %3597 = vmatmul.f32.gmra.mxu3 %v3439_v9 }
 0x582   : >> { %v2994_v13 = vmax.f32 %v8064_v22, %v8186_v49 }
 0x585   : >> { %v2890_v25 = vpop.f32.mrf.mxu3 }
 0x586   : >> { %v3172_v10 = vpop.permute.xlu1 %3171 }
 0x587   : >> { %3194 = vst.msk [vmem:[#allocation4 + $0xa8] sm:$0xff] %vm1855_vm5, %v3172_v10  ;;  %v3315_v24 = vpop.permute.xlu0 %3314  ;;  %v3116_v43 = vpop.permute.xlu2 %3115 }
 0x588   : >> { %3337 = vst.msk [vmem:[#allocation4 + $0xb0] sm:$0xff] %vm1790_vm3, %v3315_v24 }
 0x589   : >> { %3397 = vst.msk [vmem:[#allocation4 + $0xb0] sm:$0xff] %vm1855_vm5, %v3375_v5 }
 0x58d   : >> { %v2934_v27 = vpop.f32.mrf.mxu2 }
 0x58e   : >> { %v2935_v21 = vadd.f32 %v2934_v27, %v2887_v35  ;;  %v3254_v51 = vpop.permute.xlu1 %3253  ;;  %v3441_v53 = vld [vmem:[#allocation4 + $0xa8] sm:$0xff] }
 0x58f   : >> { %3275 = vst.msk [vmem:[#allocation4 + $0xc8] sm:$0xff] %vm1728_vm1, %v3254_v51  ;;  %v3054_v18 = vpop.permute.xlu0 %3053  ;;  %3553 = vmatmul.f32.gmra.mxu1 %v3441_v53  ;;  %v3379_v5 = vpop.permute.xlu2 %3378 }
 0x590   : >> { %3075 = vst.msk [vmem:[#allocation4 + $0xc0] sm:$0xff] %vm1728_vm1, %v3054_v18  ;;  %v8198_v32 = vadd.f32 %v2981_v6, %v2935_v21  ;;  %v3442_v19 = vld [vmem:[#allocation4 + $0xb0] sm:$0xff]  ;;  %v3533_v61 = vpop.f32.mrf.mxu1 }
 0x591   : >> { %3135 = vst.msk [vmem:[#allocation4 + $0xc0] sm:$0xff] %vm1790_vm3, %v3114_v31  ;;  %3600 = vmatmul.f32.gmra.mxu3 %v3442_v19  ;;  %v3422_v6 = vld [vmem:[#allocation4 + $0x10] sm:$0xff] }
 0x592   : >> { %v2995_v17 = vmax.f32 %v8081_v48, %v8198_v32 }
 0x596   : >> { %v3174_v60 = vpop.permute.xlu1 %3173 }
 0x597   : >> { %3195 = vst.msk [vmem:[#allocation4 + $0xc0] sm:$0xff] %vm1855_vm5, %v3174_v60  ;;  %v3317_v59 = vpop.permute.xlu0 %3316 }
 0x598   : >> { %3338 = vst.msk [vmem:[#allocation4 + $0xc8] sm:$0xff] %vm1790_vm3, %v3317_v59 }
 0x599   : >> { %3398 = vst.msk [vmem:[#allocation4 + $0xc8] sm:$0xff] %vm1855_vm5, %v3377_v12 }
 0x59e   : >> { %v3256_v1 = vpop.permute.xlu1 %3255  ;;  %v3444_v55 = vld [vmem:[#allocation4 + $0xc0] sm:$0xff] }
 0x59f   : >> { %3276 = vst.msk [vmem:[#allocation4 + $0xe0] sm:$0x3f] %vm1738_vm4, %v3256_v1  ;;  %v3056_v36 = vpop.permute.xlu0 %3055  ;;  %3556 = vmatmul.f32.gmra.mxu1 %v3444_v55 }
 0x5a0   : >> { %3076 = vst.msk [vmem:[#allocation4 + $0xd8] sm:$0x3f] %vm1738_vm4, %v3056_v36  ;;  %v3445_v58 = vld [vmem:[#allocation4 + $0xc8] sm:$0xff] }
 0x5a1   : >> { %3136 = vst.msk [vmem:[#allocation4 + $0xd8] sm:$0x3f] %vm1800_vm6, %v3116_v43  ;;  %3603 = vmatmul.f32.gmra.mxu3 %v3445_v58 }
 0x5a3   : >> { %v3580_v62 = vpop.f32.mrf.mxu3 }
 0x5a4   : >> { %v8211_v8 = vadd.f32 %v3580_v62, %v3533_v61  ;;  %v2937_v42 = vpop.f32.mrf.mxu2 }
 0x5a5   : >> { %v2938_v0 = vadd.f32 %v2937_v42, %v2890_v25  ;;  %v9481_v42 = vld [vmem:[#allocation8_spill] sm:$0xff] }
 0x5a6   : >> { %v3176_v14 = vpop.permute.xlu1 %3175 }
 0x5a7   : >> { %v8216_v45 = vadd.f32 %v2984_v40, %v2938_v0  ;;  %3196 = vst.msk [vmem:[#allocation4 + $0xd8] sm:$0x3f] %vm1865_vm7, %v3176_v14  ;;  %v3319_v9 = vpop.permute.xlu0 %3318  ;;  %v3711_v40 = vperm.slane %v9481_v42, 0 }
 0x5a8   : >> { %3339 = vst.msk [vmem:[#allocation4 + $0xe0] sm:$0x3f] %vm1800_vm6, %v3319_v9 }
 0x5a9   : >> { %v2996_v16 = vmax.f32 %v8214_v39, %v8216_v45  ;;  %3399 = vst.msk [vmem:[#allocation4 + $0xe0] sm:$0x3f] %vm1865_vm7, %v3379_v5  ;;  %v8281_v39 = vld [vmem:[%s9233_s6] sm:$0x1] (%p1649_p5) }
 0x5aa   : > { %9482 = vst [vmem:[#allocation64_spill] sm:$0xff] (%p1649_p5), %v8281_v39 }
 0x5ac   : >> { %v3536_v24 = vpop.f32.mrf.mxu1  ;;  %v3630_v47 = vpop.f32.mrf.mxu2 }
 0x5ae   : >> { %v3447_v11 = vld [vmem:[#allocation4 + $0xd8] sm:$0x3f] }
 0x5af   : >> { %3559 = vmatmul.f32.gmra.mxu1 %v3447_v11 }
 0x5b0   : >> { %v3448_v10 = vld [vmem:[#allocation4 + $0xe0] sm:$0x3f] }
 0x5b1   : >> { %3606 = vmatmul.f32.gmra.mxu3 %v3448_v10 }
 0x5b4   : >> { %v3583_v31 = vpop.f32.mrf.mxu3  ;;  %v3633_v51 = vpop.f32.mrf.mxu2 }
 0x5b5   : >> { %v3584_v35 = vadd.f32 %v3583_v31, %v3536_v24 }
 0x5b7   : >> { %v3631_v27 = vadd.f32 %v3630_v47, %v3584_v35  ;;  %5198 = vmatmul.msk.f32.vlgmr.msra.gmra.mxu1 %vm1635_vm0, %v3422_v6 }
 0x5b9   : >> { %v3658_v21 = vmax.f32 %v2988_v63, %v3631_v27 }
 0x5bb   : >> { %3669 = vst.msk [vmem:[#allocation6 + $0x8] sm:$0xff] %vm3667_vm8, %v3658_v21 }
 0x5bc   : >> { %v3539_v53 = vpop.f32.mrf.mxu1  ;;  %v3636_v60 = vpop.f32.mrf.mxu2 }
 0x5c4   : >> { %v3586_v18 = vpop.f32.mrf.mxu3  ;;  %v3639_v57 = vpop.f32.mrf.mxu2 }
 0x5c5   : >> { %v3587_v19 = vadd.f32 %v3586_v18, %v3539_v53 }
 0x5c7   : >> { %v3634_v15 = vadd.f32 %v3633_v51, %v3587_v19 }
 0x5c9   : >> { %v3659_v12 = vmax.f32 %v2989_v37, %v3634_v15 }
 0x5cb   : >> { %3670 = vst.msk [vmem:[#allocation6 + $0x10] sm:$0xff] %vm3667_vm8, %v3659_v12 }
 0x5cc   : >> { %v3542_v59 = vpop.f32.mrf.mxu1  ;;  %v3642_v37 = vpop.f32.mrf.mxu2 }
 0x5d4   : >> { %v3589_v50 = vpop.f32.mrf.mxu3  ;;  %v3645_v41 = vpop.f32.mrf.mxu2 }
 0x5d5   : >> { %v3590_v25 = vadd.f32 %v3589_v50, %v3542_v59 }
 0x5d7   : >> { %v3637_v43 = vadd.f32 %v3636_v60, %v3590_v25 }
 0x5d9   : >> { %v3660_v34 = vmax.f32 %v2990_v52, %v3637_v43 }
 0x5db   : >> { %3671 = vst.msk [vmem:[#allocation6 + $0x18] sm:$0xff] %vm3667_vm8, %v3660_v34 }
 0x5dc   : >> { %v3545_v63 = vpop.f32.mrf.mxu1  ;;  %v3648_v33 = vpop.f32.mrf.mxu2 }
 0x5e4   : >> { %v3592_v1 = vpop.f32.mrf.mxu3  ;;  %v3651_v6 = vpop.f32.mrf.mxu2 }
 0x5e5   : >> { %v3593_v55 = vadd.f32 %v3592_v1, %v3545_v63 }
 0x5e7   : >> { %v3640_v29 = vadd.f32 %v3639_v57, %v3593_v55 }
 0x5e9   : >> { %v3661_v23 = vmax.f32 %v2991_v7, %v3640_v29 }
 0x5eb   : >> { %3672 = vst.msk [vmem:[#allocation6 + $0x20] sm:$0xff] %vm3667_vm8, %v3661_v23 }
 0x5ec   : >> { %v3548_v36 = vpop.f32.mrf.mxu1 }
 0x5f4   : >> { %v3595_v58 = vpop.f32.mrf.mxu3 }
 0x5f5   : >> { %v3596_v30 = vadd.f32 %v3595_v58, %v3548_v36 }
 0x5f7   : >> { %v3643_v44 = vadd.f32 %v3642_v37, %v3596_v30 }
 0x5f9   : >> { %v3662_v28 = vmax.f32 %v2992_v56, %v3643_v44 }
 0x5fb   : >> { %3673 = vst.msk [vmem:[#allocation6 + $0x28] sm:$0xff] %vm3667_vm8, %v3662_v28 }
 0x5fc   : >> { %v3551_v7 = vpop.f32.mrf.mxu1 }
 0x5fd   : >> { %v3654_v22 = vpop.f32.mrf.mxu2 }
 0x602   : >> { %v3681_v52 = vld [vmem:[#allocation6 + $0x18] ss:$3 sm:$0xff]  ;;  %v3689_v61 = vld [vmem:[#allocation6 + $0x19] ss:$3 sm:$0xff]  ;;  %v3701_v20 = vld [vmem:[#allocation6 + $0x1a] ss:$3 sm:$0xff] }
 0x603   : >> { %v3695_v62 = vmax.f32 %v3681_v52, %v3689_v61 }
 0x604   : >> { %v3598_v0 = vpop.f32.mrf.mxu3 }
 0x605   : >> { %v3707_v14 = vmax.f32 %v3695_v62, %v3701_v20  ;;  %v3599_v5 = vadd.f32 %v3598_v0, %v3551_v7 }
 0x607   : >> { %v3714_v9 = vadd.f32 %v3711_v40, %v3707_v14  ;;  %v3646_v11 = vadd.f32 %v3645_v41, %v3599_v5 }
 0x609   : >> { %3720 = vst.msk [vmem:[%s8246_s16 + $0x8] sm:$0xff] %vm3667_vm8, %v3714_v9  ;;  %v3663_v3 = vmax.f32 %v2993_v38, %v3646_v11 }
 0x60b   : >> { %3674 = vst.msk [vmem:[#allocation6 + $0x30] sm:$0xff] %vm3667_vm8, %v3663_v3 }
 0x60c   : >> { %v3554_v56 = vpop.f32.mrf.mxu1 }
 0x614   : >> { %v3601_v10 = vpop.f32.mrf.mxu3 }
 0x615   : >> { %v3602_v24 = vadd.f32 %v3601_v10, %v3554_v56 }
 0x617   : >> { %v3649_v31 = vadd.f32 %v3648_v33, %v3602_v24 }
 0x619   : >> { %v3664_v47 = vmax.f32 %v2994_v13, %v3649_v31 }
 0x61b   : >> { %3675 = vst.msk [vmem:[#allocation6 + $0x38] sm:$0xff] %vm3667_vm8, %v3664_v47 }
 0x61c   : >> { %v3557_v35 = vpop.f32.mrf.mxu1 }
 0x624   : >> { %v3604_v27 = vpop.f32.mrf.mxu3 }
 0x625   : >> { %v3605_v21 = vadd.f32 %v3604_v27, %v3557_v35 }
 0x627   : >> { %v3652_v51 = vadd.f32 %v3651_v6, %v3605_v21 }
 0x629   : >> { %v3665_v26 = vmax.f32 %v2995_v17, %v3652_v51 }
 0x62b   : >> { %3676 = vst.msk [vmem:[#allocation6 + $0x40] sm:$0xff] %vm3667_vm8, %v3665_v26 }
 0x62c   : >> { %v3560_v46 = vpop.f32.mrf.mxu1 }
 0x632   : >> { %v3683_v38 = vld [vmem:[#allocation6 + $0x30] ss:$3 sm:$0xff]  ;;  %v3691_v53 = vld [vmem:[#allocation6 + $0x31] ss:$3 sm:$0xff]  ;;  %v3703_v49 = vld [vmem:[#allocation6 + $0x32] ss:$3 sm:$0xff] }
 0x633   : >> { %v3696_v18 = vmax.f32 %v3683_v38, %v3691_v53 }
 0x634   : >> { %v3607_v13 = vpop.f32.mrf.mxu3  ;;  %v3627_v19 = vpop.f32.mrf.mxu1 }
 0x635   : >> { %v3708_v15 = vmax.f32 %v3696_v18, %v3703_v49  ;;  %v3608_v12 = vadd.f32 %v3607_v13, %v3560_v46  ;;  %v3628_v60 = vadd.f32 %v3627_v19, %v8211_v8 }
 0x637   : >> { %v3715_v59 = vadd.f32 %v3711_v40, %v3708_v15  ;;  %v3657_v48 = vmax.f32 %v2987_v54, %v3628_v60  ;;  %v3655_v32 = vadd.f32 %v3654_v22, %v3608_v12 }
 0x639   : >> { %3721 = vst.msk [vmem:[%s8246_s16 + $0x10] sm:$0xff] %vm3667_vm8, %v3715_v59  ;;  %v3666_v17 = vmax.f32 %v2996_v16, %v3655_v32 }
 0x63a   : >> { %3668 = vst.msk [vmem:[#allocation6] sm:$0xff] %vm3667_vm8, %v3657_v48 }
 0x63b   : >> { %3678 = vst.msk [vmem:[#allocation6 + $0x48] sm:$0x3f] %vm3677_vm9, %v3666_v17 }
 0x641   : >> { %v3679_v50 = vld [vmem:[#allocation6] ss:$3 sm:$0xff]  ;;  %v3687_v8 = vld [vmem:[#allocation6 + $0x1] ss:$3 sm:$0xff]  ;;  %v3699_v2 = vld [vmem:[#allocation6 + $0x2] ss:$3 sm:$0xff] }
 0x642   : >> { %v3694_v25 = vmax.f32 %v3679_v50, %v3687_v8  ;;  %v3685_v43 = vld [vmem:[#allocation6 + $0x48] ss:$3 sm:$0x3]  ;;  %v3693_v34 = vld [vmem:[#allocation6 + $0x49] ss:$3 sm:$0x3] }
 0x643   : >> { %v3697_v4 = vmax.f32 %v3685_v43, %v3693_v34  ;;  %v3705_v57 = vld [vmem:[#allocation6 + $0x4a] ss:$3 sm:$0x3] }
 0x644   : >> { %v3706_v54 = vmax.f32 %v3694_v25, %v3699_v2 }
 0x645   : >> { %v3709_v63 = vmax.f32 %v3697_v4, %v3705_v57  ;;  %1651 = sbr.rel (!%p1649_p5) target bundleno = 853 (0x355), region = 151 }
 0x646   : >> { %v3713_v1 = vadd.f32 %v3711_v40, %v3706_v54 }
 0x647   : >> { %v3716_v55 = vadd.f32 %v3711_v40, %v3709_v63 }
 0x648   : >> { %3719 = vst.msk [vmem:[%s8246_s16] sm:$0xff] %vm3667_vm8, %v3713_v1 }
 0x649   : >> { %3723 = vst.msk [vmem:[%s8246_s16 + $0x18] sm:$0x3] %vm3722_vm10, %v3716_v55 }
 0x64a LB: >> { %s5209_s20 = smul.u32 96, %s5440_s19  ;;  %s5455_s13 = smov 64   ;;  %v8382_v9 = vld [vmem:[%s9232_s5 + $0x178] sm:$0xff]  ;;  %v8387_v11 = vld [vmem:[%s9232_s5 + $0x170] sm:$0xff]  ;;  %v8400_v33 = vld [vmem:[%s9232_s5 + $0x168] sm:$0xff]  ;;  %vm3756_vm11 = vcmask 1048064   ;;  %s5440_s19 = sphi %s8283_s19, %s3730_s19  }
 0x64b   : >> { %9489 = vst [vmem:[#allocation71_spill] sm:$0xff] %v8382_v9  ;;  %3992 = vmatpush.msra.mxu2 %v8382_v9  ;;  %v8395_v3 = vld [vmem:[%s9232_s5 + $0x1f8] sm:$0xff]  ;;  %v8407_v56 = vld [vmem:[%s9232_s5 + $0x160] sm:$0xff]  ;;  %v8418_v24 = vld [vmem:[%s9232_s5 + $0x1f0] sm:$0xff]  ;;  %s5295_s26 = sshll.u32 %s5440_s19, 3  ;;  %s3730_s19 = sadd.s32 1, %s5440_s19  }
 0x64c   : >> { %s8289_s21 = scalar_lea.vmem [#allocation3], %s5209_s20  ;;  %4018 = vmatpush.msra.mxu3 %v8395_v3  ;;  %v8423_v31 = vld [vmem:[%s9232_s5 + $0x158] sm:$0xff]  ;;  %v8436_v6 = vld [vmem:[%s9232_s5 + $0x1e8] sm:$0xff]  ;;  %v8441_v35 = vld [vmem:[%s9232_s5 + $0x150] sm:$0xff]  ;;  %s4753_s27 = scalar_lea.vmem %s5547_s23, %s5295_s26 }
 0x64d   : >> { %3993 = vmatpush.msra.mxu2 %v8387_v11  ;;  %v8431_v47 = vld [vmem:[%s9232_s5 + $0xf8] sm:$0xff]  ;;  %v8453_v21 = vld [vmem:[%s9232_s5 + $0xf0] sm:$0xff]  ;;  %v8458_v51 = vld [vmem:[%s9232_s5 + $0x1e0] sm:$0xff]  ;;  %p3727_p6 = scmp.ge.s32.totalorder %s3730_s19, 8  }
 0x64e   : >> { %4019 = vmatpush.msra.mxu3 %v8418_v24  ;;  %3966 = vmatpush.msra.mxu1 %v8431_v47  ;;  %v8448_v27 = vld [vmem:[%s9232_s5 + $0x78] sm:$0xff]  ;;  %9490 = vst [vmem:[#allocation72_spill] sm:$0xff] %v8458_v51  ;;  %v8465_v26 = vld [vmem:[%s9232_s5 + $0x148] sm:$0xff]  ;;  %v8472_v46 = vld [vmem:[%s9232_s5 + $0x70] sm:$0xff] }
 0x64f   : >> { %3994 = vmatpush.msra.mxu2 %v8400_v33  ;;  %3940 = vmatpush.msra.mxu0 %v8448_v27  ;;  %v8477_v38 = vld [vmem:[%s9232_s5 + $0xe8] sm:$0xff]  ;;  %v8482_v53 = vld [vmem:[%s9232_s5 + $0x1d8] sm:$0xff]  ;;  %v8502_v13 = vld [vmem:[%s9232_s5 + $0x140] sm:$0xff] }
 0x650   : >> { %v8292_v45 = vld [vmem:[%s8289_s21 + $0x22] sm:$0xff]  ;;  %v8309_v58 = vld [vmem:[%s8289_s21 + $0x2a] sm:$0xff]  ;;  %v8331_v62 = vld [vmem:[%s8289_s21 + $0x32] sm:$0xff]  ;;  %4020 = vmatpush.msra.mxu3 %v8436_v6  ;;  %3967 = vmatpush.msra.mxu1 %v8453_v21  ;;  %9491 = vst [vmem:[#allocation73_spill] sm:$0xff] %v8482_v53 }
 0x651   : >> { %v8295_v16 = vld [vmem:[%s8289_s21 + $0x20] sm:$0xff]  ;;  %3799 = vrot.lane.b32.xlu0 %v8292_v45, %s5455_s13  ;;  %v3742_v29 = vld [vmem:[%s8289_s21 + $0x9] sm:$0xff]  ;;  %v5238_v61 = vld [vmem:[%s8289_s21 + $0x31] sm:$0xff]  ;;  %9484 = vst [vmem:[#allocation66_spill] sm:$0xff] %v8331_v62  ;;  %3995 = vmatpush.msra.mxu2 %v8407_v56 }
 0x652   : >> { %3775 = vrot.lane.b32.xlu1 %v8295_v16, %s5455_s13  ;;  %3749 = vrot.lane.b32.xlu2 %v3742_v29, %s5455_s13  ;;  %v5242_v23 = vld [vmem:[%s8289_s21 + $0x40] sm:$0xff]  ;;  %v5237_v36 = vld [vmem:[%s8289_s21 + $0x29] sm:$0xff]  ;;  %3792 = vst.msk [vmem:[#allocation5 + $0x60] sm:$0xff] %vm3667_vm8, %v5238_v61 }
 0x653   : >> { %v5236_v37 = vld [vmem:[%s8289_s21 + $0x21] sm:$0xff]  ;;  %3817 = vst.msk [vmem:[#allocation5 + $0x18] sm:$0xff] %vm3667_vm8, %v5242_v23  ;;  %v5244_v52 = vld [vmem:[%s8289_s21 + $0x50] sm:$0xff]  ;;  %3996 = vmatpush.msra.mxu2 %v8423_v31  ;;  %4021 = vmatpush.msra.mxu3 %v8458_v51  ;;  %v8519_v12 = vld [vmem:[%s9232_s5 + $0x138] sm:$0xff] }
 0x654   : >> { %3790 = vst.msk [vmem:[#allocation5 + $0x10] sm:$0xff] %vm3667_vm8, %v5236_v37  ;;  %v3741_v30 = vld [vmem:[%s8289_s21 + $0x1] sm:$0xff]  ;;  %v3743_v42 = vld [vmem:[%s8289_s21 + $0x11] sm:$0xff]  ;;  %v8348_v7 = vld [vmem:[%s8289_s21 + $0x49] sm:$0xff]  ;;  %3941 = vmatpush.msra.mxu0 %v8472_v46  ;;  %3968 = vmatpush.msra.mxu1 %v8477_v38 }
 0x655   : >> { %v8313_v44 = vld [vmem:[%s8289_s21 + $0x48] sm:$0xff]  ;;  %3791 = vst.msk [vmem:[#allocation5 + $0x38] sm:$0xff] %vm3667_vm8, %v5237_v36  ;;  %v8345_v20 = vld [vmem:[%s8289_s21 + $0x30] sm:$0xff]  ;;  %3997 = vmatpush.msra.mxu2 %v8441_v35  ;;  %4022 = vmatpush.msra.mxu3 %v8482_v53  ;;  %v8509_v19 = vld [vmem:[%s9232_s5 + $0xe0] sm:$0xff] }
 0x656   : >> { %9483 = vst [vmem:[#allocation65_spill] sm:$0xff] %v8313_v44  ;;  %v8317_v28 = vld [vmem:[%s8289_s21 + $0x28] sm:$0xff]  ;;  %v8361_v14 = vld [vmem:[%s8289_s21 + $0x51] sm:$0xff]  ;;  %v8528_v60 = vld [vmem:[%s9232_s5 + $0x60] sm:$0xff]  ;;  %3969 = vmatpush.msra.mxu1 %v8509_v19 }
 0x657   : >> { %3818 = vst.msk [vmem:[#allocation5 + $0x40] sm:$0xff] %vm3667_vm8, %v8313_v44  ;;  %v8335_v40 = vld [vmem:[%s8289_s21 + $0x41] sm:$0xff]  ;;  %v8354_v0 = vld [vmem:[%s8289_s21 + $0x4a] sm:$0xff]  ;;  %v8367_v5 = vld [vmem:[%s8289_s21 + $0x52] sm:$0xff]  ;;  %3998 = vmatpush.msra.mxu2 %v8465_v26 }
 0x658   : >> { %3819 = vst.msk [vmem:[#allocation5 + $0x68] sm:$0xff] %vm3667_vm8, %v5244_v52  ;;  %v5248_v41 = vld [vmem:[%s8289_s21 + $0x42] sm:$0xff]  ;;  %v8496_v49 = vld [vmem:[%s8289_s21 + $0x71] sm:$0xff] }
 0x659   : >> { %3747 = vrot.lane.b32.xlu0 %v3741_v30, %s5455_s13  ;;  %3841 = vst.msk [vmem:[#allocation5 + $0x20] sm:$0xff] %vm3667_vm8, %v5248_v41  ;;  %v5255_v10 = vld [vmem:[%s8289_s21 + $0x61] sm:$0xff]  ;;  %v8485_v18 = vld [vmem:[%s8289_s21 + $0x69] sm:$0xff]  ;;  %3999 = vmatpush.msra.mxu2 %v8502_v13  ;;  %v8537_v48 = vld [vmem:[%s9232_s5 + $0xd8] sm:$0xff] }
 0x65a   : >> { %3801 = vrot.lane.b32.xlu1 %v8309_v58, %s5455_s13  ;;  %3777 = vrot.lane.b32.xlu2 %v8317_v28, %s5455_s13  ;;  %9485 = vst [vmem:[#allocation67_spill] sm:$0xff] %v8345_v20  ;;  %v8492_v22 = vld [vmem:[%s9232_s5 + $0x68] sm:$0xff]  ;;  %v8514_v15 = vld [vmem:[%s9232_s5 + $0x1d0] sm:$0xff] }
 0x65b   : >> { %9486 = vst [vmem:[#allocation68_spill] sm:$0xff] %v8354_v0  ;;  %3942 = vmatpush.msra.mxu0 %v8492_v22  ;;  %v3735_v59 = vld [vmem:[%s8289_s21 + $0x8] sm:$0xff]  ;;  %4023 = vmatpush.msra.mxu3 %v8514_v15  ;;  %v8550_v17 = vld [vmem:[%s9232_s5 + $0x130] sm:$0xff]  ;;  %v8555_v50 = vld [vmem:[%s9232_s5 + $0x58] sm:$0xff] }
 0x65c   : >> { %3842 = vst.msk [vmem:[#allocation5 + $0x48] sm:$0xff] %vm3667_vm8, %v8354_v0  ;;  %v8542_v32 = vld [vmem:[%s9232_s5 + $0x1c8] sm:$0xff]  ;;  %4000 = vmatpush.msra.mxu2 %v8519_v12  ;;  %v8562_v8 = vld [vmem:[%s9232_s5 + $0xd0] sm:$0xff]  ;;  %v8567_v25 = vld [vmem:[%s9232_s5 + $0x1c0] sm:$0xff]  ;;  %3970 = vmatpush.msra.mxu1 %v8537_v48 }
 0x65d   : >> { %9487 = vst [vmem:[#allocation69_spill] sm:$0xff] %v8361_v14  ;;  %3943 = vmatpush.msra.mxu0 %v8528_v60  ;;  %4024 = vmatpush.msra.mxu3 %v8542_v32  ;;  %v8574_v43 = vld [vmem:[%s9232_s5 + $0x128] sm:$0xff]  ;;  %v8579_v34 = vld [vmem:[%s9232_s5 + $0x50] sm:$0xff]  ;;  %v8582_v2 = vld [vmem:[%s8289_s21 + $0x60] sm:$0xff] }
 0x65e   : >> { %9488 = vst [vmem:[#allocation70_spill] sm:$0xff] %v8367_v5  ;;  %v8585_v4 = vld [vmem:[%s8289_s21 + $0x68] sm:$0xff]  ;;  %4001 = vmatpush.msra.mxu2 %v8550_v17  ;;  %3971 = vmatpush.msra.mxu1 %v8562_v8  ;;  %v8605_v1 = vld [vmem:[%s9232_s5 + $0x1b8] sm:$0xff]  ;;  %v8610_v55 = vld [vmem:[%s9232_s5 + $0x120] sm:$0xff] }
 0x65f   : >> { %3843 = vst.msk [vmem:[#allocation5 + $0x70] sm:$0xff] %vm3667_vm8, %v8367_v5  ;;  %3944 = vmatpush.msra.mxu0 %v8555_v50  ;;  %4025 = vmatpush.msra.mxu3 %v8567_v25  ;;  %v8592_v54 = vld [vmem:[%s8289_s21 + $0x62] sm:$0xff]  ;;  %v3761_v63 = vld [vmem:[%s8289_s21 + $0xa] sm:$0xff] }
 0x660   : >> { %9492 = vst [vmem:[#allocation74_spill] sm:$0xff] %v8485_v18  ;;  %v8597_v57 = vld [vmem:[%s9232_s5 + $0xc8] sm:$0xff]  ;;  %4002 = vmatpush.msra.mxu2 %v8574_v43  ;;  %v8645_v30 = vld [vmem:[%s9232_s5 + $0x40] sm:$0xff] }
 0x661   : >> { %3803 = vrot.lane.b32.xlu0 %v8331_v62, %s5455_s13  ;;  %9493 = vst [vmem:[#allocation75_spill] sm:$0xff] %v8496_v49  ;;  %3945 = vmatpush.msra.mxu0 %v8579_v34  ;;  %v8620_v29 = vld [vmem:[%s9232_s5 + $0x48] sm:$0xff]  ;;  %v8687_v39 = vld [vmem:[%s9232_s5 + $0x1a0] sm:$0xff] }
 0x662   : >> { %3751 = vrot.lane.b32.xlu1 %v3743_v42, %s5455_s13  ;;  %3826 = vrot.lane.b32.xlu2 %v8335_v40, %s5455_s13  ;;  %9494 = vst [vmem:[#allocation76_spill] sm:$0xff] %v8514_v15  ;;  %v8662_v42 = vld [vmem:[%s9232_s5 + $0x110] sm:$0xff]  ;;  %v8751_v62 = vld [vmem:[%s9232_s5 + $0x20] sm:$0xff] }
 0x663   : >> { %9495 = vst [vmem:[#allocation77_spill] sm:$0xff] %v8542_v32  ;;  %3972 = vmatpush.msra.mxu1 %v8597_v57  ;;  %4026 = vmatpush.msra.mxu3 %v8605_v1  ;;  %v5287_v32 = vld [vmem:[%s8289_s21 + $0x89] sm:$0xff]  ;;  %v8765_v15 = vld [vmem:[%s8289_s21 + $0x72] sm:$0xff] }
 0x664   : >> { %3739 = vst.msk [vmem:[#allocation5 + $0x28] sm:$0xff] %vm3667_vm8, %v3735_v59  ;;  %4003 = vmatpush.msra.mxu2 %v8610_v55  ;;  %3946 = vmatpush.msra.mxu0 %v8620_v29  ;;  %v5286_v59 = vld [vmem:[%s8289_s21 + $0x81] sm:$0xff] }
 0x665   : >> { %9496 = vst [vmem:[#allocation78_spill] sm:$0xff] %v8567_v25  ;;  %v8756_v25 = vld [vmem:[%s9232_s5 + $0x98] sm:$0xff]  ;;  %v8801_v53 = vld [vmem:[%s9232_s5 + $0x88] sm:$0xff] }
 0x666   : >> { %9497 = vst [vmem:[#allocation79_spill] sm:$0xff] %v8597_v57  ;;  %3947 = vmatpush.msra.mxu0 %v8645_v30  ;;  %v8813_v51 = vld [vmem:[%s9232_s5 + $0x8] sm:$0xff] }
 0x667   : >> { %9498 = vst [vmem:[#allocation80_spill] sm:$0xff] %v8605_v1  ;;  %v3760_v1 = vld [vmem:[%s8289_s21 + $0x2] sm:$0xff] }
 0x668   : >> { %3764 = vst.msk [vmem:[#allocation5 + $0x30] sm:$0xff] %vm3667_vm8, %v3761_v63  ;;  %v8678_v63 = vld [vmem:[%s8289_s21 + $0x70] sm:$0xff] }
 0x669   : >> { %3779 = vrot.lane.b32.xlu0 %v8345_v20, %s5455_s13  ;;  %9501 = vst [vmem:[#allocation83_spill] sm:$0xff] %v8687_v39  ;;  %v8781_v20 = vld [vmem:[%s9232_s5 + $0x90] sm:$0xff] }
 0x66a   : >> { %4106 = vrot.lane.b32.xlu1 %v5242_v23, %s5455_s13  ;;  %3828 = vrot.lane.b32.xlu2 %v8348_v7, %s5455_s13  ;;  %v8625_v23 = vld [vmem:[%s9232_s5 + $0xc0] sm:$0xff]  ;;  %3763 = vst.msk [vmem:[#allocation5 + $0x8] sm:$0xff] %vm3667_vm8, %v3760_v1  ;;  %v8774_v1 = vld [vmem:[%s9232_s5 + $0x18] sm:$0xff] }
 0x66b   : >> { %3973 = vmatpush.msra.mxu1 %v8625_v23  ;;  %9505 = vst [vmem:[#allocation87_spill] sm:$0xff] %v8765_v15 }
 0x671   : >> { %4082 = vrot.lane.b32.xlu0 %v5236_v37, %s5455_s13  ;;  %v8633_v37 = vld [vmem:[%s9232_s5 + $0x1b0] sm:$0xff] }
 0x672   : >> { %4108 = vrot.lane.b32.xlu1 %v8313_v44, %s5455_s13  ;;  %3830 = vrot.lane.b32.xlu2 %v8361_v14, %s5455_s13  ;;  %9499 = vst [vmem:[#allocation81_spill] sm:$0xff] %v8633_v37  ;;  %v8697_v44 = vld [vmem:[%s8289_s21 + $0x6a] sm:$0xff] }
 0x673   : >> { %4027 = vmatpush.msra.mxu3 %v8633_v37  ;;  %v8730_v37 = vld [vmem:[%s9232_s5 + $0x28] sm:$0xff] }
 0x679   : >> { %4084 = vrot.lane.b32.xlu0 %v5237_v36, %s5455_s13  ;;  %v8638_v36 = vld [vmem:[%s9232_s5 + $0x118] sm:$0xff] }
 0x67a   : >> { %4110 = vrot.lane.b32.xlu1 %v5244_v52, %s5455_s13  ;;  %4130 = vrot.lane.b32.xlu2 %v5248_v41, %s5455_s13  ;;  %v8650_v52 = vld [vmem:[%s9232_s5 + $0xb8] sm:$0xff] }
 0x67b   : >> { %4004 = vmatpush.msra.mxu2 %v8638_v36  ;;  %v8669_v41 = vld [vmem:[%s9232_s5 + $0x38] sm:$0xff]  ;;  %3974 = vmatpush.msra.mxu1 %v8650_v52 }
 0x67c   : >> { %3948 = vmatpush.msra.mxu0 %v8669_v41 }
 0x67d   : >> { %4005 = vmatpush.msra.mxu2 %v8662_v42 }
 0x681   : >> { %4086 = vrot.lane.b32.xlu0 %v5238_v61, %s5455_s13  ;;  %v8657_v61 = vld [vmem:[%s9232_s5 + $0x1a8] sm:$0xff] }
 0x682   : >> { %4416 = vrot.lane.b32.xlu1 %v8335_v40, %s5455_s13  ;;  %4132 = vrot.lane.b32.xlu2 %v8354_v0, %s5455_s13  ;;  %9500 = vst [vmem:[#allocation82_spill] sm:$0xff] %v8657_v61  ;;  %v8710_v0 = vld [vmem:[%s9232_s5 + $0xa8] sm:$0xff] }
 0x683   : >> { %4028 = vmatpush.msra.mxu3 %v8657_v61  ;;  %v8715_v61 = vld [vmem:[%s9232_s5 + $0x198] sm:$0xff] }
 0x684   : >> { %9502 = vst [vmem:[#allocation84_spill] sm:$0xff] %v8715_v61 }
 0x685   : >> { %4029 = vmatpush.msra.mxu3 %v8687_v39  ;;  %v8735_v39 = vld [vmem:[%s9232_s5 + $0xa0] sm:$0xff] }
 0x687   : >> { %4030 = vmatpush.msra.mxu3 %v8715_v61  ;;  %v8761_v61 = vld [vmem:[%s9232_s5 + $0x188] sm:$0xff] }
 0x688   : >> { %9504 = vst [vmem:[#allocation86_spill] sm:$0xff] %v8761_v61 }
 0x689   : >> { %4157 = vrot.lane.b32.xlu0 %v5255_v10, %s5455_s13  ;;  %v8674_v10 = vld [vmem:[%s9232_s5 + $0xb0] sm:$0xff] }
 0x68a   : >> { %4418 = vrot.lane.b32.xlu1 %v8348_v7, %s5455_s13  ;;  %4134 = vrot.lane.b32.xlu2 %v8367_v5, %s5455_s13  ;;  %v8692_v5 = vld [vmem:[%s9232_s5 + $0x108] sm:$0xff] }
 0x68b   : >> { %3975 = vmatpush.msra.mxu1 %v8674_v10  ;;  %4006 = vmatpush.msra.mxu2 %v8692_v5 }
 0x68d   : >> { %3976 = vmatpush.msra.mxu1 %v8710_v0 }
 0x68f   : >> { %3977 = vmatpush.msra.mxu1 %v8735_v39 }
 0x691   : >> { %4159 = vrot.lane.b32.xlu0 %v8485_v18, %s5455_s13  ;;  %v8740_v18 = vld [vmem:[%s9232_s5 + $0x190] sm:$0xff]  ;;  %3978 = vmatpush.msra.mxu1 %v8756_v25 }
 0x692   : >> { %4420 = vrot.lane.b32.xlu1 %v8361_v14, %s5455_s13  ;;  %4161 = vrot.lane.b32.xlu2 %v8496_v49, %s5455_s13  ;;  %v8702_v49 = vld [vmem:[%s9232_s5 + $0x30] sm:$0xff]  ;;  %9503 = vst [vmem:[#allocation85_spill] sm:$0xff] %v8740_v18  ;;  %v3734_v14 = vld [vmem:[%s8289_s21] sm:$0xff] }
 0x693   : >> { %3949 = vmatpush.msra.mxu0 %v8702_v49  ;;  %4031 = vmatpush.msra.mxu3 %v8740_v18  ;;  %v8786_v18 = vld [vmem:[%s9232_s5 + $0x180] sm:$0xff]  ;;  %3738 = vst.msk [vmem:[#allocation5] sm:$0xff] %vm3667_vm8, %v3734_v14 }
 0x694   : >> { %9506 = vst [vmem:[#allocation88_spill] sm:$0xff] %v8786_v18  ;;  %3979 = vmatpush.msra.mxu1 %v8781_v20  ;;  %v8821_v14 = vld [vmem:[%s9232_s5 + $0x80] sm:$0xff] }
 0x695   : >> { %3950 = vmatpush.msra.mxu0 %v8730_v37  ;;  %4032 = vmatpush.msra.mxu3 %v8761_v61  ;;  %v8796_v61 = vld [vmem:[%s9232_s5 + $0x10] sm:$0xff] }
 0x696   : >> { %3980 = vmatpush.msra.mxu1 %v8801_v53 }
 0x697   : >> { %3951 = vmatpush.msra.mxu0 %v8751_v62  ;;  %4033 = vmatpush.msra.mxu3 %v8786_v18 }
 0x698   : >> { %3981 = vmatpush.msra.mxu1 %v8821_v14 }
 0x699   : >> { %4440 = vrot.lane.b32.xlu0 %v8582_v2, %s5455_s13  ;;  %3952 = vmatpush.msra.mxu0 %v8774_v1 }
 0x69a   : >> { %4442 = vrot.lane.b32.xlu1 %v8585_v4, %s5455_s13  ;;  %4464 = vrot.lane.b32.xlu2 %v8592_v54, %s5455_s13 }
 0x69b   : >> { %4323 = vmatpush.msrb.mxu3 %v8382_v9  ;;  %3953 = vmatpush.msra.mxu0 %v8796_v61  ;;  %v8837_v9 = vld [vmem:[%s9232_s5 + $0x238] sm:$0xff] }
 0x69c   : >> { %4271 = vmatpush.msrb.mxu1 %v8448_v27 }
 0x69d   : >> { %4324 = vmatpush.msrb.mxu3 %v8387_v11  ;;  %3954 = vmatpush.msra.mxu0 %v8813_v51  ;;  %v8846_v11 = vld [vmem:[%s9232_s5 + $0x230] sm:$0xff] }
 0x69e   : >> { %4272 = vmatpush.msrb.mxu1 %v8472_v46 }
 0x69f   : >> { %4325 = vmatpush.msrb.mxu3 %v8400_v33  ;;  %v8855_v33 = vld [vmem:[%s9232_s5 + $0x228] sm:$0xff] }
 0x6a0   : >> { %4273 = vmatpush.msrb.mxu1 %v8492_v22 }
 0x6a1   : >> { %4491 = vrot.lane.b32.xlu0 %v5286_v59, %s5455_s13  ;;  %v8722_v59 = vld [vmem:[%s9232_s5 + $0x100] sm:$0xff]  ;;  %4326 = vmatpush.msrb.mxu3 %v8407_v56 }
 0x6a2   : >> { %4444 = vrot.lane.b32.xlu1 %v8678_v63, %s5455_s13  ;;  %4466 = vrot.lane.b32.xlu2 %v8697_v44, %s5455_s13  ;;  %v8867_v56 = vld [vmem:[%s9232_s5 + $0x220] sm:$0xff] }
 0x6a3   : >> { %4007 = vmatpush.msra.mxu2 %v8722_v59  ;;  %4327 = vmatpush.msrb.mxu3 %v8423_v31  ;;  %v8880_v31 = vld [vmem:[%s9232_s5 + $0x218] sm:$0xff] }
 0x6a4   : >> { %4274 = vmatpush.msrb.mxu1 %v8528_v60 }
 0x6a5   : >> { %4297 = vmatpush.msrb.mxu2 %v8431_v47  ;;  %4328 = vmatpush.msrb.mxu3 %v8441_v35 }
 0x6a6   : >> { %4275 = vmatpush.msrb.mxu1 %v8555_v50 }
 0x6a7   : >> { %4298 = vmatpush.msrb.mxu2 %v8453_v21  ;;  %4329 = vmatpush.msrb.mxu3 %v8465_v26  ;;  %v8900_v26 = vld [vmem:[%s9232_s5 + $0x208] sm:$0xff] }
 0x6a8   : >> { %4276 = vmatpush.msrb.mxu1 %v8579_v34 }
 0x6a9   : >> { %4493 = vrot.lane.b32.xlu0 %v5287_v32, %s5455_s13  ;;  %4299 = vmatpush.msrb.mxu2 %v8477_v38 }
 0x6aa   : >> { %4468 = vrot.lane.b32.xlu1 %v8765_v15, %s5455_s13  ;;  %v5288_v15 = vld [vmem:[%s8289_s21 + $0x91] sm:$0xff]  ;;  %4330 = vmatpush.msrb.mxu3 %v8502_v13  ;;  %v8914_v13 = vld [vmem:[%s9232_s5 + $0x200] sm:$0xff] }
 0x6ab   : >> { %4300 = vmatpush.msrb.mxu2 %v8509_v19  ;;  %4495 = vrot.lane.b32.xlu2 %v5288_v15, %s5455_s13 }
 0x6ac   : >> { %v3750_v32 = vpop.permute.xlu2 %3749  ;;  %4277 = vmatpush.msrb.mxu1 %v8620_v29  ;;  %4331 = vmatpush.msrb.mxu3 %v8519_v12 }
 0x6ad   : >> { %3758 = vst.msk [vmem:[#allocation5 + $0x28] sm:$0xff] %vm3756_vm11, %v3750_v32  ;;  %v8830_v32 = vld [vmem:[%s9232_s5] sm:$0xff]  ;;  %4301 = vmatpush.msrb.mxu2 %v8537_v48 }
 0x6ae   : >> { %3955 = vmatpush.msra.mxu0 %v8830_v32  ;;  %4278 = vmatpush.msrb.mxu1 %v8645_v30 }
 0x6af   : >> { %4302 = vmatpush.msrb.mxu2 %v8562_v8  ;;  %4332 = vmatpush.msrb.mxu3 %v8550_v17 }
 0x6b0   : >> { %4052 = vmatpush.msrb.mxu0 %v8837_v9  ;;  %4279 = vmatpush.msrb.mxu1 %v8669_v41 }
 0x6b1   : >> { %4303 = vmatpush.msrb.mxu2 %v8597_v57  ;;  %v3736_v57 = vld [vmem:[%s8289_s21 + $0x10] sm:$0xff]  ;;  %4333 = vmatpush.msrb.mxu3 %v8574_v43 }
 0x6b2   : >> { %4053 = vmatpush.msrb.mxu0 %v8846_v11  ;;  %3740 = vst.msk [vmem:[#allocation5 + $0x50] sm:$0xff] %vm3667_vm8, %v3736_v57  ;;  %4280 = vmatpush.msrb.mxu1 %v8702_v49 }
 0x6b3   : >> { %4304 = vmatpush.msrb.mxu2 %v8625_v23  ;;  %4334 = vmatpush.msrb.mxu3 %v8610_v55 }
 0x6b4   : >> { %v3778_v15 = vpop.permute.xlu2 %3777  ;;  %v8860_v18 = vld [vmem:[#allocation5 + $0x28] sm:$0xff]  ;;  %4054 = vmatpush.msrb.mxu0 %v8855_v33  ;;  %4281 = vmatpush.msrb.mxu1 %v8730_v37 }
 0x6b5   : >> { %3785 = vst.msk [vmem:[#allocation5 + $0x30] sm:$0xff] %vm3756_vm11, %v3778_v15  ;;  %4305 = vmatpush.msrb.mxu2 %v8650_v52  ;;  %v3762_v15 = vld [vmem:[%s8289_s21 + $0x12] sm:$0xff]  ;;  %4335 = vmatpush.msrb.mxu3 %v8638_v36 }
 0x6b6   : >> { %4074 = vst.msk [vmem:[#allocation5 + $0x28] sm:$0xff] %vm3667_vm8, %v8317_v28  ;;  %4055 = vmatpush.msrb.mxu0 %v8867_v56  ;;  %v8891_v28 = vld [vmem:[%s9232_s5 + $0x210] sm:$0xff]  ;;  %4282 = vmatpush.msrb.mxu1 %v8751_v62 }
 0x6b7   : >> { %3765 = vst.msk [vmem:[#allocation5 + $0x58] sm:$0xff] %vm3667_vm8, %v3762_v15  ;;  %4306 = vmatpush.msrb.mxu2 %v8674_v10  ;;  %4336 = vmatpush.msrb.mxu3 %v8662_v42 }
 0x6b8   : >> { %4056 = vmatpush.msrb.mxu0 %v8880_v31  ;;  %4283 = vmatpush.msrb.mxu1 %v8774_v1 }
 0x6b9   : >> { %4307 = vmatpush.msrb.mxu2 %v8710_v0  ;;  %4337 = vmatpush.msrb.mxu3 %v8692_v5 }
 0x6ba   : >> { %4057 = vmatpush.msrb.mxu0 %v8891_v28  ;;  %4284 = vmatpush.msrb.mxu1 %v8796_v61 }
 0x6bb   : >> { %4308 = vmatpush.msrb.mxu2 %v8735_v39  ;;  %4338 = vmatpush.msrb.mxu3 %v8722_v59 }
 0x6bc   : >> { %v3827_v35 = vpop.permute.xlu2 %3826  ;;  %v8905_v57 = vld [vmem:[#allocation5 + $0x30] sm:$0xff]  ;;  %4058 = vmatpush.msrb.mxu0 %v8900_v26  ;;  %4285 = vmatpush.msrb.mxu1 %v8813_v51 }
 0x6bd   : >> { %3835 = vst.msk [vmem:[#allocation5 + $0x18] sm:$0xff] %vm3756_vm11, %v3827_v35  ;;  %4309 = vmatpush.msrb.mxu2 %v8756_v25 }
 0x6be   : >> { %4098 = vst.msk [vmem:[#allocation5 + $0x30] sm:$0xff] %vm3667_vm8, %v8309_v58  ;;  %4059 = vmatpush.msrb.mxu0 %v8914_v13  ;;  %4286 = vmatpush.msrb.mxu1 %v8830_v32 }
 0x6bf   : >> { %4310 = vmatpush.msrb.mxu2 %v8781_v20 }
 0x6c1   : >> { %4311 = vmatpush.msrb.mxu2 %v8801_v53 }
 0x6c3   : >> { %v3800_v58 = vpop.permute.xlu0 %3799  ;;  %4312 = vmatpush.msrb.mxu2 %v8821_v14 }
 0x6c4   : >> { %v3776_v12 = vpop.permute.xlu1 %3775  ;;  %3808 = vst.msk [vmem:[#allocation5 + $0x10] sm:$0xff] %vm3756_vm11, %v3800_v58  ;;  %v3829_v15 = vpop.permute.xlu2 %3828  ;;  %v3847_v35 = vld [vmem:[#allocation5 + $0x18] sm:$0xff] }
 0x6c5   : >> { %3784 = vst.msk [vmem:[#allocation5 + $0x8] sm:$0xff] %vm3756_vm11, %v3776_v12  ;;  %4034 = vmatmul.f32.vlgmr.msra.gmra.mxu3 %v3847_v35  ;;  %v9519_v35 = vld [vmem:[#allocation81_spill] sm:$0xff] }
 0x6c6   : >> { %3836 = vst.msk [vmem:[#allocation5 + $0x40] sm:$0xff] %vm3756_vm11, %v3829_v15  ;;  %4631 = vmatpush.msra.mxu3 %v8431_v47  ;;  %v9518_v15 = vld [vmem:[#allocation74_spill] sm:$0xff] }
 0x6c7   : >> { %4148 = vst.msk [vmem:[#allocation5 + $0x18] sm:$0xff] %vm3667_vm8, %v8582_v2 }
 0x6c8   : >> { %4632 = vmatpush.msra.mxu3 %v8453_v21 }
 0x6ca   : >> { %4633 = vmatpush.msra.mxu3 %v8477_v38 }
 0x6cb   : >> { %v3748_v43 = vpop.permute.xlu0 %3747  ;;  %v3846_v55 = vld [vmem:[#allocation5 + $0x10] sm:$0xff] }
 0x6cc   : >> { %v3802_v17 = vpop.permute.xlu1 %3801  ;;  %4008 = vmatmul.f32.vlgmr.msra.gmra.mxu2 %v3846_v55  ;;  %v3845_v36 = vld [vmem:[#allocation5 + $0x8] sm:$0xff]  ;;  %v3831_v58 = vpop.permute.xlu2 %3830  ;;  %3757 = vst.msk [vmem:[#allocation5] sm:$0xff] %vm3756_vm11, %v3748_v43  ;;  %4634 = vmatpush.msra.mxu3 %v8509_v19  ;;  %v9520_v43 = vld [vmem:[#allocation82_spill] sm:$0xff] }
 0x6cd   : >> { %3809 = vst.msk [vmem:[#allocation5 + $0x38] sm:$0xff] %vm3756_vm11, %v3802_v17  ;;  %3982 = vmatmul.f32.vlgmr.msra.gmra.mxu1 %v3845_v36  ;;  %v3852_v2 = vld [vmem:[#allocation5 + $0x40] sm:$0xff]  ;;  %4605 = vmatpush.msra.mxu2 %v8448_v27  ;;  %v5270_v17 = vld [vmem:[%s8289_s21 + $0x42] sm:$0xff] }
 0x6ce   : >> { %4121 = vst.msk [vmem:[#allocation5 + $0x10] sm:$0xff] %vm3667_vm8, %v8335_v40  ;;  %4037 = vmatmul.f32.gmra.mxu3 %v3852_v2  ;;  %v8956_v40 = vld [vmem:[#allocation5 + $0x20] sm:$0xff]  ;;  %4383 = vmatpush.msra.mxu1 %v8837_v9 }
 0x6cf   : >> { %4097 = vst.msk [vmem:[#allocation5 + $0x8] sm:$0xff] %vm3667_vm8, %v8292_v45  ;;  %4606 = vmatpush.msra.mxu2 %v8472_v46  ;;  %4635 = vmatpush.msra.mxu3 %v8537_v48  ;;  %v9510_v48 = vld [vmem:[#allocation67_spill] sm:$0xff]  ;;  %v9523_v2 = vld [vmem:[#allocation84_spill] sm:$0xff] }
 0x6d0   : >> { %3837 = vst.msk [vmem:[#allocation5 + $0x68] sm:$0xff] %vm3756_vm11, %v3831_v58  ;;  %4384 = vmatpush.msra.mxu1 %v8846_v11 }
 0x6d1   : >> { %4149 = vst.msk [vmem:[#allocation5 + $0x40] sm:$0xff] %vm3667_vm8, %v8585_v4  ;;  %4607 = vmatpush.msra.mxu2 %v8492_v22  ;;  %4636 = vmatpush.msra.mxu3 %v8562_v8  ;;  %v9512_v4 = vld [vmem:[#allocation87_spill] sm:$0xff] }
 0x6d2   : >> { %4172 = vst.msk [vmem:[#allocation5 + $0x20] sm:$0xff] %vm3667_vm8, %v8592_v54  ;;  %4385 = vmatpush.msra.mxu1 %v8855_v33  ;;  %v9513_v54 = vld [vmem:[#allocation77_spill] sm:$0xff] }
 0x6d3   : >> { %v3804_v45 = vpop.permute.xlu0 %3803  ;;  %4608 = vmatpush.msra.mxu2 %v8528_v60  ;;  %v3844_v27 = vld [vmem:[#allocation5] sm:$0xff]  ;;  %v9509_v60 = vld [vmem:[#allocation73_spill] sm:$0xff] }
 0x6d4   : >> { %v3851_v5 = vld [vmem:[#allocation5 + $0x38] sm:$0xff]  ;;  %v3752_v47 = vpop.permute.xlu1 %3751  ;;  %3810 = vst.msk [vmem:[#allocation5 + $0x60] sm:$0xff] %vm3756_vm11, %v3804_v45  ;;  %v4131_v46 = vpop.permute.xlu2 %4130  ;;  %3956 = vmatmul.f32.vlgmr.msra.gmra.mxu0 %v3844_v27  ;;  %4386 = vmatpush.msra.mxu1 %v8867_v56  ;;  %v4584_v27 = vld [vmem:[%s9232_s5 + $0x1e0] sm:$0xff] }
 0x6d5   : >> { %4011 = vmatmul.f32.gmra.mxu2 %v3851_v5  ;;  %4073 = vst.msk [vmem:[#allocation5] sm:$0xff] %vm3667_vm8, %v8295_v16  ;;  %3985 = vmatmul.f32.gmra.mxu1 %v8905_v57  ;;  %v8981_v16 = vld [vmem:[#allocation5 + $0x48] sm:$0xff]  ;;  %v5289_v57 = vld [vmem:[%s8289_s21 + $0x82] sm:$0xff] }
 0x6d6   : >> { %4122 = vst.msk [vmem:[#allocation5 + $0x38] sm:$0xff] %vm3667_vm8, %v8348_v7  ;;  %4349 = vmatpush.msra.mxu0 %v8395_v3  ;;  %4609 = vmatpush.msra.mxu2 %v8555_v50  ;;  %v4585_v5 = vld [vmem:[%s9232_s5 + $0x1e8] sm:$0xff] }
 0x6d7   : >> { %3759 = vst.msk [vmem:[#allocation5 + $0x50] sm:$0xff] %vm3756_vm11, %v3752_v47  ;;  %v3857_v21 = vld [vmem:[#allocation5 + $0x68] sm:$0xff]  ;;  %4387 = vmatpush.msra.mxu1 %v8880_v31  ;;  %v9524_v47 = vld [vmem:[#allocation75_spill] sm:$0xff] }
 0x6d8   : >> { %4139 = vst.msk [vmem:[#allocation5 + $0x10] sm:$0xff] %vm3756_vm11, %v4131_v46  ;;  %4040 = vmatmul.f32.gmra.mxu3 %v3857_v21  ;;  %4350 = vmatpush.msra.mxu0 %v8418_v24  ;;  %v9507_v24 = vld [vmem:[#allocation72_spill] sm:$0xff]  ;;  %v5276_v46 = vld [vmem:[%s8289_s21 + $0x61] sm:$0xff] }
 0x6d9   : >> { %4150 = vst.msk [vmem:[#allocation5 + $0x68] sm:$0xff] %vm3667_vm8, %v8678_v63  ;;  %4610 = vmatpush.msra.mxu2 %v8579_v34  ;;  %4388 = vmatpush.msra.mxu1 %v8891_v28  ;;  %v9005_v34 = vld [vmem:[#allocation5 + $0x70] sm:$0xff] }
 0x6da   : >> { %4351 = vmatpush.msra.mxu0 %v8436_v6  ;;  %4173 = vst.msk [vmem:[#allocation5 + $0x48] sm:$0xff] %vm3667_vm8, %v8697_v44  ;;  %v9508_v6 = vld [vmem:[#allocation69_spill] sm:$0xff]  ;;  %v9516_v63 = vld [vmem:[#allocation66_spill] sm:$0xff] }
 0x6db   : >> { %v3780_v7 = vpop.permute.xlu0 %3779  ;;  %v3856_v38 = vld [vmem:[#allocation5 + $0x60] sm:$0xff]  ;;  %4611 = vmatpush.msra.mxu2 %v8620_v29  ;;  %4174 = vst.msk [vmem:[#allocation5 + $0x70] sm:$0xff] %vm3667_vm8, %v9512_v4  ;;  %4389 = vmatpush.msra.mxu1 %v8900_v26  ;;  %v9514_v29 = vld [vmem:[#allocation79_spill] sm:$0xff] }
 0x6dc   : >> { %v4107_v22 = vpop.permute.xlu1 %4106  ;;  %3786 = vst.msk [vmem:[#allocation5 + $0x58] sm:$0xff] %vm3756_vm11, %v3780_v7  ;;  %4352 = vmatpush.msra.mxu0 %v9507_v24  ;;  %v4133_v19 = vpop.permute.xlu2 %4132  ;;  %4637 = vmatpush.msra.mxu3 %v9514_v29  ;;  %v4583_v7 = vld [vmem:[%s9232_s5 + $0x1d8] sm:$0xff] }
 0x6dd   : >> { %4014 = vmatmul.f32.gmra.mxu2 %v3856_v38  ;;  %3959 = vmatmul.f32.gmra.mxu0 %v8860_v18  ;;  %4123 = vst.msk [vmem:[#allocation5 + $0x60] sm:$0xff] %vm3667_vm8, %v9508_v6  ;;  %v9511_v18 = vld [vmem:[#allocation76_spill] sm:$0xff] }
 0x6de   : >> { %4612 = vmatpush.msra.mxu2 %v8645_v30  ;;  %4115 = vst.msk [vmem:[#allocation5 + $0x8] sm:$0xff] %vm3756_vm11, %v4107_v22  ;;  %v3854_v44 = vld [vmem:[#allocation5 + $0x50] sm:$0xff]  ;;  %4353 = vmatpush.msra.mxu0 %v9509_v60  ;;  %v5291_v4 = vld [vmem:[%s8289_s21 + $0x92] sm:$0xff] }
 0x6df   : >> { %4075 = vst.msk [vmem:[#allocation5 + $0x50] sm:$0xff] %vm3667_vm8, %v9510_v48  ;;  %v4177_v50 = vld [vmem:[#allocation5 + $0x10] sm:$0xff]  ;;  %4390 = vmatpush.msra.mxu1 %v8914_v13  ;;  %4638 = vmatpush.msra.mxu3 %v8625_v23  ;;  %v9530_v48 = vld [vmem:[#allocation71_spill] sm:$0xff] }
 0x6e0   : >> { %4613 = vmatpush.msra.mxu2 %v8669_v41  ;;  %4140 = vst.msk [vmem:[#allocation5 + $0x38] sm:$0xff] %vm3756_vm11, %v4133_v19  ;;  %4339 = vmatmul.f32.vlgmr.msrb.gmra.mxu3 %v4177_v50  ;;  %v9527_v19 = vld [vmem:[#allocation88_spill] sm:$0xff]  ;;  %v9529_v60 = vld [vmem:[#allocation70_spill] sm:$0xff]  ;;  %v4581_v50 = vld [vmem:[%s9232_s5 + $0x1c8] sm:$0xff] }
 0x6e1   : >> { %4354 = vmatpush.msra.mxu0 %v9511_v18  ;;  %4639 = vmatpush.msra.mxu3 %v8650_v52  ;;  %v4586_v52 = vld [vmem:[%s9232_s5 + $0x1f0] sm:$0xff]  ;;  %v9067_v21 = vld [vmem:[#allocation5 + $0x48] sm:$0xff]  ;;  %4455 = vst.msk [vmem:[#allocation5 + $0x10] sm:$0xff] %vm3667_vm8, %v5276_v46 }
 0x6e2   : >> { %4614 = vmatpush.msra.mxu2 %v8702_v49  ;;  %v9515_v49 = vld [vmem:[#allocation78_spill] sm:$0xff]  ;;  %v5285_v18 = vld [vmem:[%s8289_s21 + $0x90] sm:$0xff] }
 0x6e3   : >> { %4355 = vmatpush.msra.mxu0 %v9513_v54  ;;  %v4083_v30 = vpop.permute.xlu0 %4082  ;;  %v3855_v8 = vld [vmem:[#allocation5 + $0x58] sm:$0xff]  ;;  %4640 = vmatpush.msra.mxu3 %v8674_v10  ;;  %v9522_v10 = vld [vmem:[#allocation68_spill] sm:$0xff]  ;;  %v4580_v54 = vld [vmem:[%s9232_s5 + $0x1c0] sm:$0xff] }
 0x6e4   : >> { %v4109_v42 = vpop.permute.xlu1 %4108  ;;  %4615 = vmatpush.msra.mxu2 %v8730_v37  ;;  %4091 = vst.msk [vmem:[#allocation5] sm:$0xff] %vm3756_vm11, %v4083_v30  ;;  %3988 = vmatmul.f32.gmra.mxu1 %v3855_v8  ;;  %v4135_v41 = vpop.permute.xlu2 %4134  ;;  %v9517_v37 = vld [vmem:[#allocation80_spill] sm:$0xff]  ;;  %v4568_v30 = vld [vmem:[%s9232_s5 + $0x160] sm:$0xff] }
 0x6e5   : >> { %4356 = vmatpush.msra.mxu0 %v9515_v49  ;;  %4099 = vst.msk [vmem:[#allocation5 + $0x58] sm:$0xff] %vm3667_vm8, %v9516_v63  ;;  %v4176_v59 = vld [vmem:[#allocation5 + $0x8] sm:$0xff]  ;;  %4641 = vmatpush.msra.mxu3 %v8710_v0  ;;  %v4582_v0 = vld [vmem:[%s9232_s5 + $0x1d0] sm:$0xff] }
 0x6e6   : >> { %3962 = vmatmul.f32.gmra.mxu0 %v3854_v44  ;;  %4616 = vmatpush.msra.mxu2 %v8751_v62  ;;  %4116 = vst.msk [vmem:[#allocation5 + $0x30] sm:$0xff] %vm3756_vm11, %v4109_v42  ;;  %v9029_v62 = vld [vmem:[#allocation5 + $0x20] sm:$0xff]  ;;  %v9528_v44 = vld [vmem:[#allocation65_spill] sm:$0xff] }
 0x6e7   : >> { %4313 = vmatmul.f32.vlgmr.msrb.gmra.mxu2 %v4176_v59  ;;  %4357 = vmatpush.msra.mxu0 %v9517_v37  ;;  %4141 = vst.msk [vmem:[#allocation5 + $0x60] sm:$0xff] %vm3756_vm11, %v4135_v41  ;;  %v4182_v12 = vld [vmem:[#allocation5 + $0x38] sm:$0xff]  ;;  %v4567_v41 = vld [vmem:[%s9232_s5 + $0x158] sm:$0xff]  ;;  %v4564_v37 = vld [vmem:[%s9232_s5 + $0x140] sm:$0xff] }
 0x6e8   : >> { %4617 = vmatpush.msra.mxu2 %v8774_v1  ;;  %4342 = vmatmul.f32.gmra.mxu3 %v4182_v12  ;;  %4456 = vst.msk [vmem:[#allocation5 + $0x38] sm:$0xff] %vm3667_vm8, %v9518_v15 }
 0x6e9   : >> { %4358 = vmatpush.msra.mxu0 %v9519_v35  ;;  %4506 = vst.msk [vmem:[#allocation5 + $0x20] sm:$0xff] %vm3667_vm8, %v5289_v57  ;;  %4642 = vmatpush.msra.mxu3 %v8735_v39  ;;  %v5266_v39 = vld [vmem:[%s8289_s21 + $0x50] sm:$0xff]  ;;  %v4563_v35 = vld [vmem:[%s9232_s5 + $0x138] sm:$0xff] }
 0x6ea   : >> { %4618 = vmatpush.msra.mxu2 %v8796_v61  ;;  %4431 = vst.msk [vmem:[#allocation5 + $0x8] sm:$0xff] %vm3667_vm8, %v5270_v17  ;;  %v9521_v61 = vld [vmem:[#allocation83_spill] sm:$0xff]  ;;  %v5283_v17 = vld [vmem:[%s8289_s21 + $0x80] sm:$0xff] }
 0x6eb   : >> { %4359 = vmatpush.msra.mxu0 %v9520_v43  ;;  %v4085_v23 = vpop.permute.xlu0 %4084  ;;  %v4175_v1 = vld [vmem:[#allocation5] sm:$0xff]  ;;  %4643 = vmatpush.msra.mxu3 %v8756_v25  ;;  %v4561_v43 = vld [vmem:[%s9232_s5 + $0x128] sm:$0xff] }
 0x6ec   : >> { %v4111_v55 = vpop.permute.xlu1 %4110  ;;  %4619 = vmatpush.msra.mxu2 %v8813_v51  ;;  %4092 = vst.msk [vmem:[#allocation5 + $0x28] sm:$0xff] %vm3756_vm11, %v4085_v23  ;;  %4287 = vmatmul.f32.vlgmr.msrb.gmra.mxu1 %v4175_v1  ;;  %v4162_v36 = vpop.permute.xlu2 %4161  ;;  %v5264_v51 = vld [vmem:[%s8289_s21 + $0x40] sm:$0xff]  ;;  %v4566_v25 = vld [vmem:[%s9232_s5 + $0x150] sm:$0xff]  ;;  %v4573_v23 = vld [vmem:[%s9232_s5 + $0x188] sm:$0xff] }
 0x6ed   : >> { %4360 = vmatpush.msra.mxu0 %v9521_v61  ;;  %4117 = vst.msk [vmem:[#allocation5 + $0x58] sm:$0xff] %vm3756_vm11, %v4111_v55  ;;  %v4181_v58 = vld [vmem:[#allocation5 + $0x30] sm:$0xff]  ;;  %4683 = vmatpush.msrb.mxu1 %v8395_v3  ;;  %v9525_v3 = vld [vmem:[#allocation85_spill] sm:$0xff]  ;;  %v5284_v55 = vld [vmem:[%s8289_s21 + $0x88] sm:$0xff] }
 0x6ee   : >> { %5230 = vmatmul.msk.f32.vlgmr.msrb.gmra.mxu0 %vm3667_vm8, %v8956_v40  ;;  %4432 = vst.msk [vmem:[#allocation5 + $0x30] sm:$0xff] %vm3667_vm8, %v9522_v10  ;;  %v4187_v45 = vld [vmem:[#allocation5 + $0x60] sm:$0xff]  ;;  %4620 = vmatpush.msra.mxu2 %v8830_v32  ;;  %v9526_v32 = vld [vmem:[#allocation86_spill] sm:$0xff] }
 0x6ef   : >> { %4316 = vmatmul.f32.gmra.mxu2 %v4181_v58  ;;  %4361 = vmatpush.msra.mxu0 %v9523_v2  ;;  %4457 = vst.msk [vmem:[#allocation5 + $0x60] sm:$0xff] %vm3667_vm8, %v9524_v47  ;;  %v5290_v40 = vld [vmem:[%s8289_s21 + $0x8a] sm:$0xff]  ;;  %v4560_v1 = vld [vmem:[%s9232_s5 + $0x120] sm:$0xff] }
 0x6f0   : >> { %4684 = vmatpush.msrb.mxu1 %v4586_v52  ;;  %4345 = vmatmul.f32.gmra.mxu3 %v4187_v45  ;;  %4407 = vst.msk [vmem:[#allocation5] sm:$0xff] %vm3667_vm8, %v5264_v51  ;;  %v4572_v61 = vld [vmem:[%s9232_s5 + $0x180] sm:$0xff]  ;;  %v4559_v51 = vld [vmem:[%s9232_s5 + $0x118] sm:$0xff]  ;;  %v4558_v2 = vld [vmem:[%s9232_s5 + $0x110] sm:$0xff] }
 0x6f1   : >> { %4362 = vmatpush.msra.mxu0 %v9525_v3  ;;  %4717 = vmatpush.msrb.mxu2 %v8837_v9  ;;  %4168 = vst.msk [vmem:[#allocation5 + $0x68] sm:$0xff] %vm3756_vm11, %v4162_v36  ;;  %v4557_v45 = vld [vmem:[%s9232_s5 + $0x108] sm:$0xff]  ;;  %v4556_v3 = vld [vmem:[%s9232_s5 + $0x100] sm:$0xff] }
 0x6f2   : >> { %4685 = vmatpush.msrb.mxu1 %v4585_v5  ;;  %4507 = vst.msk [vmem:[#allocation5 + $0x48] sm:$0xff] %vm3667_vm8, %v5290_v40  ;;  %4644 = vmatpush.msra.mxu3 %v8781_v20  ;;  %v4577_v20 = vld [vmem:[%s9232_s5 + $0x1a8] sm:$0xff] }
 0x6f3   : >> { %4363 = vmatpush.msra.mxu0 %v9526_v32  ;;  %v4087_v38 = vpop.permute.xlu0 %4086  ;;  %v4180_v22 = vld [vmem:[#allocation5 + $0x28] sm:$0xff]  ;;  %4718 = vmatpush.msrb.mxu2 %v8846_v11  ;;  %v4570_v11 = vld [vmem:[%s9232_s5 + $0x170] sm:$0xff] }
 0x6f4   : >> { %v4417_v24 = vpop.permute.xlu1 %4416  ;;  %4686 = vmatpush.msrb.mxu1 %v4584_v27  ;;  %4093 = vst.msk [vmem:[#allocation5 + $0x50] sm:$0xff] %vm3756_vm11, %v4087_v38  ;;  %v4186_v9 = vld [vmem:[#allocation5 + $0x58] sm:$0xff]  ;;  %v4465_v6 = vpop.permute.xlu2 %4464  ;;  %4645 = vmatpush.msra.mxu3 %v8801_v53  ;;  %v4576_v53 = vld [vmem:[%s9232_s5 + $0x1a0] sm:$0xff]  ;;  %v4513_v27 = vld [vmem:[#allocation5 + $0x20] sm:$0xff] }
 0x6f5   : >> { %4290 = vmatmul.f32.gmra.mxu1 %v4180_v22  ;;  %4364 = vmatpush.msra.mxu0 %v9527_v19  ;;  %4408 = vst.msk [vmem:[#allocation5 + $0x28] sm:$0xff] %vm3667_vm8, %v9528_v44 }
 0x6f6   : >> { %5231 = vmatmul.msk.f32.gmra.mxu0 %vm3667_vm8, %v8981_v16  ;;  %4687 = vmatpush.msrb.mxu1 %v4583_v7  ;;  %4433 = vst.msk [vmem:[#allocation5 + $0x58] sm:$0xff] %vm3667_vm8, %v9529_v60  ;;  %v4569_v16 = vld [vmem:[%s9232_s5 + $0x168] sm:$0xff] }
 0x6f7   : >> { %4319 = vmatmul.f32.gmra.mxu2 %v4186_v9  ;;  %4657 = vmatpush.msrb.mxu0 %v9530_v48  ;;  %4425 = vst.msk [vmem:[#allocation5] sm:$0xff] %vm3756_vm11, %v4417_v24 }
 0x6f8   : >> { %4719 = vmatpush.msrb.mxu2 %v8855_v33  ;;  %4688 = vmatpush.msrb.mxu1 %v4582_v0  ;;  %4473 = vst.msk [vmem:[#allocation5 + $0x10] sm:$0xff] %vm3756_vm11, %v4465_v6  ;;  %v9107_v29 = vld [vmem:[#allocation5 + $0x68] sm:$0xff]  ;;  %v9114_v33 = vld [vmem:[#allocation5 + $0x70] sm:$0xff] }
 0x6f9   : >> { %4658 = vmatpush.msrb.mxu0 %v4570_v11  ;;  %4484 = vst.msk [vmem:[#allocation5 + $0x68] sm:$0xff] %vm3667_vm8, %v5285_v18  ;;  %4646 = vmatpush.msra.mxu3 %v8821_v14  ;;  %v4575_v14 = vld [vmem:[%s9232_s5 + $0x198] sm:$0xff] }
 0x6fa   : >> { %4720 = vmatpush.msrb.mxu2 %v8867_v56  ;;  %4689 = vmatpush.msrb.mxu1 %v4581_v50  ;;  %4508 = vst.msk [vmem:[#allocation5 + $0x70] sm:$0xff] %vm3667_vm8, %v5291_v4  ;;  %v4579_v56 = vld [vmem:[%s9232_s5 + $0x1b8] sm:$0xff] }
 0x6fb   : >> { %4659 = vmatpush.msrb.mxu0 %v4569_v16  ;;  %v4158_v8 = vpop.permute.xlu0 %4157  ;;  %v4185_v42 = vld [vmem:[#allocation5 + $0x50] sm:$0xff]  ;;  %v4518_v22 = vld [vmem:[#allocation5 + $0x48] sm:$0xff] }
 0x6fc   : >> { %v4419_v49 = vpop.permute.xlu1 %4418  ;;  %4690 = vmatpush.msrb.mxu1 %v4580_v54  ;;  %4721 = vmatpush.msrb.mxu2 %v8880_v31  ;;  %4166 = vst.msk [vmem:[#allocation5 + $0x18] sm:$0xff] %vm3756_vm11, %v4158_v8  ;;  %v4578_v31 = vld [vmem:[%s9232_s5 + $0x1b0] sm:$0xff]  ;;  %v4467_v63 = vpop.permute.xlu2 %4466 }
 0x6fd   : >> { %4293 = vmatmul.f32.gmra.mxu1 %v4185_v42  ;;  %4660 = vmatpush.msrb.mxu0 %v4568_v30  ;;  %4409 = vst.msk [vmem:[#allocation5 + $0x50] sm:$0xff] %vm3667_vm8, %v5266_v39 }
 0x6fe   : >> { %5232 = vmatmul.msk.f32.gmra.mxu0 %vm3667_vm8, %v9005_v34  ;;  %4426 = vst.msk [vmem:[#allocation5 + $0x28] sm:$0xff] %vm3756_vm11, %v4419_v49  ;;  %v4509_v59 = vld [vmem:[#allocation5] sm:$0xff]  ;;  %4691 = vmatpush.msrb.mxu1 %v4579_v56  ;;  %v4565_v34 = vld [vmem:[%s9232_s5 + $0x148] sm:$0xff] }
 0x6ff   : >> { %4661 = vmatpush.msrb.mxu0 %v4567_v41  ;;  %4621 = vmatmul.f32.vlgmr.msra.gmra.mxu2 %v4509_v59  ;;  %4474 = vst.msk [vmem:[#allocation5 + $0x38] sm:$0xff] %vm3756_vm11, %v4467_v63 }
 0x700   : >> { %4692 = vmatpush.msrb.mxu1 %v4578_v31  ;;  %4722 = vmatpush.msrb.mxu2 %v8891_v28 }
 0x701   : >> { %4662 = vmatpush.msrb.mxu0 %v4566_v25  ;;  %v4523_v0 = vld [vmem:[#allocation5 + $0x70] sm:$0xff] }
 0x702   : >> { %4693 = vmatpush.msrb.mxu1 %v4577_v20  ;;  %4723 = vmatpush.msrb.mxu2 %v8900_v26  ;;  %v4562_v26 = vld [vmem:[%s9232_s5 + $0x130] sm:$0xff] }
 0x703   : >> { %4663 = vmatpush.msrb.mxu0 %v4565_v34  ;;  %v4160_v57 = vpop.permute.xlu0 %4159  ;;  %v4178_v12 = vld [vmem:[#allocation5 + $0x18] sm:$0xff] }
 0x704   : >> { %v4421_v15 = vpop.permute.xlu1 %4420  ;;  %4167 = vst.msk [vmem:[#allocation5 + $0x40] sm:$0xff] %vm3756_vm11, %v4160_v57  ;;  %4694 = vmatpush.msrb.mxu1 %v4576_v53  ;;  %4724 = vmatpush.msrb.mxu2 %v8914_v13 }
 0x705   : >> { %5261 = vmatmul.msk.f32.vlgmr.msra.gmra.mxu1 %vm3667_vm8, %v9029_v62  ;;  %4664 = vmatpush.msrb.mxu0 %v4564_v37  ;;  %4427 = vst.msk [vmem:[#allocation5 + $0x50] sm:$0xff] %vm3756_vm11, %v4421_v15  ;;  %v4514_v28 = vld [vmem:[#allocation5 + $0x28] sm:$0xff]  ;;  %v4574_v62 = vld [vmem:[%s9232_s5 + $0x190] sm:$0xff]  ;;  %v4496_v13 = vpop.permute.xlu2 %4495 }
 0x706   : >> { %4365 = vmatmul.f32.vlgmr.msra.gmra.mxu0 %v4178_v12  ;;  %4482 = vst.msk [vmem:[#allocation5 + $0x18] sm:$0xff] %vm3667_vm8, %v5283_v17  ;;  %4695 = vmatpush.msrb.mxu1 %v4575_v14  ;;  %v4516_v9 = vld [vmem:[#allocation5 + $0x38] sm:$0xff] }
 0x707   : >> { %4665 = vmatpush.msrb.mxu0 %v4563_v35  ;;  %4624 = vmatmul.f32.gmra.mxu2 %v4514_v28  ;;  %4502 = vst.msk [vmem:[#allocation5 + $0x68] sm:$0xff] %vm3756_vm11, %v4496_v13 }
 0x708   : >> { %4696 = vmatpush.msrb.mxu1 %v4574_v62 }
 0x709   : >> { %4666 = vmatpush.msrb.mxu0 %v4562_v26 }
 0x70a   : >> { %4697 = vmatpush.msrb.mxu1 %v4573_v23 }
 0x70b   : >> { %4667 = vmatpush.msrb.mxu0 %v4561_v43  ;;  %v4441_v52 = vpop.permute.xlu0 %4440  ;;  %v4183_v36 = vld [vmem:[#allocation5 + $0x40] sm:$0xff] }
 0x70c   : >> { %v4443_v58 = vpop.permute.xlu1 %4442  ;;  %4449 = vst.msk [vmem:[#allocation5 + $0x8] sm:$0xff] %vm3756_vm11, %v4441_v52  ;;  %v4519_v10 = vld [vmem:[#allocation5 + $0x50] sm:$0xff]  ;;  %4698 = vmatpush.msrb.mxu1 %v4572_v61 }
 0x70d   : >> { %5262 = vmatmul.msk.f32.gmra.mxu1 %vm3667_vm8, %v9067_v21  ;;  %4668 = vmatpush.msrb.mxu0 %v4560_v1  ;;  %4483 = vst.msk [vmem:[#allocation5 + $0x40] sm:$0xff] %vm3667_vm8, %v5284_v55  ;;  %v4511_v21 = vld [vmem:[#allocation5 + $0x10] sm:$0xff] }
 0x70e   : >> { %4368 = vmatmul.f32.gmra.mxu0 %v4183_v36  ;;  %4450 = vst.msk [vmem:[#allocation5 + $0x30] sm:$0xff] %vm3756_vm11, %v4443_v58  ;;  %v4522_v6 = vld [vmem:[#allocation5 + $0x68] sm:$0xff] }
 0x70f   : >> { %4669 = vmatpush.msrb.mxu0 %v4559_v51  ;;  %4627 = vmatmul.f32.gmra.mxu2 %v4519_v10 }
 0x711   : >> { %4670 = vmatpush.msrb.mxu0 %v4558_v2 }
 0x713   : >> { %4671 = vmatpush.msrb.mxu0 %v4557_v45  ;;  %v4510_v5 = vld [vmem:[#allocation5 + $0x8] sm:$0xff]  ;;  %v4492_v47 = vpop.permute.xlu0 %4491 }
 0x714   : >> { %v4445_v40 = vpop.permute.xlu1 %4444  ;;  %4647 = vmatmul.f32.vlgmr.msra.gmra.mxu3 %v4510_v5  ;;  %4500 = vst.msk [vmem:[#allocation5 + $0x18] sm:$0xff] %vm3756_vm11, %v4492_v47 }
 0x715   : >> { %5263 = vmatmul.msk.f32.gmra.mxu1 %vm3667_vm8, %v9114_v33  ;;  %4451 = vst.msk [vmem:[#allocation5 + $0x58] sm:$0xff] %vm3756_vm11, %v4445_v40  ;;  %4672 = vmatpush.msrb.mxu0 %v4556_v3  ;;  %v4515_v46 = vld [vmem:[#allocation5 + $0x30] sm:$0xff] }
 0x716   : >> { %4371 = vmatmul.f32.gmra.mxu0 %v9107_v29 }
 0x717   : >> { %5292 = vmatmul.msk.f32.vlgmr.msrb.gmra.mxu2 %vm3667_vm8, %v4513_v27 }
 0x71b   : >> { %v4494_v32 = vpop.permute.xlu0 %4493  ;;  %v4512_v7 = vld [vmem:[#allocation5 + $0x18] sm:$0xff] }
 0x71c   : >> { %v4469_v38 = vpop.permute.xlu1 %4468  ;;  %4650 = vmatmul.f32.gmra.mxu3 %v4515_v46  ;;  %4501 = vst.msk [vmem:[#allocation5 + $0x40] sm:$0xff] %vm3756_vm11, %v4494_v32  ;;  %v4520_v24 = vld [vmem:[#allocation5 + $0x58] sm:$0xff] }
 0x71d   : >> { %4699 = vmatmul.f32.vlgmr.msrb.gmra.mxu1 %v4512_v7  ;;  %4475 = vst.msk [vmem:[#allocation5 + $0x60] sm:$0xff] %vm3756_vm11, %v4469_v38 }
 0x71e   : >> { %4673 = vmatmul.f32.vlgmr.msrb.gmra.mxu0 %v4511_v21 }
 0x71f   : >> { %5293 = vmatmul.msk.f32.gmra.mxu2 %vm3667_vm8, %v4518_v22 }
 0x723   : >> { %v4517_v19 = vld [vmem:[#allocation5 + $0x40] sm:$0xff] }
 0x724   : >> { %4653 = vmatmul.f32.gmra.mxu3 %v4520_v24  ;;  %v4521_v44 = vld [vmem:[#allocation5 + $0x60] sm:$0xff] }
 0x725   : >> { %4702 = vmatmul.f32.gmra.mxu1 %v4517_v19 }
 0x726   : >> { %4676 = vmatmul.f32.gmra.mxu0 %v4516_v9 }
 0x727   : >> { %5294 = vmatmul.msk.f32.gmra.mxu2 %vm3667_vm8, %v4523_v0 }
 0x72d   : >> { %4705 = vmatmul.f32.gmra.mxu1 %v4522_v6 }
 0x72e   : >> { %4679 = vmatmul.f32.gmra.mxu0 %v4521_v44 }
 0x748   : >> { %v4035_v30 = vpop.f32.mrf.mxu3 }
 0x74a   : >> { %v3983_v11 = vpop.f32.mrf.mxu1 }
 0x74f   : >> { %v4009_v60 = vpop.f32.mrf.mxu2 }
 0x751   : >> { %v3957_v48 = vpop.f32.mrf.mxu0  ;;  %v4038_v56 = vpop.f32.mrf.mxu3 }
 0x752   : >> { %v3984_v50 = vadd.f32 %v3983_v11, %v3957_v48  ;;  %v3986_v4 = vpop.f32.mrf.mxu1 }
 0x754   : >> { %v4010_v18 = vadd.f32 %v4009_v60, %v3984_v50 }
 0x756   : >> { %v4036_v47 = vadd.f32 %v4035_v30, %v4010_v18 }
 0x758   : >> { %v4012_v16 = vpop.f32.mrf.mxu2 }
 0x75a   : >> { %v3960_v54 = vpop.f32.mrf.mxu0 }
 0x75b   : >> { %v3987_v29 = vadd.f32 %v3986_v4, %v3960_v54  ;;  %v4041_v59 = vpop.f32.mrf.mxu3 }
 0x75d   : >> { %v4013_v33 = vadd.f32 %v4012_v16, %v3987_v29 }
 0x75f   : >> { %v4039_v11 = vadd.f32 %v4038_v56, %v4013_v33 }
 0x760   : >> { %v4015_v39 = vpop.f32.mrf.mxu2 }
 0x761   : >> { %v3989_v8 = vpop.f32.mrf.mxu1 }
 0x763   : >> { %v3963_v42 = vpop.f32.mrf.mxu0  ;;  %v4340_v15 = vpop.f32.mrf.mxu3 }
 0x764   : >> { %v3990_v49 = vadd.f32 %v3989_v8, %v3963_v42 }
 0x766   : >> { %v9215_v41 = vadd.f32 %v4015_v39, %v3990_v49 }
 0x769   : >> { %v4288_v25 = vpop.f32.mrf.mxu1 }
 0x76a   : >> { %v4314_v31 = vpop.f32.mrf.mxu2 }
 0x76b   : >> { %v4061_v63 = vpop.f32.mrf.mxu0  ;;  %v4343_v28 = vpop.f32.mrf.mxu3  ;;  %v4315_v1 = vadd.f32 %v4314_v31, %v4288_v25  ;;  %v4042_v25 = vadd.f32 %v4041_v59, %v9215_v41 }
 0x76c   : >> { %v4062_v27 = vadd.f32 %v4061_v63, %v4036_v47 }
 0x76d   : >> { %v4341_v52 = vadd.f32 %v4340_v15, %v4315_v1 }
 0x772   : >> { %v4291_v34 = vpop.f32.mrf.mxu1  ;;  %v4317_v20 = vpop.f32.mrf.mxu2 }
 0x773   : >> { %v4064_v37 = vpop.f32.mrf.mxu0  ;;  %v4346_v23 = vpop.f32.mrf.mxu3  ;;  %v4318_v10 = vadd.f32 %v4317_v20, %v4291_v34 }
 0x774   : >> { %v4065_v50 = vadd.f32 %v4064_v37, %v4039_v11 }
 0x775   : >> { %v4344_v46 = vadd.f32 %v4343_v28, %v4318_v10 }
 0x77a   : >> { %v4294_v53 = vpop.f32.mrf.mxu1  ;;  %v4320_v12 = vpop.f32.mrf.mxu2 }
 0x77b   : >> { %v4067_v57 = vpop.f32.mrf.mxu0  ;;  %v4321_v9 = vadd.f32 %v4320_v12, %v4294_v53 }
 0x77c   : >> { %v4068_v63 = vadd.f32 %v4067_v57, %v4042_v25 }
 0x77d   : >> { %v4347_v18 = vadd.f32 %v4346_v23, %v4321_v9 }
 0x782   : >> { %v4392_v35 = vpop.f32.mrf.mxu1  ;;  %v4622_v14 = vpop.f32.mrf.mxu2 }
 0x783   : >> { %v4366_v17 = vpop.f32.mrf.mxu0 }
 0x784   : >> { %v4367_v36 = vadd.f32 %v4366_v17, %v4341_v52  ;;  %v9531_v17 = vld [vmem:[#allocation64_spill] sm:$0xff] }
 0x786   : >> { %v4393_v40 = vadd.f32 %v4392_v35, %v4367_v36 }
 0x788   : >> { %v4401_v32 = vmax.f32 %v4062_v27, %v4393_v40 }
 0x78a   : >> { %v4395_v26 = vpop.f32.mrf.mxu1  ;;  %v4625_v43 = vpop.f32.mrf.mxu2 }
 0x78b   : >> { %v4369_v62 = vpop.f32.mrf.mxu0 }
 0x78c   : >> { %v4370_v7 = vadd.f32 %v4369_v62, %v4344_v46 }
 0x78e   : >> { %v4396_v60 = vadd.f32 %v4395_v26, %v4370_v7 }
 0x790   : >> { %v4402_v4 = vmax.f32 %v4065_v50, %v4396_v60 }
 0x792   : >> { %v4398_v13 = vpop.f32.mrf.mxu1  ;;  %v4628_v61 = vpop.f32.mrf.mxu2 }
 0x793   : >> { %v4372_v55 = vpop.f32.mrf.mxu0 }
 0x794   : >> { %v4373_v54 = vadd.f32 %v4372_v55, %v4347_v18 }
 0x796   : >> { %v4399_v31 = vadd.f32 %v4398_v13, %v4373_v54 }
 0x797   : >> { %v4648_v58 = vpop.f32.mrf.mxu3 }
 0x798   : >> { %v4649_v51 = vadd.f32 %v4648_v58, %v4622_v14  ;;  %v4403_v20 = vmax.f32 %v4068_v63, %v4399_v31  ;;  %v4749_v14 = vperm.slane %v9531_v17, 0 }
 0x79a   : >> { %v4700_v2 = vpop.f32.mrf.mxu1  ;;  %v4726_v5 = vpop.f32.mrf.mxu2 }
 0x79b   : >> { %v4674_v45 = vpop.f32.mrf.mxu0 }
 0x79c   : >> { %v4675_v3 = vadd.f32 %v4674_v45, %v4649_v51 }
 0x79e   : >> { %v4701_v21 = vadd.f32 %v4700_v2, %v4675_v3 }
 0x79f   : >> { %v4651_v22 = vpop.f32.mrf.mxu3 }
 0x7a0   : >> { %v4727_v38 = vadd.f32 %v4726_v5, %v4701_v21  ;;  %v4652_v24 = vadd.f32 %v4651_v22, %v4625_v43 }
 0x7a2   : >> { %v4735_v19 = vmax.f32 %v4401_v32, %v4727_v38  ;;  %v4703_v0 = vpop.f32.mrf.mxu1  ;;  %v4729_v44 = vpop.f32.mrf.mxu2 }
 0x7a3   : >> { %v4677_v6 = vpop.f32.mrf.mxu0 }
 0x7a4   : >> { %4738 = vst [vmem:[#allocation7] sm:$0xff] %v4735_v19  ;;  %v4678_v48 = vadd.f32 %v4677_v6, %v4652_v24 }
 0x7a6   : >> { %v4704_v16 = vadd.f32 %v4703_v0, %v4678_v48 }
 0x7a7   : >> { %v4654_v30 = vpop.f32.mrf.mxu3 }
 0x7a8   : >> { %v4730_v29 = vadd.f32 %v4729_v44, %v4704_v16  ;;  %v4655_v39 = vadd.f32 %v4654_v30, %v4628_v61 }
 0x7aa   : >> { %v4736_v8 = vmax.f32 %v4402_v4, %v4730_v29  ;;  %v4706_v49 = vpop.f32.mrf.mxu1  ;;  %v4732_v56 = vpop.f32.mrf.mxu2 }
 0x7ab   : >> { %v4680_v42 = vpop.f32.mrf.mxu0 }
 0x7ac   : >> { %4739 = vst [vmem:[#allocation7 + $0x8] sm:$0xff] %v4736_v8  ;;  %v4681_v33 = vadd.f32 %v4680_v42, %v4655_v39 }
 0x7ae   : >> { %v4707_v34 = vadd.f32 %v4706_v49, %v4681_v33 }
 0x7b0   : >> { %v4733_v37 = vadd.f32 %v4732_v56, %v4707_v34 }
 0x7b2   : >> { %v4737_v53 = vmax.f32 %v4403_v20, %v4733_v37 }
 0x7b4   : >> { %4740 = vst [vmem:[#allocation7 + $0x10] sm:$0xff] %v4737_v53 }
 0x7bb   : >> { %v4741_v12 = vld [vmem:[#allocation7] ss:$3 sm:$0xff]  ;;  %v4743_v15 = vld [vmem:[#allocation7 + $0x1] ss:$3 sm:$0xff]  ;;  %v4746_v28 = vld [vmem:[#allocation7 + $0x2] ss:$3 sm:$0xff] }
 0x7bc   : >> { %v4744_v35 = vmax.f32 %v4741_v12, %v4743_v15 }
 0x7be   : >> { %v4747_v26 = vmax.f32 %v4744_v35, %v4746_v28  ;;  %3729 = sbr.rel (!%p3727_p6) target bundleno = 1610 (0x64a), region = 162 }
 0x7c0   : >> { %v4751_v41 = vadd.f32 %v4749_v14, %v4747_v26 }
 0x7c2   : >> { %4754 = vst [vmem:[%s4753_s27] sm:$0xff] %v4751_v41 }
 0x7c3 PF: > { %s17_s24 = sadd.s32 1, %s5428_s24  }
 0x7c4   : > { %p14_p7 = scmp.ge.s32.totalorder %s17_s24, 4  }
 0x7c6   :  { %16 = sbr.rel (!%p14_p7) target bundleno = 1 (0x1), region = 173 }

// kernel: encoder_forward.3
= control target key start
LH: loop header
LB: loop body
LE: loop exit
PB: predicated region body
PF: predicated region fallthrough
CT: control target
= control target key end

     0   :  { %s9482_s0 = inlined_call_operand.vmem [shape: f32[2,8192], index: 0, kind: input, shape index: {}]   ;;  %s9483_s1 = inlined_call_operand.vmem [shape: bf16[8192,128], index: 1, kind: input, shape index: {}]   ;;  %s9484_s2 = inlined_call_operand.vmem [shape: f32[1,128], index: 2, kind: input, shape index: {}]   ;;  %s9485_s3 = inlined_call_operand.hbm [shape: f32[2,128], index: 3, kind: output, shape index: {}]  }
   0x1   :  { %v7260_v0 = vld [vmem:[%s9483_s1 + $0x38] sm:$0xff]  ;;  %v7259_v4 = vld [vmem:[%s9483_s1 + $0x30] sm:$0xff]  ;;  %v7258_v8 = vld [vmem:[%s9483_s1 + $0x28] sm:$0xff] }
   0x2   :  { %v7268_v1 = vld [vmem:[%s9483_s1 + $0x78] sm:$0xff]  ;;  %4356 = vmatpush.bf16.msra.mxu0 %v7260_v0  ;;  %v7267_v5 = vld [vmem:[%s9483_s1 + $0x70] sm:$0xff]  ;;  %v7266_v9 = vld [vmem:[%s9483_s1 + $0x68] sm:$0xff] }
   0x3   :  { %v7276_v2 = vld [vmem:[%s9483_s1 + $0xb8] sm:$0xff]  ;;  %4369 = vmatpush.bf16.msra.mxu1 %v7268_v1  ;;  %v7275_v6 = vld [vmem:[%s9483_s1 + $0xb0] sm:$0xff]  ;;  %v7274_v10 = vld [vmem:[%s9483_s1 + $0xa8] sm:$0xff] }
   0x4   :  { %v7284_v3 = vld [vmem:[%s9483_s1 + $0xf8] sm:$0xff]  ;;  %4382 = vmatpush.bf16.msra.mxu2 %v7276_v2  ;;  %v7283_v7 = vld [vmem:[%s9483_s1 + $0xf0] sm:$0xff]  ;;  %v7282_v11 = vld [vmem:[%s9483_s1 + $0xe8] sm:$0xff] }
   0x5   :  { %4395 = vmatpush.bf16.msra.mxu3 %v7284_v3  ;;  %v7257_v12 = vld [vmem:[%s9483_s1 + $0x20] sm:$0xff]  ;;  %v7256_v16 = vld [vmem:[%s9483_s1 + $0x18] sm:$0xff]  ;;  %v7255_v20 = vld [vmem:[%s9483_s1 + $0x10] sm:$0xff] }
   0x6   :  { %4357 = vmatpush.bf16.msra.mxu0 %v7259_v4  ;;  %v7265_v13 = vld [vmem:[%s9483_s1 + $0x60] sm:$0xff]  ;;  %v7264_v17 = vld [vmem:[%s9483_s1 + $0x58] sm:$0xff]  ;;  %v7263_v21 = vld [vmem:[%s9483_s1 + $0x50] sm:$0xff] }
   0x7   :  { %4370 = vmatpush.bf16.msra.mxu1 %v7267_v5  ;;  %v7273_v14 = vld [vmem:[%s9483_s1 + $0xa0] sm:$0xff]  ;;  %v7272_v18 = vld [vmem:[%s9483_s1 + $0x98] sm:$0xff] }
   0x8   :  { %4383 = vmatpush.bf16.msra.mxu2 %v7275_v6  ;;  %v7281_v15 = vld [vmem:[%s9483_s1 + $0xe0] sm:$0xff]  ;;  %v7280_v19 = vld [vmem:[%s9483_s1 + $0xd8] sm:$0xff] }
   0x9   :  { %4396 = vmatpush.bf16.msra.mxu3 %v7283_v7  ;;  %v15_v22 = vld [vmem:[%s9482_s0] sm:$0xff] }
   0xa   :  { %4358 = vmatpush.bf16.msra.mxu0 %v7258_v8  ;;  %47 = vst [vmem:[#allocation1] ss:$4 sm:$0xff] %v15_v22 }
   0xb   :  { %4371 = vmatpush.bf16.msra.mxu1 %v7266_v9 }
   0xc   :  { %4384 = vmatpush.bf16.msra.mxu2 %v7274_v10 }
   0xd   :  { %4397 = vmatpush.bf16.msra.mxu3 %v7282_v11 }
   0xe   :  { %4359 = vmatpush.bf16.msra.mxu0 %v7257_v12 }
   0xf   :  { %4372 = vmatpush.bf16.msra.mxu1 %v7265_v13 }
  0x10   :  { %4385 = vmatpush.bf16.msra.mxu2 %v7273_v14 }
  0x11   :  { %4398 = vmatpush.bf16.msra.mxu3 %v7281_v15 }
  0x12   :  { %4360 = vmatpush.bf16.msra.mxu0 %v7256_v16 }
  0x13   :  { %4373 = vmatpush.bf16.msra.mxu1 %v7264_v17 }
  0x14   :  { %8 = vsyncpa [#allocation3], 0  ;;  %4386 = vmatpush.bf16.msra.mxu2 %v7272_v18  ;;  %v7271_v23 = vld [vmem:[%s9483_s1 + $0x90] sm:$0xff]  ;;  %v7254_v25 = vld [vmem:[%s9483_s1 + $0x8] sm:$0xff]  ;;  %s5196_s19 = sshll.u32 %s9485_s3, 4  ;;  %s5197_s19 = int_to_ptr.hbm [resolvable:$true] %s5196_s19 }
  0x15   :  { %4399 = vmatpush.bf16.msra.mxu3 %v7280_v19  ;;  %v7279_v24 = vld [vmem:[%s9483_s1 + $0xd0] sm:$0xff]  ;;  %v7262_v26 = vld [vmem:[%s9483_s1 + $0x48] sm:$0xff]  ;;  %v7253_v29 = vld [vmem:[%s9483_s1] sm:$0xff] }
  0x16   :  { %4361 = vmatpush.bf16.msra.mxu0 %v7255_v20  ;;  %v7270_v27 = vld [vmem:[%s9483_s1 + $0x88] sm:$0xff]  ;;  %v7261_v30 = vld [vmem:[%s9483_s1 + $0x40] sm:$0xff]  ;;  %v17_v31 = vld [vmem:[%s9482_s0 + $0x10] sm:$0xff] }
  0x17   :  { %4374 = vmatpush.bf16.msra.mxu1 %v7263_v21  ;;  %v7278_v28 = vld [vmem:[%s9483_s1 + $0xc8] sm:$0xff]  ;;  %v52_v32 = vld.sshfl [vmem:[#allocation1 + $0x10] sm:$0xff pattern:$0x73625140]  ;;  %v7269_v36 = vld [vmem:[%s9483_s1 + $0x80] sm:$0xff] }
  0x18   :  { %4387 = vmatpush.bf16.msra.mxu2 %v7271_v23  ;;  %v50_v33 = vld.sshfl [vmem:[#allocation1] sm:$0xff pattern:$0x73625140]  ;;  %v53_v34 = vld.sshfl [vmem:[#allocation1 + $0x18] sm:$0xff pattern:$0x73625140]  ;;  %v194_v43 = vpack.c.bf16 %v52_v32, %v52_v32 }
  0x19   :  { %4400 = vmatpush.bf16.msra.mxu3 %v7279_v24  ;;  %v51_v35 = vld.sshfl [vmem:[#allocation1 + $0x8] sm:$0xff pattern:$0x73625140]  ;;  %v7277_v37 = vld [vmem:[%s9483_s1 + $0xc0] sm:$0xff]  ;;  %v7292_v38 = vld [vmem:[%s9483_s1 + $0x138] sm:$0xff]  ;;  %v192_v44 = vpack.c.bf16 %v50_v33, %v50_v33  ;;  %v195_v45 = vpack.c.bf16 %v53_v34, %v53_v34 }
  0x1a   :  { %4362 = vmatpush.bf16.msra.mxu0 %v7254_v25  ;;  %58 = vst [vmem:[#allocation1] ss:$4 sm:$0xff] %v17_v31  ;;  %v7300_v39 = vld [vmem:[%s9483_s1 + $0x178] sm:$0xff]  ;;  %v16_v42 = vld [vmem:[%s9482_s0 + $0x8] sm:$0xff]  ;;  %v193_v46 = vpack.c.bf16 %v51_v35, %v51_v35  ;;  %v7291_v47 = vld [vmem:[%s9483_s1 + $0x130] sm:$0xff] }
  0x1b   :  { %4375 = vmatpush.bf16.msra.mxu1 %v7262_v26  ;;  %v7308_v40 = vld [vmem:[%s9483_s1 + $0x1b8] sm:$0xff]  ;;  %49 = vst [vmem:[#allocation1 + $0x20] ss:$4 sm:$0xff] %v16_v42  ;;  %v7299_v48 = vld [vmem:[%s9483_s1 + $0x170] sm:$0xff]  ;;  %v7290_v51 = vld [vmem:[%s9483_s1 + $0x128] sm:$0xff] }
  0x1c   :  { %4388 = vmatpush.bf16.msra.mxu2 %v7270_v27  ;;  %v7316_v41 = vld [vmem:[%s9483_s1 + $0x1f8] sm:$0xff]  ;;  %v7307_v49 = vld [vmem:[%s9483_s1 + $0x1b0] sm:$0xff]  ;;  %v7298_v52 = vld [vmem:[%s9483_s1 + $0x168] sm:$0xff] }
  0x1d   :  { %4401 = vmatpush.bf16.msra.mxu3 %v7278_v28  ;;  %v7315_v50 = vld [vmem:[%s9483_s1 + $0x1f0] sm:$0xff]  ;;  %v7306_v53 = vld [vmem:[%s9483_s1 + $0x1a8] sm:$0xff]  ;;  %v18_v58 = vld [vmem:[%s9482_s0 + $0x18] sm:$0xff] }
  0x1e   :  { %4363 = vmatpush.bf16.msra.mxu0 %v7253_v29  ;;  %v7314_v54 = vld [vmem:[%s9483_s1 + $0x1e8] sm:$0xff]  ;;  %v7289_v60 = vld [vmem:[%s9483_s1 + $0x120] sm:$0xff]  ;;  %v7288_v0 = vld [vmem:[%s9483_s1 + $0x118] sm:$0xff] }
  0x1f   :  { %4376 = vmatpush.bf16.msra.mxu1 %v7261_v30  ;;  %v7297_v61 = vld [vmem:[%s9483_s1 + $0x160] sm:$0xff]  ;;  %v7296_v1 = vld [vmem:[%s9483_s1 + $0x158] sm:$0xff]  ;;  %v7287_v4 = vld [vmem:[%s9483_s1 + $0x110] sm:$0xff] }
  0x20   :  { %4389 = vmatpush.bf16.msra.mxu2 %v7269_v36  ;;  %v7305_v62 = vld [vmem:[%s9483_s1 + $0x1a0] sm:$0xff]  ;;  %v7304_v2 = vld [vmem:[%s9483_s1 + $0x198] sm:$0xff]  ;;  %v7295_v5 = vld [vmem:[%s9483_s1 + $0x150] sm:$0xff] }
  0x21   :  { %4402 = vmatpush.bf16.msra.mxu3 %v7277_v37  ;;  %4364 = vmatmul.bf16.vlgmr.msra.gmra.mxu0 %v192_v44  ;;  %v7313_v63 = vld [vmem:[%s9483_s1 + $0x1e0] sm:$0xff]  ;;  %v7312_v3 = vld [vmem:[%s9483_s1 + $0x1d8] sm:$0xff]  ;;  %v7303_v6 = vld [vmem:[%s9483_s1 + $0x190] sm:$0xff] }
  0x22   :  { %4408 = vmatpush.bf16.msrb.mxu0 %v7292_v38  ;;  %4377 = vmatmul.bf16.vlgmr.msra.gmra.mxu1 %v193_v46  ;;  %v7955_v55 = vld.sshfl [vmem:[#allocation1 + $0x30] sm:$0xff pattern:$0x73625140]  ;;  %v7957_v56 = vld.sshfl [vmem:[#allocation1 + $0x20] sm:$0xff pattern:$0x73625140] }
  0x23   :  { %4421 = vmatpush.bf16.msrb.mxu1 %v7300_v39  ;;  %4390 = vmatmul.bf16.vlgmr.msra.gmra.mxu2 %v194_v43  ;;  %v7959_v57 = vld.sshfl [vmem:[#allocation1 + $0x38] sm:$0xff pattern:$0x73625140]  ;;  %v7964_v59 = vld.sshfl [vmem:[#allocation1 + $0x28] sm:$0xff pattern:$0x73625140]  ;;  %v198_v21 = vpack.c.bf16 %v7955_v55, %v7955_v55  ;;  %v196_v22 = vpack.c.bf16 %v7957_v56, %v7957_v56 }
  0x24   :  { %4434 = vmatpush.bf16.msrb.mxu2 %v7308_v40  ;;  %4403 = vmatmul.bf16.vlgmr.msra.gmra.mxu3 %v195_v45  ;;  %59 = vst [vmem:[#allocation1 + $0x20] ss:$4 sm:$0xff] %v18_v58  ;;  %v7311_v7 = vld [vmem:[%s9483_s1 + $0x1d0] sm:$0xff]  ;;  %v7286_v8 = vld [vmem:[%s9483_s1 + $0x108] sm:$0xff]  ;;  %v7285_v12 = vld [vmem:[%s9483_s1 + $0x100] sm:$0xff]  ;;  %v199_v25 = vpack.c.bf16 %v7959_v57, %v7959_v57  ;;  %v197_v26 = vpack.c.bf16 %v7964_v59, %v7964_v59 }
  0x25   :  { %4447 = vmatpush.bf16.msrb.mxu3 %v7316_v41  ;;  %v7294_v9 = vld [vmem:[%s9483_s1 + $0x148] sm:$0xff]  ;;  %v7293_v13 = vld [vmem:[%s9483_s1 + $0x140] sm:$0xff]  ;;  %v7324_v16 = vld [vmem:[%s9483_s1 + $0x238] sm:$0xff] }
  0x26   :  { %4409 = vmatpush.bf16.msrb.mxu0 %v7291_v47  ;;  %v7302_v10 = vld [vmem:[%s9483_s1 + $0x188] sm:$0xff]  ;;  %v7301_v14 = vld [vmem:[%s9483_s1 + $0x180] sm:$0xff]  ;;  %v7332_v17 = vld [vmem:[%s9483_s1 + $0x278] sm:$0xff] }
  0x27   :  { %4422 = vmatpush.bf16.msrb.mxu1 %v7299_v48  ;;  %v7310_v11 = vld [vmem:[%s9483_s1 + $0x1c8] sm:$0xff]  ;;  %v7309_v15 = vld [vmem:[%s9483_s1 + $0x1c0] sm:$0xff]  ;;  %v7340_v18 = vld [vmem:[%s9483_s1 + $0x2b8] sm:$0xff] }
  0x28   :  { %4435 = vmatpush.bf16.msrb.mxu2 %v7307_v49  ;;  %v7348_v19 = vld [vmem:[%s9483_s1 + $0x2f8] sm:$0xff]  ;;  %v7323_v20 = vld [vmem:[%s9483_s1 + $0x230] sm:$0xff]  ;;  %v8055_v27 = vld.sshfl [vmem:[#allocation1] sm:$0xff pattern:$0x73625140] }
  0x29   :  { %4448 = vmatpush.bf16.msrb.mxu3 %v7315_v50  ;;  %v7331_v23 = vld [vmem:[%s9483_s1 + $0x270] sm:$0xff]  ;;  %v8059_v29 = vld.sshfl [vmem:[#allocation1 + $0x8] sm:$0xff pattern:$0x73625140]  ;;  %v19_v31 = vld [vmem:[%s9482_s0 + $0x20] sm:$0xff] }
  0x2a   :  { %4410 = vmatpush.bf16.msrb.mxu0 %v7290_v51  ;;  %v7339_v24 = vld [vmem:[%s9483_s1 + $0x2b0] sm:$0xff]  ;;  %v8067_v32 = vld.sshfl [vmem:[#allocation1 + $0x18] sm:$0xff pattern:$0x73625140]  ;;  %v7322_v33 = vld [vmem:[%s9483_s1 + $0x228] sm:$0xff] }
  0x2b   :  { %4423 = vmatpush.bf16.msrb.mxu1 %v7298_v52  ;;  %v8057_v28 = vld.sshfl [vmem:[#allocation1 + $0x10] sm:$0xff pattern:$0x73625140]  ;;  %v7330_v34 = vld [vmem:[%s9483_s1 + $0x268] sm:$0xff]  ;;  %v7321_v37 = vld [vmem:[%s9483_s1 + $0x220] sm:$0xff] }
  0x2c   :  { %4436 = vmatpush.bf16.msrb.mxu2 %v7306_v53  ;;  %v7347_v30 = vld [vmem:[%s9483_s1 + $0x2f0] sm:$0xff]  ;;  %68 = vst [vmem:[#allocation1] ss:$4 sm:$0xff] %v19_v31  ;;  %v7338_v35 = vld [vmem:[%s9483_s1 + $0x2a8] sm:$0xff]  ;;  %v7329_v38 = vld [vmem:[%s9483_s1 + $0x260] sm:$0xff] }
  0x2d   :  { %4449 = vmatpush.bf16.msrb.mxu3 %v7314_v54  ;;  %v7346_v36 = vld [vmem:[%s9483_s1 + $0x2e8] sm:$0xff]  ;;  %v7337_v39 = vld [vmem:[%s9483_s1 + $0x2a0] sm:$0xff]  ;;  %v7320_v41 = vld [vmem:[%s9483_s1 + $0x218] sm:$0xff] }
  0x2e   :  { %4411 = vmatpush.bf16.msrb.mxu0 %v7289_v60  ;;  %v7345_v40 = vld [vmem:[%s9483_s1 + $0x2e0] sm:$0xff]  ;;  %v7328_v42 = vld [vmem:[%s9483_s1 + $0x258] sm:$0xff]  ;;  %v7319_v45 = vld [vmem:[%s9483_s1 + $0x210] sm:$0xff] }
  0x2f   :  { %4424 = vmatpush.bf16.msrb.mxu1 %v7297_v61  ;;  %v7336_v43 = vld [vmem:[%s9483_s1 + $0x298] sm:$0xff]  ;;  %v7327_v46 = vld [vmem:[%s9483_s1 + $0x250] sm:$0xff]  ;;  %v7318_v49 = vld [vmem:[%s9483_s1 + $0x208] sm:$0xff]  ;;  %v200_v61 = vpack.c.bf16 %v8055_v27, %v8055_v27 }
  0x30   :  { %4437 = vmatpush.bf16.msrb.mxu2 %v7305_v62  ;;  %v7344_v44 = vld [vmem:[%s9483_s1 + $0x2d8] sm:$0xff]  ;;  %v7335_v47 = vld [vmem:[%s9483_s1 + $0x290] sm:$0xff]  ;;  %v7326_v50 = vld [vmem:[%s9483_s1 + $0x248] sm:$0xff]  ;;  %v202_v62 = vpack.c.bf16 %v8057_v28, %v8057_v28 }
  0x31   :  { %4450 = vmatpush.bf16.msrb.mxu3 %v7313_v63  ;;  %v7343_v48 = vld [vmem:[%s9483_s1 + $0x2d0] sm:$0xff]  ;;  %v7334_v51 = vld [vmem:[%s9483_s1 + $0x288] sm:$0xff]  ;;  %v7317_v53 = vld [vmem:[%s9483_s1 + $0x200] sm:$0xff] }
  0x32   :  { %4412 = vmatpush.bf16.msrb.mxu0 %v7288_v0  ;;  %v7342_v52 = vld [vmem:[%s9483_s1 + $0x2c8] sm:$0xff]  ;;  %v7325_v54 = vld [vmem:[%s9483_s1 + $0x240] sm:$0xff]  ;;  %v7356_v57 = vld [vmem:[%s9483_s1 + $0x338] sm:$0xff]  ;;  %v201_v0 = vpack.c.bf16 %v8059_v29, %v8059_v29 }
  0x33   :  { %4425 = vmatpush.bf16.msrb.mxu1 %v7296_v1  ;;  %v7333_v55 = vld [vmem:[%s9483_s1 + $0x280] sm:$0xff]  ;;  %v7364_v58 = vld [vmem:[%s9483_s1 + $0x378] sm:$0xff]  ;;  %v7355_v63 = vld [vmem:[%s9483_s1 + $0x330] sm:$0xff]  ;;  %v203_v1 = vpack.c.bf16 %v8067_v32, %v8067_v32 }
  0x34   :  { %4438 = vmatpush.bf16.msrb.mxu2 %v7304_v2  ;;  %v7341_v56 = vld [vmem:[%s9483_s1 + $0x2c0] sm:$0xff]  ;;  %v7372_v59 = vld [vmem:[%s9483_s1 + $0x3b8] sm:$0xff]  ;;  %v7363_v2 = vld [vmem:[%s9483_s1 + $0x370] sm:$0xff] }
  0x35   :  { %4451 = vmatpush.bf16.msrb.mxu3 %v7312_v3  ;;  %v7380_v60 = vld [vmem:[%s9483_s1 + $0x3f8] sm:$0xff]  ;;  %v7371_v3 = vld [vmem:[%s9483_s1 + $0x3b0] sm:$0xff]  ;;  %v7358_v27 = vld [vmem:[%s9483_s1 + $0x348] sm:$0xff] }
  0x36   :  { %4413 = vmatpush.bf16.msrb.mxu0 %v7287_v4  ;;  %v8170_v4 = vld.sshfl [vmem:[#allocation1 + $0x20] sm:$0xff pattern:$0x73625140]  ;;  %v7366_v28 = vld [vmem:[%s9483_s1 + $0x388] sm:$0xff] }
  0x37   :  { %4426 = vmatpush.bf16.msrb.mxu1 %v7295_v5  ;;  %v8172_v5 = vld.sshfl [vmem:[#allocation1 + $0x30] sm:$0xff pattern:$0x73625140]  ;;  %v7374_v29 = vld [vmem:[%s9483_s1 + $0x3c8] sm:$0xff]  ;;  %v7357_v31 = vld [vmem:[%s9483_s1 + $0x340] sm:$0xff] }
  0x38   :  { %4439 = vmatpush.bf16.msrb.mxu2 %v7303_v6  ;;  %v8174_v6 = vld.sshfl [vmem:[#allocation1 + $0x28] sm:$0xff pattern:$0x73625140]  ;;  %v7365_v32 = vld [vmem:[%s9483_s1 + $0x380] sm:$0xff] }
  0x39   :  { %4452 = vmatpush.bf16.msrb.mxu3 %v7311_v7  ;;  %v7379_v7 = vld [vmem:[%s9483_s1 + $0x3f0] sm:$0xff] }
  0x3a   :  { %4414 = vmatpush.bf16.msrb.mxu0 %v7286_v8  ;;  %v20_v8 = vld [vmem:[%s9482_s0 + $0x28] sm:$0xff] }
  0x3b   :  { %4427 = vmatpush.bf16.msrb.mxu1 %v7294_v9  ;;  %v8182_v9 = vld.sshfl [vmem:[#allocation1 + $0x38] sm:$0xff pattern:$0x73625140] }
  0x3c   :  { %4440 = vmatpush.bf16.msrb.mxu2 %v7302_v10  ;;  %69 = vst [vmem:[#allocation1 + $0x20] ss:$4 sm:$0xff] %v20_v8  ;;  %v7354_v10 = vld [vmem:[%s9483_s1 + $0x328] sm:$0xff]  ;;  %v70_v8 = vld.sshfl [vmem:[#allocation1] sm:$0xff pattern:$0x73625140] }
  0x3d   :  { %4453 = vmatpush.bf16.msrb.mxu3 %v7310_v11  ;;  %v7362_v11 = vld [vmem:[%s9483_s1 + $0x368] sm:$0xff] }
  0x3e   :  { %4415 = vmatpush.bf16.msrb.mxu0 %v7285_v12  ;;  %v7370_v12 = vld [vmem:[%s9483_s1 + $0x3a8] sm:$0xff] }
  0x3f   :  { %4428 = vmatpush.bf16.msrb.mxu1 %v7293_v13  ;;  %v7378_v13 = vld [vmem:[%s9483_s1 + $0x3e8] sm:$0xff] }
  0x40   :  { %4441 = vmatpush.bf16.msrb.mxu2 %v7301_v14  ;;  %v7353_v14 = vld [vmem:[%s9483_s1 + $0x320] sm:$0xff] }
  0x41   :  { %4454 = vmatpush.bf16.msrb.mxu3 %v7309_v15  ;;  %4416 = vmatmul.bf16.vlgmr.msrb.gmra.mxu0 %v196_v22  ;;  %v7361_v15 = vld [vmem:[%s9483_s1 + $0x360] sm:$0xff]  ;;  %v7351_v22 = vld [vmem:[%s9483_s1 + $0x310] sm:$0xff] }
  0x42   :  { %4460 = vmatpush.bf16.msra.mxu0 %v7324_v16  ;;  %4429 = vmatmul.bf16.vlgmr.msrb.gmra.mxu1 %v197_v26  ;;  %v7369_v16 = vld [vmem:[%s9483_s1 + $0x3a0] sm:$0xff]  ;;  %v7350_v26 = vld [vmem:[%s9483_s1 + $0x308] sm:$0xff] }
  0x43   :  { %4473 = vmatpush.bf16.msra.mxu1 %v7332_v17  ;;  %4442 = vmatmul.bf16.vlgmr.msrb.gmra.mxu2 %v198_v21  ;;  %v7377_v17 = vld [vmem:[%s9483_s1 + $0x3e0] sm:$0xff]  ;;  %v7376_v21 = vld [vmem:[%s9483_s1 + $0x3d8] sm:$0xff] }
  0x44   :  { %4486 = vmatpush.bf16.msra.mxu2 %v7340_v18  ;;  %4455 = vmatmul.bf16.vlgmr.msrb.gmra.mxu3 %v199_v25  ;;  %v7352_v18 = vld [vmem:[%s9483_s1 + $0x318] sm:$0xff]  ;;  %v7375_v25 = vld [vmem:[%s9483_s1 + $0x3d0] sm:$0xff] }
  0x45   :  { %4499 = vmatpush.bf16.msra.mxu3 %v7348_v19  ;;  %v7360_v19 = vld [vmem:[%s9483_s1 + $0x358] sm:$0xff] }
  0x46   :  { %4461 = vmatpush.bf16.msra.mxu0 %v7323_v20  ;;  %v7368_v20 = vld [vmem:[%s9483_s1 + $0x398] sm:$0xff] }
  0x47   :  { %4474 = vmatpush.bf16.msra.mxu1 %v7331_v23  ;;  %v7359_v23 = vld [vmem:[%s9483_s1 + $0x350] sm:$0xff] }
  0x48   :  { %4487 = vmatpush.bf16.msra.mxu2 %v7339_v24  ;;  %v7367_v24 = vld [vmem:[%s9483_s1 + $0x390] sm:$0xff] }
  0x49   :  { %4500 = vmatpush.bf16.msra.mxu3 %v7347_v30  ;;  %v7349_v30 = vld [vmem:[%s9483_s1 + $0x300] sm:$0xff] }
  0x4a   :  { %4462 = vmatpush.bf16.msra.mxu0 %v7322_v33  ;;  %v7373_v33 = vld [vmem:[%s9483_s1 + $0x3c0] sm:$0xff] }
  0x4b   :  { %4475 = vmatpush.bf16.msra.mxu1 %v7330_v34  ;;  %v7388_v34 = vld [vmem:[%s9483_s1 + $0x438] sm:$0xff] }
  0x4c   :  { %4488 = vmatpush.bf16.msra.mxu2 %v7338_v35  ;;  %v7396_v35 = vld [vmem:[%s9483_s1 + $0x478] sm:$0xff] }
  0x4d   :  { %4501 = vmatpush.bf16.msra.mxu3 %v7346_v36  ;;  %v7404_v36 = vld [vmem:[%s9483_s1 + $0x4b8] sm:$0xff] }
  0x4e   :  { %4463 = vmatpush.bf16.msra.mxu0 %v7321_v37  ;;  %v7412_v37 = vld [vmem:[%s9483_s1 + $0x4f8] sm:$0xff] }
  0x4f   :  { %4476 = vmatpush.bf16.msra.mxu1 %v7329_v38  ;;  %v204_v38 = vpack.c.bf16 %v8170_v4, %v8170_v4  ;;  %v7397_v4 = vld [vmem:[%s9483_s1 + $0x480] sm:$0xff] }
  0x50   :  { %4489 = vmatpush.bf16.msra.mxu2 %v7337_v39  ;;  %v206_v39 = vpack.c.bf16 %v8172_v5, %v8172_v5  ;;  %v7405_v5 = vld [vmem:[%s9483_s1 + $0x4c0] sm:$0xff] }
  0x51   :  { %4502 = vmatpush.bf16.msra.mxu3 %v7345_v40  ;;  %v205_v40 = vpack.c.bf16 %v8174_v6, %v8174_v6  ;;  %v7420_v6 = vld [vmem:[%s9483_s1 + $0x538] sm:$0xff] }
  0x52   :  { %4464 = vmatpush.bf16.msra.mxu0 %v7320_v41  ;;  %v207_v41 = vpack.c.bf16 %v8182_v9, %v8182_v9  ;;  %v72_v9 = vld.sshfl [vmem:[#allocation1 + $0x10] sm:$0xff pattern:$0x73625140] }
  0x53   :  { %4477 = vmatpush.bf16.msra.mxu1 %v7328_v42  ;;  %v7387_v42 = vld [vmem:[%s9483_s1 + $0x430] sm:$0xff] }
  0x54   :  { %4490 = vmatpush.bf16.msra.mxu2 %v7336_v43  ;;  %v7395_v43 = vld [vmem:[%s9483_s1 + $0x470] sm:$0xff] }
  0x55   :  { %4503 = vmatpush.bf16.msra.mxu3 %v7344_v44  ;;  %v7403_v44 = vld [vmem:[%s9483_s1 + $0x4b0] sm:$0xff] }
  0x56   :  { %4465 = vmatpush.bf16.msra.mxu0 %v7319_v45  ;;  %v7411_v45 = vld [vmem:[%s9483_s1 + $0x4f0] sm:$0xff] }
  0x57   :  { %4478 = vmatpush.bf16.msra.mxu1 %v7327_v46  ;;  %v7386_v46 = vld [vmem:[%s9483_s1 + $0x428] sm:$0xff] }
  0x58   :  { %4491 = vmatpush.bf16.msra.mxu2 %v7335_v47  ;;  %v7394_v47 = vld [vmem:[%s9483_s1 + $0x468] sm:$0xff] }
  0x59   :  { %4504 = vmatpush.bf16.msra.mxu3 %v7343_v48  ;;  %v7402_v48 = vld [vmem:[%s9483_s1 + $0x4a8] sm:$0xff] }
  0x5a   :  { %4466 = vmatpush.bf16.msra.mxu0 %v7318_v49  ;;  %v7410_v49 = vld [vmem:[%s9483_s1 + $0x4e8] sm:$0xff] }
  0x5b   :  { %4479 = vmatpush.bf16.msra.mxu1 %v7326_v50  ;;  %v7385_v50 = vld [vmem:[%s9483_s1 + $0x420] sm:$0xff] }
  0x5c   :  { %4492 = vmatpush.bf16.msra.mxu2 %v7334_v51  ;;  %v7393_v51 = vld [vmem:[%s9483_s1 + $0x460] sm:$0xff] }
  0x5d   :  { %4505 = vmatpush.bf16.msra.mxu3 %v7342_v52  ;;  %v7401_v52 = vld [vmem:[%s9483_s1 + $0x4a0] sm:$0xff] }
  0x5e   :  { %4467 = vmatpush.bf16.msra.mxu0 %v7317_v53  ;;  %v7409_v53 = vld [vmem:[%s9483_s1 + $0x4e0] sm:$0xff] }
  0x5f   :  { %4480 = vmatpush.bf16.msra.mxu1 %v7325_v54  ;;  %v7384_v54 = vld [vmem:[%s9483_s1 + $0x418] sm:$0xff] }
  0x60   :  { %4493 = vmatpush.bf16.msra.mxu2 %v7333_v55  ;;  %v7392_v55 = vld [vmem:[%s9483_s1 + $0x458] sm:$0xff] }
  0x61   :  { %4506 = vmatpush.bf16.msra.mxu3 %v7341_v56  ;;  %4468 = vmatmul.bf16.vlgmr.msra.gmra.mxu0 %v200_v61  ;;  %v7400_v56 = vld [vmem:[%s9483_s1 + $0x498] sm:$0xff]  ;;  %v7407_v61 = vld [vmem:[%s9483_s1 + $0x4d0] sm:$0xff] }
  0x62   :  { %4512 = vmatpush.bf16.msrb.mxu0 %v7356_v57  ;;  %4481 = vmatmul.bf16.vlgmr.msra.gmra.mxu1 %v201_v0  ;;  %v7408_v57 = vld [vmem:[%s9483_s1 + $0x4d8] sm:$0xff]  ;;  %v7398_v0 = vld [vmem:[%s9483_s1 + $0x488] sm:$0xff] }
  0x63   :  { %4525 = vmatpush.bf16.msrb.mxu1 %v7364_v58  ;;  %4494 = vmatmul.bf16.vlgmr.msra.gmra.mxu2 %v202_v62  ;;  %v7383_v58 = vld [vmem:[%s9483_s1 + $0x410] sm:$0xff]  ;;  %v7382_v62 = vld [vmem:[%s9483_s1 + $0x408] sm:$0xff] }
  0x64   :  { %4538 = vmatpush.bf16.msrb.mxu2 %v7372_v59  ;;  %4507 = vmatmul.bf16.vlgmr.msra.gmra.mxu3 %v203_v1  ;;  %v7391_v59 = vld [vmem:[%s9483_s1 + $0x450] sm:$0xff]  ;;  %v7406_v1 = vld [vmem:[%s9483_s1 + $0x4c8] sm:$0xff] }
  0x65   :  { %4551 = vmatpush.bf16.msrb.mxu3 %v7380_v60  ;;  %v7399_v60 = vld [vmem:[%s9483_s1 + $0x490] sm:$0xff] }
  0x66   :  { %4513 = vmatpush.bf16.msrb.mxu0 %v7355_v63  ;;  %v7390_v63 = vld [vmem:[%s9483_s1 + $0x448] sm:$0xff] }
  0x67   :  { %4526 = vmatpush.bf16.msrb.mxu1 %v7363_v2  ;;  %v7381_v2 = vld [vmem:[%s9483_s1 + $0x400] sm:$0xff] }
  0x68   :  { %4539 = vmatpush.bf16.msrb.mxu2 %v7371_v3  ;;  %v7389_v3 = vld [vmem:[%s9483_s1 + $0x440] sm:$0xff] }
  0x69   :  { %4552 = vmatpush.bf16.msrb.mxu3 %v7379_v7  ;;  %v7428_v7 = vld [vmem:[%s9483_s1 + $0x578] sm:$0xff] }
  0x6a   :  { %4514 = vmatpush.bf16.msrb.mxu0 %v7354_v10  ;;  %v71_v10 = vld.sshfl [vmem:[#allocation1 + $0x8] sm:$0xff pattern:$0x73625140] }
  0x6b   :  { %4527 = vmatpush.bf16.msrb.mxu1 %v7362_v11  ;;  %v73_v11 = vld.sshfl [vmem:[#allocation1 + $0x18] sm:$0xff pattern:$0x73625140] }
  0x6c   :  { %4540 = vmatpush.bf16.msrb.mxu2 %v7370_v12  ;;  %v7436_v12 = vld [vmem:[%s9483_s1 + $0x5b8] sm:$0xff] }
  0x6d   :  { %4553 = vmatpush.bf16.msrb.mxu3 %v7378_v13  ;;  %v7444_v13 = vld [vmem:[%s9483_s1 + $0x5f8] sm:$0xff] }
  0x6e   :  { %4515 = vmatpush.bf16.msrb.mxu0 %v7353_v14  ;;  %v208_v14 = vpack.c.bf16 %v70_v8, %v70_v8  ;;  %v7451_v8 = vld [vmem:[%s9483_s1 + $0x630] sm:$0xff] }
  0x6f   :  { %4528 = vmatpush.bf16.msrb.mxu1 %v7361_v15  ;;  %v210_v15 = vpack.c.bf16 %v72_v9, %v72_v9  ;;  %v7459_v9 = vld [vmem:[%s9483_s1 + $0x670] sm:$0xff] }
  0x70   :  { %4541 = vmatpush.bf16.msrb.mxu2 %v7369_v16  ;;  %v209_v16 = vpack.c.bf16 %v71_v10, %v71_v10  ;;  %v7467_v10 = vld [vmem:[%s9483_s1 + $0x6b0] sm:$0xff] }
  0x71   :  { %4554 = vmatpush.bf16.msrb.mxu3 %v7377_v17  ;;  %v211_v17 = vpack.c.bf16 %v73_v11, %v73_v11  ;;  %v7475_v11 = vld [vmem:[%s9483_s1 + $0x6f0] sm:$0xff] }
  0x72   :  { %4516 = vmatpush.bf16.msrb.mxu0 %v7352_v18  ;;  %v7419_v18 = vld [vmem:[%s9483_s1 + $0x530] sm:$0xff] }
  0x73   :  { %4529 = vmatpush.bf16.msrb.mxu1 %v7360_v19  ;;  %v7427_v19 = vld [vmem:[%s9483_s1 + $0x570] sm:$0xff] }
  0x74   :  { %4542 = vmatpush.bf16.msrb.mxu2 %v7368_v20  ;;  %v7435_v20 = vld [vmem:[%s9483_s1 + $0x5b0] sm:$0xff] }
  0x75   :  { %4555 = vmatpush.bf16.msrb.mxu3 %v7376_v21  ;;  %v7443_v21 = vld [vmem:[%s9483_s1 + $0x5f0] sm:$0xff] }
  0x76   :  { %4517 = vmatpush.bf16.msrb.mxu0 %v7351_v22  ;;  %v7418_v22 = vld [vmem:[%s9483_s1 + $0x528] sm:$0xff] }
  0x77   :  { %4530 = vmatpush.bf16.msrb.mxu1 %v7359_v23  ;;  %v7426_v23 = vld [vmem:[%s9483_s1 + $0x568] sm:$0xff] }
  0x78   :  { %4543 = vmatpush.bf16.msrb.mxu2 %v7367_v24  ;;  %v7766_v24 = vld [vmem:[%s9484_s2] ss:$0 sm:$0xff] }
  0x79   :  { %4556 = vmatpush.bf16.msrb.mxu3 %v7375_v25  ;;  %v7434_v25 = vld [vmem:[%s9483_s1 + $0x5a8] sm:$0xff] }
  0x7a   :  { %4518 = vmatpush.bf16.msrb.mxu0 %v7350_v26  ;;  %v7442_v26 = vld [vmem:[%s9483_s1 + $0x5e8] sm:$0xff] }
  0x7b   :  { %4531 = vmatpush.bf16.msrb.mxu1 %v7358_v27 }
  0x7c   :  { %4544 = vmatpush.bf16.msrb.mxu2 %v7366_v28  ;;  %v7417_v28 = vld [vmem:[%s9483_s1 + $0x520] sm:$0xff] }
  0x7d   :  { %4557 = vmatpush.bf16.msrb.mxu3 %v7374_v29  ;;  %v7425_v29 = vld [vmem:[%s9483_s1 + $0x560] sm:$0xff] }
  0x7e   :  { %4519 = vmatpush.bf16.msrb.mxu0 %v7349_v30 }
  0x7f   :  { %4532 = vmatpush.bf16.msrb.mxu1 %v7357_v31 }
  0x80   :  { %4545 = vmatpush.bf16.msrb.mxu2 %v7365_v32  ;;  %v7433_v32 = vld [vmem:[%s9483_s1 + $0x5a0] sm:$0xff] }
  0x81   :  { %4558 = vmatpush.bf16.msrb.mxu3 %v7373_v33  ;;  %4520 = vmatmul.bf16.vlgmr.msrb.gmra.mxu0 %v204_v38  ;;  %v7441_v33 = vld [vmem:[%s9483_s1 + $0x5e0] sm:$0xff]  ;;  %v7440_v38 = vld [vmem:[%s9483_s1 + $0x5d8] sm:$0xff] }
  0x82   :  { %4564 = vmatpush.bf16.msra.mxu0 %v7388_v34  ;;  %4533 = vmatmul.bf16.vlgmr.msrb.gmra.mxu1 %v205_v40 }
  0x83   :  { %4577 = vmatpush.bf16.msra.mxu1 %v7396_v35  ;;  %4546 = vmatmul.bf16.vlgmr.msrb.gmra.mxu2 %v206_v39  ;;  %v7416_v35 = vld [vmem:[%s9483_s1 + $0x518] sm:$0xff] }
  0x84   :  { %4590 = vmatpush.bf16.msra.mxu2 %v7404_v36  ;;  %4559 = vmatmul.bf16.vlgmr.msrb.gmra.mxu3 %v207_v41  ;;  %v7424_v36 = vld [vmem:[%s9483_s1 + $0x558] sm:$0xff] }
  0x85   :  { %4603 = vmatpush.bf16.msra.mxu3 %v7412_v37  ;;  %v7432_v37 = vld [vmem:[%s9483_s1 + $0x598] sm:$0xff] }
  0x86   :  { %4565 = vmatpush.bf16.msra.mxu0 %v7387_v42 }
  0x87   :  { %4578 = vmatpush.bf16.msra.mxu1 %v7395_v43  ;;  %v7415_v43 = vld [vmem:[%s9483_s1 + $0x510] sm:$0xff] }
  0x88   :  { %4591 = vmatpush.bf16.msra.mxu2 %v7403_v44  ;;  %v7423_v44 = vld [vmem:[%s9483_s1 + $0x550] sm:$0xff] }
  0x89   :  { %4604 = vmatpush.bf16.msra.mxu3 %v7411_v45 }
  0x8a   :  { %4566 = vmatpush.bf16.msra.mxu0 %v7386_v46 }
  0x8b   :  { %4579 = vmatpush.bf16.msra.mxu1 %v7394_v47  ;;  %v7431_v47 = vld [vmem:[%s9483_s1 + $0x590] sm:$0xff] }
  0x8c   :  { %4592 = vmatpush.bf16.msra.mxu2 %v7402_v48  ;;  %v7439_v48 = vld [vmem:[%s9483_s1 + $0x5d0] sm:$0xff] }
  0x8d   :  { %4605 = vmatpush.bf16.msra.mxu3 %v7410_v49  ;;  %v7414_v49 = vld [vmem:[%s9483_s1 + $0x508] sm:$0xff] }
  0x8e   :  { %4567 = vmatpush.bf16.msra.mxu0 %v7385_v50  ;;  %v7422_v50 = vld [vmem:[%s9483_s1 + $0x548] sm:$0xff] }
  0x8f   :  { %4580 = vmatpush.bf16.msra.mxu1 %v7393_v51  ;;  %v21_v51 = vld [vmem:[%s9482_s0 + $0x30] sm:$0xff] }
  0x90   :  { %4593 = vmatpush.bf16.msra.mxu2 %v7401_v52  ;;  %v7430_v52 = vld [vmem:[%s9483_s1 + $0x588] sm:$0xff]  ;;  %78 = vst [vmem:[#allocation1] ss:$4 sm:$0xff] %v21_v51 }
  0x91   :  { %4606 = vmatpush.bf16.msra.mxu3 %v7409_v53  ;;  %v7438_v53 = vld [vmem:[%s9483_s1 + $0x5c8] sm:$0xff] }
  0x92   :  { %4568 = vmatpush.bf16.msra.mxu0 %v7384_v54 }
  0x93   :  { %4581 = vmatpush.bf16.msra.mxu1 %v7392_v55 }
  0x94   :  { %4594 = vmatpush.bf16.msra.mxu2 %v7400_v56  ;;  %v7413_v56 = vld [vmem:[%s9483_s1 + $0x500] sm:$0xff] }
  0x95   :  { %4607 = vmatpush.bf16.msra.mxu3 %v7408_v57  ;;  %v7421_v57 = vld [vmem:[%s9483_s1 + $0x540] sm:$0xff] }
  0x96   :  { %4569 = vmatpush.bf16.msra.mxu0 %v7383_v58  ;;  %v7429_v58 = vld [vmem:[%s9483_s1 + $0x580] sm:$0xff] }
  0x97   :  { %4582 = vmatpush.bf16.msra.mxu1 %v7391_v59  ;;  %v7437_v59 = vld [vmem:[%s9483_s1 + $0x5c0] sm:$0xff] }
  0x98   :  { %4595 = vmatpush.bf16.msra.mxu2 %v7399_v60  ;;  %v7452_v60 = vld [vmem:[%s9483_s1 + $0x638] sm:$0xff]  ;;  %v80_v51 = vld.sshfl [vmem:[#allocation1] sm:$0xff pattern:$0x73625140] }
  0x99   :  { %4608 = vmatpush.bf16.msra.mxu3 %v7407_v61  ;;  %v7460_v61 = vld [vmem:[%s9483_s1 + $0x678] sm:$0xff] }
  0x9a   :  { %4570 = vmatpush.bf16.msra.mxu0 %v7382_v62  ;;  %v74_v62 = vld.sshfl [vmem:[#allocation1 + $0x20] sm:$0xff pattern:$0x73625140] }
  0x9b   :  { %4583 = vmatpush.bf16.msra.mxu1 %v7390_v63  ;;  %v76_v63 = vld.sshfl [vmem:[#allocation1 + $0x30] sm:$0xff pattern:$0x73625140] }
  0x9c   :  { %4596 = vmatpush.bf16.msra.mxu2 %v7398_v0  ;;  %v75_v0 = vld.sshfl [vmem:[#allocation1 + $0x28] sm:$0xff pattern:$0x73625140] }
  0x9d   :  { %4609 = vmatpush.bf16.msra.mxu3 %v7406_v1  ;;  %v77_v1 = vld.sshfl [vmem:[#allocation1 + $0x38] sm:$0xff pattern:$0x73625140] }
  0x9e   :  { %4571 = vmatpush.bf16.msra.mxu0 %v7381_v2  ;;  %v4365_v27 = vpop.f32.mrf.mxu0  ;;  %v7468_v2 = vld [vmem:[%s9483_s1 + $0x6b8] sm:$0xff] }
  0x9f   :  { %4584 = vmatpush.bf16.msra.mxu1 %v7389_v3  ;;  %v4366_v30 = vadd.f32 %v7766_v24, %v4365_v27  ;;  %v4378_v31 = vpop.f32.mrf.mxu1  ;;  %v7476_v3 = vld [vmem:[%s9483_s1 + $0x6f8] sm:$0xff] }
  0xa0   :  { %4597 = vmatpush.bf16.msra.mxu2 %v7397_v4  ;;  %v212_v4 = vpack.c.bf16 %v74_v62, %v74_v62  ;;  %v7448_v24 = vld [vmem:[%s9483_s1 + $0x618] sm:$0xff]  ;;  %v7491_v62 = vld [vmem:[%s9483_s1 + $0x770] sm:$0xff] }
  0xa1   :  { %4610 = vmatpush.bf16.msra.mxu3 %v7405_v5  ;;  %4572 = vmatmul.bf16.vlgmr.msra.gmra.mxu0 %v208_v14  ;;  %v4379_v34 = vadd.f32 %v4378_v31, %v4366_v30  ;;  %v214_v5 = vpack.c.bf16 %v76_v63, %v76_v63  ;;  %v7466_v14 = vld [vmem:[%s9483_s1 + $0x6a8] sm:$0xff]  ;;  %v7472_v27 = vld [vmem:[%s9483_s1 + $0x6d8] sm:$0xff]  ;;  %v7499_v63 = vld [vmem:[%s9483_s1 + $0x7b0] sm:$0xff] }
  0xa2   :  { %4616 = vmatpush.bf16.msrb.mxu0 %v7420_v6  ;;  %4585 = vmatmul.bf16.vlgmr.msra.gmra.mxu1 %v209_v16  ;;  %v213_v6 = vpack.c.bf16 %v75_v0, %v75_v0  ;;  %v7507_v0 = vld [vmem:[%s9483_s1 + $0x7f0] sm:$0xff] }
  0xa3   :  { %4629 = vmatpush.bf16.msrb.mxu1 %v7428_v7  ;;  %4598 = vmatmul.bf16.vlgmr.msra.gmra.mxu2 %v210_v15  ;;  %v215_v7 = vpack.c.bf16 %v77_v1, %v77_v1  ;;  %v7474_v15 = vld [vmem:[%s9483_s1 + $0x6e8] sm:$0xff] }
  0xa4   :  { %4642 = vmatpush.bf16.msrb.mxu2 %v7436_v12  ;;  %4611 = vmatmul.bf16.vlgmr.msra.gmra.mxu3 %v211_v17  ;;  %v7450_v12 = vld [vmem:[%s9483_s1 + $0x628] sm:$0xff]  ;;  %v7449_v17 = vld [vmem:[%s9483_s1 + $0x620] sm:$0xff] }
  0xa5   :  { %4655 = vmatpush.bf16.msrb.mxu3 %v7444_v13  ;;  %v7458_v13 = vld [vmem:[%s9483_s1 + $0x668] sm:$0xff] }
  0xa6   :  { %4617 = vmatpush.bf16.msrb.mxu0 %v7419_v18  ;;  %v4391_v39 = vpop.f32.mrf.mxu2  ;;  %v4367_v42 = vpop.f32.mrf.mxu0  ;;  %v7457_v18 = vld [vmem:[%s9483_s1 + $0x660] sm:$0xff]  ;;  %v7482_v1 = vld [vmem:[%s9483_s1 + $0x728] sm:$0xff] }
  0xa7   :  { %4630 = vmatpush.bf16.msrb.mxu1 %v7427_v19  ;;  %v4392_v40 = vadd.f32 %v4391_v39, %v4379_v34  ;;  %v4404_v41 = vpop.f32.mrf.mxu3  ;;  %v4380_v46 = vpop.f32.mrf.mxu1  ;;  %v7454_v39 = vld [vmem:[%s9483_s1 + $0x648] sm:$0xff] }
  0xa8   :  { %4643 = vmatpush.bf16.msrb.mxu2 %v7435_v20  ;;  %v7470_v42 = vld [vmem:[%s9483_s1 + $0x6c8] sm:$0xff]  ;;  %v7453_v46 = vld [vmem:[%s9483_s1 + $0x640] sm:$0xff] }
  0xa9   :  { %4656 = vmatpush.bf16.msrb.mxu3 %v7443_v21  ;;  %v8429_v45 = vadd.f32 %v4404_v41, %v4392_v40  ;;  %v7465_v21 = vld [vmem:[%s9483_s1 + $0x6a0] sm:$0xff]  ;;  %v22_v40 = vld [vmem:[%s9482_s0 + $0x38] sm:$0xff]  ;;  %v7462_v41 = vld [vmem:[%s9483_s1 + $0x688] sm:$0xff] }
  0xaa   :  { %4618 = vmatpush.bf16.msrb.mxu0 %v7418_v22  ;;  %v7473_v22 = vld [vmem:[%s9483_s1 + $0x6e0] sm:$0xff]  ;;  %79 = vst [vmem:[#allocation1 + $0x20] ss:$4 sm:$0xff] %v22_v40 }
  0xab   :  { %4631 = vmatpush.bf16.msrb.mxu1 %v7426_v23 }
  0xac   :  { %4644 = vmatpush.bf16.msrb.mxu2 %v7434_v25  ;;  %v7456_v25 = vld [vmem:[%s9483_s1 + $0x658] sm:$0xff] }
  0xad   :  { %4657 = vmatpush.bf16.msrb.mxu3 %v7442_v26  ;;  %v7464_v26 = vld [vmem:[%s9483_s1 + $0x698] sm:$0xff] }
  0xae   :  { %4619 = vmatpush.bf16.msrb.mxu0 %v7417_v28  ;;  %v4393_v54 = vpop.f32.mrf.mxu2 }
  0xaf   :  { %4632 = vmatpush.bf16.msrb.mxu1 %v7425_v29  ;;  %v4406_v55 = vpop.f32.mrf.mxu3  ;;  %v83_v54 = vld.sshfl [vmem:[#allocation1 + $0x18] sm:$0xff pattern:$0x73625140] }
  0xb0   :  { %4645 = vmatpush.bf16.msrb.mxu2 %v7433_v32  ;;  %v7447_v32 = vld [vmem:[%s9483_s1 + $0x610] sm:$0xff]  ;;  %v7500_v55 = vld [vmem:[%s9483_s1 + $0x7b8] sm:$0xff] }
  0xb1   :  { %4658 = vmatpush.bf16.msrb.mxu3 %v7441_v33  ;;  %v7455_v33 = vld [vmem:[%s9483_s1 + $0x650] sm:$0xff]  ;;  %v84_v40 = vld.sshfl [vmem:[#allocation1 + $0x20] sm:$0xff pattern:$0x73625140] }
  0xb2   :  { %4620 = vmatpush.bf16.msrb.mxu0 %v7416_v35 }
  0xb3   :  { %4633 = vmatpush.bf16.msrb.mxu1 %v7424_v36  ;;  %v7463_v36 = vld [vmem:[%s9483_s1 + $0x690] sm:$0xff] }
  0xb4   :  { %4646 = vmatpush.bf16.msrb.mxu2 %v7432_v37  ;;  %v7471_v37 = vld [vmem:[%s9483_s1 + $0x6d0] sm:$0xff] }
  0xb5   :  { %4659 = vmatpush.bf16.msrb.mxu3 %v7440_v38  ;;  %v7446_v38 = vld [vmem:[%s9483_s1 + $0x608] sm:$0xff] }
  0xb6   :  { %4621 = vmatpush.bf16.msrb.mxu0 %v7415_v43 }
  0xb7   :  { %4634 = vmatpush.bf16.msrb.mxu1 %v7423_v44 }
  0xb8   :  { %4647 = vmatpush.bf16.msrb.mxu2 %v7431_v47  ;;  %v7461_v47 = vld [vmem:[%s9483_s1 + $0x680] sm:$0xff] }
  0xb9   :  { %4660 = vmatpush.bf16.msrb.mxu3 %v7439_v48  ;;  %v7469_v48 = vld [vmem:[%s9483_s1 + $0x6c0] sm:$0xff] }
  0xba   :  { %4622 = vmatpush.bf16.msrb.mxu0 %v7414_v49  ;;  %v7484_v49 = vld [vmem:[%s9483_s1 + $0x738] sm:$0xff] }
  0xbb   :  { %4635 = vmatpush.bf16.msrb.mxu1 %v7422_v50  ;;  %v7492_v50 = vld [vmem:[%s9483_s1 + $0x778] sm:$0xff] }
  0xbc   :  { %4648 = vmatpush.bf16.msrb.mxu2 %v7430_v52  ;;  %v82_v52 = vld.sshfl [vmem:[#allocation1 + $0x10] sm:$0xff pattern:$0x73625140] }
  0xbd   :  { %4661 = vmatpush.bf16.msrb.mxu3 %v7438_v53  ;;  %v81_v53 = vld.sshfl [vmem:[#allocation1 + $0x8] sm:$0xff pattern:$0x73625140] }
  0xbe   :  { %4623 = vmatpush.bf16.msrb.mxu0 %v7413_v56  ;;  %v4417_v16 = vpop.f32.mrf.mxu0  ;;  %v7508_v56 = vld [vmem:[%s9483_s1 + $0x7f8] sm:$0xff] }
  0xbf   :  { %4636 = vmatpush.bf16.msrb.mxu1 %v7421_v57  ;;  %v4418_v19 = vadd.f32 %v4417_v16, %v8429_v45  ;;  %v4430_v20 = vpop.f32.mrf.mxu1  ;;  %v7445_v45 = vld [vmem:[%s9483_s1 + $0x600] sm:$0xff]  ;;  %v216_v57 = vpack.c.bf16 %v80_v51, %v80_v51  ;;  %v7504_v16 = vld [vmem:[%s9483_s1 + $0x7d8] sm:$0xff]  ;;  %v7523_v51 = vld [vmem:[%s9483_s1 + $0x870] sm:$0xff] }
  0xc0   :  { %4649 = vmatpush.bf16.msrb.mxu2 %v7429_v58  ;;  %v218_v58 = vpack.c.bf16 %v82_v52, %v82_v52  ;;  %v7531_v52 = vld [vmem:[%s9483_s1 + $0x8b0] sm:$0xff] }
  0xc1   :  { %4662 = vmatpush.bf16.msrb.mxu3 %v7437_v59  ;;  %4624 = vmatmul.bf16.vlgmr.msrb.gmra.mxu0 %v212_v4  ;;  %v4431_v23 = vadd.f32 %v4430_v20, %v4418_v19  ;;  %v217_v59 = vpack.c.bf16 %v81_v53, %v81_v53  ;;  %v7506_v4 = vld [vmem:[%s9483_s1 + $0x7e8] sm:$0xff]  ;;  %v7539_v53 = vld [vmem:[%s9483_s1 + $0x8f0] sm:$0xff] }
  0xc2   :  { %4668 = vmatpush.bf16.msra.mxu0 %v7452_v60  ;;  %4637 = vmatmul.bf16.vlgmr.msrb.gmra.mxu1 %v213_v6  ;;  %v219_v60 = vpack.c.bf16 %v83_v54, %v83_v54  ;;  %v7514_v54 = vld [vmem:[%s9483_s1 + $0x828] sm:$0xff] }
  0xc3   :  { %4681 = vmatpush.bf16.msra.mxu1 %v7460_v61  ;;  %4650 = vmatmul.bf16.vlgmr.msrb.gmra.mxu2 %v214_v5  ;;  %v7483_v61 = vld [vmem:[%s9483_s1 + $0x730] sm:$0xff] }
  0xc4   :  { %4694 = vmatpush.bf16.msra.mxu2 %v7468_v2  ;;  %4663 = vmatmul.bf16.vlgmr.msrb.gmra.mxu3 %v215_v7  ;;  %v7490_v2 = vld [vmem:[%s9483_s1 + $0x768] sm:$0xff]  ;;  %v7481_v7 = vld [vmem:[%s9483_s1 + $0x720] sm:$0xff] }
  0xc5   :  { %4707 = vmatpush.bf16.msra.mxu3 %v7476_v3  ;;  %v7498_v3 = vld [vmem:[%s9483_s1 + $0x7a8] sm:$0xff] }
  0xc6   :  { %4669 = vmatpush.bf16.msra.mxu0 %v7451_v8  ;;  %v4443_v28 = vpop.f32.mrf.mxu2  ;;  %v4419_v31 = vpop.f32.mrf.mxu0  ;;  %v7489_v8 = vld [vmem:[%s9483_s1 + $0x760] sm:$0xff] }
  0xc7   :  { %4682 = vmatpush.bf16.msra.mxu1 %v7459_v9  ;;  %v4444_v29 = vadd.f32 %v4443_v28, %v4431_v23  ;;  %v4456_v30 = vpop.f32.mrf.mxu3  ;;  %v4432_v35 = vpop.f32.mrf.mxu1  ;;  %v7487_v23 = vld [vmem:[%s9483_s1 + $0x750] sm:$0xff]  ;;  %v7486_v28 = vld [vmem:[%s9483_s1 + $0x748] sm:$0xff] }
  0xc8   :  { %4695 = vmatpush.bf16.msra.mxu2 %v7467_v10  ;;  %v7497_v10 = vld [vmem:[%s9483_s1 + $0x7a0] sm:$0xff]  ;;  %v7502_v31 = vld [vmem:[%s9483_s1 + $0x7c8] sm:$0xff] }
  0xc9   :  { %4708 = vmatpush.bf16.msra.mxu3 %v7475_v11  ;;  %v8531_v34 = vadd.f32 %v4456_v30, %v4444_v29  ;;  %v7505_v11 = vld [vmem:[%s9483_s1 + $0x7e0] sm:$0xff]  ;;  %v7494_v30 = vld [vmem:[%s9483_s1 + $0x788] sm:$0xff] }
  0xca   :  { %4670 = vmatpush.bf16.msra.mxu0 %v7450_v12  ;;  %v23_v29 = vld [vmem:[%s9482_s0 + $0x40] sm:$0xff] }
  0xcb   :  { %4683 = vmatpush.bf16.msra.mxu1 %v7458_v13  ;;  %v7480_v13 = vld [vmem:[%s9483_s1 + $0x718] sm:$0xff]  ;;  %88 = vst [vmem:[#allocation1] ss:$4 sm:$0xff] %v23_v29  ;;  %v7485_v35 = vld [vmem:[%s9483_s1 + $0x740] sm:$0xff] }
  0xcc   :  { %4696 = vmatpush.bf16.msra.mxu2 %v7466_v14  ;;  %v7488_v14 = vld [vmem:[%s9483_s1 + $0x758] sm:$0xff] }
  0xcd   :  { %4709 = vmatpush.bf16.msra.mxu3 %v7474_v15  ;;  %v7496_v15 = vld [vmem:[%s9483_s1 + $0x798] sm:$0xff] }
  0xce   :  { %4671 = vmatpush.bf16.msra.mxu0 %v7449_v17  ;;  %v4445_v43 = vpop.f32.mrf.mxu2 }
  0xcf   :  { %4684 = vmatpush.bf16.msra.mxu1 %v7457_v18  ;;  %v4458_v44 = vpop.f32.mrf.mxu3  ;;  %v87_v43 = vld.sshfl [vmem:[#allocation1 + $0x38] sm:$0xff pattern:$0x73625140] }
  0xd0   :  { %4697 = vmatpush.bf16.msra.mxu2 %v7465_v21  ;;  %v7532_v44 = vld [vmem:[%s9483_s1 + $0x8b8] sm:$0xff] }
  0xd1   :  { %4710 = vmatpush.bf16.msra.mxu3 %v7473_v22  ;;  %v7479_v22 = vld [vmem:[%s9483_s1 + $0x710] sm:$0xff] }
  0xd2   :  { %4672 = vmatpush.bf16.msra.mxu0 %v7448_v24  ;;  %v90_v29 = vld.sshfl [vmem:[#allocation1] sm:$0xff pattern:$0x73625140] }
  0xd3   :  { %4685 = vmatpush.bf16.msra.mxu1 %v7456_v25  ;;  %v7495_v25 = vld [vmem:[%s9483_s1 + $0x790] sm:$0xff] }
  0xd4   :  { %4698 = vmatpush.bf16.msra.mxu2 %v7464_v26  ;;  %v7503_v26 = vld [vmem:[%s9483_s1 + $0x7d0] sm:$0xff] }
  0xd5   :  { %4711 = vmatpush.bf16.msra.mxu3 %v7472_v27  ;;  %v7478_v27 = vld [vmem:[%s9483_s1 + $0x708] sm:$0xff] }
  0xd6   :  { %4673 = vmatpush.bf16.msra.mxu0 %v7447_v32 }
  0xd7   :  { %4686 = vmatpush.bf16.msra.mxu1 %v7455_v33 }
  0xd8   :  { %4699 = vmatpush.bf16.msra.mxu2 %v7463_v36  ;;  %v7493_v36 = vld [vmem:[%s9483_s1 + $0x780] sm:$0xff] }
  0xd9   :  { %4712 = vmatpush.bf16.msra.mxu3 %v7471_v37  ;;  %v7501_v37 = vld [vmem:[%s9483_s1 + $0x7c0] sm:$0xff] }
  0xda   :  { %4674 = vmatpush.bf16.msra.mxu0 %v7446_v38  ;;  %v7516_v38 = vld [vmem:[%s9483_s1 + $0x838] sm:$0xff] }
  0xdb   :  { %4687 = vmatpush.bf16.msra.mxu1 %v7454_v39  ;;  %v7524_v39 = vld [vmem:[%s9483_s1 + $0x878] sm:$0xff] }
  0xdc   :  { %4700 = vmatpush.bf16.msra.mxu2 %v7462_v41  ;;  %v86_v41 = vld.sshfl [vmem:[#allocation1 + $0x30] sm:$0xff pattern:$0x73625140] }
  0xdd   :  { %4713 = vmatpush.bf16.msra.mxu3 %v7470_v42  ;;  %v85_v42 = vld.sshfl [vmem:[#allocation1 + $0x28] sm:$0xff pattern:$0x73625140] }
  0xde   :  { %4675 = vmatpush.bf16.msra.mxu0 %v7445_v45  ;;  %v4469_v5 = vpop.f32.mrf.mxu0  ;;  %v7540_v45 = vld [vmem:[%s9483_s1 + $0x8f8] sm:$0xff] }
  0xdf   :  { %4688 = vmatpush.bf16.msra.mxu1 %v7453_v46  ;;  %v4470_v6 = vadd.f32 %v4469_v5, %v8531_v34  ;;  %v4482_v9 = vpop.f32.mrf.mxu1  ;;  %v7477_v34 = vld [vmem:[%s9483_s1 + $0x700] sm:$0xff]  ;;  %v220_v46 = vpack.c.bf16 %v84_v40, %v84_v40  ;;  %v7536_v5 = vld [vmem:[%s9483_s1 + $0x8d8] sm:$0xff]  ;;  %v7555_v40 = vld [vmem:[%s9483_s1 + $0x970] sm:$0xff] }
  0xe0   :  { %4701 = vmatpush.bf16.msra.mxu2 %v7461_v47  ;;  %v222_v47 = vpack.c.bf16 %v86_v41, %v86_v41  ;;  %v7563_v41 = vld [vmem:[%s9483_s1 + $0x9b0] sm:$0xff] }
  0xe1   :  { %4714 = vmatpush.bf16.msra.mxu3 %v7469_v48  ;;  %4676 = vmatmul.bf16.vlgmr.msra.gmra.mxu0 %v216_v57  ;;  %v4483_v12 = vadd.f32 %v4482_v9, %v4470_v6  ;;  %v221_v48 = vpack.c.bf16 %v85_v42, %v85_v42  ;;  %v7538_v57 = vld [vmem:[%s9483_s1 + $0x8e8] sm:$0xff]  ;;  %v7571_v42 = vld [vmem:[%s9483_s1 + $0x9f0] sm:$0xff] }
  0xe2   :  { %4720 = vmatpush.bf16.msrb.mxu0 %v7484_v49  ;;  %4689 = vmatmul.bf16.vlgmr.msra.gmra.mxu1 %v217_v59  ;;  %v223_v49 = vpack.c.bf16 %v87_v43, %v87_v43  ;;  %v7546_v43 = vld [vmem:[%s9483_s1 + $0x928] sm:$0xff] }
  0xe3   :  { %4733 = vmatpush.bf16.msrb.mxu1 %v7492_v50  ;;  %4702 = vmatmul.bf16.vlgmr.msra.gmra.mxu2 %v218_v58  ;;  %v7515_v50 = vld [vmem:[%s9483_s1 + $0x830] sm:$0xff] }
  0xe4   :  { %4746 = vmatpush.bf16.msrb.mxu2 %v7500_v55  ;;  %4715 = vmatmul.bf16.vlgmr.msra.gmra.mxu3 %v219_v60  ;;  %v7522_v55 = vld [vmem:[%s9483_s1 + $0x868] sm:$0xff]  ;;  %v7513_v60 = vld [vmem:[%s9483_s1 + $0x820] sm:$0xff] }
  0xe5   :  { %4759 = vmatpush.bf16.msrb.mxu3 %v7508_v56  ;;  %v7530_v56 = vld [vmem:[%s9483_s1 + $0x8a8] sm:$0xff] }
  0xe6   :  { %4721 = vmatpush.bf16.msrb.mxu0 %v7483_v61  ;;  %v4495_v17 = vpop.f32.mrf.mxu2  ;;  %v4471_v20 = vpop.f32.mrf.mxu0  ;;  %v7521_v61 = vld [vmem:[%s9483_s1 + $0x860] sm:$0xff] }
  0xe7   :  { %4734 = vmatpush.bf16.msrb.mxu1 %v7491_v62  ;;  %v4496_v18 = vadd.f32 %v4495_v17, %v4483_v12  ;;  %v4508_v19 = vpop.f32.mrf.mxu3  ;;  %v4484_v24 = vpop.f32.mrf.mxu1  ;;  %v7519_v12 = vld [vmem:[%s9483_s1 + $0x850] sm:$0xff]  ;;  %v7518_v17 = vld [vmem:[%s9483_s1 + $0x848] sm:$0xff] }
  0xe8   :  { %4747 = vmatpush.bf16.msrb.mxu2 %v7499_v63  ;;  %v7529_v63 = vld [vmem:[%s9483_s1 + $0x8a0] sm:$0xff]  ;;  %v7534_v20 = vld [vmem:[%s9483_s1 + $0x8c8] sm:$0xff] }
  0xe9   :  { %4760 = vmatpush.bf16.msrb.mxu3 %v7507_v0  ;;  %v8627_v21 = vadd.f32 %v4508_v19, %v4496_v18  ;;  %v7537_v0 = vld [vmem:[%s9483_s1 + $0x8e0] sm:$0xff]  ;;  %v24_v18 = vld [vmem:[%s9482_s0 + $0x48] sm:$0xff] }
  0xea   :  { %4722 = vmatpush.bf16.msrb.mxu0 %v7482_v1  ;;  %v7526_v19 = vld [vmem:[%s9483_s1 + $0x888] sm:$0xff]  ;;  %89 = vst [vmem:[#allocation1 + $0x20] ss:$4 sm:$0xff] %v24_v18  ;;  %v7517_v24 = vld [vmem:[%s9483_s1 + $0x840] sm:$0xff] }
  0xeb   :  { %4735 = vmatpush.bf16.msrb.mxu1 %v7490_v2  ;;  %v7512_v2 = vld [vmem:[%s9483_s1 + $0x818] sm:$0xff] }
  0xec   :  { %4748 = vmatpush.bf16.msrb.mxu2 %v7498_v3  ;;  %v7520_v3 = vld [vmem:[%s9483_s1 + $0x858] sm:$0xff] }
  0xed   :  { %4761 = vmatpush.bf16.msrb.mxu3 %v7506_v4  ;;  %v7528_v4 = vld [vmem:[%s9483_s1 + $0x898] sm:$0xff] }
  0xee   :  { %4723 = vmatpush.bf16.msrb.mxu0 %v7481_v7  ;;  %v4497_v32 = vpop.f32.mrf.mxu2 }
  0xef   :  { %4736 = vmatpush.bf16.msrb.mxu1 %v7489_v8  ;;  %v4510_v33 = vpop.f32.mrf.mxu3  ;;  %v93_v32 = vld.sshfl [vmem:[#allocation1 + $0x18] sm:$0xff pattern:$0x73625140] }
  0xf0   :  { %4749 = vmatpush.bf16.msrb.mxu2 %v7497_v10  ;;  %v7564_v33 = vld [vmem:[%s9483_s1 + $0x9b8] sm:$0xff] }
  0xf1   :  { %4762 = vmatpush.bf16.msrb.mxu3 %v7505_v11  ;;  %v7511_v11 = vld [vmem:[%s9483_s1 + $0x810] sm:$0xff]  ;;  %v94_v18 = vld.sshfl [vmem:[#allocation1 + $0x20] sm:$0xff pattern:$0x73625140] }
  0xf2   :  { %4724 = vmatpush.bf16.msrb.mxu0 %v7480_v13 }
  0xf3   :  { %4737 = vmatpush.bf16.msrb.mxu1 %v7488_v14  ;;  %v7527_v14 = vld [vmem:[%s9483_s1 + $0x890] sm:$0xff] }
  0xf4   :  { %4750 = vmatpush.bf16.msrb.mxu2 %v7496_v15  ;;  %v7535_v15 = vld [vmem:[%s9483_s1 + $0x8d0] sm:$0xff] }
  0xf5   :  { %4763 = vmatpush.bf16.msrb.mxu3 %v7504_v16  ;;  %v7510_v16 = vld [vmem:[%s9483_s1 + $0x808] sm:$0xff] }
  0xf6   :  { %4725 = vmatpush.bf16.msrb.mxu0 %v7479_v22 }
  0xf7   :  { %4738 = vmatpush.bf16.msrb.mxu1 %v7487_v23  ;;  %v7509_v23 = vld [vmem:[%s9483_s1 + $0x800] sm:$0xff] }
  0xf8   :  { %4751 = vmatpush.bf16.msrb.mxu2 %v7495_v25  ;;  %v7525_v25 = vld [vmem:[%s9483_s1 + $0x880] sm:$0xff] }
  0xf9   :  { %4764 = vmatpush.bf16.msrb.mxu3 %v7503_v26  ;;  %v7533_v26 = vld [vmem:[%s9483_s1 + $0x8c0] sm:$0xff] }
  0xfa   :  { %4726 = vmatpush.bf16.msrb.mxu0 %v7478_v27  ;;  %v7548_v27 = vld [vmem:[%s9483_s1 + $0x938] sm:$0xff] }
  0xfb   :  { %4739 = vmatpush.bf16.msrb.mxu1 %v7486_v28  ;;  %v7556_v28 = vld [vmem:[%s9483_s1 + $0x978] sm:$0xff] }
  0xfc   :  { %4752 = vmatpush.bf16.msrb.mxu2 %v7494_v30  ;;  %v92_v30 = vld.sshfl [vmem:[#allocation1 + $0x10] sm:$0xff pattern:$0x73625140] }
  0xfd   :  { %4765 = vmatpush.bf16.msrb.mxu3 %v7502_v31  ;;  %v91_v31 = vld.sshfl [vmem:[#allocation1 + $0x8] sm:$0xff pattern:$0x73625140] }
  0xfe   :  { %4727 = vmatpush.bf16.msrb.mxu0 %v7477_v34  ;;  %v4521_v58 = vpop.f32.mrf.mxu0  ;;  %v7572_v34 = vld [vmem:[%s9483_s1 + $0x9f8] sm:$0xff] }
  0xff   :  { %4740 = vmatpush.bf16.msrb.mxu1 %v7485_v35  ;;  %v4522_v59 = vadd.f32 %v4521_v58, %v8627_v21  ;;  %v4534_v62 = vpop.f32.mrf.mxu1  ;;  %v224_v35 = vpack.c.bf16 %v90_v29, %v90_v29  ;;  %v7568_v58 = vld [vmem:[%s9483_s1 + $0x9d8] sm:$0xff]  ;;  %v7587_v29 = vld [vmem:[%s9483_s1 + $0xa70] sm:$0xff] }
 0x100   :  { %4753 = vmatpush.bf16.msrb.mxu2 %v7493_v36  ;;  %v226_v36 = vpack.c.bf16 %v92_v30, %v92_v30  ;;  %v7595_v30 = vld [vmem:[%s9483_s1 + $0xab0] sm:$0xff] }
 0x101   :  { %4766 = vmatpush.bf16.msrb.mxu3 %v7501_v37  ;;  %4728 = vmatmul.bf16.vlgmr.msrb.gmra.mxu0 %v220_v46  ;;  %v4535_v1 = vadd.f32 %v4534_v62, %v4522_v59  ;;  %v225_v37 = vpack.c.bf16 %v91_v31, %v91_v31  ;;  %v7570_v46 = vld [vmem:[%s9483_s1 + $0x9e8] sm:$0xff]  ;;  %v7603_v31 = vld [vmem:[%s9483_s1 + $0xaf0] sm:$0xff] }
 0x102   :  { %4772 = vmatpush.bf16.msra.mxu0 %v7516_v38  ;;  %4741 = vmatmul.bf16.vlgmr.msrb.gmra.mxu1 %v221_v48  ;;  %v227_v38 = vpack.c.bf16 %v93_v32, %v93_v32  ;;  %v7578_v32 = vld [vmem:[%s9483_s1 + $0xa28] sm:$0xff] }
 0x103   :  { %4785 = vmatpush.bf16.msra.mxu1 %v7524_v39  ;;  %4754 = vmatmul.bf16.vlgmr.msrb.gmra.mxu2 %v222_v47  ;;  %v7547_v39 = vld [vmem:[%s9483_s1 + $0x930] sm:$0xff] }
 0x104   :  { %4798 = vmatpush.bf16.msra.mxu2 %v7532_v44  ;;  %4767 = vmatmul.bf16.vlgmr.msrb.gmra.mxu3 %v223_v49  ;;  %v7554_v44 = vld [vmem:[%s9483_s1 + $0x968] sm:$0xff]  ;;  %v7545_v49 = vld [vmem:[%s9483_s1 + $0x920] sm:$0xff] }
 0x105   :  { %4811 = vmatpush.bf16.msra.mxu3 %v7540_v45  ;;  %v7562_v45 = vld [vmem:[%s9483_s1 + $0x9a8] sm:$0xff] }
 0x106   :  { %4773 = vmatpush.bf16.msra.mxu0 %v7515_v50  ;;  %v4547_v6 = vpop.f32.mrf.mxu2  ;;  %v4523_v9 = vpop.f32.mrf.mxu0  ;;  %v7553_v50 = vld [vmem:[%s9483_s1 + $0x960] sm:$0xff] }
 0x107   :  { %4786 = vmatpush.bf16.msra.mxu1 %v7523_v51  ;;  %v4548_v7 = vadd.f32 %v4547_v6, %v4535_v1  ;;  %v4560_v8 = vpop.f32.mrf.mxu3  ;;  %v4536_v13 = vpop.f32.mrf.mxu1  ;;  %v7551_v1 = vld [vmem:[%s9483_s1 + $0x950] sm:$0xff]  ;;  %v7550_v6 = vld [vmem:[%s9483_s1 + $0x948] sm:$0xff] }
 0x108   :  { %4799 = vmatpush.bf16.msra.mxu2 %v7531_v52  ;;  %v7561_v52 = vld [vmem:[%s9483_s1 + $0x9a0] sm:$0xff]  ;;  %v7566_v9 = vld [vmem:[%s9483_s1 + $0x9c8] sm:$0xff] }
 0x109   :  { %4812 = vmatpush.bf16.msra.mxu3 %v7539_v53  ;;  %v8729_v10 = vadd.f32 %v4560_v8, %v4548_v7  ;;  %v7569_v53 = vld [vmem:[%s9483_s1 + $0x9e0] sm:$0xff]  ;;  %v25_v7 = vld [vmem:[%s9482_s0 + $0x50] sm:$0xff]  ;;  %v7558_v8 = vld [vmem:[%s9483_s1 + $0x988] sm:$0xff] }
 0x10a   :  { %4774 = vmatpush.bf16.msra.mxu0 %v7514_v54  ;;  %98 = vst [vmem:[#allocation1] ss:$4 sm:$0xff] %v25_v7  ;;  %v7549_v13 = vld [vmem:[%s9483_s1 + $0x940] sm:$0xff] }
 0x10b   :  { %4787 = vmatpush.bf16.msra.mxu1 %v7522_v55  ;;  %v7544_v55 = vld [vmem:[%s9483_s1 + $0x918] sm:$0xff] }
 0x10c   :  { %4800 = vmatpush.bf16.msra.mxu2 %v7530_v56  ;;  %v7552_v56 = vld [vmem:[%s9483_s1 + $0x958] sm:$0xff] }
 0x10d   :  { %4813 = vmatpush.bf16.msra.mxu3 %v7538_v57  ;;  %v7560_v57 = vld [vmem:[%s9483_s1 + $0x998] sm:$0xff] }
 0x10e   :  { %4775 = vmatpush.bf16.msra.mxu0 %v7513_v60  ;;  %v4549_v21 = vpop.f32.mrf.mxu2 }
 0x10f   :  { %4788 = vmatpush.bf16.msra.mxu1 %v7521_v61  ;;  %v4562_v22 = vpop.f32.mrf.mxu3  ;;  %v97_v21 = vld.sshfl [vmem:[#allocation1 + $0x38] sm:$0xff pattern:$0x73625140] }
 0x110   :  { %4801 = vmatpush.bf16.msra.mxu2 %v7529_v63  ;;  %v7596_v22 = vld [vmem:[%s9483_s1 + $0xab8] sm:$0xff] }
 0x111   :  { %4814 = vmatpush.bf16.msra.mxu3 %v7537_v0  ;;  %v7543_v0 = vld [vmem:[%s9483_s1 + $0x910] sm:$0xff]  ;;  %v100_v7 = vld.sshfl [vmem:[#allocation1] sm:$0xff pattern:$0x73625140] }
 0x112   :  { %4776 = vmatpush.bf16.msra.mxu0 %v7512_v2 }
 0x113   :  { %4789 = vmatpush.bf16.msra.mxu1 %v7520_v3  ;;  %v7559_v3 = vld [vmem:[%s9483_s1 + $0x990] sm:$0xff] }
 0x114   :  { %4802 = vmatpush.bf16.msra.mxu2 %v7528_v4  ;;  %v7567_v4 = vld [vmem:[%s9483_s1 + $0x9d0] sm:$0xff] }
 0x115   :  { %4815 = vmatpush.bf16.msra.mxu3 %v7536_v5  ;;  %v7542_v5 = vld [vmem:[%s9483_s1 + $0x908] sm:$0xff] }
 0x116   :  { %4777 = vmatpush.bf16.msra.mxu0 %v7511_v11 }
 0x117   :  { %4790 = vmatpush.bf16.msra.mxu1 %v7519_v12  ;;  %v7541_v12 = vld [vmem:[%s9483_s1 + $0x900] sm:$0xff] }
 0x118   :  { %4803 = vmatpush.bf16.msra.mxu2 %v7527_v14  ;;  %v7557_v14 = vld [vmem:[%s9483_s1 + $0x980] sm:$0xff] }
 0x119   :  { %4816 = vmatpush.bf16.msra.mxu3 %v7535_v15  ;;  %v7565_v15 = vld [vmem:[%s9483_s1 + $0x9c0] sm:$0xff] }
 0x11a   :  { %4778 = vmatpush.bf16.msra.mxu0 %v7510_v16  ;;  %v7580_v16 = vld [vmem:[%s9483_s1 + $0xa38] sm:$0xff] }
 0x11b   :  { %4791 = vmatpush.bf16.msra.mxu1 %v7518_v17  ;;  %v7588_v17 = vld [vmem:[%s9483_s1 + $0xa78] sm:$0xff] }
 0x11c   :  { %4804 = vmatpush.bf16.msra.mxu2 %v7526_v19  ;;  %v96_v19 = vld.sshfl [vmem:[#allocation1 + $0x30] sm:$0xff pattern:$0x73625140] }
 0x11d   :  { %4817 = vmatpush.bf16.msra.mxu3 %v7534_v20  ;;  %v95_v20 = vld.sshfl [vmem:[#allocation1 + $0x28] sm:$0xff pattern:$0x73625140] }
 0x11e   :  { %4779 = vmatpush.bf16.msra.mxu0 %v7509_v23  ;;  %v4573_v47 = vpop.f32.mrf.mxu0  ;;  %v7604_v23 = vld [vmem:[%s9483_s1 + $0xaf8] sm:$0xff] }
 0x11f   :  { %4792 = vmatpush.bf16.msra.mxu1 %v7517_v24  ;;  %v4574_v48 = vadd.f32 %v4573_v47, %v8729_v10  ;;  %v4586_v51 = vpop.f32.mrf.mxu1  ;;  %v228_v24 = vpack.c.bf16 %v94_v18, %v94_v18  ;;  %v7600_v47 = vld [vmem:[%s9483_s1 + $0xad8] sm:$0xff]  ;;  %v7619_v18 = vld [vmem:[%s9483_s1 + $0xb70] sm:$0xff] }
 0x120   :  { %4805 = vmatpush.bf16.msra.mxu2 %v7525_v25  ;;  %v230_v25 = vpack.c.bf16 %v96_v19, %v96_v19  ;;  %v7627_v19 = vld [vmem:[%s9483_s1 + $0xbb0] sm:$0xff] }
 0x121   :  { %4818 = vmatpush.bf16.msra.mxu3 %v7533_v26  ;;  %4780 = vmatmul.bf16.vlgmr.msra.gmra.mxu0 %v224_v35  ;;  %v4587_v54 = vadd.f32 %v4586_v51, %v4574_v48  ;;  %v229_v26 = vpack.c.bf16 %v95_v20, %v95_v20  ;;  %v7602_v35 = vld [vmem:[%s9483_s1 + $0xae8] sm:$0xff]  ;;  %v7635_v20 = vld [vmem:[%s9483_s1 + $0xbf0] sm:$0xff] }
 0x122   :  { %4824 = vmatpush.bf16.msrb.mxu0 %v7548_v27  ;;  %4793 = vmatmul.bf16.vlgmr.msra.gmra.mxu1 %v225_v37  ;;  %v231_v27 = vpack.c.bf16 %v97_v21, %v97_v21  ;;  %v7610_v21 = vld [vmem:[%s9483_s1 + $0xb28] sm:$0xff] }
 0x123   :  { %4837 = vmatpush.bf16.msrb.mxu1 %v7556_v28  ;;  %4806 = vmatmul.bf16.vlgmr.msra.gmra.mxu2 %v226_v36  ;;  %v7579_v28 = vld [vmem:[%s9483_s1 + $0xa30] sm:$0xff] }
 0x124   :  { %4850 = vmatpush.bf16.msrb.mxu2 %v7564_v33  ;;  %4819 = vmatmul.bf16.vlgmr.msra.gmra.mxu3 %v227_v38  ;;  %v7586_v33 = vld [vmem:[%s9483_s1 + $0xa68] sm:$0xff]  ;;  %v7577_v38 = vld [vmem:[%s9483_s1 + $0xa20] sm:$0xff] }
 0x125   :  { %4863 = vmatpush.bf16.msrb.mxu3 %v7572_v34  ;;  %v7594_v34 = vld [vmem:[%s9483_s1 + $0xaa8] sm:$0xff] }
 0x126   :  { %4825 = vmatpush.bf16.msrb.mxu0 %v7547_v39  ;;  %v4599_v59 = vpop.f32.mrf.mxu2  ;;  %v4575_v62 = vpop.f32.mrf.mxu0  ;;  %v7585_v39 = vld [vmem:[%s9483_s1 + $0xa60] sm:$0xff] }
 0x127   :  { %4838 = vmatpush.bf16.msrb.mxu1 %v7555_v40  ;;  %v4600_v60 = vadd.f32 %v4599_v59, %v4587_v54  ;;  %v4612_v61 = vpop.f32.mrf.mxu3  ;;  %v4588_v2 = vpop.f32.mrf.mxu1  ;;  %v7583_v54 = vld [vmem:[%s9483_s1 + $0xa50] sm:$0xff]  ;;  %v7582_v59 = vld [vmem:[%s9483_s1 + $0xa48] sm:$0xff] }
 0x128   :  { %4851 = vmatpush.bf16.msrb.mxu2 %v7563_v41  ;;  %v7593_v41 = vld [vmem:[%s9483_s1 + $0xaa0] sm:$0xff]  ;;  %v7598_v62 = vld [vmem:[%s9483_s1 + $0xac8] sm:$0xff] }
 0x129   :  { %4864 = vmatpush.bf16.msrb.mxu3 %v7571_v42  ;;  %v8831_v63 = vadd.f32 %v4612_v61, %v4600_v60  ;;  %v7601_v42 = vld [vmem:[%s9483_s1 + $0xae0] sm:$0xff]  ;;  %v26_v60 = vld [vmem:[%s9482_s0 + $0x58] sm:$0xff]  ;;  %v7590_v61 = vld [vmem:[%s9483_s1 + $0xa88] sm:$0xff] }
 0x12a   :  { %4826 = vmatpush.bf16.msrb.mxu0 %v7546_v43  ;;  %99 = vst [vmem:[#allocation1 + $0x20] ss:$4 sm:$0xff] %v26_v60  ;;  %v7581_v2 = vld [vmem:[%s9483_s1 + $0xa40] sm:$0xff] }
 0x12b   :  { %4839 = vmatpush.bf16.msrb.mxu1 %v7554_v44  ;;  %v7576_v44 = vld [vmem:[%s9483_s1 + $0xa18] sm:$0xff] }
 0x12c   :  { %4852 = vmatpush.bf16.msrb.mxu2 %v7562_v45  ;;  %v7584_v45 = vld [vmem:[%s9483_s1 + $0xa58] sm:$0xff] }
 0x12d   :  { %4865 = vmatpush.bf16.msrb.mxu3 %v7570_v46  ;;  %v7592_v46 = vld [vmem:[%s9483_s1 + $0xa98] sm:$0xff] }
 0x12e   :  { %4827 = vmatpush.bf16.msrb.mxu0 %v7545_v49  ;;  %v4601_v10 = vpop.f32.mrf.mxu2 }
 0x12f   :  { %4840 = vmatpush.bf16.msrb.mxu1 %v7553_v50  ;;  %v4614_v11 = vpop.f32.mrf.mxu3  ;;  %v103_v10 = vld.sshfl [vmem:[#allocation1 + $0x18] sm:$0xff pattern:$0x73625140] }
 0x130   :  { %4853 = vmatpush.bf16.msrb.mxu2 %v7561_v52  ;;  %v7628_v11 = vld [vmem:[%s9483_s1 + $0xbb8] sm:$0xff] }
 0x131   :  { %4866 = vmatpush.bf16.msrb.mxu3 %v7569_v53  ;;  %v7575_v53 = vld [vmem:[%s9483_s1 + $0xa10] sm:$0xff]  ;;  %v104_v60 = vld.sshfl [vmem:[#allocation1 + $0x20] sm:$0xff pattern:$0x73625140] }
 0x132   :  { %4828 = vmatpush.bf16.msrb.mxu0 %v7544_v55 }
 0x133   :  { %4841 = vmatpush.bf16.msrb.mxu1 %v7552_v56  ;;  %v7591_v56 = vld [vmem:[%s9483_s1 + $0xa90] sm:$0xff] }
 0x134   :  { %4854 = vmatpush.bf16.msrb.mxu2 %v7560_v57  ;;  %v7599_v57 = vld [vmem:[%s9483_s1 + $0xad0] sm:$0xff] }
 0x135   :  { %4867 = vmatpush.bf16.msrb.mxu3 %v7568_v58  ;;  %v7574_v58 = vld [vmem:[%s9483_s1 + $0xa08] sm:$0xff] }
 0x136   :  { %4829 = vmatpush.bf16.msrb.mxu0 %v7543_v0 }
 0x137   :  { %4842 = vmatpush.bf16.msrb.mxu1 %v7551_v1  ;;  %v7573_v1 = vld [vmem:[%s9483_s1 + $0xa00] sm:$0xff] }
 0x138   :  { %4855 = vmatpush.bf16.msrb.mxu2 %v7559_v3  ;;  %v7589_v3 = vld [vmem:[%s9483_s1 + $0xa80] sm:$0xff] }
 0x139   :  { %4868 = vmatpush.bf16.msrb.mxu3 %v7567_v4  ;;  %v7597_v4 = vld [vmem:[%s9483_s1 + $0xac0] sm:$0xff] }
 0x13a   :  { %4830 = vmatpush.bf16.msrb.mxu0 %v7542_v5  ;;  %v7612_v5 = vld [vmem:[%s9483_s1 + $0xb38] sm:$0xff] }
 0x13b   :  { %4843 = vmatpush.bf16.msrb.mxu1 %v7550_v6  ;;  %v7620_v6 = vld [vmem:[%s9483_s1 + $0xb78] sm:$0xff] }
 0x13c   :  { %4856 = vmatpush.bf16.msrb.mxu2 %v7558_v8  ;;  %v102_v8 = vld.sshfl [vmem:[#allocation1 + $0x10] sm:$0xff pattern:$0x73625140] }
 0x13d   :  { %4869 = vmatpush.bf16.msrb.mxu3 %v7566_v9  ;;  %v101_v9 = vld.sshfl [vmem:[#allocation1 + $0x8] sm:$0xff pattern:$0x73625140] }
 0x13e   :  { %4831 = vmatpush.bf16.msrb.mxu0 %v7541_v12  ;;  %v4625_v36 = vpop.f32.mrf.mxu0  ;;  %v7636_v12 = vld [vmem:[%s9483_s1 + $0xbf8] sm:$0xff] }
 0x13f   :  { %4844 = vmatpush.bf16.msrb.mxu1 %v7549_v13  ;;  %v4626_v37 = vadd.f32 %v4625_v36, %v8831_v63  ;;  %v4638_v40 = vpop.f32.mrf.mxu1  ;;  %v232_v13 = vpack.c.bf16 %v100_v7, %v100_v7  ;;  %v7632_v36 = vld [vmem:[%s9483_s1 + $0xbd8] sm:$0xff]  ;;  %v7651_v7 = vld [vmem:[%s9483_s1 + $0xc70] sm:$0xff] }
 0x140   :  { %4857 = vmatpush.bf16.msrb.mxu2 %v7557_v14  ;;  %v234_v14 = vpack.c.bf16 %v102_v8, %v102_v8  ;;  %v7659_v8 = vld [vmem:[%s9483_s1 + $0xcb0] sm:$0xff] }
 0x141   :  { %4870 = vmatpush.bf16.msrb.mxu3 %v7565_v15  ;;  %4832 = vmatmul.bf16.vlgmr.msrb.gmra.mxu0 %v228_v24  ;;  %v4639_v43 = vadd.f32 %v4638_v40, %v4626_v37  ;;  %v233_v15 = vpack.c.bf16 %v101_v9, %v101_v9  ;;  %v7634_v24 = vld [vmem:[%s9483_s1 + $0xbe8] sm:$0xff]  ;;  %v7667_v9 = vld [vmem:[%s9483_s1 + $0xcf0] sm:$0xff] }
 0x142   :  { %4876 = vmatpush.bf16.msra.mxu0 %v7580_v16  ;;  %4845 = vmatmul.bf16.vlgmr.msrb.gmra.mxu1 %v229_v26  ;;  %v235_v16 = vpack.c.bf16 %v103_v10, %v103_v10  ;;  %v7642_v10 = vld [vmem:[%s9483_s1 + $0xc28] sm:$0xff] }
 0x143   :  { %4889 = vmatpush.bf16.msra.mxu1 %v7588_v17  ;;  %4858 = vmatmul.bf16.vlgmr.msrb.gmra.mxu2 %v230_v25  ;;  %v7611_v17 = vld [vmem:[%s9483_s1 + $0xb30] sm:$0xff] }
 0x144   :  { %4902 = vmatpush.bf16.msra.mxu2 %v7596_v22  ;;  %4871 = vmatmul.bf16.vlgmr.msrb.gmra.mxu3 %v231_v27  ;;  %v7618_v22 = vld [vmem:[%s9483_s1 + $0xb68] sm:$0xff]  ;;  %v7609_v27 = vld [vmem:[%s9483_s1 + $0xb20] sm:$0xff] }
 0x145   :  { %4915 = vmatpush.bf16.msra.mxu3 %v7604_v23  ;;  %v7626_v23 = vld [vmem:[%s9483_s1 + $0xba8] sm:$0xff] }
 0x146   :  { %4877 = vmatpush.bf16.msra.mxu0 %v7579_v28  ;;  %v4651_v48 = vpop.f32.mrf.mxu2  ;;  %v4627_v51 = vpop.f32.mrf.mxu0  ;;  %v7617_v28 = vld [vmem:[%s9483_s1 + $0xb60] sm:$0xff] }
 0x147   :  { %4890 = vmatpush.bf16.msra.mxu1 %v7587_v29  ;;  %v4652_v49 = vadd.f32 %v4651_v48, %v4639_v43  ;;  %v4664_v50 = vpop.f32.mrf.mxu3  ;;  %v4640_v55 = vpop.f32.mrf.mxu1  ;;  %v7615_v43 = vld [vmem:[%s9483_s1 + $0xb50] sm:$0xff]  ;;  %v7614_v48 = vld [vmem:[%s9483_s1 + $0xb48] sm:$0xff] }
 0x148   :  { %4903 = vmatpush.bf16.msra.mxu2 %v7595_v30  ;;  %v7625_v30 = vld [vmem:[%s9483_s1 + $0xba0] sm:$0xff]  ;;  %v7630_v51 = vld [vmem:[%s9483_s1 + $0xbc8] sm:$0xff] }
 0x149   :  { %4916 = vmatpush.bf16.msra.mxu3 %v7603_v31  ;;  %v8933_v52 = vadd.f32 %v4664_v50, %v4652_v49  ;;  %v7633_v31 = vld [vmem:[%s9483_s1 + $0xbe0] sm:$0xff]  ;;  %v7622_v50 = vld [vmem:[%s9483_s1 + $0xb88] sm:$0xff] }
 0x14a   :  { %4878 = vmatpush.bf16.msra.mxu0 %v7578_v32  ;;  %v27_v49 = vld [vmem:[%s9482_s0 + $0x60] sm:$0xff] }
 0x14b   :  { %4891 = vmatpush.bf16.msra.mxu1 %v7586_v33  ;;  %v7608_v33 = vld [vmem:[%s9483_s1 + $0xb18] sm:$0xff]  ;;  %108 = vst [vmem:[#allocation1] ss:$4 sm:$0xff] %v27_v49  ;;  %v7613_v55 = vld [vmem:[%s9483_s1 + $0xb40] sm:$0xff] }
 0x14c   :  { %4904 = vmatpush.bf16.msra.mxu2 %v7594_v34  ;;  %v7616_v34 = vld [vmem:[%s9483_s1 + $0xb58] sm:$0xff] }
 0x14d   :  { %4917 = vmatpush.bf16.msra.mxu3 %v7602_v35  ;;  %v7624_v35 = vld [vmem:[%s9483_s1 + $0xb98] sm:$0xff] }
 0x14e   :  { %4879 = vmatpush.bf16.msra.mxu0 %v7577_v38  ;;  %v4653_v63 = vpop.f32.mrf.mxu2 }
 0x14f   :  { %4892 = vmatpush.bf16.msra.mxu1 %v7585_v39  ;;  %v4666_v0 = vpop.f32.mrf.mxu3  ;;  %v107_v63 = vld.sshfl [vmem:[#allocation1 + $0x38] sm:$0xff pattern:$0x73625140] }
 0x150   :  { %4905 = vmatpush.bf16.msra.mxu2 %v7593_v41  ;;  %v7660_v0 = vld [vmem:[%s9483_s1 + $0xcb8] sm:$0xff] }
 0x151   :  { %4918 = vmatpush.bf16.msra.mxu3 %v7601_v42  ;;  %v7607_v42 = vld [vmem:[%s9483_s1 + $0xb10] sm:$0xff] }
 0x152   :  { %4880 = vmatpush.bf16.msra.mxu0 %v7576_v44  ;;  %v110_v49 = vld.sshfl [vmem:[#allocation1] sm:$0xff pattern:$0x73625140] }
 0x153   :  { %4893 = vmatpush.bf16.msra.mxu1 %v7584_v45  ;;  %v7623_v45 = vld [vmem:[%s9483_s1 + $0xb90] sm:$0xff] }
 0x154   :  { %4906 = vmatpush.bf16.msra.mxu2 %v7592_v46  ;;  %v7631_v46 = vld [vmem:[%s9483_s1 + $0xbd0] sm:$0xff] }
 0x155   :  { %4919 = vmatpush.bf16.msra.mxu3 %v7600_v47  ;;  %v7606_v47 = vld [vmem:[%s9483_s1 + $0xb08] sm:$0xff] }
 0x156   :  { %4881 = vmatpush.bf16.msra.mxu0 %v7575_v53 }
 0x157   :  { %4894 = vmatpush.bf16.msra.mxu1 %v7583_v54  ;;  %v7605_v54 = vld [vmem:[%s9483_s1 + $0xb00] sm:$0xff] }
 0x158   :  { %4907 = vmatpush.bf16.msra.mxu2 %v7591_v56  ;;  %v7621_v56 = vld [vmem:[%s9483_s1 + $0xb80] sm:$0xff] }
 0x159   :  { %4920 = vmatpush.bf16.msra.mxu3 %v7599_v57  ;;  %v7629_v57 = vld [vmem:[%s9483_s1 + $0xbc0] sm:$0xff] }
 0x15a   :  { %4882 = vmatpush.bf16.msra.mxu0 %v7574_v58  ;;  %v7644_v58 = vld [vmem:[%s9483_s1 + $0xc38] sm:$0xff] }
 0x15b   :  { %4895 = vmatpush.bf16.msra.mxu1 %v7582_v59  ;;  %v7652_v59 = vld [vmem:[%s9483_s1 + $0xc78] sm:$0xff] }
 0x15c   :  { %4908 = vmatpush.bf16.msra.mxu2 %v7590_v61  ;;  %v106_v61 = vld.sshfl [vmem:[#allocation1 + $0x30] sm:$0xff pattern:$0x73625140] }
 0x15d   :  { %4921 = vmatpush.bf16.msra.mxu3 %v7598_v62  ;;  %v105_v62 = vld.sshfl [vmem:[#allocation1 + $0x28] sm:$0xff pattern:$0x73625140] }
 0x15e   :  { %4883 = vmatpush.bf16.msra.mxu0 %v7573_v1  ;;  %v4677_v25 = vpop.f32.mrf.mxu0  ;;  %v7668_v1 = vld [vmem:[%s9483_s1 + $0xcf8] sm:$0xff] }
 0x15f   :  { %4896 = vmatpush.bf16.msra.mxu1 %v7581_v2  ;;  %v4678_v26 = vadd.f32 %v4677_v25, %v8933_v52  ;;  %v4690_v29 = vpop.f32.mrf.mxu1  ;;  %v236_v2 = vpack.c.bf16 %v104_v60, %v104_v60  ;;  %v7664_v25 = vld [vmem:[%s9483_s1 + $0xcd8] sm:$0xff]  ;;  %v7683_v60 = vld [vmem:[%s9483_s1 + $0xd70] sm:$0xff] }
 0x160   :  { %4909 = vmatpush.bf16.msra.mxu2 %v7589_v3  ;;  %v238_v3 = vpack.c.bf16 %v106_v61, %v106_v61  ;;  %v7691_v61 = vld [vmem:[%s9483_s1 + $0xdb0] sm:$0xff] }
 0x161   :  { %4922 = vmatpush.bf16.msra.mxu3 %v7597_v4  ;;  %4884 = vmatmul.bf16.vlgmr.msra.gmra.mxu0 %v232_v13  ;;  %v4691_v32 = vadd.f32 %v4690_v29, %v4678_v26  ;;  %v237_v4 = vpack.c.bf16 %v105_v62, %v105_v62  ;;  %v7666_v13 = vld [vmem:[%s9483_s1 + $0xce8] sm:$0xff]  ;;  %v7699_v62 = vld [vmem:[%s9483_s1 + $0xdf0] sm:$0xff] }
 0x162   :  { %4928 = vmatpush.bf16.msrb.mxu0 %v7612_v5  ;;  %4897 = vmatmul.bf16.vlgmr.msra.gmra.mxu1 %v233_v15  ;;  %v239_v5 = vpack.c.bf16 %v107_v63, %v107_v63  ;;  %v7674_v63 = vld [vmem:[%s9483_s1 + $0xd28] sm:$0xff] }
 0x163   :  { %4941 = vmatpush.bf16.msrb.mxu1 %v7620_v6  ;;  %4910 = vmatmul.bf16.vlgmr.msra.gmra.mxu2 %v234_v14  ;;  %v7643_v6 = vld [vmem:[%s9483_s1 + $0xc30] sm:$0xff] }
 0x164   :  { %4954 = vmatpush.bf16.msrb.mxu2 %v7628_v11  ;;  %4923 = vmatmul.bf16.vlgmr.msra.gmra.mxu3 %v235_v16  ;;  %v7650_v11 = vld [vmem:[%s9483_s1 + $0xc68] sm:$0xff]  ;;  %v7641_v16 = vld [vmem:[%s9483_s1 + $0xc20] sm:$0xff] }
 0x165   :  { %4967 = vmatpush.bf16.msrb.mxu3 %v7636_v12  ;;  %v7658_v12 = vld [vmem:[%s9483_s1 + $0xca8] sm:$0xff] }
 0x166   :  { %4929 = vmatpush.bf16.msrb.mxu0 %v7611_v17  ;;  %v4703_v37 = vpop.f32.mrf.mxu2  ;;  %v4679_v40 = vpop.f32.mrf.mxu0  ;;  %v7649_v17 = vld [vmem:[%s9483_s1 + $0xc60] sm:$0xff] }
 0x167   :  { %4942 = vmatpush.bf16.msrb.mxu1 %v7619_v18  ;;  %v4704_v38 = vadd.f32 %v4703_v37, %v4691_v32  ;;  %v4716_v39 = vpop.f32.mrf.mxu3  ;;  %v4692_v44 = vpop.f32.mrf.mxu1  ;;  %v7647_v32 = vld [vmem:[%s9483_s1 + $0xc50] sm:$0xff]  ;;  %v7646_v37 = vld [vmem:[%s9483_s1 + $0xc48] sm:$0xff] }
 0x168   :  { %4955 = vmatpush.bf16.msrb.mxu2 %v7627_v19  ;;  %v7657_v19 = vld [vmem:[%s9483_s1 + $0xca0] sm:$0xff]  ;;  %v7662_v40 = vld [vmem:[%s9483_s1 + $0xcc8] sm:$0xff] }
 0x169   :  { %4968 = vmatpush.bf16.msrb.mxu3 %v7635_v20  ;;  %v9035_v41 = vadd.f32 %v4716_v39, %v4704_v38  ;;  %v7665_v20 = vld [vmem:[%s9483_s1 + $0xce0] sm:$0xff]  ;;  %v28_v38 = vld [vmem:[%s9482_s0 + $0x68] sm:$0xff] }
 0x16a   :  { %4930 = vmatpush.bf16.msrb.mxu0 %v7610_v21  ;;  %v7654_v39 = vld [vmem:[%s9483_s1 + $0xc88] sm:$0xff]  ;;  %109 = vst [vmem:[#allocation1 + $0x20] ss:$4 sm:$0xff] %v28_v38  ;;  %v7645_v44 = vld [vmem:[%s9483_s1 + $0xc40] sm:$0xff] }
 0x16b   :  { %4943 = vmatpush.bf16.msrb.mxu1 %v7618_v22  ;;  %v7640_v22 = vld [vmem:[%s9483_s1 + $0xc18] sm:$0xff] }
 0x16c   :  { %4956 = vmatpush.bf16.msrb.mxu2 %v7626_v23  ;;  %v7648_v23 = vld [vmem:[%s9483_s1 + $0xc58] sm:$0xff] }
 0x16d   :  { %4969 = vmatpush.bf16.msrb.mxu3 %v7634_v24  ;;  %v7656_v24 = vld [vmem:[%s9483_s1 + $0xc98] sm:$0xff] }
 0x16e   :  { %4931 = vmatpush.bf16.msrb.mxu0 %v7609_v27  ;;  %v4705_v52 = vpop.f32.mrf.mxu2 }
 0x16f   :  { %4944 = vmatpush.bf16.msrb.mxu1 %v7617_v28  ;;  %v4718_v53 = vpop.f32.mrf.mxu3  ;;  %v113_v52 = vld.sshfl [vmem:[#allocation1 + $0x18] sm:$0xff pattern:$0x73625140] }
 0x170   :  { %4957 = vmatpush.bf16.msrb.mxu2 %v7625_v30  ;;  %v7692_v53 = vld [vmem:[%s9483_s1 + $0xdb8] sm:$0xff] }
 0x171   :  { %4970 = vmatpush.bf16.msrb.mxu3 %v7633_v31  ;;  %v7639_v31 = vld [vmem:[%s9483_s1 + $0xc10] sm:$0xff]  ;;  %v114_v38 = vld.sshfl [vmem:[#allocation1 + $0x20] sm:$0xff pattern:$0x73625140] }
 0x172   :  { %4932 = vmatpush.bf16.msrb.mxu0 %v7608_v33 }
 0x173   :  { %4945 = vmatpush.bf16.msrb.mxu1 %v7616_v34  ;;  %v7655_v34 = vld [vmem:[%s9483_s1 + $0xc90] sm:$0xff] }
 0x174   :  { %4958 = vmatpush.bf16.msrb.mxu2 %v7624_v35  ;;  %v7663_v35 = vld [vmem:[%s9483_s1 + $0xcd0] sm:$0xff] }
 0x175   :  { %4971 = vmatpush.bf16.msrb.mxu3 %v7632_v36  ;;  %v7638_v36 = vld [vmem:[%s9483_s1 + $0xc08] sm:$0xff] }
 0x176   :  { %4933 = vmatpush.bf16.msrb.mxu0 %v7607_v42 }
 0x177   :  { %4946 = vmatpush.bf16.msrb.mxu1 %v7615_v43  ;;  %v7637_v43 = vld [vmem:[%s9483_s1 + $0xc00] sm:$0xff] }
 0x178   :  { %4959 = vmatpush.bf16.msrb.mxu2 %v7623_v45  ;;  %v7653_v45 = vld [vmem:[%s9483_s1 + $0xc80] sm:$0xff] }
 0x179   :  { %4972 = vmatpush.bf16.msrb.mxu3 %v7631_v46  ;;  %v7661_v46 = vld [vmem:[%s9483_s1 + $0xcc0] sm:$0xff] }
 0x17a   :  { %4934 = vmatpush.bf16.msrb.mxu0 %v7606_v47  ;;  %v7676_v47 = vld [vmem:[%s9483_s1 + $0xd38] sm:$0xff] }
 0x17b   :  { %4947 = vmatpush.bf16.msrb.mxu1 %v7614_v48  ;;  %v7684_v48 = vld [vmem:[%s9483_s1 + $0xd78] sm:$0xff] }
 0x17c   :  { %4960 = vmatpush.bf16.msrb.mxu2 %v7622_v50  ;;  %v112_v50 = vld.sshfl [vmem:[#allocation1 + $0x10] sm:$0xff pattern:$0x73625140] }
 0x17d   :  { %4973 = vmatpush.bf16.msrb.mxu3 %v7630_v51  ;;  %v111_v51 = vld.sshfl [vmem:[#allocation1 + $0x8] sm:$0xff pattern:$0x73625140] }
 0x17e   :  { %4935 = vmatpush.bf16.msrb.mxu0 %v7605_v54  ;;  %v4729_v14 = vpop.f32.mrf.mxu0  ;;  %v7700_v54 = vld [vmem:[%s9483_s1 + $0xdf8] sm:$0xff] }
 0x17f   :  { %4948 = vmatpush.bf16.msrb.mxu1 %v7613_v55  ;;  %v4730_v15 = vadd.f32 %v4729_v14, %v9035_v41  ;;  %v4742_v18 = vpop.f32.mrf.mxu1  ;;  %v240_v55 = vpack.c.bf16 %v110_v49, %v110_v49  ;;  %v7696_v14 = vld [vmem:[%s9483_s1 + $0xdd8] sm:$0xff]  ;;  %v7715_v49 = vld [vmem:[%s9483_s1 + $0xe70] sm:$0xff] }
 0x180   :  { %4961 = vmatpush.bf16.msrb.mxu2 %v7621_v56  ;;  %v242_v56 = vpack.c.bf16 %v112_v50, %v112_v50  ;;  %v7723_v50 = vld [vmem:[%s9483_s1 + $0xeb0] sm:$0xff] }
 0x181   :  { %4974 = vmatpush.bf16.msrb.mxu3 %v7629_v57  ;;  %4936 = vmatmul.bf16.vlgmr.msrb.gmra.mxu0 %v236_v2  ;;  %v4743_v21 = vadd.f32 %v4742_v18, %v4730_v15  ;;  %v241_v57 = vpack.c.bf16 %v111_v51, %v111_v51  ;;  %v7698_v2 = vld [vmem:[%s9483_s1 + $0xde8] sm:$0xff]  ;;  %v7731_v51 = vld [vmem:[%s9483_s1 + $0xef0] sm:$0xff] }
 0x182   :  { %4980 = vmatpush.bf16.msra.mxu0 %v7644_v58  ;;  %4949 = vmatmul.bf16.vlgmr.msrb.gmra.mxu1 %v237_v4  ;;  %v243_v58 = vpack.c.bf16 %v113_v52, %v113_v52  ;;  %v7706_v52 = vld [vmem:[%s9483_s1 + $0xe28] sm:$0xff] }
 0x183   :  { %4993 = vmatpush.bf16.msra.mxu1 %v7652_v59  ;;  %4962 = vmatmul.bf16.vlgmr.msrb.gmra.mxu2 %v238_v3  ;;  %v7675_v59 = vld [vmem:[%s9483_s1 + $0xd30] sm:$0xff] }
 0x184   :  { %5006 = vmatpush.bf16.msra.mxu2 %v7660_v0  ;;  %4975 = vmatmul.bf16.vlgmr.msrb.gmra.mxu3 %v239_v5  ;;  %v7682_v0 = vld [vmem:[%s9483_s1 + $0xd68] sm:$0xff]  ;;  %v7673_v5 = vld [vmem:[%s9483_s1 + $0xd20] sm:$0xff] }
 0x185   :  { %5019 = vmatpush.bf16.msra.mxu3 %v7668_v1  ;;  %v7690_v1 = vld [vmem:[%s9483_s1 + $0xda8] sm:$0xff] }
 0x186   :  { %4981 = vmatpush.bf16.msra.mxu0 %v7643_v6  ;;  %v4755_v26 = vpop.f32.mrf.mxu2  ;;  %v4731_v29 = vpop.f32.mrf.mxu0  ;;  %v7681_v6 = vld [vmem:[%s9483_s1 + $0xd60] sm:$0xff] }
 0x187   :  { %4994 = vmatpush.bf16.msra.mxu1 %v7651_v7  ;;  %v4756_v27 = vadd.f32 %v4755_v26, %v4743_v21  ;;  %v4768_v28 = vpop.f32.mrf.mxu3  ;;  %v4744_v33 = vpop.f32.mrf.mxu1  ;;  %v7679_v21 = vld [vmem:[%s9483_s1 + $0xd50] sm:$0xff]  ;;  %v7678_v26 = vld [vmem:[%s9483_s1 + $0xd48] sm:$0xff] }
 0x188   :  { %5007 = vmatpush.bf16.msra.mxu2 %v7659_v8  ;;  %v7689_v8 = vld [vmem:[%s9483_s1 + $0xda0] sm:$0xff]  ;;  %v7694_v29 = vld [vmem:[%s9483_s1 + $0xdc8] sm:$0xff] }
 0x189   :  { %5020 = vmatpush.bf16.msra.mxu3 %v7667_v9  ;;  %v9137_v30 = vadd.f32 %v4768_v28, %v4756_v27  ;;  %v7697_v9 = vld [vmem:[%s9483_s1 + $0xde0] sm:$0xff]  ;;  %v29_v27 = vld [vmem:[%s9482_s0 + $0x70] sm:$0xff]  ;;  %v7686_v28 = vld [vmem:[%s9483_s1 + $0xd88] sm:$0xff] }
 0x18a   :  { %4982 = vmatpush.bf16.msra.mxu0 %v7642_v10  ;;  %118 = vst [vmem:[#allocation1] ss:$4 sm:$0xff] %v29_v27  ;;  %v7677_v33 = vld [vmem:[%s9483_s1 + $0xd40] sm:$0xff] }
 0x18b   :  { %4995 = vmatpush.bf16.msra.mxu1 %v7650_v11  ;;  %v7672_v11 = vld [vmem:[%s9483_s1 + $0xd18] sm:$0xff] }
 0x18c   :  { %5008 = vmatpush.bf16.msra.mxu2 %v7658_v12  ;;  %v7680_v12 = vld [vmem:[%s9483_s1 + $0xd58] sm:$0xff] }
 0x18d   :  { %5021 = vmatpush.bf16.msra.mxu3 %v7666_v13  ;;  %v7688_v13 = vld [vmem:[%s9483_s1 + $0xd98] sm:$0xff] }
 0x18e   :  { %4983 = vmatpush.bf16.msra.mxu0 %v7641_v16  ;;  %v4757_v41 = vpop.f32.mrf.mxu2 }
 0x18f   :  { %4996 = vmatpush.bf16.msra.mxu1 %v7649_v17  ;;  %v4770_v42 = vpop.f32.mrf.mxu3  ;;  %v117_v41 = vld.sshfl [vmem:[#allocation1 + $0x38] sm:$0xff pattern:$0x73625140] }
 0x190   :  { %5009 = vmatpush.bf16.msra.mxu2 %v7657_v19  ;;  %v7724_v42 = vld [vmem:[%s9483_s1 + $0xeb8] sm:$0xff] }
 0x191   :  { %5022 = vmatpush.bf16.msra.mxu3 %v7665_v20  ;;  %v7671_v20 = vld [vmem:[%s9483_s1 + $0xd10] sm:$0xff]  ;;  %v120_v27 = vld.sshfl [vmem:[#allocation1] sm:$0xff pattern:$0x73625140] }
 0x192   :  { %4984 = vmatpush.bf16.msra.mxu0 %v7640_v22 }
 0x193   :  { %4997 = vmatpush.bf16.msra.mxu1 %v7648_v23  ;;  %v7687_v23 = vld [vmem:[%s9483_s1 + $0xd90] sm:$0xff] }
 0x194   :  { %5010 = vmatpush.bf16.msra.mxu2 %v7656_v24  ;;  %v7695_v24 = vld [vmem:[%s9483_s1 + $0xdd0] sm:$0xff] }
 0x195   :  { %5023 = vmatpush.bf16.msra.mxu3 %v7664_v25  ;;  %v7670_v25 = vld [vmem:[%s9483_s1 + $0xd08] sm:$0xff] }
 0x196   :  { %4985 = vmatpush.bf16.msra.mxu0 %v7639_v31 }
 0x197   :  { %4998 = vmatpush.bf16.msra.mxu1 %v7647_v32  ;;  %v7669_v32 = vld [vmem:[%s9483_s1 + $0xd00] sm:$0xff] }
 0x198   :  { %5011 = vmatpush.bf16.msra.mxu2 %v7655_v34  ;;  %v7685_v34 = vld [vmem:[%s9483_s1 + $0xd80] sm:$0xff] }
 0x199   :  { %5024 = vmatpush.bf16.msra.mxu3 %v7663_v35  ;;  %v7693_v35 = vld [vmem:[%s9483_s1 + $0xdc0] sm:$0xff] }
 0x19a   :  { %4986 = vmatpush.bf16.msra.mxu0 %v7638_v36  ;;  %v7708_v36 = vld [vmem:[%s9483_s1 + $0xe38] sm:$0xff] }
 0x19b   :  { %4999 = vmatpush.bf16.msra.mxu1 %v7646_v37  ;;  %v7716_v37 = vld [vmem:[%s9483_s1 + $0xe78] sm:$0xff] }
 0x19c   :  { %5012 = vmatpush.bf16.msra.mxu2 %v7654_v39  ;;  %v116_v39 = vld.sshfl [vmem:[#allocation1 + $0x30] sm:$0xff pattern:$0x73625140] }
 0x19d   :  { %5025 = vmatpush.bf16.msra.mxu3 %v7662_v40  ;;  %v115_v40 = vld.sshfl [vmem:[#allocation1 + $0x28] sm:$0xff pattern:$0x73625140] }
 0x19e   :  { %4987 = vmatpush.bf16.msra.mxu0 %v7637_v43  ;;  %v4781_v3 = vpop.f32.mrf.mxu0  ;;  %v7732_v43 = vld [vmem:[%s9483_s1 + $0xef8] sm:$0xff] }
 0x19f   :  { %5000 = vmatpush.bf16.msra.mxu1 %v7645_v44  ;;  %v4782_v4 = vadd.f32 %v4781_v3, %v9137_v30  ;;  %v4794_v7 = vpop.f32.mrf.mxu1  ;;  %v244_v44 = vpack.c.bf16 %v114_v38, %v114_v38  ;;  %v7728_v3 = vld [vmem:[%s9483_s1 + $0xed8] sm:$0xff]  ;;  %v7747_v38 = vld [vmem:[%s9483_s1 + $0xf70] sm:$0xff] }
 0x1a0   :  { %5013 = vmatpush.bf16.msra.mxu2 %v7653_v45  ;;  %v246_v45 = vpack.c.bf16 %v116_v39, %v116_v39  ;;  %v7755_v39 = vld [vmem:[%s9483_s1 + $0xfb0] sm:$0xff] }
 0x1a1   :  { %5026 = vmatpush.bf16.msra.mxu3 %v7661_v46  ;;  %4988 = vmatmul.bf16.vlgmr.msra.gmra.mxu0 %v240_v55  ;;  %v4795_v10 = vadd.f32 %v4794_v7, %v4782_v4  ;;  %v245_v46 = vpack.c.bf16 %v115_v40, %v115_v40  ;;  %v7730_v55 = vld [vmem:[%s9483_s1 + $0xee8] sm:$0xff]  ;;  %v7763_v40 = vld [vmem:[%s9483_s1 + $0xff0] sm:$0xff] }
 0x1a2   :  { %5032 = vmatpush.bf16.msrb.mxu0 %v7676_v47  ;;  %5001 = vmatmul.bf16.vlgmr.msra.gmra.mxu1 %v241_v57  ;;  %v247_v47 = vpack.c.bf16 %v117_v41, %v117_v41  ;;  %v7738_v41 = vld [vmem:[%s9483_s1 + $0xf28] sm:$0xff] }
 0x1a3   :  { %5045 = vmatpush.bf16.msrb.mxu1 %v7684_v48  ;;  %5014 = vmatmul.bf16.vlgmr.msra.gmra.mxu2 %v242_v56  ;;  %v7707_v48 = vld [vmem:[%s9483_s1 + $0xe30] sm:$0xff] }
 0x1a4   :  { %5058 = vmatpush.bf16.msrb.mxu2 %v7692_v53  ;;  %5027 = vmatmul.bf16.vlgmr.msra.gmra.mxu3 %v243_v58  ;;  %v7714_v53 = vld [vmem:[%s9483_s1 + $0xe68] sm:$0xff]  ;;  %v7705_v58 = vld [vmem:[%s9483_s1 + $0xe20] sm:$0xff] }
 0x1a5   :  { %5071 = vmatpush.bf16.msrb.mxu3 %v7700_v54  ;;  %v7722_v54 = vld [vmem:[%s9483_s1 + $0xea8] sm:$0xff] }
 0x1a6   :  { %5033 = vmatpush.bf16.msrb.mxu0 %v7675_v59  ;;  %v4807_v15 = vpop.f32.mrf.mxu2  ;;  %v4783_v18 = vpop.f32.mrf.mxu0  ;;  %v7713_v59 = vld [vmem:[%s9483_s1 + $0xe60] sm:$0xff] }
 0x1a7   :  { %5046 = vmatpush.bf16.msrb.mxu1 %v7683_v60  ;;  %v4808_v16 = vadd.f32 %v4807_v15, %v4795_v10  ;;  %v4820_v17 = vpop.f32.mrf.mxu3  ;;  %v4796_v22 = vpop.f32.mrf.mxu1  ;;  %v7711_v10 = vld [vmem:[%s9483_s1 + $0xe50] sm:$0xff]  ;;  %v7702_v15 = vld [vmem:[%s9483_s1 + $0xe08] sm:$0xff] }
 0x1a8   :  { %5059 = vmatpush.bf16.msrb.mxu2 %v7691_v61  ;;  %v7721_v61 = vld [vmem:[%s9483_s1 + $0xea0] sm:$0xff]  ;;  %v7726_v18 = vld [vmem:[%s9483_s1 + $0xec8] sm:$0xff] }
 0x1a9   :  { %5072 = vmatpush.bf16.msrb.mxu3 %v7699_v62  ;;  %v9239_v19 = vadd.f32 %v4820_v17, %v4808_v16  ;;  %v7729_v62 = vld [vmem:[%s9483_s1 + $0xee0] sm:$0xff]  ;;  %v7710_v16 = vld [vmem:[%s9483_s1 + $0xe48] sm:$0xff] }
 0x1aa   :  { %5034 = vmatpush.bf16.msrb.mxu0 %v7674_v63  ;;  %v7718_v17 = vld [vmem:[%s9483_s1 + $0xe88] sm:$0xff]  ;;  %v7709_v22 = vld [vmem:[%s9483_s1 + $0xe40] sm:$0xff] }
 0x1ab   :  { %5047 = vmatpush.bf16.msrb.mxu1 %v7682_v0  ;;  %v7704_v0 = vld [vmem:[%s9483_s1 + $0xe18] sm:$0xff] }
 0x1ac   :  { %5060 = vmatpush.bf16.msrb.mxu2 %v7690_v1  ;;  %v7712_v1 = vld [vmem:[%s9483_s1 + $0xe58] sm:$0xff] }
 0x1ad   :  { %5073 = vmatpush.bf16.msrb.mxu3 %v7698_v2  ;;  %v7720_v2 = vld [vmem:[%s9483_s1 + $0xe98] sm:$0xff] }
 0x1ae   :  { %5035 = vmatpush.bf16.msrb.mxu0 %v7673_v5  ;;  %v4809_v30 = vpop.f32.mrf.mxu2 }
 0x1af   :  { %5048 = vmatpush.bf16.msrb.mxu1 %v7681_v6  ;;  %v4822_v31 = vpop.f32.mrf.mxu3  ;;  %v123_v30 = vld.sshfl [vmem:[#allocation1 + $0x18] sm:$0xff pattern:$0x73625140] }
 0x1b0   :  { %5061 = vmatpush.bf16.msrb.mxu2 %v7689_v8  ;;  %v7756_v31 = vld [vmem:[%s9483_s1 + $0xfb8] sm:$0xff] }
 0x1b1   :  { %5074 = vmatpush.bf16.msrb.mxu3 %v7697_v9  ;;  %v7703_v9 = vld [vmem:[%s9483_s1 + $0xe10] sm:$0xff] }
 0x1b2   :  { %5036 = vmatpush.bf16.msrb.mxu0 %v7672_v11 }
 0x1b3   :  { %5049 = vmatpush.bf16.msrb.mxu1 %v7680_v12  ;;  %v7719_v12 = vld [vmem:[%s9483_s1 + $0xe90] sm:$0xff] }
 0x1b4   :  { %5062 = vmatpush.bf16.msrb.mxu2 %v7688_v13  ;;  %v7727_v13 = vld [vmem:[%s9483_s1 + $0xed0] sm:$0xff] }
 0x1b5   :  { %5075 = vmatpush.bf16.msrb.mxu3 %v7696_v14  ;;  %v30_v14 = vld [vmem:[%s9482_s0 + $0x78] sm:$0xff] }
 0x1b6   :  { %5037 = vmatpush.bf16.msrb.mxu0 %v7671_v20  ;;  %119 = vst [vmem:[#allocation1 + $0x20] ss:$4 sm:$0xff] %v30_v14 }
 0x1b7   :  { %5050 = vmatpush.bf16.msrb.mxu1 %v7679_v21  ;;  %v7701_v21 = vld [vmem:[%s9483_s1 + $0xe00] sm:$0xff] }
 0x1b8   :  { %5063 = vmatpush.bf16.msrb.mxu2 %v7687_v23  ;;  %v7717_v23 = vld [vmem:[%s9483_s1 + $0xe80] sm:$0xff] }
 0x1b9   :  { %5076 = vmatpush.bf16.msrb.mxu3 %v7695_v24  ;;  %v7725_v24 = vld [vmem:[%s9483_s1 + $0xec0] sm:$0xff] }
 0x1ba   :  { %5038 = vmatpush.bf16.msrb.mxu0 %v7670_v25  ;;  %v7740_v25 = vld [vmem:[%s9483_s1 + $0xf38] sm:$0xff] }
 0x1bb   :  { %5051 = vmatpush.bf16.msrb.mxu1 %v7678_v26  ;;  %v7748_v26 = vld [vmem:[%s9483_s1 + $0xf78] sm:$0xff] }
 0x1bc   :  { %5064 = vmatpush.bf16.msrb.mxu2 %v7686_v28  ;;  %v122_v28 = vld.sshfl [vmem:[#allocation1 + $0x10] sm:$0xff pattern:$0x73625140] }
 0x1bd   :  { %5077 = vmatpush.bf16.msrb.mxu3 %v7694_v29  ;;  %v121_v29 = vld.sshfl [vmem:[#allocation1 + $0x8] sm:$0xff pattern:$0x73625140] }
 0x1be   :  { %5039 = vmatpush.bf16.msrb.mxu0 %v7669_v32  ;;  %v4833_v56 = vpop.f32.mrf.mxu0  ;;  %v7764_v32 = vld [vmem:[%s9483_s1 + $0xff8] sm:$0xff]  ;;  %v125_v14 = vld.sshfl [vmem:[#allocation1 + $0x28] sm:$0xff pattern:$0x73625140] }
 0x1bf   :  { %5052 = vmatpush.bf16.msrb.mxu1 %v7677_v33  ;;  %v4834_v57 = vadd.f32 %v4833_v56, %v9239_v19  ;;  %v4846_v60 = vpop.f32.mrf.mxu1  ;;  %v248_v33 = vpack.c.bf16 %v120_v27, %v120_v27  ;;  %v7760_v56 = vld [vmem:[%s9483_s1 + $0xfd8] sm:$0xff] }
 0x1c0   :  { %5065 = vmatpush.bf16.msrb.mxu2 %v7685_v34  ;;  %v250_v34 = vpack.c.bf16 %v122_v28, %v122_v28 }
 0x1c1   :  { %5078 = vmatpush.bf16.msrb.mxu3 %v7693_v35  ;;  %5040 = vmatmul.bf16.vlgmr.msrb.gmra.mxu0 %v244_v44  ;;  %v4847_v63 = vadd.f32 %v4846_v60, %v4834_v57  ;;  %v249_v35 = vpack.c.bf16 %v121_v29, %v121_v29  ;;  %v7762_v44 = vld [vmem:[%s9483_s1 + $0xfe8] sm:$0xff] }
 0x1c2   :  { %5084 = vmatpush.bf16.msra.mxu0 %v7708_v36  ;;  %5053 = vmatmul.bf16.vlgmr.msrb.gmra.mxu1 %v245_v46  ;;  %v251_v36 = vpack.c.bf16 %v123_v30, %v123_v30 }
 0x1c3   :  { %5097 = vmatpush.bf16.msra.mxu1 %v7716_v37  ;;  %5066 = vmatmul.bf16.vlgmr.msrb.gmra.mxu2 %v246_v45  ;;  %v7739_v37 = vld [vmem:[%s9483_s1 + $0xf30] sm:$0xff] }
 0x1c4   :  { %5110 = vmatpush.bf16.msra.mxu2 %v7724_v42  ;;  %5079 = vmatmul.bf16.vlgmr.msrb.gmra.mxu3 %v247_v47  ;;  %v7746_v42 = vld [vmem:[%s9483_s1 + $0xf68] sm:$0xff]  ;;  %v7737_v47 = vld [vmem:[%s9483_s1 + $0xf20] sm:$0xff] }
 0x1c5   :  { %5123 = vmatpush.bf16.msra.mxu3 %v7732_v43  ;;  %v7754_v43 = vld [vmem:[%s9483_s1 + $0xfa8] sm:$0xff] }
 0x1c6   :  { %5085 = vmatpush.bf16.msra.mxu0 %v7707_v48  ;;  %v4859_v4 = vpop.f32.mrf.mxu2  ;;  %v4835_v7 = vpop.f32.mrf.mxu0  ;;  %v7745_v48 = vld [vmem:[%s9483_s1 + $0xf60] sm:$0xff] }
 0x1c7   :  { %5098 = vmatpush.bf16.msra.mxu1 %v7715_v49  ;;  %v4860_v5 = vadd.f32 %v4859_v4, %v4847_v63  ;;  %v4872_v6 = vpop.f32.mrf.mxu3  ;;  %v4848_v11 = vpop.f32.mrf.mxu1  ;;  %v7743_v63 = vld [vmem:[%s9483_s1 + $0xf50] sm:$0xff]  ;;  %v7742_v4 = vld [vmem:[%s9483_s1 + $0xf48] sm:$0xff] }
 0x1c8   :  { %5111 = vmatpush.bf16.msra.mxu2 %v7723_v50  ;;  %v7753_v50 = vld [vmem:[%s9483_s1 + $0xfa0] sm:$0xff] }
 0x1c9   :  { %5124 = vmatpush.bf16.msra.mxu3 %v7731_v51  ;;  %v9341_v8 = vadd.f32 %v4872_v6, %v4860_v5  ;;  %v7761_v51 = vld [vmem:[%s9483_s1 + $0xfe0] sm:$0xff]  ;;  %v7750_v5 = vld [vmem:[%s9483_s1 + $0xf88] sm:$0xff] }
 0x1ca   :  { %5086 = vmatpush.bf16.msra.mxu0 %v7706_v52  ;;  %v7758_v6 = vld [vmem:[%s9483_s1 + $0xfc8] sm:$0xff]  ;;  %v7749_v11 = vld [vmem:[%s9483_s1 + $0xf80] sm:$0xff] }
 0x1cb   :  { %5099 = vmatpush.bf16.msra.mxu1 %v7714_v53  ;;  %v7736_v53 = vld [vmem:[%s9483_s1 + $0xf18] sm:$0xff] }
 0x1cc   :  { %5112 = vmatpush.bf16.msra.mxu2 %v7722_v54  ;;  %v7744_v54 = vld [vmem:[%s9483_s1 + $0xf58] sm:$0xff] }
 0x1cd   :  { %5125 = vmatpush.bf16.msra.mxu3 %v7730_v55  ;;  %v7752_v55 = vld [vmem:[%s9483_s1 + $0xf98] sm:$0xff] }
 0x1ce   :  { %5087 = vmatpush.bf16.msra.mxu0 %v7705_v58  ;;  %v4861_v19 = vpop.f32.mrf.mxu2 }
 0x1cf   :  { %5100 = vmatpush.bf16.msra.mxu1 %v7713_v59  ;;  %v4874_v20 = vpop.f32.mrf.mxu3 }
 0x1d0   :  { %5113 = vmatpush.bf16.msra.mxu2 %v7721_v61 }
 0x1d1   :  { %5126 = vmatpush.bf16.msra.mxu3 %v7729_v62  ;;  %v7735_v62 = vld [vmem:[%s9483_s1 + $0xf10] sm:$0xff] }
 0x1d2   :  { %5088 = vmatpush.bf16.msra.mxu0 %v7704_v0 }
 0x1d3   :  { %5101 = vmatpush.bf16.msra.mxu1 %v7712_v1  ;;  %v7751_v1 = vld [vmem:[%s9483_s1 + $0xf90] sm:$0xff] }
 0x1d4   :  { %5114 = vmatpush.bf16.msra.mxu2 %v7720_v2  ;;  %v7759_v2 = vld [vmem:[%s9483_s1 + $0xfd0] sm:$0xff] }
 0x1d5   :  { %5127 = vmatpush.bf16.msra.mxu3 %v7728_v3  ;;  %v7734_v3 = vld [vmem:[%s9483_s1 + $0xf08] sm:$0xff] }
 0x1d6   :  { %5089 = vmatpush.bf16.msra.mxu0 %v7703_v9 }
 0x1d7   :  { %5102 = vmatpush.bf16.msra.mxu1 %v7711_v10  ;;  %v7741_v10 = vld [vmem:[%s9483_s1 + $0xf40] sm:$0xff] }
 0x1d8   :  { %5115 = vmatpush.bf16.msra.mxu2 %v7719_v12  ;;  %v7757_v12 = vld [vmem:[%s9483_s1 + $0xfc0] sm:$0xff] }
 0x1d9   :  { %5128 = vmatpush.bf16.msra.mxu3 %v7727_v13  ;;  %v124_v13 = vld.sshfl [vmem:[#allocation1 + $0x20] sm:$0xff pattern:$0x73625140] }
 0x1da   :  { %5090 = vmatpush.bf16.msra.mxu0 %v7702_v15  ;;  %v126_v15 = vld.sshfl [vmem:[#allocation1 + $0x30] sm:$0xff pattern:$0x73625140] }
 0x1db   :  { %5103 = vmatpush.bf16.msra.mxu1 %v7710_v16  ;;  %v127_v16 = vld.sshfl [vmem:[#allocation1 + $0x38] sm:$0xff pattern:$0x73625140]  ;;  %v254_v19 = vpack.c.bf16 %v126_v15, %v126_v15 }
 0x1dc   :  { %5116 = vmatpush.bf16.msra.mxu2 %v7718_v17  ;;  %v252_v17 = vpack.c.bf16 %v124_v13, %v124_v13  ;;  %v255_v20 = vpack.c.bf16 %v127_v16, %v127_v16 }
 0x1dd   :  { %5129 = vmatpush.bf16.msra.mxu3 %v7726_v18  ;;  %v253_v18 = vpack.c.bf16 %v125_v14, %v125_v14 }
 0x1de   :  { %5091 = vmatpush.bf16.msra.mxu0 %v7701_v21  ;;  %v4885_v45 = vpop.f32.mrf.mxu0 }
 0x1df   :  { %5104 = vmatpush.bf16.msra.mxu1 %v7709_v22  ;;  %v4886_v46 = vadd.f32 %v4885_v45, %v9341_v8  ;;  %v4898_v49 = vpop.f32.mrf.mxu1  ;;  %v7733_v8 = vld [vmem:[%s9483_s1 + $0xf00] sm:$0xff]  ;;  %s7793_s1 = smov [#allocation2]  }
 0x1e0   :  { %5117 = vmatpush.bf16.msra.mxu2 %v7717_v23  ;;  %s5194_s16 = sshll.u32 %s7793_s1, 4  ;;  %s5195_s16 = int_to_ptr.vmem [resolvable:$true] %s5194_s16 }
 0x1e1   :  { %5130 = vmatpush.bf16.msra.mxu3 %v7725_v24  ;;  %5092 = vmatmul.bf16.vlgmr.msra.gmra.mxu0 %v248_v33  ;;  %v4899_v52 = vadd.f32 %v4898_v49, %v4886_v46 }
 0x1e2   :  { %5136 = vmatpush.bf16.msrb.mxu0 %v7740_v25  ;;  %5105 = vmatmul.bf16.vlgmr.msra.gmra.mxu1 %v249_v35 }
 0x1e3   :  { %5149 = vmatpush.bf16.msrb.mxu1 %v7748_v26  ;;  %5118 = vmatmul.bf16.vlgmr.msra.gmra.mxu2 %v250_v34 }
 0x1e4   :  { %5162 = vmatpush.bf16.msrb.mxu2 %v7756_v31  ;;  %5131 = vmatmul.bf16.vlgmr.msra.gmra.mxu3 %v251_v36 }
 0x1e5   :  { %5175 = vmatpush.bf16.msrb.mxu3 %v7764_v32 }
 0x1e6   :  { %5137 = vmatpush.bf16.msrb.mxu0 %v7739_v37  ;;  %v4911_v57 = vpop.f32.mrf.mxu2  ;;  %v4887_v60 = vpop.f32.mrf.mxu0 }
 0x1e7   :  { %5150 = vmatpush.bf16.msrb.mxu1 %v7747_v38  ;;  %v4912_v58 = vadd.f32 %v4911_v57, %v4899_v52  ;;  %v4924_v59 = vpop.f32.mrf.mxu3  ;;  %v4900_v0 = vpop.f32.mrf.mxu1 }
 0x1e8   :  { %5163 = vmatpush.bf16.msrb.mxu2 %v7755_v39 }
 0x1e9   :  { %5176 = vmatpush.bf16.msrb.mxu3 %v7763_v40  ;;  %v4925_v61 = vadd.f32 %v4924_v59, %v4912_v58 }
 0x1ea   :  { %5138 = vmatpush.bf16.msrb.mxu0 %v7738_v41 }
 0x1eb   :  { %5151 = vmatpush.bf16.msrb.mxu1 %v7746_v42 }
 0x1ec   :  { %5164 = vmatpush.bf16.msrb.mxu2 %v7754_v43 }
 0x1ed   :  { %5177 = vmatpush.bf16.msrb.mxu3 %v7762_v44 }
 0x1ee   :  { %5139 = vmatpush.bf16.msrb.mxu0 %v7737_v47  ;;  %v4913_v7 = vpop.f32.mrf.mxu2 }
 0x1ef   :  { %5152 = vmatpush.bf16.msrb.mxu1 %v7745_v48  ;;  %v4926_v9 = vpop.f32.mrf.mxu3 }
 0x1f0   :  { %5165 = vmatpush.bf16.msrb.mxu2 %v7753_v50 }
 0x1f1   :  { %5178 = vmatpush.bf16.msrb.mxu3 %v7761_v51 }
 0x1f2   :  { %5140 = vmatpush.bf16.msrb.mxu0 %v7736_v53 }
 0x1f3   :  { %5153 = vmatpush.bf16.msrb.mxu1 %v7744_v54 }
 0x1f4   :  { %5166 = vmatpush.bf16.msrb.mxu2 %v7752_v55 }
 0x1f5   :  { %5179 = vmatpush.bf16.msrb.mxu3 %v7760_v56 }
 0x1f6   :  { %5141 = vmatpush.bf16.msrb.mxu0 %v7735_v62 }
 0x1f7   :  { %5154 = vmatpush.bf16.msrb.mxu1 %v7743_v63 }
 0x1f8   :  { %5167 = vmatpush.bf16.msrb.mxu2 %v7751_v1 }
 0x1f9   :  { %5180 = vmatpush.bf16.msrb.mxu3 %v7759_v2 }
 0x1fa   :  { %5142 = vmatpush.bf16.msrb.mxu0 %v7734_v3 }
 0x1fb   :  { %5155 = vmatpush.bf16.msrb.mxu1 %v7742_v4 }
 0x1fc   :  { %5168 = vmatpush.bf16.msrb.mxu2 %v7750_v5 }
 0x1fd   :  { %5181 = vmatpush.bf16.msrb.mxu3 %v7758_v6 }
 0x1fe   :  { %5143 = vmatpush.bf16.msrb.mxu0 %v7733_v8  ;;  %v4937_v21 = vpop.f32.mrf.mxu0 }
 0x1ff   :  { %5156 = vmatpush.bf16.msrb.mxu1 %v7741_v10  ;;  %v4938_v22 = vadd.f32 %v4937_v21, %v4925_v61  ;;  %v4950_v23 = vpop.f32.mrf.mxu1 }
 0x200   :  { %5169 = vmatpush.bf16.msrb.mxu2 %v7749_v11 }
 0x201   :  { %5182 = vmatpush.bf16.msrb.mxu3 %v7757_v12  ;;  %5144 = vmatmul.bf16.vlgmr.msrb.gmra.mxu0 %v252_v17  ;;  %v4951_v24 = vadd.f32 %v4950_v23, %v4938_v22 }
 0x202   :  { %5157 = vmatmul.bf16.vlgmr.msrb.gmra.mxu1 %v253_v18 }
 0x203   :  { %5170 = vmatmul.bf16.vlgmr.msrb.gmra.mxu2 %v254_v19 }
 0x204   :  { %5183 = vmatmul.bf16.vlgmr.msrb.gmra.mxu3 %v255_v20 }
 0x206   :  { %v4963_v25 = vpop.f32.mrf.mxu2  ;;  %v4939_v28 = vpop.f32.mrf.mxu0 }
 0x207   :  { %v4964_v26 = vadd.f32 %v4963_v25, %v4951_v24  ;;  %v4976_v27 = vpop.f32.mrf.mxu3  ;;  %v4952_v30 = vpop.f32.mrf.mxu1 }
 0x209   :  { %v4977_v29 = vadd.f32 %v4976_v27, %v4964_v26 }
 0x20e   :  { %v4965_v31 = vpop.f32.mrf.mxu2 }
 0x20f   :  { %v4978_v32 = vpop.f32.mrf.mxu3 }
 0x21e   :  { %v4989_v33 = vpop.f32.mrf.mxu0 }
 0x21f   :  { %v4990_v34 = vadd.f32 %v4989_v33, %v4977_v29  ;;  %v5002_v35 = vpop.f32.mrf.mxu1 }
 0x221   :  { %v5003_v36 = vadd.f32 %v5002_v35, %v4990_v34 }
 0x226   :  { %v5015_v37 = vpop.f32.mrf.mxu2  ;;  %v4991_v40 = vpop.f32.mrf.mxu0 }
 0x227   :  { %v5016_v38 = vadd.f32 %v5015_v37, %v5003_v36  ;;  %v5028_v39 = vpop.f32.mrf.mxu3  ;;  %v5004_v42 = vpop.f32.mrf.mxu1 }
 0x229   :  { %v5029_v41 = vadd.f32 %v5028_v39, %v5016_v38 }
 0x22e   :  { %v5017_v43 = vpop.f32.mrf.mxu2 }
 0x22f   :  { %v5030_v44 = vpop.f32.mrf.mxu3 }
 0x23e   :  { %v5041_v45 = vpop.f32.mrf.mxu0 }
 0x23f   :  { %v5054_v46 = vpop.f32.mrf.mxu1  ;;  %v5042_v56 = vadd.f32 %v5041_v45, %v5029_v41 }
 0x241   :  { %v5055_v60 = vadd.f32 %v5054_v46, %v5042_v56 }
 0x246   :  { %v5067_v47 = vpop.f32.mrf.mxu2  ;;  %v5043_v49 = vpop.f32.mrf.mxu0 }
 0x247   :  { %v5080_v48 = vpop.f32.mrf.mxu3  ;;  %v5056_v50 = vpop.f32.mrf.mxu1  ;;  %v5068_v61 = vadd.f32 %v5067_v47, %v5055_v60 }
 0x249   :  { %v5081_v0 = vadd.f32 %v5080_v48, %v5068_v61 }
 0x24e   :  { %v5069_v51 = vpop.f32.mrf.mxu2 }
 0x24f   :  { %v5082_v52 = vpop.f32.mrf.mxu3 }
 0x25e   :  { %v5093_v53 = vpop.f32.mrf.mxu0 }
 0x25f   :  { %v5106_v54 = vpop.f32.mrf.mxu1  ;;  %v5094_v1 = vadd.f32 %v5093_v53, %v5081_v0 }
 0x261   :  { %v5107_v2 = vadd.f32 %v5106_v54, %v5094_v1 }
 0x266   :  { %v5119_v55 = vpop.f32.mrf.mxu2  ;;  %v5095_v58 = vpop.f32.mrf.mxu0 }
 0x267   :  { %v5132_v57 = vpop.f32.mrf.mxu3  ;;  %v5108_v59 = vpop.f32.mrf.mxu1  ;;  %v5120_v3 = vadd.f32 %v5119_v55, %v5107_v2 }
 0x269   :  { %v5133_v4 = vadd.f32 %v5132_v57, %v5120_v3 }
 0x26e   :  { %v5121_v62 = vpop.f32.mrf.mxu2 }
 0x26f   :  { %v5134_v63 = vpop.f32.mrf.mxu3 }
 0x27e   :  { %v5145_v5 = vpop.f32.mrf.mxu0 }
 0x27f   :  { %v5158_v6 = vpop.f32.mrf.mxu1  ;;  %v5146_v7 = vadd.f32 %v5145_v5, %v5133_v4 }
 0x281   :  { %v5159_v8 = vadd.f32 %v5158_v6, %v5146_v7 }
 0x286   :  { %v5171_v9 = vpop.f32.mrf.mxu2  ;;  %v5147_v12 = vpop.f32.mrf.mxu0 }
 0x287   :  { %v5184_v10 = vpop.f32.mrf.mxu3  ;;  %v5172_v11 = vadd.f32 %v5171_v9, %v5159_v8  ;;  %v5160_v13 = vpop.f32.mrf.mxu1 }
 0x289   :  { %v5185_v14 = vadd.f32 %v5184_v10, %v5172_v11 }
 0x28b   :  { %5188 = vst [vmem:[#allocation2] sm:$0x3] %v5185_v14 }
 0x28c   :  { %5199 = dma.vmem_to_hbm [thread:$0]  %s5195_s16, 32, %s5197_s19, [#allocation3]  }
 0x28e   :  { %v5173_v15 = vpop.f32.mrf.mxu2 }
 0x28f   :  { %v5186_v16 = vpop.f32.mrf.mxu3 }
 0x290   :  { %7791 = dma.done.wait [#allocation3], 32  }
 0x291   :  { %7792 = vsyncadd [#allocation3], 4294967264 }
 0x292   :  { %5204 = vsyncpa [#allocation3], 1 }

</bundles_post_ra>
